<compile_context>
chip_gen: v6e
topology: v6e:2x2x1
jax: 0.10.0
libtpu: 0.0.40
codegen_flags: <defaults>
</compile_context>

<pallas_src>
import functools

import numpy as np
import jax
import jax.numpy as jnp
from jax import lax
from jax.experimental import pallas as pl
from jax.experimental.pallas import tpu as pltpu

LN_EPS = 1e-5


def _gelu_tanh(x):
    c = 0.7978845608028654  # sqrt(2/pi)
    return 0.5 * x * (1.0 + jnp.tanh(c * (x + 0.044715 * x * x * x)))


def _mm(m, k, n):
    return 2 * m * k * n


# ---------------------------------------------------------------------------
# pallas_call helper: explicit VMEM specs, compiler params, cost estimate
# ---------------------------------------------------------------------------
def _vmem_spec():
    return pl.BlockSpec(memory_space=pltpu.MemorySpace.VMEM)


def _call(kernel, out_shape, args, *, flops, transcendentals=0, aliases=None):
    multi = isinstance(out_shape, (tuple, list))
    outs = tuple(out_shape) if multi else (out_shape,)
    bytes_accessed = sum(int(np.prod(a.shape)) * 4 for a in args)
    bytes_accessed += sum(int(np.prod(o.shape)) * 4 for o in outs)
    return pl.pallas_call(
        kernel,
        out_shape=out_shape,
        in_specs=[_vmem_spec() for _ in args],
        out_specs=tuple(_vmem_spec() for _ in outs) if multi else _vmem_spec(),
        compiler_params=pltpu.CompilerParams(vmem_limit_bytes=32 * 1024 * 1024),
        cost_estimate=pl.CostEstimate(flops=int(flops),
                                      transcendentals=int(transcendentals),
                                      bytes_accessed=int(bytes_accessed)),
        input_output_aliases=aliases if aliases is not None else {},
    )(*args)


# ---------------------------------------------------------------------------
# Kernel 1: LN1 (per-token segments via averaging matmul) + head-split-folded QKV
# ---------------------------------------------------------------------------
def _s1_front_kernel(eps, x_ref, aseg_ref, g1_ref, b1_ref, wq_ref, wk_ref, wv_ref,
                     xn_ref, q_ref, k_ref, v_ref):
    x = x_ref[...]
    aseg = aseg_ref[...]
    mu = jnp.dot(x, aseg, preferred_element_type=jnp.float32)
    xc = x - mu
    var = jnp.dot(xc * xc, aseg, preferred_element_type=jnp.float32)
    xn = xc * lax.rsqrt(var + eps) * g1_ref[...] + b1_ref[...]
    xn_ref[...] = xn
    q_ref[...] = jnp.dot(xn, wq_ref[...], preferred_element_type=jnp.float32)
    k_ref[...] = jnp.dot(xn, wk_ref[...], preferred_element_type=jnp.float32)
    v_ref[...] = jnp.dot(xn, wv_ref[...], preferred_element_type=jnp.float32)


# ---------------------------------------------------------------------------
# Kernels 2 & 4: batched attention core (scale already folded into Q weights)
# ---------------------------------------------------------------------------
def _attn_kernel(q_ref, k_ref, v_ref, o_ref):
    q = q_ref[...]
    k = k_ref[...]
    v = v_ref[...]
    s = jnp.einsum('bid,bjd->bij', q, k, preferred_element_type=jnp.float32)
    m = jnp.max(s, axis=-1, keepdims=True)
    p = jnp.exp(s - m)
    l = jnp.sum(p, axis=-1, keepdims=True)
    attn = p * pl.reciprocal(l, approx=True)
    o_ref[...] = jnp.einsum('bij,bjd->bid', attn, v, preferred_element_type=jnp.float32)


# ---------------------------------------------------------------------------
# Kernel 3: residual + merged out-proj + LN2 + GEGLU-FF1 + residual + LN3 + QKV2
#           (all per-token ops expressed on the (B, F*D) flat layout via
#            block-diagonal expanded weights -> no in-kernel reshapes)
# ---------------------------------------------------------------------------
def _mid_kernel(eps, xn1_ref, o1_ref, wout_ref, bout_ref, g2_ref, b2_ref,
                w1a_ref, b1a_ref, w1b_ref, b1b_ref, w1c_ref, b1c_ref,
                aseg_ref, g3_ref, b3_ref, wq2_ref, wk2_ref, wv2_ref,
                yn_ref, q2_ref, k2_ref, v2_ref):
    # residual 1: x1 = LN1(x) + to_out(attention)
    x1 = xn1_ref[...] + jnp.dot(o1_ref[...], wout_ref[...],
                                preferred_element_type=jnp.float32) + bout_ref[...]
    # LN2 per 32-wide token segment
    aseg = aseg_ref[...]
    mu = jnp.dot(x1, aseg, preferred_element_type=jnp.float32)
    xc = x1 - mu
    var = jnp.dot(xc * xc, aseg, preferred_element_type=jnp.float32)
    xn2 = xc * lax.rsqrt(var + eps) * g2_ref[...] + b2_ref[...]
    # GEGLU FF1 (two half-width matmuls; dropout == identity)
    ha = jnp.dot(xn2, w1a_ref[...], preferred_element_type=jnp.float32) + b1a_ref[...]
    hb = jnp.dot(xn2, w1b_ref[...], preferred_element_type=jnp.float32) + b1b_ref[...]
    a = ha * _gelu_tanh(hb)
    ff = jnp.dot(a, w1c_ref[...], preferred_element_type=jnp.float32) + b1c_ref[...]
    x2 = xn2 + ff
    # LN3 over the full (F*dim)-wide row  (== torch view(1, B, F*dim) then norm3)
    mu3 = jnp.mean(x2, axis=-1, keepdims=True)
    xc3 = x2 - mu3
    var3 = jnp.mean(xc3 * xc3, axis=-1, keepdims=True)
    yn = xc3 * lax.rsqrt(var3 + eps) * g3_ref[...] + b3_ref[...]
    yn_ref[...] = yn
    q2_ref[...] = jnp.dot(yn, wq2_ref[...], preferred_element_type=jnp.float32)
    k2_ref[...] = jnp.dot(yn, wk2_ref[...], preferred_element_type=jnp.float32)
    v2_ref[...] = jnp.dot(yn, wv2_ref[...], preferred_element_type=jnp.float32)


# ---------------------------------------------------------------------------
# Kernel 5: stage-2 residual + to_out + LN4 + GEGLU-FF2 + residual
# ---------------------------------------------------------------------------
def _s2_post_kernel(eps, yn_ref, o2_ref, wout_ref, bout_ref, g4_ref, b4_ref,
                    w2a_ref, b2a_ref, w2b_ref, b2b_ref, w2c_ref, b2c_ref, out_ref):
    x3 = yn_ref[...] + jnp.dot(o2_ref[...], wout_ref[...],
                               preferred_element_type=jnp.float32) + bout_ref[...]
    mu = jnp.mean(x3, axis=-1, keepdims=True)
    xc = x3 - mu
    var = jnp.mean(xc * xc, axis=-1, keepdims=True)
    xn4 = xc * lax.rsqrt(var + eps) * g4_ref[...] + b4_ref[...]
    ha = jnp.dot(xn4, w2a_ref[...], preferred_element_type=jnp.float32) + b2a_ref[...]
    hb = jnp.dot(xn4, w2b_ref[...], preferred_element_type=jnp.float32) + b2b_ref[...]
    a = ha * _gelu_tanh(hb)
    ff = jnp.dot(a, w2c_ref[...], preferred_element_type=jnp.float32) + b2c_ref[...]
    out_ref[...] = xn4 + ff


# ---------------------------------------------------------------------------
# Parameter preparation (done once, outside the kernels)
# ---------------------------------------------------------------------------
def _expand_split_weight(w, n_tok):
    """Fold torch's permute(0,2,1).reshape(b, heads, n, -1) head split into the weight.

    w: (D, inner) per-token projection.  Returns (n_tok*D, n_tok*inner) so that
    (per-sample flat xn) @ Wexp equals the per-sample [h, token, dh]-ordered flat q'.
    """
    w = np.asarray(w, np.float32)
    d, inner = w.shape
    m = np.arange(n_tok * inner)
    src_col = m // n_tok          # source column i of w
    src_tok = m % n_tok           # source token f
    onehot = (np.arange(n_tok)[:, None] == src_tok[None, :]).astype(np.float32)  # (n_tok, M)
    cols = w[:, src_col]                                                          # (d, M)
    wexp = (onehot[:, None, :] * cols[None, :, :]).reshape(n_tok * d, n_tok * inner)
    return jnp.asarray(wexp)


def prepare_params(p, *, num_features, dim, heads, msa_dim_head, misa_dim_head, mult=4):
    F, D = num_features, dim
    DF = F * D
    inner1 = heads * msa_dim_head
    inner2 = heads * misa_dim_head
    dff1 = D * mult
    dff2 = DF * mult
    f32 = np.float32

    tile_tok = lambda v: jnp.tile(jnp.asarray(v, jnp.float32).reshape(1, -1), (1, F))
    bdiag = lambda w: jnp.asarray(np.kron(np.eye(F, dtype=f32), np.asarray(w, f32)))
    # per-token (width-D segment) averaging matrix for LayerNorm on the (B, F*D) layout
    aseg = jnp.asarray(np.kron(np.eye(F, dtype=f32), np.full((D, D), 1.0 / D, f32)))

    wqkv1 = p['msa_wqkv']
    wq1 = wqkv1[:, :inner1] * (msa_dim_head ** -0.5)   # fold softmax scale into Q
    wk1 = wqkv1[:, inner1:2 * inner1]
    wv1 = wqkv1[:, 2 * inner1:]
    wqkv2 = p['misa_wqkv']

    # TODO(synk): for production sizes store the large (stage-2) weights in bfloat16.
    return {
        'aseg': aseg,
        'g1': tile_tok(p['ln1_g']), 'b1': tile_tok(p['ln1_b']),
        'wq1': _expand_split_weight(wq1, F),
        'wk1': _expand_split_weight(wk1, F),
        'wv1': _expand_split_weight(wv1, F),
        'wout1': bdiag(p['msa_wout']),
        'bout1': tile_tok(p['msa_bout']),
        'g2': tile_tok(p['ln2_g']), 'b2': tile_tok(p['ln2_b']),
        'w1a': bdiag(p['ff1_w1'][:, :dff1]), 'b1a': tile_tok(p['ff1_b1'][:, :dff1]),
        'w1b': bdiag(p['ff1_w1'][:, dff1:]), 'b1b': tile_tok(p['ff1_b1'][:, dff1:]),
        'w1c': bdiag(p['ff1_w2']), 'b1c': tile_tok(p['ff1_b2']),
        'g3': jnp.asarray(p['ln3_g'], jnp.float32), 'b3': jnp.asarray(p['ln3_b'], jnp.float32),
        'wq2': wqkv2[:, :inner2] * (misa_dim_head ** -0.5),
        'wk2': wqkv2[:, inner2:2 * inner2],
        'wv2': wqkv2[:, 2 * inner2:],
        'wout2': p['misa_wout'], 'bout2': p['misa_bout'],
        'g4': p['ln4_g'], 'b4': p['ln4_b'],
        'w2a': p['ff2_w1'][:, :dff2], 'b2a': p['ff2_b1'][:, :dff2],
        'w2b': p['ff2_w1'][:, dff2:], 'b2b': p['ff2_b1'][:, dff2:],
        'w2c': p['ff2_w2'], 'b2c': p['ff2_b2'],
    }


# ---------------------------------------------------------------------------
# Forward: 5 fused pallas_calls; wrapper glue is free contiguous reshapes only
# (plus three (8,512) transposes for the stage-2 intersample head split)
# ---------------------------------------------------------------------------
def saint_forward(kp, x, *, num_features, dim, heads, msa_dim_head, misa_dim_head):
    B, F, D = x.shape
    assert F == num_features and D == dim
    DF = F * D
    inner1 = heads * msa_dim_head
    inner2 = heads * misa_dim_head
    dff1 = D * 4
    dff2 = DF * 4

    x_flat = x.reshape(B, DF).astype(jnp.float32)

    # -- kernel 1: LN1 + head-split-folded QKV projection -----------------------------
    xn1, q1, k1, v1 = _call(
        functools.partial(_s1_front_kernel, LN_EPS),
        (jax.ShapeDtypeStruct((B, DF), jnp.float32),
         jax.ShapeDtypeStruct((B, F * inner1), jnp.float32),
         jax.ShapeDtypeStruct((B, F * inner1), jnp.float32),
         jax.ShapeDtypeStruct((B, F * inner1), jnp.float32)),
        (x_flat, kp['aseg'], kp['g1'], kp['b1'], kp['wq1'], kp['wk1'], kp['wv1']),
        flops=2 * _mm(B, DF, DF) + 3 * _mm(B, DF, F * inner1),
        transcendentals=B * DF)

    # free contiguous reshapes (no transposes): (B, F*inner1) -> (B*heads, F, dh)
    to3d = lambda t: t.reshape(B * heads, F, msa_dim_head)

    # -- kernel 2: MSA attention core --------------------------------------------------
    o1 = _call(_attn_kernel,
               jax.ShapeDtypeStruct((B * heads, F, msa_dim_head), jnp.float32),
               (to3d(q1), to3d(k1), to3d(v1)),
               flops=2 * _mm(B * heads, F * F, msa_dim_head),
               transcendentals=B * heads * F * F)
    o1m = o1.reshape(B, F * inner1)            # merged [h, f, d] flat — free reshape

    # -- kernel 3: residual + out-proj + LN2 + GEGLU-FF1 + residual + LN3 + QKV2 -------
    yn, q2, k2, v2 = _call(
        functools.partial(_mid_kernel, LN_EPS),
        (jax.ShapeDtypeStruct((B, DF), jnp.float32),
         jax.ShapeDtypeStruct((B, inner2), jnp.float32),
         jax.ShapeDtypeStruct((B, inner2), jnp.float32),
         jax.ShapeDtypeStruct((B, inner2), jnp.float32)),
        (xn1, o1m, kp['wout1'], kp['bout1'], kp['g2'], kp['b2'],
         kp['w1a'], kp['b1a'], kp['w1b'], kp['b1b'], kp['w1c'], kp['b1c'],
         kp['aseg'], kp['g3'], kp['b3'], kp['wq2'], kp['wk2'], kp['wv2']),
        flops=(_mm(B, F * inner1, DF) + 2 * _mm(B, DF, DF)
               + 2 * _mm(B, DF, F * dff1) + _mm(B, F * dff1, DF)
               + 3 * _mm(B, DF, inner2)),
        transcendentals=3 * B * DF + B * F * dff1,
        aliases={0: 0})

    # stage-2 head split == transpose + contiguous reshape (tiny (8,512) tensors)
    split2 = lambda t: t.T.reshape(heads, B, misa_dim_head)

    # -- kernel 4: MISA (intersample) attention core ------------------------------------
    o2 = _call(_attn_kernel,
               jax.ShapeDtypeStruct((heads, B, misa_dim_head), jnp.float32),
               (split2(q2), split2(k2), split2(v2)),
               flops=2 * _mm(heads, B * B, misa_dim_head),
               transcendentals=heads * B * B)
    o2m = o2.reshape(B, inner2)                # == torch .view(1, B, heads*dh) — free

    # -- kernel 5: residual + out-proj + LN4 + GEGLU-FF2 + residual ----------------------
    y = _call(
        functools.partial(_s2_post_kernel, LN_EPS),
        jax.ShapeDtypeStruct((B, DF), jnp.float32),
        (yn, o2m, kp['wout2'], kp['bout2'], kp['g4'], kp['b4'],
         kp['w2a'], kp['b2a'], kp['w2b'], kp['b2b'], kp['w2c'], kp['b2c']),
        flops=_mm(B, inner2, DF) + 2 * _mm(B, DF, dff2) + _mm(B, dff2, DF),
        transcendentals=B * DF + B * dff2,
        aliases={0: 0})

    return y.reshape(B, F, D)


# ---------------------------------------------------------------------------
# Parameter init (mimics nn.Linear / nn.LayerNorm default init), weights stored (in, out)
# ---------------------------------------------------------------------------
def _uniform(key, shape, fan_in):
    lim = 1.0 / (fan_in ** 0.5)
    return jax.random.uniform(key, shape, jnp.float32, -lim, lim)


def init_saint_params(key, num_features, dim, heads, msa_dim_head, misa_dim_head, mult=4):
    D, DF = dim, dim * num_features
    inner1, inner2 = heads * msa_dim_head, heads * misa_dim_head
    ks = jax.random.split(key, 14)
    ones = lambda d: jnp.ones((1, d), jnp.float32)
    zeros = lambda d: jnp.zeros((1, d), jnp.float32)
    return {
        'ln1_g': ones(D), 'ln1_b': zeros(D), 'ln2_g': ones(D), 'ln2_b': zeros(D),
        'ln3_g': ones(DF), 'ln3_b': zeros(DF), 'ln4_g': ones(DF), 'ln4_b': zeros(DF),
        'msa_wqkv': _uniform(ks[0], (D, 3 * inner1), D),
        'msa_wout': _uniform(ks[1], (inner1, D), inner1),
        'msa_bout': _uniform(ks[2], (1, D), inner1),
        'ff1_w1': _uniform(ks[3], (D, D * mult * 2), D),
        'ff1_b1': _uniform(ks[4], (1, D * mult * 2), D),
        'ff1_w2': _uniform(ks[5], (D * mult, D), D * mult),
        'ff1_b2': _uniform(ks[6], (1, D), D * mult),
        'misa_wqkv': _uniform(ks[7], (DF, 3 * inner2), DF),
        'misa_wout': _uniform(ks[8], (inner2, DF), inner2),
        'misa_bout': _uniform(ks[9], (1, DF), inner2),
        'ff2_w1': _uniform(ks[10], (DF, DF * mult * 2), DF),
        'ff2_b1': _uniform(ks[11], (1, DF * mult * 2), DF),
        'ff2_w2': _uniform(ks[12], (DF * mult, DF), DF * mult),
        'ff2_b2': _uniform(ks[13], (1, DF), DF * mult),
    }


# ---------------------------------------------------------------------------
# Pure-JAX reference (mirrors the torch module op-for-op, un-expanded params)
# ---------------------------------------------------------------------------
def reference_forward(params, x, *, heads, msa_dim_head, misa_dim_head):
    hp = lax.Precision.HIGHEST

    def ln(t, g, b):
        mu = jnp.mean(t, axis=-1, keepdims=True)
        var = jnp.mean((t - mu) ** 2, axis=-1, keepdims=True)
        return (t - mu) / jnp.sqrt(var + LN_EPS) * g.reshape(-1) + b.reshape(-1)

    def attn(t, wqkv, wout, bout, dh):
        b, n, _ = t.shape
        qkv = jnp.einsum('bnd,de->bne', t, wqkv, precision=hp)
        inner = qkv.shape[-1] // 3
        q, k, v = qkv[..., :inner], qkv[..., inner:2 * inner], qkv[..., 2 * inner:]
        resh = lambda u: jnp.transpose(u, (0, 2, 1)).reshape(b, heads, n, -1)
        q, k, v = resh(q), resh(k), resh(v)
        sim = jnp.einsum('bhid,bhjd->bhij', q, k, precision=hp) * (dh ** -0.5)
        a = jax.nn.softmax(sim, axis=-1)
        out = jnp.einsum('bhij,bhjd->bhid', a, v, precision=hp).reshape(b, n, -1)
        return jnp.einsum('bnd,de->bne', out, wout, precision=hp) + bout.reshape(-1)

    def ff(t, w1, b1, w2, b2):
        h = jnp.einsum('bnd,de->bne', t, w1, precision=hp) + b1.reshape(-1)
        half = h.shape[-1] // 2
        a = h[..., :half] * _gelu_tanh(h[..., half:])
        return jnp.einsum('bnd,de->bne', a, w2, precision=hp) + b2.reshape(-1)

    B, F, D = x.shape
    t = ln(x, params['ln1_g'], params['ln1_b'])
    t = t + attn(t, params['msa_wqkv'], params['msa_wout'], params['msa_bout'], msa_dim_head)
    t = ln(t, params['ln2_g'], params['ln2_b'])
    t = t + ff(t, params['ff1_w1'], params['ff1_b1'], params['ff1_w2'], params['ff1_b2'])
    t = t.reshape(1, B, F * D)
    t = ln(t, params['ln3_g'], params['ln3_b'])
    t = t + attn(t, params['misa_wqkv'], params['misa_wout'], params['misa_bout'], misa_dim_head)
    t = ln(t, params['ln4_g'], params['ln4_b'])
    t = t + ff(t, params['ff2_w1'], params['ff2_b1'], params['ff2_w2'], params['ff2_b2'])
    return t.reshape(B, F, D)


if __name__ == "__main__":
    B, NUM_FEATURES, DIM = 8, 4, 32
    HEADS, MSA_DH, MISA_DH = 8, 16, 64

    key = jax.random.PRNGKey(0)
    k_x, k_p = jax.random.split(key)
    x = jax.random.normal(k_x, (B, NUM_FEATURES, DIM), jnp.float32)
    params = init_saint_params(k_p, NUM_FEATURES, DIM, HEADS, MSA_DH, MISA_DH)
    kparams = prepare_params(params, num_features=NUM_FEATURES, dim=DIM, heads=HEADS,
                             msa_dim_head=MSA_DH, misa_dim_head=MISA_DH)

    fwd = jax.jit(functools.partial(
        saint_forward, num_features=NUM_FEATURES, dim=DIM,
        heads=HEADS, msa_dim_head=MSA_DH, misa_dim_head=MISA_DH))
    out = jax.block_until_ready(fwd(kparams, x))

    ref = jax.block_until_ready(reference_forward(
        params, x, heads=HEADS, msa_dim_head=MSA_DH, misa_dim_head=MISA_DH))

    assert out.shape == (B, NUM_FEATURES, DIM)
    assert bool(jnp.isfinite(out).all())
    max_err = float(jnp.max(jnp.abs(out - ref)))
    # only approximations vs the f32 reference: EUP approx reciprocal in softmax + MXU rounding
    assert jnp.allclose(out, ref, atol=2e-2, rtol=2e-2), max_err
    print("KERNEL_OK")
</pallas_src>

<mosaic_0001>
module attributes {stable_mosaic.version = 11 : i64} {
  func.func @_attn_kernel(%arg0: memref<64x4x16xf32, #tpu.memory_space<vmem>>, %arg1: memref<64x4x16xf32, #tpu.memory_space<vmem>>, %arg2: memref<64x4x16xf32, #tpu.memory_space<vmem>>, %arg3: memref<64x4x16xf32, #tpu.memory_space<vmem>>) attributes {dimension_semantics = [], scalar_prefetch = 0 : i64, scratch_operands = 0 : i64, tpu.core_type = #tpu.core_type<tc>} {
    %c0 = arith.constant 0 : index
    %c0_0 = arith.constant 0 : index
    %c0_1 = arith.constant 0 : index
    %0 = vector.load %arg0[%c0, %c0_0, %c0_1] : memref<64x4x16xf32, #tpu.memory_space<vmem>>, vector<64x4x16xf32>
    %c0_2 = arith.constant 0 : index
    %c0_3 = arith.constant 0 : index
    %c0_4 = arith.constant 0 : index
    %1 = vector.load %arg1[%c0_2, %c0_3, %c0_4] : memref<64x4x16xf32, #tpu.memory_space<vmem>>, vector<64x4x16xf32>
    %c0_5 = arith.constant 0 : index
    %c0_6 = arith.constant 0 : index
    %c0_7 = arith.constant 0 : index
    %2 = vector.load %arg2[%c0_5, %c0_6, %c0_7] : memref<64x4x16xf32, #tpu.memory_space<vmem>>, vector<64x4x16xf32>
    "tpu.trace_start"() <{level = 10 : i32, message = "bid,bjd->bij"}> : () -> ()
    %cst = arith.constant dense<0.000000e+00> : vector<64x4x4xf32>
    %3 = tpu.matmul %0, %1, %cst {dimension_numbers = #tpu.dot_dimension_numbers<[2], [2], [1], [1], [0, 0, 0, 1, 1, 1], [0], [0]>} : vector<64x4x16xf32>, vector<64x4x16xf32>, vector<64x4x4xf32> -> vector<64x4x4xf32>
    "tpu.trace_stop"() : () -> ()
    %cst_8 = arith.constant dense<0xFF800000> : vector<64x4xf32>
    %4 = vector.multi_reduction <maximumf>, %3, %cst_8 [2] : vector<64x4x4xf32> to vector<64x4xf32>
    %5 = vector.shape_cast %4 : vector<64x4xf32> to vector<64x4x1xf32>
    %6 = vector.broadcast %5 : vector<64x4x1xf32> to vector<64x4x4xf32>
    %7 = arith.subf %3, %6 : vector<64x4x4xf32>
    %8 = math.exp %7 : vector<64x4x4xf32>
    %cst_9 = arith.constant dense<0.000000e+00> : vector<64x4xf32>
    %9 = vector.multi_reduction <add>, %8, %cst_9 [2] : vector<64x4x4xf32> to vector<64x4xf32>
    %10 = vector.shape_cast %9 : vector<64x4xf32> to vector<64x4x1xf32>
    %11 = tpu.reciprocal %10 {approx = true} : vector<64x4x1xf32> -> vector<64x4x1xf32>
    %12 = vector.broadcast %11 : vector<64x4x1xf32> to vector<64x4x4xf32>
    %13 = arith.mulf %8, %12 : vector<64x4x4xf32>
    "tpu.trace_start"() <{level = 10 : i32, message = "bij,bjd->bid"}> : () -> ()
    %cst_10 = arith.constant dense<0.000000e+00> : vector<64x4x16xf32>
    %14 = tpu.matmul %13, %2, %cst_10 {dimension_numbers = #tpu.dot_dimension_numbers<[2], [1], [1], [2], [0, 0, 0, 1, 1, 2], [0], [0]>} : vector<64x4x4xf32>, vector<64x4x16xf32>, vector<64x4x16xf32> -> vector<64x4x16xf32>
    "tpu.trace_stop"() : () -> ()
    %c0_11 = arith.constant 0 : index
    %c0_12 = arith.constant 0 : index
    %c0_13 = arith.constant 0 : index
    %15 = vector.load %arg3[%c0_11, %c0_12, %c0_13] : memref<64x4x16xf32, #tpu.memory_space<vmem>>, vector<64x4x16xf32>
    tpu.vector_store %arg3[%c0_11, %c0_12, %c0_13], %14 {strides = array<i32>} : memref<64x4x16xf32, #tpu.memory_space<vmem>>, vector<64x4x16xf32>,
    return
  }
}

module attributes {stable_mosaic.version = 11 : i64} {
  func.func @_s1_front_kernel(%arg0: memref<8x128xf32, #tpu.memory_space<vmem>>, %arg1: memref<128x128xf32, #tpu.memory_space<vmem>>, %arg2: memref<1x128xf32, #tpu.memory_space<vmem>>, %arg3: memref<1x128xf32, #tpu.memory_space<vmem>>, %arg4: memref<128x512xf32, #tpu.memory_space<vmem>>, %arg5: memref<128x512xf32, #tpu.memory_space<vmem>>, %arg6: memref<128x512xf32, #tpu.memory_space<vmem>>, %arg7: memref<8x128xf32, #tpu.memory_space<vmem>>, %arg8: memref<8x512xf32, #tpu.memory_space<vmem>>, %arg9: memref<8x512xf32, #tpu.memory_space<vmem>>, %arg10: memref<8x512xf32, #tpu.memory_space<vmem>>) attributes {dimension_semantics = [], scalar_prefetch = 0 : i64, scratch_operands = 0 : i64, tpu.core_type = #tpu.core_type<tc>} {
    %c0 = arith.constant 0 : index
    %c0_0 = arith.constant 0 : index
    %0 = vector.load %arg0[%c0, %c0_0] : memref<8x128xf32, #tpu.memory_space<vmem>>, vector<8x128xf32>
    %c0_1 = arith.constant 0 : index
    %c0_2 = arith.constant 0 : index
    %1 = vector.load %arg1[%c0_1, %c0_2] : memref<128x128xf32, #tpu.memory_space<vmem>>, vector<128x128xf32>
    %cst = arith.constant dense<0.000000e+00> : vector<8x128xf32>
    %2 = tpu.matmul %0, %1, %cst {dimension_numbers = #tpu.dot_dimension_numbers<[1], [0], [0], [1], [0, 0, 1, 1], [], []>} : vector<8x128xf32>, vector<128x128xf32>, vector<8x128xf32> -> vector<8x128xf32>
    %3 = arith.subf %0, %2 : vector<8x128xf32>
    %4 = arith.mulf %3, %3 : vector<8x128xf32>
    %cst_3 = arith.constant dense<0.000000e+00> : vector<8x128xf32>
    %5 = tpu.matmul %4, %1, %cst_3 {dimension_numbers = #tpu.dot_dimension_numbers<[1], [0], [0], [1], [0, 0, 1, 1], [], []>} : vector<8x128xf32>, vector<128x128xf32>, vector<8x128xf32> -> vector<8x128xf32>
    %cst_4 = arith.constant 9.99999974E-6 : f32
    %6 = vector.broadcast %cst_4 : f32 to vector<8x128xf32>
    %7 = arith.addf %5, %6 : vector<8x128xf32>
    %8 = math.rsqrt %7 : vector<8x128xf32>
    %9 = arith.mulf %3, %8 : vector<8x128xf32>
    %c0_5 = arith.constant 0 : index
    %c0_6 = arith.constant 0 : index
    %10 = vector.load %arg2[%c0_5, %c0_6] : memref<1x128xf32, #tpu.memory_space<vmem>>, vector<1x128xf32>
    %11 = vector.broadcast %10 : vector<1x128xf32> to vector<8x128xf32>
    %12 = arith.mulf %9, %11 : vector<8x128xf32>
    %c0_7 = arith.constant 0 : index
    %c0_8 = arith.constant 0 : index
    %13 = vector.load %arg3[%c0_7, %c0_8] : memref<1x128xf32, #tpu.memory_space<vmem>>, vector<1x128xf32>
    %14 = vector.broadcast %13 : vector<1x128xf32> to vector<8x128xf32>
    %15 = arith.addf %12, %14 : vector<8x128xf32>
    %c0_9 = arith.constant 0 : index
    %c0_10 = arith.constant 0 : index
    %16 = vector.load %arg7[%c0_9, %c0_10] : memref<8x128xf32, #tpu.memory_space<vmem>>, vector<8x128xf32>
    tpu.vector_store %arg7[%c0_9, %c0_10], %15 {strides = array<i32>} : memref<8x128xf32, #tpu.memory_space<vmem>>, vector<8x128xf32>,
    %c0_11 = arith.constant 0 : index
    %c0_12 = arith.constant 0 : index
    %17 = vector.load %arg4[%c0_11, %c0_12] : memref<128x512xf32, #tpu.memory_space<vmem>>, vector<128x512xf32>
    %cst_13 = arith.constant dense<0.000000e+00> : vector<8x512xf32>
    %18 = tpu.matmul %15, %17, %cst_13 {dimension_numbers = #tpu.dot_dimension_numbers<[1], [0], [0], [1], [0, 0, 1, 1], [], []>} : vector<8x128xf32>, vector<128x512xf32>, vector<8x512xf32> -> vector<8x512xf32>
    %c0_14 = arith.constant 0 : index
    %c0_15 = arith.constant 0 : index
    %19 = vector.load %arg8[%c0_14, %c0_15] : memref<8x512xf32, #tpu.memory_space<vmem>>, vector<8x512xf32>
    tpu.vector_store %arg8[%c0_14, %c0_15], %18 {strides = array<i32>} : memref<8x512xf32, #tpu.memory_space<vmem>>, vector<8x512xf32>,
    %c0_16 = arith.constant 0 : index
    %c0_17 = arith.constant 0 : index
    %20 = vector.load %arg5[%c0_16, %c0_17] : memref<128x512xf32, #tpu.memory_space<vmem>>, vector<128x512xf32>
    %cst_18 = arith.constant dense<0.000000e+00> : vector<8x512xf32>
    %21 = tpu.matmul %15, %20, %cst_18 {dimension_numbers = #tpu.dot_dimension_numbers<[1], [0], [0], [1], [0, 0, 1, 1], [], []>} : vector<8x128xf32>, vector<128x512xf32>, vector<8x512xf32> -> vector<8x512xf32>
    %c0_19 = arith.constant 0 : index
    %c0_20 = arith.constant 0 : index
    %22 = vector.load %arg9[%c0_19, %c0_20] : memref<8x512xf32, #tpu.memory_space<vmem>>, vector<8x512xf32>
    tpu.vector_store %arg9[%c0_19, %c0_20], %21 {strides = array<i32>} : memref<8x512xf32, #tpu.memory_space<vmem>>, vector<8x512xf32>,
    %c0_21 = arith.constant 0 : index
    %c0_22 = arith.constant 0 : index
    %23 = vector.load %arg6[%c0_21, %c0_22] : memref<128x512xf32, #tpu.memory_space<vmem>>, vector<128x512xf32>
    %cst_23 = arith.constant dense<0.000000e+00> : vector<8x512xf32>
    %24 = tpu.matmul %15, %23, %cst_23 {dimension_numbers = #tpu.dot_dimension_numbers<[1], [0], [0], [1], [0, 0, 1, 1], [], []>} : vector<8x128xf32>, vector<128x512xf32>, vector<8x512xf32> -> vector<8x512xf32>
    %c0_24 = arith.constant 0 : index
    %c0_25 = arith.constant 0 : index
    %25 = vector.load %arg10[%c0_24, %c0_25] : memref<8x512xf32, #tpu.memory_space<vmem>>, vector<8x512xf32>
    tpu.vector_store %arg10[%c0_24, %c0_25], %24 {strides = array<i32>} : memref<8x512xf32, #tpu.memory_space<vmem>>, vector<8x512xf32>,
    return
  }
}

module attributes {stable_mosaic.version = 11 : i64} {
  func.func @_mid_kernel(%arg0: memref<8x128xf32, #tpu.memory_space<vmem>>, %arg1: memref<8x512xf32, #tpu.memory_space<vmem>>, %arg2: memref<512x128xf32, #tpu.memory_space<vmem>>, %arg3: memref<1x128xf32, #tpu.memory_space<vmem>>, %arg4: memref<1x128xf32, #tpu.memory_space<vmem>>, %arg5: memref<1x128xf32, #tpu.memory_space<vmem>>, %arg6: memref<128x512xf32, #tpu.memory_space<vmem>>, %arg7: memref<1x512xf32, #tpu.memory_space<vmem>>, %arg8: memref<128x512xf32, #tpu.memory_space<vmem>>, %arg9: memref<1x512xf32, #tpu.memory_space<vmem>>, %arg10: memref<512x128xf32, #tpu.memory_space<vmem>>, %arg11: memref<1x128xf32, #tpu.memory_space<vmem>>, %arg12: memref<128x128xf32, #tpu.memory_space<vmem>>, %arg13: memref<1x128xf32, #tpu.memory_space<vmem>>, %arg14: memref<1x128xf32, #tpu.memory_space<vmem>>, %arg15: memref<128x512xf32, #tpu.memory_space<vmem>>, %arg16: memref<128x512xf32, #tpu.memory_space<vmem>>, %arg17: memref<128x512xf32, #tpu.memory_space<vmem>>, %arg18: memref<8x128xf32, #tpu.memory_space<vmem>>, %arg19: memref<8x512xf32, #tpu.memory_space<vmem>>, %arg20: memref<8x512xf32, #tpu.memory_space<vmem>>, %arg21: memref<8x512xf32, #tpu.memory_space<vmem>>) attributes {dimension_semantics = [], scalar_prefetch = 0 : i64, scratch_operands = 0 : i64, tpu.core_type = #tpu.core_type<tc>} {
    %c0 = arith.constant 0 : index
    %c0_0 = arith.constant 0 : index
    %0 = vector.load %arg0[%c0, %c0_0] : memref<8x128xf32, #tpu.memory_space<vmem>>, vector<8x128xf32>
    %c0_1 = arith.constant 0 : index
    %c0_2 = arith.constant 0 : index
    %1 = vector.load %arg1[%c0_1, %c0_2] : memref<8x512xf32, #tpu.memory_space<vmem>>, vector<8x512xf32>
    %c0_3 = arith.constant 0 : index
    %c0_4 = arith.constant 0 : index
    %2 = vector.load %arg2[%c0_3, %c0_4] : memref<512x128xf32, #tpu.memory_space<vmem>>, vector<512x128xf32>
    %cst = arith.constant dense<0.000000e+00> : vector<8x128xf32>
    %3 = tpu.matmul %1, %2, %cst {dimension_numbers = #tpu.dot_dimension_numbers<[1], [0], [0], [1], [0, 0, 1, 1], [], []>} : vector<8x512xf32>, vector<512x128xf32>, vector<8x128xf32> -> vector<8x128xf32>
    %4 = arith.addf %0, %3 : vector<8x128xf32>
    %c0_5 = arith.constant 0 : index
    %c0_6 = arith.constant 0 : index
    %5 = vector.load %arg3[%c0_5, %c0_6] : memref<1x128xf32, #tpu.memory_space<vmem>>, vector<1x128xf32>
    %6 = vector.broadcast %5 : vector<1x128xf32> to vector<8x128xf32>
    %7 = arith.addf %4, %6 : vector<8x128xf32>
    %c0_7 = arith.constant 0 : index
    %c0_8 = arith.constant 0 : index
    %8 = vector.load %arg12[%c0_7, %c0_8] : memref<128x128xf32, #tpu.memory_space<vmem>>, vector<128x128xf32>
    %cst_9 = arith.constant dense<0.000000e+00> : vector<8x128xf32>
    %9 = tpu.matmul %7, %8, %cst_9 {dimension_numbers = #tpu.dot_dimension_numbers<[1], [0], [0], [1], [0, 0, 1, 1], [], []>} : vector<8x128xf32>, vector<128x128xf32>, vector<8x128xf32> -> vector<8x128xf32>
    %10 = arith.subf %7, %9 : vector<8x128xf32>
    %11 = arith.mulf %10, %10 : vector<8x128xf32>
    %cst_10 = arith.constant dense<0.000000e+00> : vector<8x128xf32>
    %12 = tpu.matmul %11, %8, %cst_10 {dimension_numbers = #tpu.dot_dimension_numbers<[1], [0], [0], [1], [0, 0, 1, 1], [], []>} : vector<8x128xf32>, vector<128x128xf32>, vector<8x128xf32> -> vector<8x128xf32>
    %cst_11 = arith.constant 9.99999974E-6 : f32
    %13 = vector.broadcast %cst_11 : f32 to vector<8x128xf32>
    %14 = arith.addf %12, %13 : vector<8x128xf32>
    %15 = math.rsqrt %14 : vector<8x128xf32>
    %16 = arith.mulf %10, %15 : vector<8x128xf32>
    %c0_12 = arith.constant 0 : index
    %c0_13 = arith.constant 0 : index
    %17 = vector.load %arg4[%c0_12, %c0_13] : memref<1x128xf32, #tpu.memory_space<vmem>>, vector<1x128xf32>
    %18 = vector.broadcast %17 : vector<1x128xf32> to vector<8x128xf32>
    %19 = arith.mulf %16, %18 : vector<8x128xf32>
    %c0_14 = arith.constant 0 : index
    %c0_15 = arith.constant 0 : index
    %20 = vector.load %arg5[%c0_14, %c0_15] : memref<1x128xf32, #tpu.memory_space<vmem>>, vector<1x128xf32>
    %21 = vector.broadcast %20 : vector<1x128xf32> to vector<8x128xf32>
    %22 = arith.addf %19, %21 : vector<8x128xf32>
    %c0_16 = arith.constant 0 : index
    %c0_17 = arith.constant 0 : index
    %23 = vector.load %arg6[%c0_16, %c0_17] : memref<128x512xf32, #tpu.memory_space<vmem>>, vector<128x512xf32>
    %cst_18 = arith.constant dense<0.000000e+00> : vector<8x512xf32>
    %24 = tpu.matmul %22, %23, %cst_18 {dimension_numbers = #tpu.dot_dimension_numbers<[1], [0], [0], [1], [0, 0, 1, 1], [], []>} : vector<8x128xf32>, vector<128x512xf32>, vector<8x512xf32> -> vector<8x512xf32>
    %c0_19 = arith.constant 0 : index
    %c0_20 = arith.constant 0 : index
    %25 = vector.load %arg7[%c0_19, %c0_20] : memref<1x512xf32, #tpu.memory_space<vmem>>, vector<1x512xf32>
    %26 = vector.broadcast %25 : vector<1x512xf32> to vector<8x512xf32>
    %27 = arith.addf %24, %26 : vector<8x512xf32>
    %c0_21 = arith.constant 0 : index
    %c0_22 = arith.constant 0 : index
    %28 = vector.load %arg8[%c0_21, %c0_22] : memref<128x512xf32, #tpu.memory_space<vmem>>, vector<128x512xf32>
    %cst_23 = arith.constant dense<0.000000e+00> : vector<8x512xf32>
    %29 = tpu.matmul %22, %28, %cst_23 {dimension_numbers = #tpu.dot_dimension_numbers<[1], [0], [0], [1], [0, 0, 1, 1], [], []>} : vector<8x128xf32>, vector<128x512xf32>, vector<8x512xf32> -> vector<8x512xf32>
    %c0_24 = arith.constant 0 : index
    %c0_25 = arith.constant 0 : index
    %30 = vector.load %arg9[%c0_24, %c0_25] : memref<1x512xf32, #tpu.memory_space<vmem>>, vector<1x512xf32>
    %31 = vector.broadcast %30 : vector<1x512xf32> to vector<8x512xf32>
    %32 = arith.addf %29, %31 : vector<8x512xf32>
    %cst_26 = arith.constant 5.000000e-01 : f32
    %33 = vector.broadcast %cst_26 : f32 to vector<8x512xf32>
    %34 = arith.mulf %33, %32 : vector<8x512xf32>
    %cst_27 = arith.constant 4.471500e-02 : f32
    %35 = vector.broadcast %cst_27 : f32 to vector<8x512xf32>
    %36 = arith.mulf %35, %32 : vector<8x512xf32>
    %37 = arith.mulf %36, %32 : vector<8x512xf32>
    %38 = arith.mulf %37, %32 : vector<8x512xf32>
    %39 = arith.addf %32, %38 : vector<8x512xf32>
    %cst_28 = arith.constant 0.797884583 : f32
    %40 = vector.broadcast %cst_28 : f32 to vector<8x512xf32>
    %41 = arith.mulf %40, %39 : vector<8x512xf32>
    %42 = math.tanh %41 : vector<8x512xf32>
    %cst_29 = arith.constant 1.000000e+00 : f32
    %43 = vector.broadcast %cst_29 : f32 to vector<8x512xf32>
    %44 = arith.addf %43, %42 : vector<8x512xf32>
    %45 = arith.mulf %34, %44 : vector<8x512xf32>
    %46 = arith.mulf %27, %45 : vector<8x512xf32>
    %c0_30 = arith.constant 0 : index
    %c0_31 = arith.constant 0 : index
    %47 = vector.load %arg10[%c0_30, %c0_31] : memref<512x128xf32, #tpu.memory_space<vmem>>, vector<512x128xf32>
    %cst_32 = arith.constant dense<0.000000e+00> : vector<8x128xf32>
    %48 = tpu.matmul %46, %47, %cst_32 {dimension_numbers = #tpu.dot_dimension_numbers<[1], [0], [0], [1], [0, 0, 1, 1], [], []>} : vector<8x512xf32>, vector<512x128xf32>, vector<8x128xf32> -> vector<8x128xf32>
    %c0_33 = arith.constant 0 : index
    %c0_34 = arith.constant 0 : index
    %49 = vector.load %arg11[%c0_33, %c0_34] : memref<1x128xf32, #tpu.memory_space<vmem>>, vector<1x128xf32>
    %50 = vector.broadcast %49 : vector<1x128xf32> to vector<8x128xf32>
    %51 = arith.addf %48, %50 : vector<8x128xf32>
    %52 = arith.addf %22, %51 : vector<8x128xf32>
    %cst_35 = arith.constant dense<0.000000e+00> : vector<8xf32>
    %53 = vector.multi_reduction <add>, %52, %cst_35 [1] : vector<8x128xf32> to vector<8xf32>
    %54 = vector.shape_cast %53 : vector<8xf32> to vector<8x1xf32>
    %cst_36 = arith.constant 1.280000e+02 : f32
    %55 = vector.broadcast %cst_36 : f32 to vector<8x1xf32>
    %56 = arith.divf %54, %55 : vector<8x1xf32>
    %57 = vector.broadcast %56 : vector<8x1xf32> to vector<8x128xf32>
    %58 = arith.subf %52, %57 : vector<8x128xf32>
    %59 = arith.mulf %58, %58 : vector<8x128xf32>
    %cst_37 = arith.constant dense<0.000000e+00> : vector<8xf32>
    %60 = vector.multi_reduction <add>, %59, %cst_37 [1] : vector<8x128xf32> to vector<8xf32>
    %61 = vector.shape_cast %60 : vector<8xf32> to vector<8x1xf32>
    %cst_38 = arith.constant 1.280000e+02 : f32
    %62 = vector.broadcast %cst_38 : f32 to vector<8x1xf32>
    %63 = arith.divf %61, %62 : vector<8x1xf32>
    %cst_39 = arith.constant 9.99999974E-6 : f32
    %64 = vector.broadcast %cst_39 : f32 to vector<8x1xf32>
    %65 = arith.addf %63, %64 : vector<8x1xf32>
    %66 = math.rsqrt %65 : vector<8x1xf32>
    %67 = vector.broadcast %66 : vector<8x1xf32> to vector<8x128xf32>
    %68 = arith.mulf %58, %67 : vector<8x128xf32>
    %c0_40 = arith.constant 0 : index
    %c0_41 = arith.constant 0 : index
    %69 = vector.load %arg13[%c0_40, %c0_41] : memref<1x128xf32, #tpu.memory_space<vmem>>, vector<1x128xf32>
    %70 = vector.broadcast %69 : vector<1x128xf32> to vector<8x128xf32>
    %71 = arith.mulf %68, %70 : vector<8x128xf32>
    %c0_42 = arith.constant 0 : index
    %c0_43 = arith.constant 0 : index
    %72 = vector.load %arg14[%c0_42, %c0_43] : memref<1x128xf32, #tpu.memory_space<vmem>>, vector<1x128xf32>
    %73 = vector.broadcast %72 : vector<1x128xf32> to vector<8x128xf32>
    %74 = arith.addf %71, %73 : vector<8x128xf32>
    %c0_44 = arith.constant 0 : index
    %c0_45 = arith.constant 0 : index
    %75 = vector.load %arg18[%c0_44, %c0_45] : memref<8x128xf32, #tpu.memory_space<vmem>>, vector<8x128xf32>
    tpu.vector_store %arg18[%c0_44, %c0_45], %74 {strides = array<i32>} : memref<8x128xf32, #tpu.memory_space<vmem>>, vector<8x128xf32>,
    %c0_46 = arith.constant 0 : index
    %c0_47 = arith.constant 0 : index
    %76 = vector.load %arg15[%c0_46, %c0_47] : memref<128x512xf32, #tpu.memory_space<vmem>>, vector<128x512xf32>
    %cst_48 = arith.constant dense<0.000000e+00> : vector<8x512xf32>
    %77 = tpu.matmul %74, %76, %cst_48 {dimension_numbers = #tpu.dot_dimension_numbers<[1], [0], [0], [1], [0, 0, 1, 1], [], []>} : vector<8x128xf32>, vector<128x512xf32>, vector<8x512xf32> -> vector<8x512xf32>
    %c0_49 = arith.constant 0 : index
    %c0_50 = arith.constant 0 : index
    %78 = vector.load %arg19[%c0_49, %c0_50] : memref<8x512xf32, #tpu.memory_space<vmem>>, vector<8x512xf32>
    tpu.vector_store %arg19[%c0_49, %c0_50], %77 {strides = array<i32>} : memref<8x512xf32, #tpu.memory_space<vmem>>, vector<8x512xf32>,
    %c0_51 = arith.constant 0 : index
    %c0_52 = arith.constant 0 : index
    %79 = vector.load %arg16[%c0_51, %c0_52] : memref<128x512xf32, #tpu.memory_space<vmem>>, vector<128x512xf32>
    %cst_53 = arith.constant dense<0.000000e+00> : vector<8x512xf32>
    %80 = tpu.matmul %74, %79, %cst_53 {dimension_numbers = #tpu.dot_dimension_numbers<[1], [0], [0], [1], [0, 0, 1, 1], [], []>} : vector<8x128xf32>, vector<128x512xf32>, vector<8x512xf32> -> vector<8x512xf32>
    %c0_54 = arith.constant 0 : index
    %c0_55 = arith.constant 0 : index
    %81 = vector.load %arg20[%c0_54, %c0_55] : memref<8x512xf32, #tpu.memory_space<vmem>>, vector<8x512xf32>
    tpu.vector_store %arg20[%c0_54, %c0_55], %80 {strides = array<i32>} : memref<8x512xf32, #tpu.memory_space<vmem>>, vector<8x512xf32>,
    %c0_56 = arith.constant 0 : index
    %c0_57 = arith.constant 0 : index
    %82 = vector.load %arg17[%c0_56, %c0_57] : memref<128x512xf32, #tpu.memory_space<vmem>>, vector<128x512xf32>
    %cst_58 = arith.constant dense<0.000000e+00> : vector<8x512xf32>
    %83 = tpu.matmul %74, %82, %cst_58 {dimension_numbers = #tpu.dot_dimension_numbers<[1], [0], [0], [1], [0, 0, 1, 1], [], []>} : vector<8x128xf32>, vector<128x512xf32>, vector<8x512xf32> -> vector<8x512xf32>
    %c0_59 = arith.constant 0 : index
    %c0_60 = arith.constant 0 : index
    %84 = vector.load %arg21[%c0_59, %c0_60] : memref<8x512xf32, #tpu.memory_space<vmem>>, vector<8x512xf32>
    tpu.vector_store %arg21[%c0_59, %c0_60], %83 {strides = array<i32>} : memref<8x512xf32, #tpu.memory_space<vmem>>, vector<8x512xf32>,
    return
  }
}

module attributes {stable_mosaic.version = 11 : i64} {
  func.func @_s2_post_kernel(%arg0: memref<8x128xf32, #tpu.memory_space<vmem>>, %arg1: memref<8x512xf32, #tpu.memory_space<vmem>>, %arg2: memref<512x128xf32, #tpu.memory_space<vmem>>, %arg3: memref<1x128xf32, #tpu.memory_space<vmem>>, %arg4: memref<1x128xf32, #tpu.memory_space<vmem>>, %arg5: memref<1x128xf32, #tpu.memory_space<vmem>>, %arg6: memref<128x512xf32, #tpu.memory_space<vmem>>, %arg7: memref<1x512xf32, #tpu.memory_space<vmem>>, %arg8: memref<128x512xf32, #tpu.memory_space<vmem>>, %arg9: memref<1x512xf32, #tpu.memory_space<vmem>>, %arg10: memref<512x128xf32, #tpu.memory_space<vmem>>, %arg11: memref<1x128xf32, #tpu.memory_space<vmem>>, %arg12: memref<8x128xf32, #tpu.memory_space<vmem>>) attributes {dimension_semantics = [], scalar_prefetch = 0 : i64, scratch_operands = 0 : i64, tpu.core_type = #tpu.core_type<tc>} {
    %c0 = arith.constant 0 : index
    %c0_0 = arith.constant 0 : index
    %0 = vector.load %arg0[%c0, %c0_0] : memref<8x128xf32, #tpu.memory_space<vmem>>, vector<8x128xf32>
    %c0_1 = arith.constant 0 : index
    %c0_2 = arith.constant 0 : index
    %1 = vector.load %arg1[%c0_1, %c0_2] : memref<8x512xf32, #tpu.memory_space<vmem>>, vector<8x512xf32>
    %c0_3 = arith.constant 0 : index
    %c0_4 = arith.constant 0 : index
    %2 = vector.load %arg2[%c0_3, %c0_4] : memref<512x128xf32, #tpu.memory_space<vmem>>, vector<512x128xf32>
    %cst = arith.constant dense<0.000000e+00> : vector<8x128xf32>
    %3 = tpu.matmul %1, %2, %cst {dimension_numbers = #tpu.dot_dimension_numbers<[1], [0], [0], [1], [0, 0, 1, 1], [], []>} : vector<8x512xf32>, vector<512x128xf32>, vector<8x128xf32> -> vector<8x128xf32>
    %4 = arith.addf %0, %3 : vector<8x128xf32>
    %c0_5 = arith.constant 0 : index
    %c0_6 = arith.constant 0 : index
    %5 = vector.load %arg3[%c0_5, %c0_6] : memref<1x128xf32, #tpu.memory_space<vmem>>, vector<1x128xf32>
    %6 = vector.broadcast %5 : vector<1x128xf32> to vector<8x128xf32>
    %7 = arith.addf %4, %6 : vector<8x128xf32>
    %cst_7 = arith.constant dense<0.000000e+00> : vector<8xf32>
    %8 = vector.multi_reduction <add>, %7, %cst_7 [1] : vector<8x128xf32> to vector<8xf32>
    %9 = vector.shape_cast %8 : vector<8xf32> to vector<8x1xf32>
    %cst_8 = arith.constant 1.280000e+02 : f32
    %10 = vector.broadcast %cst_8 : f32 to vector<8x1xf32>
    %11 = arith.divf %9, %10 : vector<8x1xf32>
    %12 = vector.broadcast %11 : vector<8x1xf32> to vector<8x128xf32>
    %13 = arith.subf %7, %12 : vector<8x128xf32>
    %14 = arith.mulf %13, %13 : vector<8x128xf32>
    %cst_9 = arith.constant dense<0.000000e+00> : vector<8xf32>
    %15 = vector.multi_reduction <add>, %14, %cst_9 [1] : vector<8x128xf32> to vector<8xf32>
    %16 = vector.shape_cast %15 : vector<8xf32> to vector<8x1xf32>
    %cst_10 = arith.constant 1.280000e+02 : f32
    %17 = vector.broadcast %cst_10 : f32 to vector<8x1xf32>
    %18 = arith.divf %16, %17 : vector<8x1xf32>
    %cst_11 = arith.constant 9.99999974E-6 : f32
    %19 = vector.broadcast %cst_11 : f32 to vector<8x1xf32>
    %20 = arith.addf %18, %19 : vector<8x1xf32>
    %21 = math.rsqrt %20 : vector<8x1xf32>
    %22 = vector.broadcast %21 : vector<8x1xf32> to vector<8x128xf32>
    %23 = arith.mulf %13, %22 : vector<8x128xf32>
    %c0_12 = arith.constant 0 : index
    %c0_13 = arith.constant 0 : index
    %24 = vector.load %arg4[%c0_12, %c0_13] : memref<1x128xf32, #tpu.memory_space<vmem>>, vector<1x128xf32>
    %25 = vector.broadcast %24 : vector<1x128xf32> to vector<8x128xf32>
    %26 = arith.mulf %23, %25 : vector<8x128xf32>
    %c0_14 = arith.constant 0 : index
    %c0_15 = arith.constant 0 : index
    %27 = vector.load %arg5[%c0_14, %c0_15] : memref<1x128xf32, #tpu.memory_space<vmem>>, vector<1x128xf32>
    %28 = vector.broadcast %27 : vector<1x128xf32> to vector<8x128xf32>
    %29 = arith.addf %26, %28 : vector<8x128xf32>
    %c0_16 = arith.constant 0 : index
    %c0_17 = arith.constant 0 : index
    %30 = vector.load %arg6[%c0_16, %c0_17] : memref<128x512xf32, #tpu.memory_space<vmem>>, vector<128x512xf32>
    %cst_18 = arith.constant dense<0.000000e+00> : vector<8x512xf32>
    %31 = tpu.matmul %29, %30, %cst_18 {dimension_numbers = #tpu.dot_dimension_numbers<[1], [0], [0], [1], [0, 0, 1, 1], [], []>} : vector<8x128xf32>, vector<128x512xf32>, vector<8x512xf32> -> vector<8x512xf32>
    %c0_19 = arith.constant 0 : index
    %c0_20 = arith.constant 0 : index
    %32 = vector.load %arg7[%c0_19, %c0_20] : memref<1x512xf32, #tpu.memory_space<vmem>>, vector<1x512xf32>
    %33 = vector.broadcast %32 : vector<1x512xf32> to vector<8x512xf32>
    %34 = arith.addf %31, %33 : vector<8x512xf32>
    %c0_21 = arith.constant 0 : index
    %c0_22 = arith.constant 0 : index
    %35 = vector.load %arg8[%c0_21, %c0_22] : memref<128x512xf32, #tpu.memory_space<vmem>>, vector<128x512xf32>
    %cst_23 = arith.constant dense<0.000000e+00> : vector<8x512xf32>
    %36 = tpu.matmul %29, %35, %cst_23 {dimension_numbers = #tpu.dot_dimension_numbers<[1], [0], [0], [1], [0, 0, 1, 1], [], []>} : vector<8x128xf32>, vector<128x512xf32>, vector<8x512xf32> -> vector<8x512xf32>
    %c0_24 = arith.constant 0 : index
    %c0_25 = arith.constant 0 : index
    %37 = vector.load %arg9[%c0_24, %c0_25] : memref<1x512xf32, #tpu.memory_space<vmem>>, vector<1x512xf32>
    %38 = vector.broadcast %37 : vector<1x512xf32> to vector<8x512xf32>
    %39 = arith.addf %36, %38 : vector<8x512xf32>
    %cst_26 = arith.constant 5.000000e-01 : f32
    %40 = vector.broadcast %cst_26 : f32 to vector<8x512xf32>
    %41 = arith.mulf %40, %39 : vector<8x512xf32>
    %cst_27 = arith.constant 4.471500e-02 : f32
    %42 = vector.broadcast %cst_27 : f32 to vector<8x512xf32>
    %43 = arith.mulf %42, %39 : vector<8x512xf32>
    %44 = arith.mulf %43, %39 : vector<8x512xf32>
    %45 = arith.mulf %44, %39 : vector<8x512xf32>
    %46 = arith.addf %39, %45 : vector<8x512xf32>
    %cst_28 = arith.constant 0.797884583 : f32
    %47 = vector.broadcast %cst_28 : f32 to vector<8x512xf32>
    %48 = arith.mulf %47, %46 : vector<8x512xf32>
    %49 = math.tanh %48 : vector<8x512xf32>
    %cst_29 = arith.constant 1.000000e+00 : f32
    %50 = vector.broadcast %cst_29 : f32 to vector<8x512xf32>
    %51 = arith.addf %50, %49 : vector<8x512xf32>
    %52 = arith.mulf %41, %51 : vector<8x512xf32>
    %53 = arith.mulf %34, %52 : vector<8x512xf32>
    %c0_30 = arith.constant 0 : index
    %c0_31 = arith.constant 0 : index
    %54 = vector.load %arg10[%c0_30, %c0_31] : memref<512x128xf32, #tpu.memory_space<vmem>>, vector<512x128xf32>
    %cst_32 = arith.constant dense<0.000000e+00> : vector<8x128xf32>
    %55 = tpu.matmul %53, %54, %cst_32 {dimension_numbers = #tpu.dot_dimension_numbers<[1], [0], [0], [1], [0, 0, 1, 1], [], []>} : vector<8x512xf32>, vector<512x128xf32>, vector<8x128xf32> -> vector<8x128xf32>
    %c0_33 = arith.constant 0 : index
    %c0_34 = arith.constant 0 : index
    %56 = vector.load %arg11[%c0_33, %c0_34] : memref<1x128xf32, #tpu.memory_space<vmem>>, vector<1x128xf32>
    %57 = vector.broadcast %56 : vector<1x128xf32> to vector<8x128xf32>
    %58 = arith.addf %55, %57 : vector<8x128xf32>
    %59 = arith.addf %29, %58 : vector<8x128xf32>
    %c0_35 = arith.constant 0 : index
    %c0_36 = arith.constant 0 : index
    %60 = vector.load %arg12[%c0_35, %c0_36] : memref<8x128xf32, #tpu.memory_space<vmem>>, vector<8x128xf32>
    tpu.vector_store %arg12[%c0_35, %c0_36], %59 {strides = array<i32>} : memref<8x128xf32, #tpu.memory_space<vmem>>, vector<8x128xf32>,
    return
  }
}

module attributes {stable_mosaic.version = 11 : i64} {
  func.func @_attn_kernel(%arg0: memref<8x8x64xf32, #tpu.memory_space<vmem>>, %arg1: memref<8x8x64xf32, #tpu.memory_space<vmem>>, %arg2: memref<8x8x64xf32, #tpu.memory_space<vmem>>, %arg3: memref<8x8x64xf32, #tpu.memory_space<vmem>>) attributes {dimension_semantics = [], scalar_prefetch = 0 : i64, scratch_operands = 0 : i64, tpu.core_type = #tpu.core_type<tc>} {
    %c0 = arith.constant 0 : index
    %c0_0 = arith.constant 0 : index
    %c0_1 = arith.constant 0 : index
    %0 = vector.load %arg0[%c0, %c0_0, %c0_1] : memref<8x8x64xf32, #tpu.memory_space<vmem>>, vector<8x8x64xf32>
    %c0_2 = arith.constant 0 : index
    %c0_3 = arith.constant 0 : index
    %c0_4 = arith.constant 0 : index
    %1 = vector.load %arg1[%c0_2, %c0_3, %c0_4] : memref<8x8x64xf32, #tpu.memory_space<vmem>>, vector<8x8x64xf32>
    %c0_5 = arith.constant 0 : index
    %c0_6 = arith.constant 0 : index
    %c0_7 = arith.constant 0 : index
    %2 = vector.load %arg2[%c0_5, %c0_6, %c0_7] : memref<8x8x64xf32, #tpu.memory_space<vmem>>, vector<8x8x64xf32>
    "tpu.trace_start"() <{level = 10 : i32, message = "bid,bjd->bij"}> : () -> ()
    %cst = arith.constant dense<0.000000e+00> : vector<8x8x8xf32>
    %3 = tpu.matmul %0, %1, %cst {dimension_numbers = #tpu.dot_dimension_numbers<[2], [2], [1], [1], [0, 0, 0, 1, 1, 1], [0], [0]>} : vector<8x8x64xf32>, vector<8x8x64xf32>, vector<8x8x8xf32> -> vector<8x8x8xf32>
    "tpu.trace_stop"() : () -> ()
    %cst_8 = arith.constant dense<0xFF800000> : vector<8x8xf32>
    %4 = vector.multi_reduction <maximumf>, %3, %cst_8 [2] : vector<8x8x8xf32> to vector<8x8xf32>
    %5 = vector.shape_cast %4 : vector<8x8xf32> to vector<8x8x1xf32>
    %6 = vector.broadcast %5 : vector<8x8x1xf32> to vector<8x8x8xf32>
    %7 = arith.subf %3, %6 : vector<8x8x8xf32>
    %8 = math.exp %7 : vector<8x8x8xf32>
    %cst_9 = arith.constant dense<0.000000e+00> : vector<8x8xf32>
    %9 = vector.multi_reduction <add>, %8, %cst_9 [2] : vector<8x8x8xf32> to vector<8x8xf32>
    %10 = vector.shape_cast %9 : vector<8x8xf32> to vector<8x8x1xf32>
    %11 = tpu.reciprocal %10 {approx = true} : vector<8x8x1xf32> -> vector<8x8x1xf32>
    %12 = vector.broadcast %11 : vector<8x8x1xf32> to vector<8x8x8xf32>
    %13 = arith.mulf %8, %12 : vector<8x8x8xf32>
    "tpu.trace_start"() <{level = 10 : i32, message = "bij,bjd->bid"}> : () -> ()
    %cst_10 = arith.constant dense<0.000000e+00> : vector<8x8x64xf32>
    %14 = tpu.matmul %13, %2, %cst_10 {dimension_numbers = #tpu.dot_dimension_numbers<[2], [1], [1], [2], [0, 0, 0, 1, 1, 2], [0], [0]>} : vector<8x8x8xf32>, vector<8x8x64xf32>, vector<8x8x64xf32> -> vector<8x8x64xf32>
    "tpu.trace_stop"() : () -> ()
    %c0_11 = arith.constant 0 : index
    %c0_12 = arith.constant 0 : index
    %c0_13 = arith.constant 0 : index
    %15 = vector.load %arg3[%c0_11, %c0_12, %c0_13] : memref<8x8x64xf32, #tpu.memory_space<vmem>>, vector<8x8x64xf32>
    tpu.vector_store %arg3[%c0_11, %c0_12, %c0_13], %14 {strides = array<i32>} : memref<8x8x64xf32, #tpu.memory_space<vmem>>, vector<8x8x64xf32>,
    return
  }
}

</mosaic_0001>

<bundles_post_ra>
// kernel: saint_forward.5
= control target key start
LH: loop header
LB: loop body
LE: loop exit
PB: predicated region body
PF: predicated region fallthrough
CT: control target
= control target key end

     0   :  { %16 = vsyncpa [#allocation3], 0  ;;  %s1304_s0 = inlined_call_operand.vmem [shape: f32[8,128], index: 0, kind: input, shape index: {}]   ;;  %s1305_s1 = inlined_call_operand.hbm [shape: f32[128,128], index: 1, kind: input, shape index: {}]   ;;  %s1306_s2 = inlined_call_operand.vmem [shape: f32[1,128], index: 2, kind: input, shape index: {}]   ;;  %s1307_s3 = inlined_call_operand.vmem [shape: f32[1,128], index: 3, kind: input, shape index: {}]   ;;  %s1308_s4 = inlined_call_operand.hbm [shape: f32[128,512], index: 4, kind: input, shape index: {}]   ;;  %s1309_s5 = inlined_call_operand.hbm [shape: f32[128,512], index: 5, kind: input, shape index: {}]   ;;  %s1310_s6 = inlined_call_operand.hbm [shape: f32[128,512], index: 6, kind: input, shape index: {}]   ;;  %s1311_s7 = inlined_call_operand.vmem [shape: f32[8,128], index: 7, kind: output, shape index: {0}]   ;;  %s1312_s8 = inlined_call_operand.vmem [shape: f32[8,512], index: 8, kind: output, shape index: {1}]   ;;  %s1313_s9 = inlined_call_operand.vmem [shape: f32[8,512], index: 9, kind: output, shape index: {2}]   ;;  %s1314_s10 = inlined_call_operand.vmem [shape: f32[8,512], index: 10, kind: output, shape index: {3}]  }
   0x1   :  { %17 = vsyncpa [#allocation5], 0 }
   0x2   :  { %18 = vsyncpa [#allocation8], 0  ;;  %s1116_s13 = smov [#allocation4]  }
   0x3   :  { %s42_s14 = sshll.u32 %s1116_s13, 4  ;;  %s43_s14 = int_to_ptr.vmem [resolvable:$true] %s42_s14 }
   0x4   :  { %s1038_s15 = scalar_lea.vmem %s43_s14, 8192  ;;  %p1043_p1 = scmp.lt.s32.totalorder %s43_s14, %s43_s14 }
   0x5   :  { %p1039_p0 = scmp.ne.s32.totalorder %s43_s14, %s1038_s15  ;;  %p1044_p2 = scmp.lt.s32.totalorder %s1038_s15, %s1038_s15 }
   0x7   :  { %p1045_p3 = por %p1044_p2, %p1043_p1 }
   0x9   :  { %p1046_p4 = pnand %p1045_p3, %p1039_p0 }
   0xb   :  { %1049 = shalt.err (!%p1046_p4)
}
   0xc   :  { %s1117_s16 = smov 512   ;;  %s1118_s17 = smov 32  }
   0xd   :  { %48 = dma.hbm_to_vmem [thread:$0]  %s1308_s4, 8192, %s43_s14, [#allocation5], %s1117_s16, %s1117_s16, %s1118_s17  }
   0xe   :  { %s1119_s20 = smov [#allocation2]  }
   0xf   :  { %s26_s21 = sshll.u32 %s1119_s20, 4  ;;  %s27_s21 = int_to_ptr.vmem [resolvable:$true] %s26_s21 }
  0x10   :  { %s1058_s22 = scalar_lea.vmem %s27_s21, 2048  ;;  %p1063_p6 = scmp.lt.s32.totalorder %s27_s21, %s27_s21 }
  0x11   :  { %p1059_p5 = scmp.ne.s32.totalorder %s27_s21, %s1058_s22  ;;  %p1064_p7 = scmp.lt.s32.totalorder %s1058_s22, %s1058_s22 }
  0x13   :  { %p1065_p8 = por %p1064_p7, %p1063_p6 }
  0x15   :  { %p1066_p9 = pnand %p1065_p8, %p1059_p5 }
  0x17   :  { %1069 = shalt.err (!%p1066_p9)
}
  0x18   :  { %s1120_s23 = smov 128   ;;  %s1121_s24 = smov 8  }
  0x19   :  { %32 = dma.hbm_to_vmem [thread:$0]  %s1305_s1, 2048, %s27_s21, [#allocation3], %s1120_s23, %s1120_s23, %s1121_s24  }
  0x1a   :  { %s1122_s27 = smov [#allocation6]   ;;  %s1123_s29 = smov [#allocation7]  }
  0x1b   :  { %s54_s28 = sshll.u32 %s1122_s27, 4  ;;  %s66_s4 = sshll.u32 %s1123_s29, 4  ;;  %s55_s28 = int_to_ptr.vmem [resolvable:$true] %s54_s28  ;;  %s67_s4 = int_to_ptr.vmem [resolvable:$true] %s66_s4 }
  0x1c   :  { %s1078_s30 = scalar_lea.vmem %s55_s28, 8192  ;;  %p1083_p11 = scmp.lt.s32.totalorder %s55_s28, %s55_s28 }
  0x1d   :  { %p1079_p10 = scmp.ne.s32.totalorder %s55_s28, %s1078_s30  ;;  %p1084_p12 = scmp.lt.s32.totalorder %s1078_s30, %s1078_s30 }
  0x1f   :  { %p1085_p13 = por %p1084_p12, %p1083_p11 }
  0x21   :  { %p1086_p0 = pnand %p1085_p13, %p1079_p10 }
  0x23   :  { %1089 = shalt.err (!%p1086_p0)
}
  0x24   :  { %60 = dma.hbm_to_vmem [thread:$0]  %s1309_s5, 8192, %s55_s28, [#allocation5], %s1117_s16, %s1117_s16, %s1118_s17  }
  0x25   :  { %s1098_s1 = scalar_lea.vmem %s67_s4, 8192  ;;  %p1103_p2 = scmp.lt.s32.totalorder %s67_s4, %s67_s4 }
  0x26   :  { %p1099_p1 = scmp.ne.s32.totalorder %s67_s4, %s1098_s1  ;;  %p1104_p3 = scmp.lt.s32.totalorder %s1098_s1, %s1098_s1 }
  0x28   :  { %p1105_p4 = por %p1104_p3, %p1103_p2 }
  0x2a   :  { %p1106_p5 = pnand %p1105_p4, %p1099_p1 }
  0x2c   :  { %1109 = shalt.err (!%p1106_p5)
}
  0x2d   :  { %72 = dma.hbm_to_vmem [thread:$0]  %s1310_s6, 8192, %s67_s4, [#allocation8], %s1117_s16, %s1117_s16, %s1118_s17  }
  0x2e   :  { %1110 = dma.done.wait [#allocation3], 2048  }
  0x2f   :  { %1111 = vsyncadd [#allocation3], 4294965248 }
  0x30   :  { %1112 = dma.done.wait [#allocation5], 16384  }
  0x31   :  { %1113 = vsyncadd [#allocation5], 4294950912 }
  0x32   :  { %1114 = dma.done.wait [#allocation8], 8192  }
  0x33   :  { %1115 = vsyncadd [#allocation8], 4294959104  ;;  %v1124_v0 = vmov 0.0   ;;  %vm1125_vm0 = vmmov 0   ;;  %v101_v1 = vld [vmem:[#allocation2 + $0x78] sm:$0xff]  ;;  %v100_v2 = vld [vmem:[#allocation2 + $0x70] sm:$0xff] }
  0x34   :  { %948 = vmatprep.subr.mxu0 %v1124_v0  ;;  %980 = vmatprep.mubr.msk.f32.mxu0 %vm1125_vm0, %v1124_v0  ;;  %v99_v3 = vld [vmem:[#allocation2 + $0x68] sm:$0xff]  ;;  %v98_v4 = vld [vmem:[#allocation2 + $0x60] sm:$0xff]  ;;  %v97_v5 = vld [vmem:[#allocation2 + $0x58] sm:$0xff] }
  0x35   :  { %983 = vmatprep.subr.mxu1 %v1124_v0  ;;  %1015 = vmatprep.mubr.msk.f32.mxu1 %vm1125_vm0, %v1124_v0  ;;  %v96_v6 = vld [vmem:[#allocation2 + $0x50] sm:$0xff]  ;;  %v95_v7 = vld [vmem:[#allocation2 + $0x48] sm:$0xff]  ;;  %v94_v8 = vld [vmem:[#allocation2 + $0x40] sm:$0xff] }
  0x36   :  { %949 = vmatpush3.msra.mxu0 %v101_v1  ;;  %984 = vmatpush3.msra.mxu1 %v101_v1  ;;  %v93_v9 = vld [vmem:[#allocation2 + $0x38] sm:$0xff]  ;;  %v92_v10 = vld [vmem:[#allocation2 + $0x30] sm:$0xff]  ;;  %v91_v11 = vld [vmem:[#allocation2 + $0x28] sm:$0xff] }
  0x37   :  { %950 = vmatprep.subr.mxu0 %v1124_v0  ;;  %985 = vmatprep.subr.mxu1 %v1124_v0  ;;  %v90_v12 = vld [vmem:[#allocation2 + $0x20] sm:$0xff]  ;;  %v89_v13 = vld [vmem:[#allocation2 + $0x18] sm:$0xff]  ;;  %v88_v14 = vld [vmem:[#allocation2 + $0x10] sm:$0xff] }
  0x38   :  { %951 = vmatpush3.msra.mxu0 %v100_v2  ;;  %986 = vmatpush3.msra.mxu1 %v100_v2  ;;  %v87_v15 = vld [vmem:[#allocation2 + $0x8] sm:$0xff]  ;;  %v86_v16 = vld [vmem:[#allocation2] sm:$0xff]  ;;  %v326_v19 = vld [vmem:[#allocation4 + $0x1f8] sm:$0xff] }
  0x39   :  { %952 = vmatprep.subr.mxu0 %v1124_v0  ;;  %987 = vmatprep.subr.mxu1 %v1124_v0  ;;  %v85_v17 = vld [vmem:[%s1304_s0] sm:$0xff]  ;;  %v324_v18 = vld [vmem:[#allocation4 + $0x1e8] sm:$0xff]  ;;  %v325_v33 = vld [vmem:[#allocation4 + $0x1f0] sm:$0xff] }
  0x3a   :  { %953 = vmatpush3.msra.mxu0 %v99_v3  ;;  %988 = vmatpush3.msra.mxu1 %v99_v3  ;;  %v323_v20 = vld [vmem:[#allocation4 + $0x1e0] sm:$0xff]  ;;  %v320_v21 = vld [vmem:[#allocation4 + $0x1c8] sm:$0xff]  ;;  %v322_v34 = vld [vmem:[#allocation4 + $0x1d8] sm:$0xff] }
  0x3b   :  { %954 = vmatprep.subr.mxu0 %v1124_v0  ;;  %989 = vmatprep.subr.mxu1 %v1124_v0  ;;  %v319_v22 = vld [vmem:[#allocation4 + $0x1c0] sm:$0xff]  ;;  %v316_v23 = vld [vmem:[#allocation4 + $0x1a8] sm:$0xff]  ;;  %v321_v35 = vld [vmem:[#allocation4 + $0x1d0] sm:$0xff] }
  0x3c   :  { %955 = vmatpush3.msra.mxu0 %v98_v4  ;;  %990 = vmatpush3.msra.mxu1 %v98_v4  ;;  %v315_v24 = vld [vmem:[#allocation4 + $0x1a0] sm:$0xff]  ;;  %v312_v25 = vld [vmem:[#allocation4 + $0x188] sm:$0xff]  ;;  %v318_v36 = vld [vmem:[#allocation4 + $0x1b8] sm:$0xff] }
  0x3d   :  { %956 = vmatprep.subr.mxu0 %v1124_v0  ;;  %991 = vmatprep.subr.mxu1 %v1124_v0  ;;  %v311_v26 = vld [vmem:[#allocation4 + $0x180] sm:$0xff]  ;;  %v308_v27 = vld [vmem:[#allocation4 + $0x168] sm:$0xff]  ;;  %v317_v37 = vld [vmem:[#allocation4 + $0x1b0] sm:$0xff] }
  0x3e   :  { %957 = vmatpush3.msra.mxu0 %v97_v5  ;;  %992 = vmatpush3.msra.mxu1 %v97_v5  ;;  %v307_v28 = vld [vmem:[#allocation4 + $0x160] sm:$0xff]  ;;  %v314_v38 = vld [vmem:[#allocation4 + $0x198] sm:$0xff]  ;;  %v313_v39 = vld [vmem:[#allocation4 + $0x190] sm:$0xff] }
  0x3f   :  { %958 = vmatprep.subr.mxu0 %v1124_v0  ;;  %993 = vmatprep.subr.mxu1 %v1124_v0  ;;  %v310_v40 = vld [vmem:[#allocation4 + $0x178] sm:$0xff]  ;;  %v309_v41 = vld [vmem:[#allocation4 + $0x170] sm:$0xff]  ;;  %v304_v42 = vld [vmem:[#allocation4 + $0x148] sm:$0xff] }
  0x40   :  { %959 = vmatpush3.msra.mxu0 %v96_v6  ;;  %994 = vmatpush3.msra.mxu1 %v96_v6  ;;  %v306_v43 = vld [vmem:[#allocation4 + $0x158] sm:$0xff]  ;;  %v303_v44 = vld [vmem:[#allocation4 + $0x140] sm:$0xff]  ;;  %v305_v45 = vld [vmem:[#allocation4 + $0x150] sm:$0xff] }
  0x41   :  { %960 = vmatprep.subr.mxu0 %v1124_v0  ;;  %995 = vmatprep.subr.mxu1 %v1124_v0  ;;  %v300_v46 = vld [vmem:[#allocation4 + $0x128] sm:$0xff]  ;;  %v302_v47 = vld [vmem:[#allocation4 + $0x138] sm:$0xff]  ;;  %v299_v48 = vld [vmem:[#allocation4 + $0x120] sm:$0xff] }
  0x42   :  { %961 = vmatpush3.msra.mxu0 %v95_v7  ;;  %996 = vmatpush3.msra.mxu1 %v95_v7  ;;  %v301_v49 = vld [vmem:[#allocation4 + $0x130] sm:$0xff]  ;;  %v296_v50 = vld [vmem:[#allocation4 + $0x108] sm:$0xff]  ;;  %v298_v51 = vld [vmem:[#allocation4 + $0x118] sm:$0xff] }
  0x43   :  { %962 = vmatprep.subr.mxu0 %v1124_v0  ;;  %997 = vmatprep.subr.mxu1 %v1124_v0  ;;  %v295_v52 = vld [vmem:[#allocation4 + $0x100] sm:$0xff]  ;;  %v297_v53 = vld [vmem:[#allocation4 + $0x110] sm:$0xff]  ;;  %v292_v54 = vld [vmem:[#allocation4 + $0xe8] sm:$0xff] }
  0x44   :  { %963 = vmatpush3.msra.mxu0 %v94_v8  ;;  %998 = vmatpush3.msra.mxu1 %v94_v8  ;;  %v294_v55 = vld [vmem:[#allocation4 + $0xf8] sm:$0xff]  ;;  %v291_v56 = vld [vmem:[#allocation4 + $0xe0] sm:$0xff]  ;;  %v293_v57 = vld [vmem:[#allocation4 + $0xf0] sm:$0xff] }
  0x45   :  { %964 = vmatprep.subr.mxu0 %v1124_v0  ;;  %999 = vmatprep.subr.mxu1 %v1124_v0  ;;  %v288_v58 = vld [vmem:[#allocation4 + $0xc8] sm:$0xff]  ;;  %v290_v59 = vld [vmem:[#allocation4 + $0xd8] sm:$0xff]  ;;  %v287_v60 = vld [vmem:[#allocation4 + $0xc0] sm:$0xff] }
  0x46   :  { %965 = vmatpush3.msra.mxu0 %v93_v9  ;;  %1000 = vmatpush3.msra.mxu1 %v93_v9  ;;  %v289_v61 = vld [vmem:[#allocation4 + $0xd0] sm:$0xff]  ;;  %v284_v62 = vld [vmem:[#allocation4 + $0xa8] sm:$0xff]  ;;  %v286_v63 = vld [vmem:[#allocation4 + $0xb8] sm:$0xff] }
  0x47   :  { %966 = vmatprep.subr.mxu0 %v1124_v0  ;;  %1001 = vmatprep.subr.mxu1 %v1124_v0  ;;  %v283_v1 = vld [vmem:[#allocation4 + $0xa0] sm:$0xff]  ;;  %v285_v2 = vld [vmem:[#allocation4 + $0xb0] sm:$0xff]  ;;  %v280_v3 = vld [vmem:[#allocation4 + $0x88] sm:$0xff] }
  0x48   :  { %967 = vmatpush3.msra.mxu0 %v92_v10  ;;  %1002 = vmatpush3.msra.mxu1 %v92_v10  ;;  %v282_v4 = vld [vmem:[#allocation4 + $0x98] sm:$0xff]  ;;  %v279_v5 = vld [vmem:[#allocation4 + $0x80] sm:$0xff]  ;;  %v281_v6 = vld [vmem:[#allocation4 + $0x90] sm:$0xff] }
  0x49   :  { %968 = vmatprep.subr.mxu0 %v1124_v0  ;;  %1003 = vmatprep.subr.mxu1 %v1124_v0  ;;  %v276_v7 = vld [vmem:[#allocation4 + $0x68] sm:$0xff]  ;;  %v278_v8 = vld [vmem:[#allocation4 + $0x78] sm:$0xff]  ;;  %v275_v9 = vld [vmem:[#allocation4 + $0x60] sm:$0xff] }
  0x4a   :  { %969 = vmatpush3.msra.mxu0 %v91_v11  ;;  %1004 = vmatpush3.msra.mxu1 %v91_v11  ;;  %v277_v10 = vld [vmem:[#allocation4 + $0x70] sm:$0xff]  ;;  %v272_v11 = vld [vmem:[#allocation4 + $0x48] sm:$0xff] }
  0x4b   :  { %970 = vmatprep.subr.mxu0 %v1124_v0  ;;  %1005 = vmatprep.subr.mxu1 %v1124_v0 }
  0x4c   :  { %971 = vmatpush3.msra.mxu0 %v90_v12  ;;  %1006 = vmatpush3.msra.mxu1 %v90_v12  ;;  %v274_v12 = vld [vmem:[#allocation4 + $0x58] sm:$0xff] }
  0x4d   :  { %972 = vmatprep.subr.mxu0 %v1124_v0  ;;  %1007 = vmatprep.subr.mxu1 %v1124_v0 }
  0x4e   :  { %973 = vmatpush3.msra.mxu0 %v89_v13  ;;  %1008 = vmatpush3.msra.mxu1 %v89_v13  ;;  %v271_v13 = vld [vmem:[#allocation4 + $0x40] sm:$0xff] }
  0x4f   :  { %974 = vmatprep.subr.mxu0 %v1124_v0  ;;  %1009 = vmatprep.subr.mxu1 %v1124_v0 }
  0x50   :  { %975 = vmatpush3.msra.mxu0 %v88_v14  ;;  %1010 = vmatpush3.msra.mxu1 %v88_v14  ;;  %v273_v14 = vld [vmem:[#allocation4 + $0x50] sm:$0xff] }
  0x51   :  { %976 = vmatprep.subr.mxu0 %v1124_v0  ;;  %1011 = vmatprep.subr.mxu1 %v1124_v0 }
  0x52   :  { %977 = vmatpush3.msra.mxu0 %v87_v15  ;;  %1012 = vmatpush3.msra.mxu1 %v87_v15  ;;  %v268_v15 = vld [vmem:[#allocation4 + $0x28] sm:$0xff] }
  0x53   :  { %978 = vmatprep.subr.mxu0 %v1124_v0  ;;  %1013 = vmatprep.subr.mxu1 %v1124_v0 }
  0x54   :  { %979 = vmatpush3.msra.mxu0 %v86_v16  ;;  %1014 = vmatpush3.msra.mxu1 %v86_v16  ;;  %v270_v16 = vld [vmem:[#allocation4 + $0x38] sm:$0xff] }
  0x55   :  { %981 = vmatmul.mubr.f32.vlgmr.msra.gmra.mxu0 %v85_v17  ;;  %327 = vmatprep.subr.mxu0 %v324_v18  ;;  %v269_v18 = vld [vmem:[#allocation4 + $0x30] sm:$0xff] }
  0x56   :  { %391 = vmatprep.mubr.f32.mxu0 %v1124_v0  ;;  %398 = vmatprep.subr.mxu1 %v326_v19  ;;  %v264_v19 = vld [vmem:[#allocation4 + $0x8] sm:$0xff] }
  0x57   :  { %328 = vmatpush1.msra.mxu0 %v323_v20  ;;  %v266_v20 = vld [vmem:[#allocation4 + $0x18] sm:$0xff] }
  0x58   :  { %329 = vmatprep.subr.mxu0 %v320_v21  ;;  %v263_v21 = vld [vmem:[#allocation4] sm:$0xff] }
  0x59   :  { %330 = vmatpush1.msra.mxu0 %v319_v22  ;;  %v265_v22 = vld [vmem:[#allocation4 + $0x10] sm:$0xff] }
  0x5a   :  { %331 = vmatprep.subr.mxu0 %v316_v23  ;;  %v534_v23 = vld [vmem:[#allocation6 + $0x1e8] sm:$0xff] }
  0x5b   :  { %332 = vmatpush1.msra.mxu0 %v315_v24  ;;  %v536_v24 = vld [vmem:[#allocation6 + $0x1f8] sm:$0xff] }
  0x5c   :  { %333 = vmatprep.subr.mxu0 %v312_v25 }
  0x5d   :  { %334 = vmatpush1.msra.mxu0 %v311_v26 }
  0x5e   :  { %335 = vmatprep.subr.mxu0 %v308_v27 }
  0x5f   :  { %336 = vmatpush1.msra.mxu0 %v307_v28 }
  0x60   :  { %337 = vmatprep.subr.mxu0 %v304_v42  ;;  %v525_v42 = vld [vmem:[#allocation6 + $0x1a0] sm:$0xff] }
  0x61   :  { %338 = vmatpush1.msra.mxu0 %v303_v44  ;;  %v522_v44 = vld [vmem:[#allocation6 + $0x188] sm:$0xff] }
  0x62   :  { %339 = vmatprep.subr.mxu0 %v300_v46  ;;  %v521_v46 = vld [vmem:[#allocation6 + $0x180] sm:$0xff] }
  0x63   :  { %340 = vmatpush1.msra.mxu0 %v299_v48  ;;  %v518_v48 = vld [vmem:[#allocation6 + $0x168] sm:$0xff] }
  0x64   :  { %341 = vmatprep.subr.mxu0 %v296_v50  ;;  %v517_v50 = vld [vmem:[#allocation6 + $0x160] sm:$0xff] }
  0x65   :  { %342 = vmatpush1.msra.mxu0 %v295_v52  ;;  %v514_v52 = vld [vmem:[#allocation6 + $0x148] sm:$0xff] }
  0x66   :  { %343 = vmatprep.subr.mxu0 %v292_v54  ;;  %v513_v54 = vld [vmem:[#allocation6 + $0x140] sm:$0xff] }
  0x67   :  { %344 = vmatpush1.msra.mxu0 %v291_v56  ;;  %v510_v56 = vld [vmem:[#allocation6 + $0x128] sm:$0xff] }
  0x68   :  { %345 = vmatprep.subr.mxu0 %v288_v58  ;;  %v509_v58 = vld [vmem:[#allocation6 + $0x120] sm:$0xff] }
  0x69   :  { %346 = vmatpush1.msra.mxu0 %v287_v60  ;;  %v506_v60 = vld [vmem:[#allocation6 + $0x108] sm:$0xff] }
  0x6a   :  { %347 = vmatprep.subr.mxu0 %v284_v62  ;;  %v505_v62 = vld [vmem:[#allocation6 + $0x100] sm:$0xff] }
  0x6b   :  { %348 = vmatpush1.msra.mxu0 %v283_v1  ;;  %v502_v1 = vld [vmem:[#allocation6 + $0xe8] sm:$0xff] }
  0x6c   :  { %349 = vmatprep.subr.mxu0 %v280_v3  ;;  %v501_v3 = vld [vmem:[#allocation6 + $0xe0] sm:$0xff] }
  0x6d   :  { %350 = vmatpush1.msra.mxu0 %v279_v5  ;;  %v498_v5 = vld [vmem:[#allocation6 + $0xc8] sm:$0xff] }
  0x6e   :  { %351 = vmatprep.subr.mxu0 %v276_v7  ;;  %v497_v7 = vld [vmem:[#allocation6 + $0xc0] sm:$0xff] }
  0x6f   :  { %352 = vmatpush1.msra.mxu0 %v275_v9  ;;  %v494_v9 = vld [vmem:[#allocation6 + $0xa8] sm:$0xff] }
  0x70   :  { %353 = vmatprep.subr.mxu0 %v272_v11  ;;  %v493_v11 = vld [vmem:[#allocation6 + $0xa0] sm:$0xff] }
  0x71   :  { %354 = vmatpush1.msra.mxu0 %v271_v13  ;;  %v490_v13 = vld [vmem:[#allocation6 + $0x88] sm:$0xff] }
  0x72   :  { %355 = vmatprep.subr.mxu0 %v268_v15  ;;  %v489_v15 = vld [vmem:[#allocation6 + $0x80] sm:$0xff] }
 0x115   :  { %v168_v29 = vpop.f32.mrf.mxu0 }
 0x116   :  { %v1240_v30 = vsub.f32 %v85_v17, %v168_v29  ;;  %v267_v17 = vld [vmem:[#allocation4 + $0x20] sm:$0xff] }
 0x117   :  { %v982_v31 = vpop.f32.mrf.mxu0  ;;  %356 = vmatpush1.msra.mxu0 %v267_v17  ;;  %v912_v29 = vld [vmem:[%s1306_s2] ss:$0 sm:$0xff]  ;;  %v486_v17 = vld [vmem:[#allocation6 + $0x68] sm:$0xff] }
 0x118   :  { %v173_v32 = vmul.f32 %v1240_v30, %v1240_v30  ;;  %357 = vmatprep.subr.mxu0 %v264_v19  ;;  %v485_v19 = vld [vmem:[#allocation6 + $0x60] sm:$0xff] }
 0x119   :  { %358 = vmatpush1.msra.mxu0 %v263_v21  ;;  %v482_v21 = vld [vmem:[#allocation6 + $0x48] sm:$0xff] }
 0x11a   :  { %1016 = vmatmul.mubr.f32.vlgmr.msra.gmra.mxu1 %v173_v32  ;;  %537 = vmatprep.subr.mxu0 %v534_v23  ;;  %v913_v32 = vld [vmem:[%s1307_s3] ss:$0 sm:$0xff] }
 0x11b   :  { %399 = vmatpush1.msra.mxu1 %v325_v33  ;;  %462 = vmatprep.mubr.f32.mxu1 %v1124_v0  ;;  %v481_v23 = vld [vmem:[#allocation6 + $0x40] sm:$0xff] }
 0x11c   :  { %400 = vmatprep.subr.mxu1 %v322_v34 }
 0x11d   :  { %401 = vmatpush1.msra.mxu1 %v321_v35  ;;  %v533_v35 = vld [vmem:[#allocation6 + $0x1e0] sm:$0xff] }
 0x11e   :  { %402 = vmatprep.subr.mxu1 %v318_v36  ;;  %v535_v36 = vld [vmem:[#allocation6 + $0x1f0] sm:$0xff] }
 0x11f   :  { %403 = vmatpush1.msra.mxu1 %v317_v37  ;;  %v530_v37 = vld [vmem:[#allocation6 + $0x1c8] sm:$0xff] }
 0x120   :  { %404 = vmatprep.subr.mxu1 %v314_v38  ;;  %v532_v38 = vld [vmem:[#allocation6 + $0x1d8] sm:$0xff] }
 0x121   :  { %405 = vmatpush1.msra.mxu1 %v313_v39  ;;  %v531_v39 = vld [vmem:[#allocation6 + $0x1d0] sm:$0xff] }
 0x122   :  { %406 = vmatprep.subr.mxu1 %v310_v40  ;;  %v526_v40 = vld [vmem:[#allocation6 + $0x1a8] sm:$0xff] }
 0x123   :  { %407 = vmatpush1.msra.mxu1 %v309_v41  ;;  %v528_v41 = vld [vmem:[#allocation6 + $0x1b8] sm:$0xff] }
 0x124   :  { %408 = vmatprep.subr.mxu1 %v306_v43  ;;  %v527_v43 = vld [vmem:[#allocation6 + $0x1b0] sm:$0xff] }
 0x125   :  { %409 = vmatpush1.msra.mxu1 %v305_v45  ;;  %v524_v45 = vld [vmem:[#allocation6 + $0x198] sm:$0xff] }
 0x126   :  { %410 = vmatprep.subr.mxu1 %v302_v47  ;;  %v523_v47 = vld [vmem:[#allocation6 + $0x190] sm:$0xff] }
 0x127   :  { %411 = vmatpush1.msra.mxu1 %v301_v49  ;;  %v520_v49 = vld [vmem:[#allocation6 + $0x178] sm:$0xff] }
 0x128   :  { %412 = vmatprep.subr.mxu1 %v298_v51  ;;  %v519_v51 = vld [vmem:[#allocation6 + $0x170] sm:$0xff] }
 0x129   :  { %413 = vmatpush1.msra.mxu1 %v297_v53  ;;  %v516_v53 = vld [vmem:[#allocation6 + $0x158] sm:$0xff] }
 0x12a   :  { %414 = vmatprep.subr.mxu1 %v294_v55  ;;  %v515_v55 = vld [vmem:[#allocation6 + $0x150] sm:$0xff] }
 0x12b   :  { %415 = vmatpush1.msra.mxu1 %v293_v57  ;;  %v512_v57 = vld [vmem:[#allocation6 + $0x138] sm:$0xff] }
 0x12c   :  { %416 = vmatprep.subr.mxu1 %v290_v59  ;;  %v511_v59 = vld [vmem:[#allocation6 + $0x130] sm:$0xff] }
 0x12d   :  { %417 = vmatpush1.msra.mxu1 %v289_v61  ;;  %v508_v61 = vld [vmem:[#allocation6 + $0x118] sm:$0xff] }
 0x12e   :  { %418 = vmatprep.subr.mxu1 %v286_v63  ;;  %v507_v63 = vld [vmem:[#allocation6 + $0x110] sm:$0xff] }
 0x12f   :  { %419 = vmatpush1.msra.mxu1 %v285_v2  ;;  %v504_v2 = vld [vmem:[#allocation6 + $0xf8] sm:$0xff] }
 0x130   :  { %420 = vmatprep.subr.mxu1 %v282_v4  ;;  %v503_v4 = vld [vmem:[#allocation6 + $0xf0] sm:$0xff] }
 0x131   :  { %421 = vmatpush1.msra.mxu1 %v281_v6  ;;  %v500_v6 = vld [vmem:[#allocation6 + $0xd8] sm:$0xff] }
 0x132   :  { %422 = vmatprep.subr.mxu1 %v278_v8  ;;  %v499_v8 = vld [vmem:[#allocation6 + $0xd0] sm:$0xff] }
 0x133   :  { %423 = vmatpush1.msra.mxu1 %v277_v10  ;;  %v496_v10 = vld [vmem:[#allocation6 + $0xb8] sm:$0xff] }
 0x134   :  { %424 = vmatprep.subr.mxu1 %v274_v12  ;;  %v495_v12 = vld [vmem:[#allocation6 + $0xb0] sm:$0xff] }
 0x135   :  { %425 = vmatpush1.msra.mxu1 %v273_v14  ;;  %v492_v14 = vld [vmem:[#allocation6 + $0x98] sm:$0xff] }
 0x136   :  { %426 = vmatprep.subr.mxu1 %v270_v16  ;;  %v491_v16 = vld [vmem:[#allocation6 + $0x90] sm:$0xff] }
 0x137   :  { %427 = vmatpush1.msra.mxu1 %v269_v18  ;;  %v488_v18 = vld [vmem:[#allocation6 + $0x78] sm:$0xff] }
 0x138   :  { %428 = vmatprep.subr.mxu1 %v266_v20  ;;  %v487_v20 = vld [vmem:[#allocation6 + $0x70] sm:$0xff] }
 0x139   :  { %429 = vmatpush1.msra.mxu1 %v265_v22  ;;  %v484_v22 = vld [vmem:[#allocation6 + $0x58] sm:$0xff] }
 0x13a   :  { %608 = vmatprep.subr.mxu1 %v536_v24  ;;  %v483_v24 = vld [vmem:[#allocation6 + $0x50] sm:$0xff] }
 0x1da   :  { %v240_v25 = vpop.f32.mrf.mxu1 }
 0x1db   :  { %v241_v26 = vadd.f32 1e-05, %v240_v25  ;;  %v478_v25 = vld [vmem:[#allocation6 + $0x28] sm:$0xff] }
 0x1dc   :  { %v1017_v27 = vpop.f32.mrf.mxu1 }
 0x1dd   :  { %1028 = vrsqrt.f32 %v241_v26  ;;  %v480_v26 = vld [vmem:[#allocation6 + $0x38] sm:$0xff]  ;;  %v477_v27 = vld [vmem:[#allocation6 + $0x20] sm:$0xff] }
 0x1ea   :  { %v1029_v28 = vpop.eup %1028 }
 0x1eb   :  { %v245_v31 = vmul.f32 %v1029_v28, %v1240_v30  ;;  %v529_v30 = vld [vmem:[#allocation6 + $0x1c0] sm:$0xff]  ;;  %v479_v28 = vld [vmem:[#allocation6 + $0x30] sm:$0xff] }
 0x1ed   :  { %v253_v33 = vmul.f32 %v912_v29, %v245_v31  ;;  %v474_v29 = vld [vmem:[#allocation6 + $0x8] sm:$0xff]  ;;  %v476_v31 = vld [vmem:[#allocation6 + $0x18] sm:$0xff] }
 0x1ef   :  { %v1252_v34 = vadd.f32 %v913_v32, %v253_v33  ;;  %v473_v32 = vld [vmem:[#allocation6] sm:$0xff]  ;;  %v475_v33 = vld [vmem:[#allocation6 + $0x10] sm:$0xff] }
 0x1f1   :  { %262 = vst [vmem:[%s1311_s7] sm:$0xff] %v1252_v34  ;;  %392 = vmatmul.mubr.f32.vlgmr.msra.gmra.mxu0 %v1252_v34  ;;  %463 = vmatmul.mubr.f32.vlgmr.msra.gmra.mxu1 %v1252_v34 }
 0x1f2   :  { %538 = vmatpush1.msra.mxu0 %v533_v35  ;;  %609 = vmatpush1.msra.mxu1 %v535_v36  ;;  %v744_v35 = vld [vmem:[#allocation7 + $0x1e8] sm:$0xff]  ;;  %v746_v36 = vld [vmem:[#allocation7 + $0x1f8] sm:$0xff] }
 0x1f3   :  { %539 = vmatprep.subr.mxu0 %v530_v37  ;;  %610 = vmatprep.subr.mxu1 %v532_v38  ;;  %v743_v37 = vld [vmem:[#allocation7 + $0x1e0] sm:$0xff]  ;;  %v745_v38 = vld [vmem:[#allocation7 + $0x1f0] sm:$0xff] }
 0x1f4   :  { %540 = vmatpush1.msra.mxu0 %v529_v30  ;;  %611 = vmatpush1.msra.mxu1 %v531_v39  ;;  %v740_v30 = vld [vmem:[#allocation7 + $0x1c8] sm:$0xff]  ;;  %v742_v39 = vld [vmem:[#allocation7 + $0x1d8] sm:$0xff] }
 0x1f5   :  { %541 = vmatprep.subr.mxu0 %v526_v40  ;;  %612 = vmatprep.subr.mxu1 %v528_v41  ;;  %v739_v40 = vld [vmem:[#allocation7 + $0x1c0] sm:$0xff]  ;;  %v741_v41 = vld [vmem:[#allocation7 + $0x1d0] sm:$0xff] }
 0x1f6   :  { %542 = vmatpush1.msra.mxu0 %v525_v42  ;;  %613 = vmatpush1.msra.mxu1 %v527_v43  ;;  %v736_v42 = vld [vmem:[#allocation7 + $0x1a8] sm:$0xff]  ;;  %v738_v43 = vld [vmem:[#allocation7 + $0x1b8] sm:$0xff] }
 0x1f7   :  { %543 = vmatprep.subr.mxu0 %v522_v44  ;;  %614 = vmatprep.subr.mxu1 %v524_v45  ;;  %v735_v44 = vld [vmem:[#allocation7 + $0x1a0] sm:$0xff]  ;;  %v737_v45 = vld [vmem:[#allocation7 + $0x1b0] sm:$0xff] }
 0x1f8   :  { %544 = vmatpush1.msra.mxu0 %v521_v46  ;;  %615 = vmatpush1.msra.mxu1 %v523_v47  ;;  %v732_v46 = vld [vmem:[#allocation7 + $0x188] sm:$0xff]  ;;  %v734_v47 = vld [vmem:[#allocation7 + $0x198] sm:$0xff] }
 0x1f9   :  { %545 = vmatprep.subr.mxu0 %v518_v48  ;;  %616 = vmatprep.subr.mxu1 %v520_v49  ;;  %v731_v48 = vld [vmem:[#allocation7 + $0x180] sm:$0xff]  ;;  %v733_v49 = vld [vmem:[#allocation7 + $0x190] sm:$0xff] }
 0x1fa   :  { %546 = vmatpush1.msra.mxu0 %v517_v50  ;;  %617 = vmatpush1.msra.mxu1 %v519_v51  ;;  %v728_v50 = vld [vmem:[#allocation7 + $0x168] sm:$0xff]  ;;  %v730_v51 = vld [vmem:[#allocation7 + $0x178] sm:$0xff] }
 0x1fb   :  { %547 = vmatprep.subr.mxu0 %v514_v52  ;;  %618 = vmatprep.subr.mxu1 %v516_v53  ;;  %v727_v52 = vld [vmem:[#allocation7 + $0x160] sm:$0xff]  ;;  %v729_v53 = vld [vmem:[#allocation7 + $0x170] sm:$0xff] }
 0x1fc   :  { %548 = vmatpush1.msra.mxu0 %v513_v54  ;;  %619 = vmatpush1.msra.mxu1 %v515_v55  ;;  %v724_v54 = vld [vmem:[#allocation7 + $0x148] sm:$0xff]  ;;  %v726_v55 = vld [vmem:[#allocation7 + $0x158] sm:$0xff] }
 0x1fd   :  { %549 = vmatprep.subr.mxu0 %v510_v56  ;;  %620 = vmatprep.subr.mxu1 %v512_v57  ;;  %v723_v56 = vld [vmem:[#allocation7 + $0x140] sm:$0xff]  ;;  %v725_v57 = vld [vmem:[#allocation7 + $0x150] sm:$0xff] }
 0x1fe   :  { %550 = vmatpush1.msra.mxu0 %v509_v58  ;;  %621 = vmatpush1.msra.mxu1 %v511_v59  ;;  %v720_v58 = vld [vmem:[#allocation7 + $0x128] sm:$0xff]  ;;  %v722_v59 = vld [vmem:[#allocation7 + $0x138] sm:$0xff] }
 0x1ff   :  { %551 = vmatprep.subr.mxu0 %v506_v60  ;;  %622 = vmatprep.subr.mxu1 %v508_v61  ;;  %v719_v60 = vld [vmem:[#allocation7 + $0x120] sm:$0xff]  ;;  %v721_v61 = vld [vmem:[#allocation7 + $0x130] sm:$0xff] }
 0x200   :  { %552 = vmatpush1.msra.mxu0 %v505_v62  ;;  %623 = vmatpush1.msra.mxu1 %v507_v63  ;;  %v716_v62 = vld [vmem:[#allocation7 + $0x108] sm:$0xff]  ;;  %v718_v63 = vld [vmem:[#allocation7 + $0x118] sm:$0xff] }
 0x201   :  { %553 = vmatprep.subr.mxu0 %v502_v1  ;;  %624 = vmatprep.subr.mxu1 %v504_v2  ;;  %v715_v1 = vld [vmem:[#allocation7 + $0x100] sm:$0xff]  ;;  %v717_v2 = vld [vmem:[#allocation7 + $0x110] sm:$0xff] }
 0x202   :  { %554 = vmatpush1.msra.mxu0 %v501_v3  ;;  %625 = vmatpush1.msra.mxu1 %v503_v4  ;;  %v712_v3 = vld [vmem:[#allocation7 + $0xe8] sm:$0xff]  ;;  %v714_v4 = vld [vmem:[#allocation7 + $0xf8] sm:$0xff] }
 0x203   :  { %555 = vmatprep.subr.mxu0 %v498_v5  ;;  %626 = vmatprep.subr.mxu1 %v500_v6  ;;  %v711_v5 = vld [vmem:[#allocation7 + $0xe0] sm:$0xff]  ;;  %v713_v6 = vld [vmem:[#allocation7 + $0xf0] sm:$0xff] }
 0x204   :  { %556 = vmatpush1.msra.mxu0 %v497_v7  ;;  %627 = vmatpush1.msra.mxu1 %v499_v8  ;;  %v708_v7 = vld [vmem:[#allocation7 + $0xc8] sm:$0xff]  ;;  %v710_v8 = vld [vmem:[#allocation7 + $0xd8] sm:$0xff] }
 0x205   :  { %557 = vmatprep.subr.mxu0 %v494_v9  ;;  %628 = vmatprep.subr.mxu1 %v496_v10  ;;  %v707_v9 = vld [vmem:[#allocation7 + $0xc0] sm:$0xff]  ;;  %v709_v10 = vld [vmem:[#allocation7 + $0xd0] sm:$0xff] }
 0x206   :  { %558 = vmatpush1.msra.mxu0 %v493_v11  ;;  %629 = vmatpush1.msra.mxu1 %v495_v12  ;;  %v704_v11 = vld [vmem:[#allocation7 + $0xa8] sm:$0xff]  ;;  %v706_v12 = vld [vmem:[#allocation7 + $0xb8] sm:$0xff] }
 0x207   :  { %559 = vmatprep.subr.mxu0 %v490_v13  ;;  %630 = vmatprep.subr.mxu1 %v492_v14  ;;  %v703_v13 = vld [vmem:[#allocation7 + $0xa0] sm:$0xff]  ;;  %v705_v14 = vld [vmem:[#allocation7 + $0xb0] sm:$0xff] }
 0x208   :  { %560 = vmatpush1.msra.mxu0 %v489_v15  ;;  %631 = vmatpush1.msra.mxu1 %v491_v16  ;;  %v700_v15 = vld [vmem:[#allocation7 + $0x88] sm:$0xff]  ;;  %v702_v16 = vld [vmem:[#allocation7 + $0x98] sm:$0xff] }
 0x209   :  { %561 = vmatprep.subr.mxu0 %v486_v17  ;;  %632 = vmatprep.subr.mxu1 %v488_v18  ;;  %v699_v17 = vld [vmem:[#allocation7 + $0x80] sm:$0xff]  ;;  %v701_v18 = vld [vmem:[#allocation7 + $0x90] sm:$0xff] }
 0x20a   :  { %562 = vmatpush1.msra.mxu0 %v485_v19  ;;  %633 = vmatpush1.msra.mxu1 %v487_v20  ;;  %v696_v19 = vld [vmem:[#allocation7 + $0x68] sm:$0xff]  ;;  %v698_v20 = vld [vmem:[#allocation7 + $0x78] sm:$0xff] }
 0x20b   :  { %563 = vmatprep.subr.mxu0 %v482_v21  ;;  %634 = vmatprep.subr.mxu1 %v484_v22  ;;  %v695_v21 = vld [vmem:[#allocation7 + $0x60] sm:$0xff]  ;;  %v697_v22 = vld [vmem:[#allocation7 + $0x70] sm:$0xff] }
 0x20c   :  { %564 = vmatpush1.msra.mxu0 %v481_v23  ;;  %635 = vmatpush1.msra.mxu1 %v483_v24  ;;  %v692_v23 = vld [vmem:[#allocation7 + $0x48] sm:$0xff]  ;;  %v694_v24 = vld [vmem:[#allocation7 + $0x58] sm:$0xff] }
 0x20d   :  { %565 = vmatprep.subr.mxu0 %v478_v25  ;;  %636 = vmatprep.subr.mxu1 %v480_v26  ;;  %v691_v25 = vld [vmem:[#allocation7 + $0x40] sm:$0xff]  ;;  %v693_v26 = vld [vmem:[#allocation7 + $0x50] sm:$0xff] }
 0x20e   :  { %566 = vmatpush1.msra.mxu0 %v477_v27  ;;  %637 = vmatpush1.msra.mxu1 %v479_v28  ;;  %v688_v27 = vld [vmem:[#allocation7 + $0x28] sm:$0xff]  ;;  %v690_v28 = vld [vmem:[#allocation7 + $0x38] sm:$0xff] }
 0x20f   :  { %567 = vmatprep.subr.mxu0 %v474_v29  ;;  %638 = vmatprep.subr.mxu1 %v476_v31  ;;  %v687_v29 = vld [vmem:[#allocation7 + $0x20] sm:$0xff]  ;;  %v689_v31 = vld [vmem:[#allocation7 + $0x30] sm:$0xff] }
 0x210   :  { %568 = vmatpush1.msra.mxu0 %v473_v32  ;;  %601 = vmatprep.mubr.f32.mxu0 %v1124_v0  ;;  %v684_v32 = vld [vmem:[#allocation7 + $0x8] sm:$0xff] }
 0x211   :  { %639 = vmatpush1.msra.mxu1 %v475_v33  ;;  %672 = vmatprep.mubr.f32.mxu1 %v1124_v0  ;;  %v686_v33 = vld [vmem:[#allocation7 + $0x18] sm:$0xff] }
 0x212   :  { %602 = vmatmul.mubr.f32.vlgmr.msra.gmra.mxu0 %v1252_v34  ;;  %673 = vmatmul.mubr.f32.vlgmr.msra.gmra.mxu1 %v1252_v34 }
 0x213   :  { %747 = vmatprep.subr.mxu0 %v744_v35  ;;  %818 = vmatprep.subr.mxu1 %v746_v36  ;;  %v683_v35 = vld [vmem:[#allocation7] sm:$0xff]  ;;  %v685_v36 = vld [vmem:[#allocation7 + $0x10] sm:$0xff] }
 0x214   :  { %748 = vmatpush1.msra.mxu0 %v743_v37  ;;  %819 = vmatpush1.msra.mxu1 %v745_v38 }
 0x215   :  { %749 = vmatprep.subr.mxu0 %v740_v30  ;;  %820 = vmatprep.subr.mxu1 %v742_v39 }
 0x216   :  { %750 = vmatpush1.msra.mxu0 %v739_v40  ;;  %821 = vmatpush1.msra.mxu1 %v741_v41 }
 0x217   :  { %751 = vmatprep.subr.mxu0 %v736_v42  ;;  %822 = vmatprep.subr.mxu1 %v738_v43 }
 0x218   :  { %752 = vmatpush1.msra.mxu0 %v735_v44  ;;  %823 = vmatpush1.msra.mxu1 %v737_v45 }
 0x219   :  { %753 = vmatprep.subr.mxu0 %v732_v46  ;;  %824 = vmatprep.subr.mxu1 %v734_v47 }
 0x21a   :  { %754 = vmatpush1.msra.mxu0 %v731_v48  ;;  %825 = vmatpush1.msra.mxu1 %v733_v49 }
 0x21b   :  { %755 = vmatprep.subr.mxu0 %v728_v50  ;;  %826 = vmatprep.subr.mxu1 %v730_v51 }
 0x21c   :  { %756 = vmatpush1.msra.mxu0 %v727_v52  ;;  %827 = vmatpush1.msra.mxu1 %v729_v53 }
 0x21d   :  { %757 = vmatprep.subr.mxu0 %v724_v54  ;;  %828 = vmatprep.subr.mxu1 %v726_v55 }
 0x21e   :  { %758 = vmatpush1.msra.mxu0 %v723_v56  ;;  %829 = vmatpush1.msra.mxu1 %v725_v57 }
 0x21f   :  { %759 = vmatprep.subr.mxu0 %v720_v58  ;;  %830 = vmatprep.subr.mxu1 %v722_v59 }
 0x220   :  { %760 = vmatpush1.msra.mxu0 %v719_v60  ;;  %831 = vmatpush1.msra.mxu1 %v721_v61 }
 0x221   :  { %761 = vmatprep.subr.mxu0 %v716_v62  ;;  %832 = vmatprep.subr.mxu1 %v718_v63 }
 0x222   :  { %762 = vmatpush1.msra.mxu0 %v715_v1  ;;  %833 = vmatpush1.msra.mxu1 %v717_v2 }
 0x223   :  { %763 = vmatprep.subr.mxu0 %v712_v3  ;;  %834 = vmatprep.subr.mxu1 %v714_v4 }
 0x224   :  { %764 = vmatpush1.msra.mxu0 %v711_v5  ;;  %835 = vmatpush1.msra.mxu1 %v713_v6 }
 0x225   :  { %765 = vmatprep.subr.mxu0 %v708_v7  ;;  %836 = vmatprep.subr.mxu1 %v710_v8 }
 0x226   :  { %766 = vmatpush1.msra.mxu0 %v707_v9  ;;  %837 = vmatpush1.msra.mxu1 %v709_v10 }
 0x227   :  { %767 = vmatprep.subr.mxu0 %v704_v11  ;;  %838 = vmatprep.subr.mxu1 %v706_v12 }
 0x228   :  { %768 = vmatpush1.msra.mxu0 %v703_v13  ;;  %839 = vmatpush1.msra.mxu1 %v705_v14 }
 0x229   :  { %769 = vmatprep.subr.mxu0 %v700_v15  ;;  %840 = vmatprep.subr.mxu1 %v702_v16 }
 0x22a   :  { %770 = vmatpush1.msra.mxu0 %v699_v17  ;;  %841 = vmatpush1.msra.mxu1 %v701_v18 }
 0x22b   :  { %771 = vmatprep.subr.mxu0 %v696_v19  ;;  %842 = vmatprep.subr.mxu1 %v698_v20 }
 0x22c   :  { %772 = vmatpush1.msra.mxu0 %v695_v21  ;;  %843 = vmatpush1.msra.mxu1 %v697_v22 }
 0x22d   :  { %773 = vmatprep.subr.mxu0 %v692_v23  ;;  %844 = vmatprep.subr.mxu1 %v694_v24 }
 0x22e   :  { %774 = vmatpush1.msra.mxu0 %v691_v25  ;;  %845 = vmatpush1.msra.mxu1 %v693_v26 }
 0x22f   :  { %775 = vmatprep.subr.mxu0 %v688_v27  ;;  %846 = vmatprep.subr.mxu1 %v690_v28 }
 0x230   :  { %776 = vmatpush1.msra.mxu0 %v687_v29  ;;  %847 = vmatpush1.msra.mxu1 %v689_v31 }
 0x231   :  { %777 = vmatprep.subr.mxu0 %v684_v32  ;;  %848 = vmatprep.subr.mxu1 %v686_v33 }
 0x232   :  { %778 = vmatpush1.msra.mxu0 %v683_v35  ;;  %811 = vmatprep.mubr.f32.mxu0 %v1124_v0 }
 0x233   :  { %849 = vmatpush1.msra.mxu1 %v685_v36  ;;  %882 = vmatprep.mubr.f32.mxu1 %v1124_v0 }
 0x234   :  { %812 = vmatmul.mubr.f32.vlgmr.msra.gmra.mxu0 %v1252_v34  ;;  %883 = vmatmul.mubr.f32.vlgmr.msra.gmra.mxu1 %v1252_v34 }
 0x2b1   :  { %v393_v37 = vpop.f32.mrf.mxu0  ;;  %v464_v38 = vpop.f32.mrf.mxu1 }
 0x2b2   :  { %469 = vst [vmem:[%s1312_s8] sm:$0xff] %v393_v37  ;;  %471 = vst [vmem:[%s1312_s8 + $0x10] sm:$0xff] %v464_v38 }
 0x2b3   :  { %v395_v30 = vpop.f32.mrf.mxu0  ;;  %v466_v39 = vpop.f32.mrf.mxu1 }
 0x2b4   :  { %470 = vst [vmem:[%s1312_s8 + $0x8] sm:$0xff] %v395_v30  ;;  %472 = vst [vmem:[%s1312_s8 + $0x18] sm:$0xff] %v466_v39 }
 0x2d2   :  { %v603_v0 = vpop.f32.mrf.mxu0  ;;  %v674_v34 = vpop.f32.mrf.mxu1 }
 0x2d3   :  { %679 = vst [vmem:[%s1313_s9] sm:$0xff] %v603_v0  ;;  %681 = vst [vmem:[%s1313_s9 + $0x10] sm:$0xff] %v674_v34 }
 0x2d4   :  { %v605_v40 = vpop.f32.mrf.mxu0  ;;  %v676_v41 = vpop.f32.mrf.mxu1 }
 0x2d5   :  { %680 = vst [vmem:[%s1313_s9 + $0x8] sm:$0xff] %v605_v40  ;;  %682 = vst [vmem:[%s1313_s9 + $0x18] sm:$0xff] %v676_v41 }
 0x2f4   :  { %v813_v42 = vpop.f32.mrf.mxu0  ;;  %v884_v43 = vpop.f32.mrf.mxu1 }
 0x2f5   :  { %889 = vst [vmem:[%s1314_s10] sm:$0xff] %v813_v42  ;;  %891 = vst [vmem:[%s1314_s10 + $0x10] sm:$0xff] %v884_v43 }
 0x2f6   :  { %v815_v44 = vpop.f32.mrf.mxu0  ;;  %v886_v45 = vpop.f32.mrf.mxu1 }
 0x2f7   :  { %890 = vst [vmem:[%s1314_s10 + $0x8] sm:$0xff] %v815_v44  ;;  %892 = vst [vmem:[%s1314_s10 + $0x18] sm:$0xff] %v886_v45 }
 0x2f8   :  { %909 = vsyncpa [#allocation3], 1 }
 0x2f9   :  { %910 = vsyncpa [#allocation5], 1 }
 0x2fa   :  { %911 = vsyncpa [#allocation8], 1 }

// kernel: saint_forward.7
= control target key start
LH: loop header
LB: loop body
LE: loop exit
PB: predicated region body
PF: predicated region fallthrough
CT: control target
= control target key end

     0   :  { %vm2105_vm0 = vmmov 0   ;;  %s3762_s2 = inlined_call_operand.vmem [shape: f32[512,128], index: 2, kind: input, shape index: {}]   ;;  %s3763_s1 = inlined_call_operand.vmem [shape: f32[8,512], index: 1, kind: input, shape index: {}]   ;;  %s3764_s12 = inlined_call_operand.vmem [shape: f32[128,128], index: 12, kind: input, shape index: {}]   ;;  %s3765_s0 = inlined_call_operand.vmem [shape: f32[8,128], index: 0, kind: input, shape index: {}, may-alias: {0,18}]   ;;  %s3766_s3 = inlined_call_operand.vmem [shape: f32[1,128], index: 3, kind: input, shape index: {}]   ;;  %s3767_s6 = inlined_call_operand.vmem [shape: f32[128,512], index: 6, kind: input, shape index: {}]   ;;  %s3768_s8 = inlined_call_operand.vmem [shape: f32[128,512], index: 8, kind: input, shape index: {}]   ;;  %s3769_s4 = inlined_call_operand.vmem [shape: f32[1,128], index: 4, kind: input, shape index: {}]   ;;  %s3770_s5 = inlined_call_operand.vmem [shape: f32[1,128], index: 5, kind: input, shape index: {}]   ;;  %s3771_s10 = inlined_call_operand.vmem [shape: f32[512,128], index: 10, kind: input, shape index: {}]   ;;  %s3772_s9 = inlined_call_operand.vmem [shape: f32[1,512], index: 9, kind: input, shape index: {}]   ;;  %s3773_s7 = inlined_call_operand.vmem [shape: f32[1,512], index: 7, kind: input, shape index: {}]   ;;  %s3774_s11 = inlined_call_operand.vmem [shape: f32[1,128], index: 11, kind: input, shape index: {}]   ;;  %s3775_s15 = inlined_call_operand.vmem [shape: f32[128,512], index: 15, kind: input, shape index: {}]   ;;  %s3776_s16 = inlined_call_operand.vmem [shape: f32[128,512], index: 16, kind: input, shape index: {}]   ;;  %s3777_s13 = inlined_call_operand.vmem [shape: f32[1,128], index: 13, kind: input, shape index: {}]   ;;  %s3778_s14 = inlined_call_operand.vmem [shape: f32[1,128], index: 14, kind: input, shape index: {}]   ;;  %s3779_s18 = inlined_call_operand.vmem [shape: f32[8,128], index: 18, kind: output, shape index: {0}, may-alias: {0,18}]   ;;  %s3780_s17 = inlined_call_operand.vmem [shape: f32[128,512], index: 17, kind: input, shape index: {}]   ;;  %s3781_s19 = inlined_call_operand.vmem [shape: f32[8,512], index: 19, kind: output, shape index: {1}]   ;;  %s3782_s20 = inlined_call_operand.vmem [shape: f32[8,512], index: 20, kind: output, shape index: {2}]   ;;  %s3783_s21 = inlined_call_operand.vmem [shape: f32[8,512], index: 21, kind: output, shape index: {3}]  }
   0x1   :  { %3788 = sst [smem:[#allocation2_spill]] %s3762_s2 }
   0x2   :  { %3789 = sst [smem:[#allocation3_spill]] %s3763_s1 }
   0x3   :  { %3790 = sst [smem:[#allocation4_spill]] %s3764_s12 }
   0x4   :  { %3791 = sst [smem:[#allocation5_spill]] %s3765_s0 }
   0x5   :  { %3792 = sst [smem:[#allocation6_spill]] %s3766_s3 }
   0x6   :  { %3793 = sst [smem:[#allocation7_spill]] %s3767_s6 }
   0x7   :  { %s3794_s26 = sld [smem:[#allocation2_spill]] }
   0x8   :  { %s3795_s27 = sld [smem:[#allocation3_spill]] }
   0x9   :  { %s3796_s1 = sld [smem:[#allocation4_spill]] }
   0xa   :  { %s3797_s0 = sld [smem:[#allocation5_spill]] }
   0xb   :  { %s3798_s29 = sld [smem:[#allocation6_spill]] }
   0xc   :  { %s3799_s30 = sld [smem:[#allocation7_spill]] }
   0xd   :  { %v99_v0 = vld [vmem:[%s3794_s26 + $0xf8] sm:$0xff]  ;;  %v98_v4 = vld [vmem:[%s3794_s26 + $0xf0] sm:$0xff]  ;;  %v97_v8 = vld [vmem:[%s3794_s26 + $0xe8] sm:$0xff] }
   0xe   :  { %v131_v1 = vld [vmem:[%s3794_s26 + $0x1f8] sm:$0xff]  ;;  %1846 = vmatprep.subr.mxu0 %v99_v0  ;;  %v130_v5 = vld [vmem:[%s3794_s26 + $0x1f0] sm:$0xff]  ;;  %v129_v9 = vld [vmem:[%s3794_s26 + $0x1e8] sm:$0xff] }
   0xf   :  { %v83_v2 = vld [vmem:[%s3794_s26 + $0x78] sm:$0xff]  ;;  %1881 = vmatprep.subr.mxu1 %v131_v1  ;;  %v82_v6 = vld [vmem:[%s3794_s26 + $0x70] sm:$0xff]  ;;  %v81_v10 = vld [vmem:[%s3794_s26 + $0x68] sm:$0xff] }
  0x10   :  { %v115_v3 = vld [vmem:[%s3794_s26 + $0x178] sm:$0xff]  ;;  %1847 = vmatpush3.msra.mxu0 %v83_v2  ;;  %v114_v7 = vld [vmem:[%s3794_s26 + $0x170] sm:$0xff]  ;;  %v113_v11 = vld [vmem:[%s3794_s26 + $0x168] sm:$0xff] }
  0x11   :  { %1882 = vmatpush3.msra.mxu1 %v115_v3  ;;  %1848 = vmatprep.subr.mxu0 %v98_v4  ;;  %v96_v12 = vld [vmem:[%s3794_s26 + $0xe0] sm:$0xff]  ;;  %v95_v16 = vld [vmem:[%s3794_s26 + $0xd8] sm:$0xff]  ;;  %v94_v20 = vld [vmem:[%s3794_s26 + $0xd0] sm:$0xff] }
  0x12   :  { %1883 = vmatprep.subr.mxu1 %v130_v5  ;;  %1849 = vmatpush3.msra.mxu0 %v82_v6  ;;  %v128_v13 = vld [vmem:[%s3794_s26 + $0x1e0] sm:$0xff]  ;;  %v127_v17 = vld [vmem:[%s3794_s26 + $0x1d8] sm:$0xff]  ;;  %v126_v21 = vld [vmem:[%s3794_s26 + $0x1d0] sm:$0xff]  ;;  %v2104_v5 = vmov 0.0  }
  0x13   :  { %1884 = vmatpush3.msra.mxu1 %v114_v7  ;;  %1850 = vmatprep.subr.mxu0 %v97_v8  ;;  %v80_v14 = vld [vmem:[%s3794_s26 + $0x60] sm:$0xff]  ;;  %v79_v18 = vld [vmem:[%s3794_s26 + $0x58] sm:$0xff]  ;;  %v78_v22 = vld [vmem:[%s3794_s26 + $0x50] sm:$0xff] }
  0x14   :  { %1885 = vmatprep.subr.mxu1 %v129_v9  ;;  %v112_v15 = vld [vmem:[%s3794_s26 + $0x160] sm:$0xff]  ;;  %1851 = vmatpush3.msra.mxu0 %v81_v10  ;;  %v111_v19 = vld [vmem:[%s3794_s26 + $0x158] sm:$0xff]  ;;  %v110_v23 = vld [vmem:[%s3794_s26 + $0x150] sm:$0xff] }
  0x15   :  { %1886 = vmatpush3.msra.mxu1 %v113_v11  ;;  %1852 = vmatprep.subr.mxu0 %v96_v12  ;;  %v93_v24 = vld [vmem:[%s3794_s26 + $0xc8] sm:$0xff]  ;;  %v92_v28 = vld [vmem:[%s3794_s26 + $0xc0] sm:$0xff]  ;;  %v91_v32 = vld [vmem:[%s3794_s26 + $0xb8] sm:$0xff] }
  0x16   :  { %1887 = vmatprep.subr.mxu1 %v128_v13  ;;  %1853 = vmatpush3.msra.mxu0 %v80_v14  ;;  %v125_v25 = vld [vmem:[%s3794_s26 + $0x1c8] sm:$0xff]  ;;  %v124_v29 = vld [vmem:[%s3794_s26 + $0x1c0] sm:$0xff]  ;;  %v123_v33 = vld [vmem:[%s3794_s26 + $0x1b8] sm:$0xff] }
  0x17   :  { %1888 = vmatpush3.msra.mxu1 %v112_v15  ;;  %1854 = vmatprep.subr.mxu0 %v95_v16  ;;  %v77_v26 = vld [vmem:[%s3794_s26 + $0x48] sm:$0xff]  ;;  %v76_v30 = vld [vmem:[%s3794_s26 + $0x40] sm:$0xff]  ;;  %v75_v34 = vld [vmem:[%s3794_s26 + $0x38] sm:$0xff] }
  0x18   :  { %1889 = vmatprep.subr.mxu1 %v127_v17  ;;  %1855 = vmatpush3.msra.mxu0 %v79_v18  ;;  %v109_v27 = vld [vmem:[%s3794_s26 + $0x148] sm:$0xff]  ;;  %v108_v31 = vld [vmem:[%s3794_s26 + $0x140] sm:$0xff]  ;;  %v107_v35 = vld [vmem:[%s3794_s26 + $0x138] sm:$0xff] }
  0x19   :  { %1890 = vmatpush3.msra.mxu1 %v111_v19  ;;  %1856 = vmatprep.subr.mxu0 %v94_v20  ;;  %v90_v36 = vld [vmem:[%s3794_s26 + $0xb0] sm:$0xff]  ;;  %v89_v40 = vld [vmem:[%s3794_s26 + $0xa8] sm:$0xff]  ;;  %v88_v44 = vld [vmem:[%s3794_s26 + $0xa0] sm:$0xff] }
  0x1a   :  { %1891 = vmatprep.subr.mxu1 %v126_v21  ;;  %1857 = vmatpush3.msra.mxu0 %v78_v22  ;;  %v122_v37 = vld [vmem:[%s3794_s26 + $0x1b0] sm:$0xff]  ;;  %v121_v41 = vld [vmem:[%s3794_s26 + $0x1a8] sm:$0xff]  ;;  %v120_v45 = vld [vmem:[%s3794_s26 + $0x1a0] sm:$0xff] }
  0x1b   :  { %1892 = vmatpush3.msra.mxu1 %v110_v23  ;;  %1858 = vmatprep.subr.mxu0 %v93_v24  ;;  %v74_v38 = vld [vmem:[%s3794_s26 + $0x30] sm:$0xff]  ;;  %v73_v42 = vld [vmem:[%s3794_s26 + $0x28] sm:$0xff]  ;;  %v72_v46 = vld [vmem:[%s3794_s26 + $0x20] sm:$0xff] }
  0x1c   :  { %1893 = vmatprep.subr.mxu1 %v125_v25  ;;  %1859 = vmatpush3.msra.mxu0 %v77_v26  ;;  %v106_v39 = vld [vmem:[%s3794_s26 + $0x130] sm:$0xff]  ;;  %v105_v43 = vld [vmem:[%s3794_s26 + $0x128] sm:$0xff]  ;;  %v104_v47 = vld [vmem:[%s3794_s26 + $0x120] sm:$0xff] }
  0x1d   :  { %1894 = vmatpush3.msra.mxu1 %v109_v27  ;;  %1860 = vmatprep.subr.mxu0 %v92_v28  ;;  %v87_v48 = vld [vmem:[%s3794_s26 + $0x98] sm:$0xff]  ;;  %v86_v52 = vld [vmem:[%s3794_s26 + $0x90] sm:$0xff]  ;;  %v85_v56 = vld [vmem:[%s3794_s26 + $0x88] sm:$0xff] }
  0x1e   :  { %1895 = vmatprep.subr.mxu1 %v124_v29  ;;  %1861 = vmatpush3.msra.mxu0 %v76_v30  ;;  %v119_v49 = vld [vmem:[%s3794_s26 + $0x198] sm:$0xff]  ;;  %v118_v53 = vld [vmem:[%s3794_s26 + $0x190] sm:$0xff]  ;;  %v117_v57 = vld [vmem:[%s3794_s26 + $0x188] sm:$0xff] }
  0x1f   :  { %1896 = vmatpush3.msra.mxu1 %v108_v31  ;;  %1862 = vmatprep.subr.mxu0 %v91_v32  ;;  %v71_v50 = vld [vmem:[%s3794_s26 + $0x18] sm:$0xff]  ;;  %v70_v54 = vld [vmem:[%s3794_s26 + $0x10] sm:$0xff]  ;;  %v69_v58 = vld [vmem:[%s3794_s26 + $0x8] sm:$0xff] }
  0x20   :  { %1897 = vmatprep.subr.mxu1 %v123_v33  ;;  %1863 = vmatpush3.msra.mxu0 %v75_v34  ;;  %v103_v51 = vld [vmem:[%s3794_s26 + $0x118] sm:$0xff]  ;;  %v102_v55 = vld [vmem:[%s3794_s26 + $0x110] sm:$0xff]  ;;  %v101_v59 = vld [vmem:[%s3794_s26 + $0x108] sm:$0xff] }
  0x21   :  { %1898 = vmatpush3.msra.mxu1 %v107_v35  ;;  %1864 = vmatprep.subr.mxu0 %v90_v36  ;;  %v84_v60 = vld [vmem:[%s3794_s26 + $0x80] sm:$0xff]  ;;  %v65_v63 = vld [vmem:[%s3795_s27 + $0x8] sm:$0xff]  ;;  %v67_v1 = vld [vmem:[%s3795_s27 + $0x18] sm:$0xff] }
  0x22   :  { %1899 = vmatprep.subr.mxu1 %v122_v37  ;;  %1865 = vmatpush3.msra.mxu0 %v74_v38  ;;  %v116_v61 = vld [vmem:[%s3794_s26 + $0x180] sm:$0xff]  ;;  %v66_v3 = vld [vmem:[%s3795_s27 + $0x10] sm:$0xff]  ;;  %v296_v4 = vld [vmem:[%s3796_s1 + $0x78] sm:$0xff] }
  0x23   :  { %1900 = vmatpush3.msra.mxu1 %v106_v39  ;;  %1866 = vmatprep.subr.mxu0 %v89_v40  ;;  %v68_v62 = vld [vmem:[%s3794_s26] sm:$0xff]  ;;  %v295_v6 = vld [vmem:[%s3796_s1 + $0x70] sm:$0xff]  ;;  %v294_v7 = vld [vmem:[%s3796_s1 + $0x68] sm:$0xff] }
  0x24   :  { %1901 = vmatprep.subr.mxu1 %v121_v41  ;;  %1867 = vmatpush3.msra.mxu0 %v73_v42  ;;  %v100_v0 = vld [vmem:[%s3794_s26 + $0x100] sm:$0xff]  ;;  %v292_v9 = vld [vmem:[%s3796_s1 + $0x58] sm:$0xff]  ;;  %v291_v10 = vld [vmem:[%s3796_s1 + $0x50] sm:$0xff] }
  0x25   :  { %1902 = vmatpush3.msra.mxu1 %v105_v43  ;;  %1868 = vmatprep.subr.mxu0 %v88_v44  ;;  %v64_v2 = vld [vmem:[%s3795_s27] sm:$0xff]  ;;  %v290_v11 = vld [vmem:[%s3796_s1 + $0x48] sm:$0xff]  ;;  %v288_v13 = vld [vmem:[%s3796_s1 + $0x38] sm:$0xff] }
  0x26   :  { %1903 = vmatprep.subr.mxu1 %v120_v45  ;;  %1869 = vmatpush3.msra.mxu0 %v72_v46  ;;  %v293_v8 = vld [vmem:[%s3796_s1 + $0x60] sm:$0xff]  ;;  %v287_v14 = vld [vmem:[%s3796_s1 + $0x30] sm:$0xff]  ;;  %v286_v15 = vld [vmem:[%s3796_s1 + $0x28] sm:$0xff] }
  0x27   :  { %1904 = vmatpush3.msra.mxu1 %v104_v47  ;;  %1870 = vmatprep.subr.mxu0 %v87_v48  ;;  %v289_v12 = vld [vmem:[%s3796_s1 + $0x40] sm:$0xff]  ;;  %v284_v17 = vld [vmem:[%s3796_s1 + $0x18] sm:$0xff]  ;;  %v283_v18 = vld [vmem:[%s3796_s1 + $0x10] sm:$0xff] }
  0x28   :  { %1905 = vmatprep.subr.mxu1 %v119_v49  ;;  %1871 = vmatpush3.msra.mxu0 %v71_v50  ;;  %v285_v16 = vld [vmem:[%s3796_s1 + $0x20] sm:$0xff]  ;;  %v282_v19 = vld [vmem:[%s3796_s1 + $0x8] sm:$0xff]  ;;  %v520_v33 = vld [vmem:[%s3799_s30 + $0x1f8] sm:$0xff] }
  0x29   :  { %1906 = vmatpush3.msra.mxu1 %v103_v51  ;;  %1872 = vmatprep.subr.mxu0 %v86_v52  ;;  %v281_v20 = vld [vmem:[%s3796_s1] sm:$0xff]  ;;  %v518_v32 = vld [vmem:[%s3799_s30 + $0x1e8] sm:$0xff]  ;;  %v519_v47 = vld [vmem:[%s3799_s30 + $0x1f0] sm:$0xff] }
  0x2a   :  { %1907 = vmatprep.subr.mxu1 %v118_v53  ;;  %1873 = vmatpush3.msra.mxu0 %v70_v54  ;;  %v63_v27 = vld [vmem:[%s3797_s0] sm:$0xff]  ;;  %v514_v35 = vld [vmem:[%s3799_s30 + $0x1c8] sm:$0xff]  ;;  %v516_v48 = vld [vmem:[%s3799_s30 + $0x1d8] sm:$0xff] }
  0x2b   :  { %1908 = vmatpush3.msra.mxu1 %v102_v55  ;;  %1874 = vmatprep.subr.mxu0 %v85_v56  ;;  %v1840_v29 = vld [vmem:[%s3798_s29] ss:$0 sm:$0xff]  ;;  %v510_v37 = vld [vmem:[%s3799_s30 + $0x1a8] sm:$0xff]  ;;  %v515_v49 = vld [vmem:[%s3799_s30 + $0x1d0] sm:$0xff] }
  0x2c   :  { %1909 = vmatprep.subr.mxu1 %v117_v57  ;;  %1875 = vmatpush3.msra.mxu0 %v69_v58  ;;  %v517_v34 = vld [vmem:[%s3799_s30 + $0x1e0] sm:$0xff]  ;;  %v506_v39 = vld [vmem:[%s3799_s30 + $0x188] sm:$0xff]  ;;  %v512_v50 = vld [vmem:[%s3799_s30 + $0x1b8] sm:$0xff] }
  0x2d   :  { %1910 = vmatpush3.msra.mxu1 %v101_v59  ;;  %1876 = vmatprep.subr.mxu0 %v84_v60  ;;  %v513_v36 = vld [vmem:[%s3799_s30 + $0x1c0] sm:$0xff]  ;;  %v502_v41 = vld [vmem:[%s3799_s30 + $0x168] sm:$0xff]  ;;  %v511_v51 = vld [vmem:[%s3799_s30 + $0x1b0] sm:$0xff] }
  0x2e   :  { %1911 = vmatprep.subr.mxu1 %v116_v61  ;;  %1877 = vmatpush3.msra.mxu0 %v68_v62  ;;  %v509_v38 = vld [vmem:[%s3799_s30 + $0x1a0] sm:$0xff]  ;;  %v508_v52 = vld [vmem:[%s3799_s30 + $0x198] sm:$0xff]  ;;  %v507_v53 = vld [vmem:[%s3799_s30 + $0x190] sm:$0xff] }
  0x2f   :  { %196 = vmatprep.mubr.f32.mxu0 %v65_v63  ;;  %1912 = vmatpush3.msra.mxu1 %v100_v0  ;;  %v505_v40 = vld [vmem:[%s3799_s30 + $0x180] sm:$0xff]  ;;  %v504_v54 = vld [vmem:[%s3799_s30 + $0x178] sm:$0xff]  ;;  %v503_v55 = vld [vmem:[%s3799_s30 + $0x170] sm:$0xff] }
  0x30   :  { %266 = vmatprep.mubr.f32.mxu1 %v67_v1  ;;  %197 = vmatmul.mubr.f32.vlgmr.msra.gmra.mxu0 %v64_v2  ;;  %v501_v42 = vld [vmem:[%s3799_s30 + $0x160] sm:$0xff]  ;;  %v498_v56 = vld [vmem:[%s3799_s30 + $0x148] sm:$0xff]  ;;  %v500_v57 = vld [vmem:[%s3799_s30 + $0x158] sm:$0xff] }
  0x31   :  { %267 = vmatmul.mubr.f32.vlgmr.msra.gmra.mxu1 %v66_v3  ;;  %2020 = vmatprep.subr.mxu0 %v2104_v5  ;;  %v497_v58 = vld [vmem:[%s3799_s30 + $0x140] sm:$0xff]  ;;  %v499_v59 = vld [vmem:[%s3799_s30 + $0x150] sm:$0xff]  ;;  %v494_v60 = vld [vmem:[%s3799_s30 + $0x128] sm:$0xff] }
  0x32   :  { %2055 = vmatprep.subr.mxu1 %v2104_v5  ;;  %2021 = vmatpush3.msra.mxu0 %v296_v4  ;;  %v496_v61 = vld [vmem:[%s3799_s30 + $0x138] sm:$0xff]  ;;  %v493_v62 = vld [vmem:[%s3799_s30 + $0x120] sm:$0xff]  ;;  %v495_v63 = vld [vmem:[%s3799_s30 + $0x130] sm:$0xff] }
  0x33   :  { %2056 = vmatpush3.msra.mxu1 %v296_v4  ;;  %2022 = vmatprep.subr.mxu0 %v2104_v5  ;;  %v490_v0 = vld [vmem:[%s3799_s30 + $0x108] sm:$0xff]  ;;  %v492_v1 = vld [vmem:[%s3799_s30 + $0x118] sm:$0xff]  ;;  %v489_v2 = vld [vmem:[%s3799_s30 + $0x100] sm:$0xff] }
  0x34   :  { %2057 = vmatprep.subr.mxu1 %v2104_v5  ;;  %2023 = vmatpush3.msra.mxu0 %v295_v6  ;;  %v491_v3 = vld [vmem:[%s3799_s30 + $0x110] sm:$0xff]  ;;  %v486_v4 = vld [vmem:[%s3799_s30 + $0xe8] sm:$0xff] }
  0x35   :  { %2058 = vmatpush3.msra.mxu1 %v295_v6  ;;  %2024 = vmatprep.subr.mxu0 %v2104_v5  ;;  %v488_v6 = vld [vmem:[%s3799_s30 + $0xf8] sm:$0xff] }
  0x36   :  { %2059 = vmatprep.subr.mxu1 %v2104_v5  ;;  %2025 = vmatpush3.msra.mxu0 %v294_v7 }
  0x37   :  { %2060 = vmatpush3.msra.mxu1 %v294_v7  ;;  %2026 = vmatprep.subr.mxu0 %v2104_v5  ;;  %v485_v7 = vld [vmem:[%s3799_s30 + $0xe0] sm:$0xff] }
  0x38   :  { %2061 = vmatprep.subr.mxu1 %v2104_v5  ;;  %2027 = vmatpush3.msra.mxu0 %v293_v8 }
  0x39   :  { %2062 = vmatpush3.msra.mxu1 %v293_v8  ;;  %2028 = vmatprep.subr.mxu0 %v2104_v5  ;;  %v487_v8 = vld [vmem:[%s3799_s30 + $0xf0] sm:$0xff] }
  0x3a   :  { %2063 = vmatprep.subr.mxu1 %v2104_v5  ;;  %2029 = vmatpush3.msra.mxu0 %v292_v9 }
  0x3b   :  { %2064 = vmatpush3.msra.mxu1 %v292_v9  ;;  %2030 = vmatprep.subr.mxu0 %v2104_v5  ;;  %v482_v9 = vld [vmem:[%s3799_s30 + $0xc8] sm:$0xff] }
  0x3c   :  { %2065 = vmatprep.subr.mxu1 %v2104_v5  ;;  %2031 = vmatpush3.msra.mxu0 %v291_v10 }
  0x3d   :  { %2066 = vmatpush3.msra.mxu1 %v291_v10  ;;  %2032 = vmatprep.subr.mxu0 %v2104_v5  ;;  %v484_v10 = vld [vmem:[%s3799_s30 + $0xd8] sm:$0xff] }
  0x3e   :  { %2067 = vmatprep.subr.mxu1 %v2104_v5  ;;  %2033 = vmatpush3.msra.mxu0 %v290_v11 }
  0x3f   :  { %2068 = vmatpush3.msra.mxu1 %v290_v11  ;;  %2034 = vmatprep.subr.mxu0 %v2104_v5  ;;  %v481_v11 = vld [vmem:[%s3799_s30 + $0xc0] sm:$0xff] }
  0x40   :  { %2069 = vmatprep.subr.mxu1 %v2104_v5  ;;  %2035 = vmatpush3.msra.mxu0 %v289_v12 }
  0x41   :  { %2070 = vmatpush3.msra.mxu1 %v289_v12  ;;  %2036 = vmatprep.subr.mxu0 %v2104_v5  ;;  %v483_v12 = vld [vmem:[%s3799_s30 + $0xd0] sm:$0xff] }
  0x42   :  { %2071 = vmatprep.subr.mxu1 %v2104_v5  ;;  %2037 = vmatpush3.msra.mxu0 %v288_v13 }
  0x43   :  { %2072 = vmatpush3.msra.mxu1 %v288_v13  ;;  %2038 = vmatprep.subr.mxu0 %v2104_v5  ;;  %v478_v13 = vld [vmem:[%s3799_s30 + $0xa8] sm:$0xff] }
  0x44   :  { %2073 = vmatprep.subr.mxu1 %v2104_v5  ;;  %2039 = vmatpush3.msra.mxu0 %v287_v14 }
  0x45   :  { %2074 = vmatpush3.msra.mxu1 %v287_v14  ;;  %2040 = vmatprep.subr.mxu0 %v2104_v5  ;;  %v480_v14 = vld [vmem:[%s3799_s30 + $0xb8] sm:$0xff] }
  0x46   :  { %2075 = vmatprep.subr.mxu1 %v2104_v5  ;;  %2041 = vmatpush3.msra.mxu0 %v286_v15 }
  0x47   :  { %2076 = vmatpush3.msra.mxu1 %v286_v15  ;;  %2042 = vmatprep.subr.mxu0 %v2104_v5  ;;  %v477_v15 = vld [vmem:[%s3799_s30 + $0xa0] sm:$0xff] }
  0x48   :  { %2077 = vmatprep.subr.mxu1 %v2104_v5  ;;  %2043 = vmatpush3.msra.mxu0 %v285_v16 }
  0x49   :  { %2078 = vmatpush3.msra.mxu1 %v285_v16  ;;  %2044 = vmatprep.subr.mxu0 %v2104_v5  ;;  %v479_v16 = vld [vmem:[%s3799_s30 + $0xb0] sm:$0xff] }
  0x4a   :  { %2079 = vmatprep.subr.mxu1 %v2104_v5  ;;  %2045 = vmatpush3.msra.mxu0 %v284_v17 }
  0x4b   :  { %2080 = vmatpush3.msra.mxu1 %v284_v17  ;;  %2046 = vmatprep.subr.mxu0 %v2104_v5  ;;  %v474_v17 = vld [vmem:[%s3799_s30 + $0x88] sm:$0xff] }
  0x4c   :  { %2081 = vmatprep.subr.mxu1 %v2104_v5  ;;  %2047 = vmatpush3.msra.mxu0 %v283_v18 }
  0x4d   :  { %2082 = vmatpush3.msra.mxu1 %v283_v18  ;;  %2048 = vmatprep.subr.mxu0 %v2104_v5  ;;  %v476_v18 = vld [vmem:[%s3799_s30 + $0x98] sm:$0xff] }
  0x4e   :  { %2083 = vmatprep.subr.mxu1 %v2104_v5  ;;  %2049 = vmatpush3.msra.mxu0 %v282_v19 }
  0x4f   :  { %2084 = vmatpush3.msra.mxu1 %v282_v19  ;;  %2050 = vmatprep.subr.mxu0 %v2104_v5  ;;  %v473_v19 = vld [vmem:[%s3799_s30 + $0x80] sm:$0xff] }
  0x50   :  { %2085 = vmatprep.subr.mxu1 %v2104_v5  ;;  %2051 = vmatpush3.msra.mxu0 %v281_v20 }
  0x51   :  { %2052 = vmatprep.mubr.msk.f32.mxu0 %vm2105_vm0, %v2104_v5  ;;  %2086 = vmatpush3.msra.mxu1 %v281_v20  ;;  %v475_v20 = vld [vmem:[%s3799_s30 + $0x90] sm:$0xff] }
  0x52   :  { %2087 = vmatprep.mubr.msk.f32.mxu1 %vm2105_vm0, %v2104_v5  ;;  %543 = vmatprep.subr.mxu0 %v518_v32  ;;  %v463_v32 = vld [vmem:[%s3799_s30 + $0x30] sm:$0xff] }
  0x53   :  { %614 = vmatprep.subr.mxu1 %v520_v33  ;;  %v458_v33 = vld [vmem:[%s3799_s30 + $0x8] sm:$0xff] }
  0xf0   :  { %v1878_v21 = vpop.f32.mrf.mxu0 }
  0xf1   :  { %v1913_v22 = vpop.f32.mrf.mxu1 }
  0xf2   :  { %v1879_v23 = vpop.f32.mrf.mxu0 }
  0xf3   :  { %v1914_v24 = vpop.f32.mrf.mxu1  ;;  %v1880_v25 = vadd.f32 %v1879_v23, %v1878_v21  ;;  %v470_v21 = vld [vmem:[%s3799_s30 + $0x68] sm:$0xff]  ;;  %v469_v23 = vld [vmem:[%s3799_s30 + $0x60] sm:$0xff] }
  0xf4   :  { %v1915_v26 = vadd.f32 %v1914_v24, %v1913_v22  ;;  %v472_v22 = vld [vmem:[%s3799_s30 + $0x78] sm:$0xff]  ;;  %v471_v24 = vld [vmem:[%s3799_s30 + $0x70] sm:$0xff] }
  0xf6   :  { %v269_v28 = vadd.f32 %v1915_v26, %v1880_v25  ;;  %v466_v25 = vld [vmem:[%s3799_s30 + $0x48] sm:$0xff]  ;;  %v468_v26 = vld [vmem:[%s3799_s30 + $0x58] sm:$0xff] }
  0xf8   :  { %v272_v30 = vadd.f32 %v269_v28, %v63_v27  ;;  %v465_v27 = vld [vmem:[%s3799_s30 + $0x40] sm:$0xff]  ;;  %v467_v28 = vld [vmem:[%s3799_s30 + $0x50] sm:$0xff] }
  0xfa   :  { %v280_v31 = vadd.f32 %v1840_v29, %v272_v30  ;;  %v462_v29 = vld [vmem:[%s3799_s30 + $0x28] sm:$0xff]  ;;  %v464_v30 = vld [vmem:[%s3799_s30 + $0x38] sm:$0xff] }
  0xfc   :  { %2053 = vmatmul.mubr.f32.vlgmr.msra.gmra.mxu0 %v280_v31 }
  0xfd   :  { %607 = vmatprep.mubr.f32.mxu0 %v2104_v5  ;;  %544 = vmatpush1.msra.mxu0 %v517_v34  ;;  %v460_v34 = vld [vmem:[%s3799_s30 + $0x18] sm:$0xff] }
  0xfe   :  { %545 = vmatprep.subr.mxu0 %v514_v35  ;;  %v457_v35 = vld [vmem:[%s3799_s30] sm:$0xff] }
  0xff   :  { %546 = vmatpush1.msra.mxu0 %v513_v36  ;;  %v459_v36 = vld [vmem:[%s3799_s30 + $0x10] sm:$0xff] }
 0x100   :  { %547 = vmatprep.subr.mxu0 %v510_v37  ;;  %v746_v37 = vld [vmem:[%s3768_s8 + $0x1e8] sm:$0xff] }
 0x101   :  { %548 = vmatpush1.msra.mxu0 %v509_v38  ;;  %v748_v38 = vld [vmem:[%s3768_s8 + $0x1f8] sm:$0xff] }
 0x102   :  { %549 = vmatprep.subr.mxu0 %v506_v39 }
 0x103   :  { %550 = vmatpush1.msra.mxu0 %v505_v40 }
 0x104   :  { %551 = vmatprep.subr.mxu0 %v502_v41 }
 0x105   :  { %552 = vmatpush1.msra.mxu0 %v501_v42 }
 0x106   :  { %553 = vmatprep.subr.mxu0 %v498_v56  ;;  %v737_v56 = vld [vmem:[%s3768_s8 + $0x1a0] sm:$0xff] }
 0x107   :  { %554 = vmatpush1.msra.mxu0 %v497_v58  ;;  %v734_v58 = vld [vmem:[%s3768_s8 + $0x188] sm:$0xff] }
 0x108   :  { %555 = vmatprep.subr.mxu0 %v494_v60  ;;  %v733_v60 = vld [vmem:[%s3768_s8 + $0x180] sm:$0xff] }
 0x109   :  { %556 = vmatpush1.msra.mxu0 %v493_v62  ;;  %v730_v62 = vld [vmem:[%s3768_s8 + $0x168] sm:$0xff] }
 0x10a   :  { %557 = vmatprep.subr.mxu0 %v490_v0  ;;  %v729_v0 = vld [vmem:[%s3768_s8 + $0x160] sm:$0xff] }
 0x10b   :  { %558 = vmatpush1.msra.mxu0 %v489_v2  ;;  %v726_v2 = vld [vmem:[%s3768_s8 + $0x148] sm:$0xff] }
 0x10c   :  { %559 = vmatprep.subr.mxu0 %v486_v4  ;;  %v725_v4 = vld [vmem:[%s3768_s8 + $0x140] sm:$0xff] }
 0x10d   :  { %560 = vmatpush1.msra.mxu0 %v485_v7  ;;  %v722_v7 = vld [vmem:[%s3768_s8 + $0x128] sm:$0xff] }
 0x10e   :  { %561 = vmatprep.subr.mxu0 %v482_v9  ;;  %v721_v9 = vld [vmem:[%s3768_s8 + $0x120] sm:$0xff] }
 0x10f   :  { %562 = vmatpush1.msra.mxu0 %v481_v11  ;;  %v718_v11 = vld [vmem:[%s3768_s8 + $0x108] sm:$0xff] }
 0x110   :  { %563 = vmatprep.subr.mxu0 %v478_v13  ;;  %v717_v13 = vld [vmem:[%s3768_s8 + $0x100] sm:$0xff] }
 0x111   :  { %564 = vmatpush1.msra.mxu0 %v477_v15  ;;  %v714_v15 = vld [vmem:[%s3768_s8 + $0xe8] sm:$0xff] }
 0x112   :  { %565 = vmatprep.subr.mxu0 %v474_v17  ;;  %v713_v17 = vld [vmem:[%s3768_s8 + $0xe0] sm:$0xff] }
 0x113   :  { %566 = vmatpush1.msra.mxu0 %v473_v19  ;;  %v710_v19 = vld [vmem:[%s3768_s8 + $0xc8] sm:$0xff] }
 0x114   :  { %567 = vmatprep.subr.mxu0 %v470_v21  ;;  %v709_v21 = vld [vmem:[%s3768_s8 + $0xc0] sm:$0xff] }
 0x115   :  { %568 = vmatpush1.msra.mxu0 %v469_v23  ;;  %v706_v23 = vld [vmem:[%s3768_s8 + $0xa8] sm:$0xff] }
 0x116   :  { %569 = vmatprep.subr.mxu0 %v466_v25  ;;  %v705_v25 = vld [vmem:[%s3768_s8 + $0xa0] sm:$0xff] }
 0x117   :  { %570 = vmatpush1.msra.mxu0 %v465_v27  ;;  %v702_v27 = vld [vmem:[%s3768_s8 + $0x88] sm:$0xff] }
 0x118   :  { %571 = vmatprep.subr.mxu0 %v462_v29  ;;  %v701_v29 = vld [vmem:[%s3768_s8 + $0x80] sm:$0xff] }
 0x1bc   :  { %v363_v43 = vpop.f32.mrf.mxu0 }
 0x1bd   :  { %v2542_v44 = vsub.f32 %v280_v31, %v363_v43  ;;  %v461_v31 = vld [vmem:[%s3799_s30 + $0x20] sm:$0xff] }
 0x1be   :  { %v2054_v45 = vpop.f32.mrf.mxu0  ;;  %572 = vmatpush1.msra.mxu0 %v461_v31  ;;  %v1841_v43 = vld [vmem:[%s3769_s4] ss:$0 sm:$0xff]  ;;  %v698_v31 = vld [vmem:[%s3768_s8 + $0x68] sm:$0xff] }
 0x1bf   :  { %v368_v46 = vmul.f32 %v2542_v44, %v2542_v44  ;;  %573 = vmatprep.subr.mxu0 %v458_v33  ;;  %v697_v33 = vld [vmem:[%s3768_s8 + $0x60] sm:$0xff] }
 0x1c0   :  { %574 = vmatpush1.msra.mxu0 %v457_v35  ;;  %v694_v35 = vld [vmem:[%s3768_s8 + $0x48] sm:$0xff] }
 0x1c1   :  { %2088 = vmatmul.mubr.f32.vlgmr.msra.gmra.mxu1 %v368_v46  ;;  %771 = vmatprep.subr.mxu0 %v746_v37  ;;  %v1842_v46 = vld [vmem:[%s3770_s5] ss:$0 sm:$0xff] }
 0x1c2   :  { %615 = vmatpush1.msra.mxu1 %v519_v47  ;;  %678 = vmatprep.mubr.f32.mxu1 %v2104_v5  ;;  %v693_v37 = vld [vmem:[%s3768_s8 + $0x40] sm:$0xff] }
 0x1c3   :  { %616 = vmatprep.subr.mxu1 %v516_v48 }
 0x1c4   :  { %617 = vmatpush1.msra.mxu1 %v515_v49  ;;  %v745_v49 = vld [vmem:[%s3768_s8 + $0x1e0] sm:$0xff] }
 0x1c5   :  { %618 = vmatprep.subr.mxu1 %v512_v50  ;;  %v747_v50 = vld [vmem:[%s3768_s8 + $0x1f0] sm:$0xff] }
 0x1c6   :  { %619 = vmatpush1.msra.mxu1 %v511_v51  ;;  %v742_v51 = vld [vmem:[%s3768_s8 + $0x1c8] sm:$0xff] }
 0x1c7   :  { %620 = vmatprep.subr.mxu1 %v508_v52  ;;  %v741_v52 = vld [vmem:[%s3768_s8 + $0x1c0] sm:$0xff] }
 0x1c8   :  { %621 = vmatpush1.msra.mxu1 %v507_v53  ;;  %v743_v53 = vld [vmem:[%s3768_s8 + $0x1d0] sm:$0xff] }
 0x1c9   :  { %622 = vmatprep.subr.mxu1 %v504_v54  ;;  %v738_v54 = vld [vmem:[%s3768_s8 + $0x1a8] sm:$0xff] }
 0x1ca   :  { %623 = vmatpush1.msra.mxu1 %v503_v55  ;;  %v740_v55 = vld [vmem:[%s3768_s8 + $0x1b8] sm:$0xff] }
 0x1cb   :  { %624 = vmatprep.subr.mxu1 %v500_v57  ;;  %v739_v57 = vld [vmem:[%s3768_s8 + $0x1b0] sm:$0xff] }
 0x1cc   :  { %625 = vmatpush1.msra.mxu1 %v499_v59  ;;  %v736_v59 = vld [vmem:[%s3768_s8 + $0x198] sm:$0xff] }
 0x1cd   :  { %626 = vmatprep.subr.mxu1 %v496_v61  ;;  %v735_v61 = vld [vmem:[%s3768_s8 + $0x190] sm:$0xff] }
 0x1ce   :  { %627 = vmatpush1.msra.mxu1 %v495_v63  ;;  %v732_v63 = vld [vmem:[%s3768_s8 + $0x178] sm:$0xff] }
 0x1cf   :  { %628 = vmatprep.subr.mxu1 %v492_v1  ;;  %v731_v1 = vld [vmem:[%s3768_s8 + $0x170] sm:$0xff] }
 0x1d0   :  { %629 = vmatpush1.msra.mxu1 %v491_v3  ;;  %v728_v3 = vld [vmem:[%s3768_s8 + $0x158] sm:$0xff] }
 0x1d1   :  { %630 = vmatprep.subr.mxu1 %v488_v6  ;;  %v727_v6 = vld [vmem:[%s3768_s8 + $0x150] sm:$0xff] }
 0x1d2   :  { %631 = vmatpush1.msra.mxu1 %v487_v8  ;;  %v724_v8 = vld [vmem:[%s3768_s8 + $0x138] sm:$0xff] }
 0x1d3   :  { %632 = vmatprep.subr.mxu1 %v484_v10  ;;  %v723_v10 = vld [vmem:[%s3768_s8 + $0x130] sm:$0xff] }
 0x1d4   :  { %633 = vmatpush1.msra.mxu1 %v483_v12  ;;  %v720_v12 = vld [vmem:[%s3768_s8 + $0x118] sm:$0xff] }
 0x1d5   :  { %634 = vmatprep.subr.mxu1 %v480_v14  ;;  %v719_v14 = vld [vmem:[%s3768_s8 + $0x110] sm:$0xff] }
 0x1d6   :  { %635 = vmatpush1.msra.mxu1 %v479_v16  ;;  %v716_v16 = vld [vmem:[%s3768_s8 + $0xf8] sm:$0xff] }
 0x1d7   :  { %636 = vmatprep.subr.mxu1 %v476_v18  ;;  %v715_v18 = vld [vmem:[%s3768_s8 + $0xf0] sm:$0xff] }
 0x1d8   :  { %637 = vmatpush1.msra.mxu1 %v475_v20  ;;  %v712_v20 = vld [vmem:[%s3768_s8 + $0xd8] sm:$0xff] }
 0x1d9   :  { %638 = vmatprep.subr.mxu1 %v472_v22  ;;  %v711_v22 = vld [vmem:[%s3768_s8 + $0xd0] sm:$0xff] }
 0x1da   :  { %639 = vmatpush1.msra.mxu1 %v471_v24  ;;  %v708_v24 = vld [vmem:[%s3768_s8 + $0xb8] sm:$0xff] }
 0x1db   :  { %640 = vmatprep.subr.mxu1 %v468_v26  ;;  %v707_v26 = vld [vmem:[%s3768_s8 + $0xb0] sm:$0xff] }
 0x1dc   :  { %641 = vmatpush1.msra.mxu1 %v467_v28  ;;  %v704_v28 = vld [vmem:[%s3768_s8 + $0x98] sm:$0xff] }
 0x1dd   :  { %642 = vmatprep.subr.mxu1 %v464_v30  ;;  %v703_v30 = vld [vmem:[%s3768_s8 + $0x90] sm:$0xff] }
 0x1de   :  { %643 = vmatpush1.msra.mxu1 %v463_v32  ;;  %v700_v32 = vld [vmem:[%s3768_s8 + $0x78] sm:$0xff] }
 0x1df   :  { %644 = vmatprep.subr.mxu1 %v460_v34  ;;  %v699_v34 = vld [vmem:[%s3768_s8 + $0x70] sm:$0xff] }
 0x1e0   :  { %645 = vmatpush1.msra.mxu1 %v459_v36  ;;  %v696_v36 = vld [vmem:[%s3768_s8 + $0x58] sm:$0xff] }
 0x1e1   :  { %842 = vmatprep.subr.mxu1 %v748_v38  ;;  %v695_v38 = vld [vmem:[%s3768_s8 + $0x50] sm:$0xff] }
 0x281   :  { %v435_v39 = vpop.f32.mrf.mxu1 }
 0x282   :  { %v436_v40 = vadd.f32 1e-05, %v435_v39  ;;  %v690_v39 = vld [vmem:[%s3768_s8 + $0x28] sm:$0xff] }
 0x283   :  { %v2089_v41 = vpop.f32.mrf.mxu1 }
 0x284   :  { %2092 = vrsqrt.f32 %v436_v40  ;;  %v692_v40 = vld [vmem:[%s3768_s8 + $0x38] sm:$0xff]  ;;  %v689_v41 = vld [vmem:[%s3768_s8 + $0x20] sm:$0xff] }
 0x291   :  { %v2093_v42 = vpop.eup %2092 }
 0x292   :  { %v440_v45 = vmul.f32 %v2093_v42, %v2542_v44  ;;  %v744_v44 = vld [vmem:[%s3768_s8 + $0x1d8] sm:$0xff]  ;;  %v691_v42 = vld [vmem:[%s3768_s8 + $0x30] sm:$0xff] }
 0x294   :  { %v448_v47 = vmul.f32 %v1841_v43, %v440_v45  ;;  %v686_v43 = vld [vmem:[%s3768_s8 + $0x8] sm:$0xff]  ;;  %v688_v45 = vld [vmem:[%s3768_s8 + $0x18] sm:$0xff] }
 0x296   :  { %v2719_v48 = vadd.f32 %v1842_v46, %v448_v47  ;;  %v685_v46 = vld [vmem:[%s3768_s8] sm:$0xff]  ;;  %v687_v47 = vld [vmem:[%s3768_s8 + $0x10] sm:$0xff] }
 0x298   :  { %608 = vmatmul.mubr.f32.vlgmr.msra.gmra.mxu0 %v2719_v48  ;;  %679 = vmatmul.mubr.f32.vlgmr.msra.gmra.mxu1 %v2719_v48 }
 0x299   :  { %772 = vmatpush1.msra.mxu0 %v745_v49  ;;  %843 = vmatpush1.msra.mxu1 %v747_v50  ;;  %v984_v49 = vld [vmem:[%s3771_s10 + $0xf8] sm:$0xff] }
 0x29a   :  { %773 = vmatprep.subr.mxu0 %v742_v51  ;;  %844 = vmatprep.subr.mxu1 %v744_v44  ;;  %v1016_v50 = vld [vmem:[%s3771_s10 + $0x1f8] sm:$0xff] }
 0x29b   :  { %774 = vmatpush1.msra.mxu0 %v741_v52  ;;  %845 = vmatpush1.msra.mxu1 %v743_v53  ;;  %v968_v51 = vld [vmem:[%s3771_s10 + $0x78] sm:$0xff]  ;;  %v983_v52 = vld [vmem:[%s3771_s10 + $0xf0] sm:$0xff] }
 0x29c   :  { %775 = vmatprep.subr.mxu0 %v738_v54  ;;  %846 = vmatprep.subr.mxu1 %v740_v55  ;;  %v1000_v44 = vld [vmem:[%s3771_s10 + $0x178] sm:$0xff]  ;;  %v1015_v53 = vld [vmem:[%s3771_s10 + $0x1f0] sm:$0xff] }
 0x29d   :  { %776 = vmatpush1.msra.mxu0 %v737_v56  ;;  %847 = vmatpush1.msra.mxu1 %v739_v57  ;;  %v967_v54 = vld [vmem:[%s3771_s10 + $0x70] sm:$0xff]  ;;  %v982_v56 = vld [vmem:[%s3771_s10 + $0xe8] sm:$0xff] }
 0x29e   :  { %777 = vmatprep.subr.mxu0 %v734_v58  ;;  %848 = vmatprep.subr.mxu1 %v736_v59  ;;  %v999_v55 = vld [vmem:[%s3771_s10 + $0x170] sm:$0xff]  ;;  %v1014_v57 = vld [vmem:[%s3771_s10 + $0x1e8] sm:$0xff] }
 0x29f   :  { %778 = vmatpush1.msra.mxu0 %v733_v60  ;;  %849 = vmatpush1.msra.mxu1 %v735_v61  ;;  %v966_v58 = vld [vmem:[%s3771_s10 + $0x68] sm:$0xff]  ;;  %v981_v60 = vld [vmem:[%s3771_s10 + $0xe0] sm:$0xff] }
 0x2a0   :  { %779 = vmatprep.subr.mxu0 %v730_v62  ;;  %850 = vmatprep.subr.mxu1 %v732_v63  ;;  %v998_v59 = vld [vmem:[%s3771_s10 + $0x168] sm:$0xff]  ;;  %v1013_v61 = vld [vmem:[%s3771_s10 + $0x1e0] sm:$0xff] }
 0x2a1   :  { %780 = vmatpush1.msra.mxu0 %v729_v0  ;;  %851 = vmatpush1.msra.mxu1 %v731_v1  ;;  %v965_v62 = vld [vmem:[%s3771_s10 + $0x60] sm:$0xff]  ;;  %v980_v0 = vld [vmem:[%s3771_s10 + $0xd8] sm:$0xff] }
 0x2a2   :  { %781 = vmatprep.subr.mxu0 %v726_v2  ;;  %852 = vmatprep.subr.mxu1 %v728_v3  ;;  %v997_v63 = vld [vmem:[%s3771_s10 + $0x160] sm:$0xff]  ;;  %v1012_v1 = vld [vmem:[%s3771_s10 + $0x1d8] sm:$0xff] }
 0x2a3   :  { %782 = vmatpush1.msra.mxu0 %v725_v4  ;;  %853 = vmatpush1.msra.mxu1 %v727_v6  ;;  %v964_v2 = vld [vmem:[%s3771_s10 + $0x58] sm:$0xff]  ;;  %v979_v4 = vld [vmem:[%s3771_s10 + $0xd0] sm:$0xff] }
 0x2a4   :  { %783 = vmatprep.subr.mxu0 %v722_v7  ;;  %854 = vmatprep.subr.mxu1 %v724_v8  ;;  %v996_v3 = vld [vmem:[%s3771_s10 + $0x158] sm:$0xff]  ;;  %v1011_v6 = vld [vmem:[%s3771_s10 + $0x1d0] sm:$0xff] }
 0x2a5   :  { %784 = vmatpush1.msra.mxu0 %v721_v9  ;;  %855 = vmatpush1.msra.mxu1 %v723_v10  ;;  %v963_v7 = vld [vmem:[%s3771_s10 + $0x50] sm:$0xff]  ;;  %v978_v9 = vld [vmem:[%s3771_s10 + $0xc8] sm:$0xff] }
 0x2a6   :  { %785 = vmatprep.subr.mxu0 %v718_v11  ;;  %856 = vmatprep.subr.mxu1 %v720_v12  ;;  %v995_v8 = vld [vmem:[%s3771_s10 + $0x150] sm:$0xff]  ;;  %v1010_v10 = vld [vmem:[%s3771_s10 + $0x1c8] sm:$0xff] }
 0x2a7   :  { %786 = vmatpush1.msra.mxu0 %v717_v13  ;;  %857 = vmatpush1.msra.mxu1 %v719_v14  ;;  %v962_v11 = vld [vmem:[%s3771_s10 + $0x48] sm:$0xff]  ;;  %v977_v13 = vld [vmem:[%s3771_s10 + $0xc0] sm:$0xff] }
 0x2a8   :  { %787 = vmatprep.subr.mxu0 %v714_v15  ;;  %858 = vmatprep.subr.mxu1 %v716_v16  ;;  %v994_v12 = vld [vmem:[%s3771_s10 + $0x148] sm:$0xff]  ;;  %v1009_v14 = vld [vmem:[%s3771_s10 + $0x1c0] sm:$0xff] }
 0x2a9   :  { %788 = vmatpush1.msra.mxu0 %v713_v17  ;;  %859 = vmatpush1.msra.mxu1 %v715_v18  ;;  %v961_v15 = vld [vmem:[%s3771_s10 + $0x40] sm:$0xff]  ;;  %v976_v17 = vld [vmem:[%s3771_s10 + $0xb8] sm:$0xff] }
 0x2aa   :  { %789 = vmatprep.subr.mxu0 %v710_v19  ;;  %860 = vmatprep.subr.mxu1 %v712_v20  ;;  %v993_v16 = vld [vmem:[%s3771_s10 + $0x140] sm:$0xff]  ;;  %v1008_v18 = vld [vmem:[%s3771_s10 + $0x1b8] sm:$0xff] }
 0x2ab   :  { %790 = vmatpush1.msra.mxu0 %v709_v21  ;;  %861 = vmatpush1.msra.mxu1 %v711_v22  ;;  %v960_v19 = vld [vmem:[%s3771_s10 + $0x38] sm:$0xff]  ;;  %v975_v21 = vld [vmem:[%s3771_s10 + $0xb0] sm:$0xff] }
 0x2ac   :  { %791 = vmatprep.subr.mxu0 %v706_v23  ;;  %862 = vmatprep.subr.mxu1 %v708_v24  ;;  %v992_v20 = vld [vmem:[%s3771_s10 + $0x138] sm:$0xff]  ;;  %v1007_v22 = vld [vmem:[%s3771_s10 + $0x1b0] sm:$0xff] }
 0x2ad   :  { %792 = vmatpush1.msra.mxu0 %v705_v25  ;;  %863 = vmatpush1.msra.mxu1 %v707_v26  ;;  %v959_v23 = vld [vmem:[%s3771_s10 + $0x30] sm:$0xff]  ;;  %v974_v25 = vld [vmem:[%s3771_s10 + $0xa8] sm:$0xff] }
 0x2ae   :  { %793 = vmatprep.subr.mxu0 %v702_v27  ;;  %864 = vmatprep.subr.mxu1 %v704_v28  ;;  %v991_v24 = vld [vmem:[%s3771_s10 + $0x130] sm:$0xff]  ;;  %v1006_v26 = vld [vmem:[%s3771_s10 + $0x1a8] sm:$0xff] }
 0x2af   :  { %794 = vmatpush1.msra.mxu0 %v701_v29  ;;  %865 = vmatpush1.msra.mxu1 %v703_v30  ;;  %v958_v27 = vld [vmem:[%s3771_s10 + $0x28] sm:$0xff]  ;;  %v973_v29 = vld [vmem:[%s3771_s10 + $0xa0] sm:$0xff] }
 0x2b0   :  { %795 = vmatprep.subr.mxu0 %v698_v31  ;;  %866 = vmatprep.subr.mxu1 %v700_v32  ;;  %v990_v28 = vld [vmem:[%s3771_s10 + $0x128] sm:$0xff]  ;;  %v1005_v30 = vld [vmem:[%s3771_s10 + $0x1a0] sm:$0xff] }
 0x2b1   :  { %796 = vmatpush1.msra.mxu0 %v697_v33  ;;  %867 = vmatpush1.msra.mxu1 %v699_v34  ;;  %v957_v31 = vld [vmem:[%s3771_s10 + $0x20] sm:$0xff]  ;;  %v972_v33 = vld [vmem:[%s3771_s10 + $0x98] sm:$0xff] }
 0x2b2   :  { %797 = vmatprep.subr.mxu0 %v694_v35  ;;  %868 = vmatprep.subr.mxu1 %v696_v36  ;;  %v989_v32 = vld [vmem:[%s3771_s10 + $0x120] sm:$0xff]  ;;  %v1004_v34 = vld [vmem:[%s3771_s10 + $0x198] sm:$0xff] }
 0x2b3   :  { %798 = vmatpush1.msra.mxu0 %v693_v37  ;;  %869 = vmatpush1.msra.mxu1 %v695_v38  ;;  %v956_v35 = vld [vmem:[%s3771_s10 + $0x18] sm:$0xff]  ;;  %v971_v37 = vld [vmem:[%s3771_s10 + $0x90] sm:$0xff] }
 0x2b4   :  { %799 = vmatprep.subr.mxu0 %v690_v39  ;;  %870 = vmatprep.subr.mxu1 %v692_v40  ;;  %v988_v36 = vld [vmem:[%s3771_s10 + $0x118] sm:$0xff]  ;;  %v1003_v38 = vld [vmem:[%s3771_s10 + $0x190] sm:$0xff] }
 0x2b5   :  { %800 = vmatpush1.msra.mxu0 %v689_v41  ;;  %871 = vmatpush1.msra.mxu1 %v691_v42  ;;  %v955_v39 = vld [vmem:[%s3771_s10 + $0x10] sm:$0xff]  ;;  %v970_v41 = vld [vmem:[%s3771_s10 + $0x88] sm:$0xff] }
 0x2b6   :  { %801 = vmatprep.subr.mxu0 %v686_v43  ;;  %872 = vmatprep.subr.mxu1 %v688_v45  ;;  %v987_v40 = vld [vmem:[%s3771_s10 + $0x110] sm:$0xff]  ;;  %v1002_v42 = vld [vmem:[%s3771_s10 + $0x188] sm:$0xff] }
 0x2b7   :  { %802 = vmatpush1.msra.mxu0 %v685_v46  ;;  %835 = vmatprep.mubr.f32.mxu0 %v2104_v5  ;;  %v954_v43 = vld [vmem:[%s3771_s10 + $0x8] sm:$0xff]  ;;  %v969_v46 = vld [vmem:[%s3771_s10 + $0x80] sm:$0xff] }
 0x2b8   :  { %873 = vmatpush1.msra.mxu1 %v687_v47  ;;  %906 = vmatprep.mubr.f32.mxu1 %v2104_v5  ;;  %v986_v45 = vld [vmem:[%s3771_s10 + $0x108] sm:$0xff]  ;;  %v1001_v47 = vld [vmem:[%s3771_s10 + $0x180] sm:$0xff] }
 0x2b9   :  { %836 = vmatmul.mubr.f32.vlgmr.msra.gmra.mxu0 %v2719_v48  ;;  %907 = vmatmul.mubr.f32.vlgmr.msra.gmra.mxu1 %v2719_v48 }
 0x2ba   :  { %1950 = vmatprep.subr.mxu0 %v984_v49  ;;  %1985 = vmatprep.subr.mxu1 %v1016_v50  ;;  %v953_v49 = vld [vmem:[%s3771_s10] sm:$0xff] }
 0x2bb   :  { %1951 = vmatpush3.msra.mxu0 %v968_v51  ;;  %1986 = vmatpush3.msra.mxu1 %v1000_v44  ;;  %v985_v50 = vld [vmem:[%s3771_s10 + $0x100] sm:$0xff]  ;;  %v523_v51 = vlaneseq }
 0x2bc   :  { %1952 = vmatprep.subr.mxu0 %v983_v52  ;;  %1987 = vmatprep.subr.mxu1 %v1015_v53 }
 0x2bd   :  { %1953 = vmatpush3.msra.mxu0 %v967_v54  ;;  %1988 = vmatpush3.msra.mxu1 %v999_v55  ;;  %v524_v44 = vshrl.u32 %v523_v51, 7  ;;  %v749_v54 = vld [vmem:[%s3772_s9] sm:$0xf] }
 0x2be   :  { %1954 = vmatprep.subr.mxu0 %v982_v56  ;;  %1989 = vmatprep.subr.mxu1 %v1014_v57 }
 0x2bf   :  { %1955 = vmatpush3.msra.mxu0 %v966_v58  ;;  %1990 = vmatpush3.msra.mxu1 %v998_v59  ;;  %v525_v55 = vsub.s32 0, %v524_v44  ;;  %v533_v56 = vsub.s32 2, %v524_v44  ;;  %v529_v57 = vsub.s32 1, %v524_v44  ;;  %v537_v58 = vsub.s32 3, %v524_v44 }
 0x2c0   :  { %1956 = vmatprep.subr.mxu0 %v981_v60  ;;  %1991 = vmatprep.subr.mxu1 %v1013_v61 }
 0x2c1   :  { %1957 = vmatpush3.msra.mxu0 %v965_v62  ;;  %1992 = vmatpush3.msra.mxu1 %v997_v63  ;;  %v754_v59 = vrot.slane %v749_v54, %v525_v55  ;;  %v762_v60 = vrot.slane %v749_v54, %v533_v56  ;;  %v758_v63 = vrot.slane %v749_v54, %v529_v57 }
 0x2c2   :  { %1958 = vmatprep.subr.mxu0 %v980_v0  ;;  %1993 = vmatprep.subr.mxu1 %v1012_v1  ;;  %v766_v0 = vrot.slane %v749_v54, %v537_v58 }
 0x2c3   :  { %1959 = vmatpush3.msra.mxu0 %v964_v2  ;;  %1994 = vmatpush3.msra.mxu1 %v996_v3 }
 0x2c4   :  { %1960 = vmatprep.subr.mxu0 %v979_v4  ;;  %1995 = vmatprep.subr.mxu1 %v1011_v6 }
 0x2c5   :  { %1961 = vmatpush3.msra.mxu0 %v963_v7  ;;  %1996 = vmatpush3.msra.mxu1 %v995_v8 }
 0x2c6   :  { %1962 = vmatprep.subr.mxu0 %v978_v9  ;;  %1997 = vmatprep.subr.mxu1 %v1010_v10 }
 0x2c7   :  { %1963 = vmatpush3.msra.mxu0 %v962_v11  ;;  %1998 = vmatpush3.msra.mxu1 %v994_v12 }
 0x2c8   :  { %1964 = vmatprep.subr.mxu0 %v977_v13  ;;  %1999 = vmatprep.subr.mxu1 %v1009_v14 }
 0x2c9   :  { %1965 = vmatpush3.msra.mxu0 %v961_v15  ;;  %2000 = vmatpush3.msra.mxu1 %v993_v16 }
 0x2ca   :  { %1966 = vmatprep.subr.mxu0 %v976_v17  ;;  %2001 = vmatprep.subr.mxu1 %v1008_v18 }
 0x2cb   :  { %1967 = vmatpush3.msra.mxu0 %v960_v19  ;;  %2002 = vmatpush3.msra.mxu1 %v992_v20 }
 0x2cc   :  { %1968 = vmatprep.subr.mxu0 %v975_v21  ;;  %2003 = vmatprep.subr.mxu1 %v1007_v22 }
 0x2cd   :  { %1969 = vmatpush3.msra.mxu0 %v959_v23  ;;  %2004 = vmatpush3.msra.mxu1 %v991_v24 }
 0x2ce   :  { %1970 = vmatprep.subr.mxu0 %v974_v25  ;;  %2005 = vmatprep.subr.mxu1 %v1006_v26 }
 0x2cf   :  { %1971 = vmatpush3.msra.mxu0 %v958_v27  ;;  %2006 = vmatpush3.msra.mxu1 %v990_v28 }
 0x2d0   :  { %1972 = vmatprep.subr.mxu0 %v973_v29  ;;  %2007 = vmatprep.subr.mxu1 %v1005_v30  ;;  %v521_v30 = vld [vmem:[%s3773_s7] sm:$0xf] }
 0x2d1   :  { %1973 = vmatpush3.msra.mxu0 %v957_v31  ;;  %2008 = vmatpush3.msra.mxu1 %v989_v32 }
 0x2d2   :  { %1974 = vmatprep.subr.mxu0 %v972_v33  ;;  %2009 = vmatprep.subr.mxu1 %v1004_v34  ;;  %v530_v33 = vrot.slane %v521_v30, %v529_v57 }
 0x2d3   :  { %1975 = vmatpush3.msra.mxu0 %v956_v35  ;;  %2010 = vmatpush3.msra.mxu1 %v988_v36  ;;  %v526_v36 = vrot.slane %v521_v30, %v525_v55 }
 0x2d4   :  { %1976 = vmatprep.subr.mxu0 %v971_v37  ;;  %2011 = vmatprep.subr.mxu1 %v1003_v38  ;;  %v538_v37 = vrot.slane %v521_v30, %v537_v58 }
 0x2d5   :  { %1977 = vmatpush3.msra.mxu0 %v955_v39  ;;  %2012 = vmatpush3.msra.mxu1 %v987_v40 }
 0x2d6   :  { %1978 = vmatprep.subr.mxu0 %v970_v41  ;;  %2013 = vmatprep.subr.mxu1 %v1002_v42  ;;  %v534_v41 = vrot.slane %v521_v30, %v533_v56  ;;  %v1235_v30 = vld [vmem:[%s3775_s15 + $0x148] sm:$0xff] }
 0x2d7   :  { %1979 = vmatpush3.msra.mxu0 %v954_v43  ;;  %2014 = vmatpush3.msra.mxu1 %v986_v45 }
 0x2d8   :  { %1980 = vmatprep.subr.mxu0 %v969_v46  ;;  %2015 = vmatprep.subr.mxu1 %v1001_v47 }
 0x2d9   :  { %1981 = vmatpush3.msra.mxu0 %v953_v49  ;;  %2016 = vmatpush3.msra.mxu1 %v985_v50 }
 0x358   :  { %v3105_v52 = vpop.f32.mrf.mxu0  ;;  %v3107_v53 = vpop.f32.mrf.mxu1 }
 0x359   :  { %v610_v54 = vadd.f32 %v3105_v52, %v526_v36  ;;  %v681_v55 = vadd.f32 %v3107_v53, %v534_v41  ;;  %v1843_v52 = vld [vmem:[%s3774_s11] ss:$0 sm:$0xff]  ;;  %v1228_v41 = vld [vmem:[%s3775_s15 + $0x110] sm:$0xff] }
 0x35a   :  { %v611_v61 = vpop.f32.mrf.mxu0  ;;  %v682_v62 = vpop.f32.mrf.mxu1  ;;  %v1230_v36 = vld [vmem:[%s3775_s15 + $0x120] sm:$0xff] }
 0x35b   :  { %v612_v50 = vadd.f32 %v611_v61, %v530_v33  ;;  %v683_v57 = vadd.f32 %v682_v62, %v538_v37  ;;  %v1236_v33 = vld [vmem:[%s3775_s15 + $0x150] sm:$0xff] }
 0x35c   :  { %v1232_v37 = vld [vmem:[%s3775_s15 + $0x130] sm:$0xff] }
 0x379   :  { %v837_v1 = vpop.f32.mrf.mxu0  ;;  %v908_v2 = vpop.f32.mrf.mxu1 }
 0x37a   :  { %v838_v3 = vadd.f32 %v837_v1, %v754_v59  ;;  %v909_v4 = vadd.f32 %v908_v2, %v762_v60 }
 0x37b   :  { %v839_v6 = vpop.f32.mrf.mxu0  ;;  %v910_v7 = vpop.f32.mrf.mxu1 }
 0x37c   :  { %v917_v8 = vmul.f32 0.044715, %v838_v3  ;;  %v919_v9 = vmul.f32 0.044715, %v909_v4  ;;  %v840_v10 = vadd.f32 %v839_v6, %v758_v63  ;;  %v911_v11 = vadd.f32 %v910_v7, %v766_v0  ;;  %v1255_v7 = vld [vmem:[%s3775_s15 + $0x1e8] sm:$0xff] }
 0x37d   :  { %v913_v38 = vmul.f32 0.5, %v838_v3  ;;  %v915_v45 = vmul.f32 0.5, %v909_v4  ;;  %1258 = vmatprep.subr.mxu0 %v1255_v7  ;;  %v1200_v7 = vld [vmem:[%s3775_s15 + $0x30] sm:$0xff] }
 0x37e   :  { %v921_v12 = vmul.f32 %v917_v8, %v838_v3  ;;  %v923_v13 = vmul.f32 %v919_v9, %v909_v4  ;;  %v918_v14 = vmul.f32 0.044715, %v840_v10  ;;  %v920_v15 = vmul.f32 0.044715, %v911_v11  ;;  %v1257_v8 = vld [vmem:[%s3775_s15 + $0x1f8] sm:$0xff]  ;;  %v1254_v9 = vld [vmem:[%s3775_s15 + $0x1e0] sm:$0xff] }
 0x37f   :  { %v914_v42 = vmul.f32 0.5, %v840_v10  ;;  %v916_v46 = vmul.f32 0.5, %v911_v11  ;;  %1329 = vmatprep.subr.mxu1 %v1257_v8  ;;  %v1195_v8 = vld [vmem:[%s3775_s15 + $0x8] sm:$0xff] }
 0x380   :  { %v925_v16 = vmul.f32 %v921_v12, %v838_v3  ;;  %v927_v17 = vmul.f32 %v923_v13, %v909_v4  ;;  %v922_v18 = vmul.f32 %v918_v14, %v840_v10  ;;  %v924_v19 = vmul.f32 %v920_v15, %v911_v11  ;;  %v1250_v12 = vld [vmem:[%s3775_s15 + $0x1c0] sm:$0xff]  ;;  %v1252_v13 = vld [vmem:[%s3775_s15 + $0x1d0] sm:$0xff]  ;;  %v1247_v14 = vld [vmem:[%s3775_s15 + $0x1a8] sm:$0xff] }
 0x381   :  { %v1249_v15 = vld [vmem:[%s3775_s15 + $0x1b8] sm:$0xff] }
 0x382   :  { %v929_v20 = vadd.f32 %v925_v16, %v838_v3  ;;  %v931_v21 = vadd.f32 %v927_v17, %v909_v4  ;;  %v926_v22 = vmul.f32 %v922_v18, %v840_v10  ;;  %v928_v23 = vmul.f32 %v924_v19, %v911_v11  ;;  %v1246_v16 = vld [vmem:[%s3775_s15 + $0x1a0] sm:$0xff]  ;;  %v1248_v17 = vld [vmem:[%s3775_s15 + $0x1b0] sm:$0xff]  ;;  %v1243_v18 = vld [vmem:[%s3775_s15 + $0x188] sm:$0xff] }
 0x383   :  { %v1245_v19 = vld [vmem:[%s3775_s15 + $0x198] sm:$0xff] }
 0x384   :  { %v933_v24 = vmul.f32 0.7978846, %v929_v20  ;;  %v935_v25 = vmul.f32 0.7978846, %v931_v21  ;;  %v930_v26 = vadd.f32 %v926_v22, %v840_v10  ;;  %v932_v27 = vadd.f32 %v928_v23, %v911_v11  ;;  %v1256_v10 = vld [vmem:[%s3775_s15 + $0x1f0] sm:$0xff]  ;;  %v1253_v11 = vld [vmem:[%s3775_s15 + $0x1d8] sm:$0xff] }
 0x385   :  { %v1242_v20 = vld [vmem:[%s3775_s15 + $0x180] sm:$0xff]  ;;  %v1244_v21 = vld [vmem:[%s3775_s15 + $0x190] sm:$0xff]  ;;  %v1239_v22 = vld [vmem:[%s3775_s15 + $0x168] sm:$0xff] }
 0x386   :  { %2094 = vtanh.f32 %v933_v24  ;;  %v934_v28 = vmul.f32 0.7978846, %v930_v26  ;;  %v936_v29 = vmul.f32 0.7978846, %v932_v27  ;;  %v1241_v23 = vld [vmem:[%s3775_s15 + $0x178] sm:$0xff] }
 0x387   :  { %2096 = vtanh.f32 %v935_v25 }
 0x388   :  { %2098 = vtanh.f32 %v934_v28  ;;  %v1238_v28 = vld [vmem:[%s3775_s15 + $0x160] sm:$0xff] }
 0x389   :  { %2100 = vtanh.f32 %v936_v29  ;;  %v1240_v29 = vld [vmem:[%s3775_s15 + $0x170] sm:$0xff] }
 0x393   :  { %v2095_v31 = vpop.eup %2094 }
 0x394   :  { %v2097_v32 = vpop.eup %2096  ;;  %v941_v34 = vadd.f32 1.0, %v2095_v31  ;;  %v1237_v31 = vld [vmem:[%s3775_s15 + $0x158] sm:$0xff] }
 0x395   :  { %v2099_v35 = vpop.eup %2098  ;;  %v943_v39 = vadd.f32 1.0, %v2097_v32  ;;  %v1234_v32 = vld [vmem:[%s3775_s15 + $0x140] sm:$0xff] }
 0x396   :  { %v2101_v40 = vpop.eup %2100  ;;  %v942_v43 = vadd.f32 1.0, %v2099_v35  ;;  %v945_v49 = vmul.f32 %v941_v34, %v913_v38  ;;  %v1231_v34 = vld [vmem:[%s3775_s15 + $0x128] sm:$0xff]  ;;  %v1233_v35 = vld [vmem:[%s3775_s15 + $0x138] sm:$0xff] }
 0x397   :  { %v944_v47 = vadd.f32 1.0, %v2101_v40  ;;  %v947_v44 = vmul.f32 %v943_v39, %v915_v45  ;;  %v1227_v38 = vld [vmem:[%s3775_s15 + $0x108] sm:$0xff]  ;;  %v1229_v39 = vld [vmem:[%s3775_s15 + $0x118] sm:$0xff]  ;;  %v1226_v40 = vld [vmem:[%s3775_s15 + $0x100] sm:$0xff] }
 0x398   :  { %v946_v51 = vmul.f32 %v942_v43, %v914_v42  ;;  %v949_v63 = vmul.f32 %v945_v49, %v610_v54  ;;  %v1223_v42 = vld [vmem:[%s3775_s15 + $0xe8] sm:$0xff]  ;;  %v1225_v43 = vld [vmem:[%s3775_s15 + $0xf8] sm:$0xff]  ;;  %v1222_v45 = vld [vmem:[%s3775_s15 + $0xe0] sm:$0xff] }
 0x399   :  { %v948_v59 = vmul.f32 %v944_v47, %v916_v46  ;;  %v951_v56 = vmul.f32 %v947_v44, %v681_v55  ;;  %v1224_v46 = vld [vmem:[%s3775_s15 + $0xf0] sm:$0xff]  ;;  %v1219_v47 = vld [vmem:[%s3775_s15 + $0xc8] sm:$0xff]  ;;  %v1221_v49 = vld [vmem:[%s3775_s15 + $0xd8] sm:$0xff] }
 0x39a   :  { %v950_v58 = vmul.f32 %v946_v51, %v612_v50  ;;  %v1218_v50 = vld [vmem:[%s3775_s15 + $0xc0] sm:$0xff]  ;;  %v1220_v51 = vld [vmem:[%s3775_s15 + $0xd0] sm:$0xff]  ;;  %v1215_v44 = vld [vmem:[%s3775_s15 + $0xa8] sm:$0xff] }
 0x39b   :  { %v952_v60 = vmul.f32 %v948_v59, %v683_v57  ;;  %v1217_v54 = vld [vmem:[%s3775_s15 + $0xb8] sm:$0xff]  ;;  %v1214_v57 = vld [vmem:[%s3775_s15 + $0xa0] sm:$0xff]  ;;  %v1216_v59 = vld [vmem:[%s3775_s15 + $0xb0] sm:$0xff] }
 0x39c   :  { %1088 = vmatprep.mubr.f32.mxu0 %v950_v58  ;;  %v1211_v55 = vld [vmem:[%s3775_s15 + $0x88] sm:$0xff]  ;;  %v1213_v58 = vld [vmem:[%s3775_s15 + $0x98] sm:$0xff] }
 0x39d   :  { %1158 = vmatprep.mubr.f32.mxu1 %v952_v60  ;;  %1089 = vmatmul.mubr.f32.vlgmr.msra.gmra.mxu0 %v949_v63  ;;  %v1210_v60 = vld [vmem:[%s3775_s15 + $0x80] sm:$0xff]  ;;  %v1212_v63 = vld [vmem:[%s3775_s15 + $0x90] sm:$0xff] }
 0x39e   :  { %1159 = vmatmul.mubr.f32.vlgmr.msra.gmra.mxu1 %v951_v56  ;;  %1322 = vmatprep.mubr.f32.mxu0 %v2104_v5  ;;  %v1207_v56 = vld [vmem:[%s3775_s15 + $0x68] sm:$0xff] }
 0x39f   :  { %1393 = vmatprep.mubr.f32.mxu1 %v2104_v5  ;;  %1259 = vmatpush1.msra.mxu0 %v1254_v9  ;;  %v1197_v9 = vld [vmem:[%s3775_s15 + $0x18] sm:$0xff] }
 0x3a0   :  { %1330 = vmatpush1.msra.mxu1 %v1256_v10  ;;  %v1194_v10 = vld [vmem:[%s3775_s15] sm:$0xff] }
 0x3a1   :  { %1331 = vmatprep.subr.mxu1 %v1253_v11  ;;  %v1465_v11 = vld [vmem:[%s3776_s16 + $0x1e8] sm:$0xff] }
 0x3a2   :  { %1332 = vmatpush1.msra.mxu1 %v1252_v13 }
 0x3a3   :  { %1333 = vmatprep.subr.mxu1 %v1249_v15 }
 0x3a4   :  { %1334 = vmatpush1.msra.mxu1 %v1248_v17  ;;  %v1844_v17 = vld [vmem:[%s3777_s13] ss:$0 sm:$0xff] }
 0x3a5   :  { %1335 = vmatprep.subr.mxu1 %v1245_v19  ;;  %v1845_v19 = vld [vmem:[%s3778_s14] ss:$0 sm:$0xff] }
 0x3a6   :  { %1336 = vmatpush1.msra.mxu1 %v1244_v21 }
 0x3a7   :  { %1337 = vmatprep.subr.mxu1 %v1241_v23  ;;  %v1466_v23 = vld [vmem:[%s3776_s16 + $0x1f0] sm:$0xff] }
 0x3a8   :  { %1338 = vmatpush1.msra.mxu1 %v1240_v29  ;;  %v1459_v29 = vld [vmem:[%s3776_s16 + $0x1b8] sm:$0xff] }
 0x3a9   :  { %1339 = vmatprep.subr.mxu1 %v1237_v31  ;;  %v1458_v31 = vld [vmem:[%s3776_s16 + $0x1b0] sm:$0xff] }
 0x3aa   :  { %1340 = vmatpush1.msra.mxu1 %v1236_v33  ;;  %v1455_v33 = vld [vmem:[%s3776_s16 + $0x198] sm:$0xff] }
 0x3ab   :  { %1341 = vmatprep.subr.mxu1 %v1233_v35  ;;  %v1454_v35 = vld [vmem:[%s3776_s16 + $0x190] sm:$0xff] }
 0x3ac   :  { %1342 = vmatpush1.msra.mxu1 %v1232_v37  ;;  %v1451_v37 = vld [vmem:[%s3776_s16 + $0x178] sm:$0xff] }
 0x3ad   :  { %1343 = vmatprep.subr.mxu1 %v1229_v39  ;;  %v1450_v39 = vld [vmem:[%s3776_s16 + $0x170] sm:$0xff] }
 0x3ae   :  { %1344 = vmatpush1.msra.mxu1 %v1228_v41  ;;  %v1447_v41 = vld [vmem:[%s3776_s16 + $0x158] sm:$0xff] }
 0x3af   :  { %1345 = vmatprep.subr.mxu1 %v1225_v43  ;;  %v1446_v43 = vld [vmem:[%s3776_s16 + $0x150] sm:$0xff] }
 0x3b0   :  { %1346 = vmatpush1.msra.mxu1 %v1224_v46  ;;  %v1443_v46 = vld [vmem:[%s3776_s16 + $0x138] sm:$0xff] }
 0x3b1   :  { %1347 = vmatprep.subr.mxu1 %v1221_v49  ;;  %v1442_v49 = vld [vmem:[%s3776_s16 + $0x130] sm:$0xff] }
 0x3b2   :  { %1348 = vmatpush1.msra.mxu1 %v1220_v51  ;;  %v1439_v51 = vld [vmem:[%s3776_s16 + $0x118] sm:$0xff] }
 0x3b3   :  { %1349 = vmatprep.subr.mxu1 %v1217_v54  ;;  %v1438_v54 = vld [vmem:[%s3776_s16 + $0x110] sm:$0xff] }
 0x3b4   :  { %1350 = vmatpush1.msra.mxu1 %v1216_v59  ;;  %v1435_v59 = vld [vmem:[%s3776_s16 + $0xf8] sm:$0xff] }
 0x3b5   :  { %1351 = vmatprep.subr.mxu1 %v1213_v58  ;;  %v1434_v58 = vld [vmem:[%s3776_s16 + $0xf0] sm:$0xff] }
 0x3b6   :  { %1352 = vmatpush1.msra.mxu1 %v1212_v63  ;;  %v1431_v63 = vld [vmem:[%s3776_s16 + $0xd8] sm:$0xff] }
 0x45d   :  { %v1982_v61 = vpop.f32.mrf.mxu0 }
 0x45e   :  { %v2017_v0 = vpop.f32.mrf.mxu1 }
 0x45f   :  { %v1983_v62 = vpop.f32.mrf.mxu0 }
 0x460   :  { %v1984_v53 = vadd.f32 %v1983_v62, %v1982_v61  ;;  %v2018_v1 = vpop.f32.mrf.mxu1  ;;  %v1209_v61 = vld [vmem:[%s3775_s15 + $0x78] sm:$0xff]  ;;  %v1203_v62 = vld [vmem:[%s3775_s15 + $0x48] sm:$0xff] }
 0x461   :  { %v2019_v3 = vadd.f32 %v2018_v1, %v2017_v0  ;;  %1353 = vmatprep.subr.mxu1 %v1209_v61  ;;  %v1206_v0 = vld [vmem:[%s3775_s15 + $0x60] sm:$0xff]  ;;  %v1430_v61 = vld [vmem:[%s3776_s16 + $0xd0] sm:$0xff] }
 0x462   :  { %v1091_v2 = vadd.f32 %v1984_v53, %v1843_v52  ;;  %v1208_v52 = vld [vmem:[%s3775_s15 + $0x70] sm:$0xff]  ;;  %v1205_v53 = vld [vmem:[%s3775_s15 + $0x58] sm:$0xff]  ;;  %v1202_v1 = vld [vmem:[%s3775_s15 + $0x40] sm:$0xff] }
 0x463   :  { %1354 = vmatpush1.msra.mxu1 %v1208_v52  ;;  %v1427_v52 = vld [vmem:[%s3776_s16 + $0xb8] sm:$0xff] }
 0x464   :  { %v1161_v4 = vadd.f32 %v2019_v3, %v1091_v2  ;;  %1355 = vmatprep.subr.mxu1 %v1205_v53  ;;  %v1204_v2 = vld [vmem:[%s3775_s15 + $0x50] sm:$0xff]  ;;  %v1199_v3 = vld [vmem:[%s3775_s15 + $0x28] sm:$0xff] }
 0x465   :  { %1356 = vmatpush1.msra.mxu1 %v1204_v2  ;;  %v1426_v53 = vld [vmem:[%s3776_s16 + $0xb0] sm:$0xff]  ;;  %v1423_v2 = vld [vmem:[%s3776_s16 + $0x98] sm:$0xff] }
 0x466   :  { %v1164_v6 = vadd.f32 %v1161_v4, %v2719_v48  ;;  %v1251_v48 = vld [vmem:[%s3775_s15 + $0x1c8] sm:$0xff]  ;;  %v1201_v4 = vld [vmem:[%s3775_s15 + $0x38] sm:$0xff] }
 0x467   :  { %1260 = vmatprep.subr.mxu0 %v1251_v48  ;;  %1357 = vmatprep.subr.mxu1 %v1201_v4  ;;  %v1196_v48 = vld [vmem:[%s3775_s15 + $0x10] sm:$0xff] }
 0x468   :  { %1165 = vadd.xlane.f32.xlu0 %v1164_v6  ;;  %1261 = vmatpush1.msra.mxu0 %v1250_v12  ;;  %v1467_v12 = vld [vmem:[%s3776_s16 + $0x1f8] sm:$0xff]  ;;  %v1422_v4 = vld [vmem:[%s3776_s16 + $0x90] sm:$0xff] }
 0x469   :  { %1262 = vmatprep.subr.mxu0 %v1247_v14  ;;  %1358 = vmatpush1.msra.mxu1 %v1200_v7  ;;  %v1419_v7 = vld [vmem:[%s3776_s16 + $0x78] sm:$0xff] }
 0x46a   :  { %1263 = vmatpush1.msra.mxu0 %v1246_v16  ;;  %1359 = vmatprep.subr.mxu1 %v1197_v9  ;;  %v1418_v9 = vld [vmem:[%s3776_s16 + $0x70] sm:$0xff] }
 0x46b   :  { %1264 = vmatprep.subr.mxu0 %v1243_v18  ;;  %1360 = vmatpush1.msra.mxu1 %v1196_v48  ;;  %v1415_v48 = vld [vmem:[%s3776_s16 + $0x58] sm:$0xff] }
 0x46c   :  { %1265 = vmatpush1.msra.mxu0 %v1242_v20  ;;  %1539 = vmatprep.subr.mxu1 %v1467_v12  ;;  %v1414_v12 = vld [vmem:[%s3776_s16 + $0x50] sm:$0xff] }
 0x46d   :  { %1266 = vmatprep.subr.mxu0 %v1239_v22  ;;  %v1464_v22 = vld [vmem:[%s3776_s16 + $0x1e0] sm:$0xff] }
 0x46e   :  { %1267 = vmatpush1.msra.mxu0 %v1238_v28  ;;  %v1457_v28 = vld [vmem:[%s3776_s16 + $0x1a8] sm:$0xff] }
 0x46f   :  { %1268 = vmatprep.subr.mxu0 %v1235_v30  ;;  %v1456_v30 = vld [vmem:[%s3776_s16 + $0x1a0] sm:$0xff] }
 0x470   :  { %1269 = vmatpush1.msra.mxu0 %v1234_v32  ;;  %v1453_v32 = vld [vmem:[%s3776_s16 + $0x188] sm:$0xff] }
 0x471   :  { %1270 = vmatprep.subr.mxu0 %v1231_v34  ;;  %v1452_v34 = vld [vmem:[%s3776_s16 + $0x180] sm:$0xff] }
 0x472   :  { %1271 = vmatpush1.msra.mxu0 %v1230_v36  ;;  %v1449_v36 = vld [vmem:[%s3776_s16 + $0x168] sm:$0xff] }
 0x473   :  { %1272 = vmatprep.subr.mxu0 %v1227_v38  ;;  %v1448_v38 = vld [vmem:[%s3776_s16 + $0x160] sm:$0xff] }
 0x474   :  { %1273 = vmatpush1.msra.mxu0 %v1226_v40  ;;  %v1445_v40 = vld [vmem:[%s3776_s16 + $0x148] sm:$0xff] }
 0x475   :  { %1274 = vmatprep.subr.mxu0 %v1223_v42  ;;  %v1444_v42 = vld [vmem:[%s3776_s16 + $0x140] sm:$0xff] }
 0x476   :  { %1275 = vmatpush1.msra.mxu0 %v1222_v45  ;;  %v1441_v45 = vld [vmem:[%s3776_s16 + $0x128] sm:$0xff] }
 0x477   :  { %1276 = vmatprep.subr.mxu0 %v1219_v47  ;;  %v1440_v47 = vld [vmem:[%s3776_s16 + $0x120] sm:$0xff] }
 0x478   :  { %1277 = vmatpush1.msra.mxu0 %v1218_v50  ;;  %v1437_v50 = vld [vmem:[%s3776_s16 + $0x108] sm:$0xff] }
 0x479   :  { %1278 = vmatprep.subr.mxu0 %v1215_v44  ;;  %v1436_v44 = vld [vmem:[%s3776_s16 + $0x100] sm:$0xff] }
 0x47a   :  { %1279 = vmatpush1.msra.mxu0 %v1214_v57  ;;  %v1433_v57 = vld [vmem:[%s3776_s16 + $0xe8] sm:$0xff] }
 0x47b   :  { %1280 = vmatprep.subr.mxu0 %v1211_v55  ;;  %v1432_v55 = vld [vmem:[%s3776_s16 + $0xe0] sm:$0xff] }
 0x47c   :  { %1281 = vmatpush1.msra.mxu0 %v1210_v60  ;;  %v1429_v60 = vld [vmem:[%s3776_s16 + $0xc8] sm:$0xff] }
 0x47d   :  { %1282 = vmatprep.subr.mxu0 %v1207_v56  ;;  %v1428_v56 = vld [vmem:[%s3776_s16 + $0xc0] sm:$0xff] }
 0x47e   :  { %1283 = vmatpush1.msra.mxu0 %v1206_v0  ;;  %v1425_v0 = vld [vmem:[%s3776_s16 + $0xa8] sm:$0xff] }
 0x47f   :  { %1284 = vmatprep.subr.mxu0 %v1203_v62  ;;  %v1424_v62 = vld [vmem:[%s3776_s16 + $0xa0] sm:$0xff] }
 0x480   :  { %1285 = vmatpush1.msra.mxu0 %v1202_v1  ;;  %v1421_v1 = vld [vmem:[%s3776_s16 + $0x88] sm:$0xff] }
 0x481   :  { %1286 = vmatprep.subr.mxu0 %v1199_v3  ;;  %v1420_v3 = vld [vmem:[%s3776_s16 + $0x80] sm:$0xff] }
 0x4f1   :  { %v1166_v24 = vpop.xlane.xlu0 %1165 }
 0x4f2   :  { %v1168_v25 = vmul.f32 0.0078125, %v1166_v24  ;;  %v1461_v24 = vld [vmem:[%s3776_s16 + $0x1c8] sm:$0xff] }
 0x4f4   :  { %v3177_v26 = vsub.f32 %v1164_v6, %v1168_v25  ;;  %v1198_v6 = vld [vmem:[%s3775_s15 + $0x20] sm:$0xff]  ;;  %v1463_v25 = vld [vmem:[%s3776_s16 + $0x1d8] sm:$0xff] }
 0x4f5   :  { %1287 = vmatpush1.msra.mxu0 %v1198_v6  ;;  %v1417_v6 = vld [vmem:[%s3776_s16 + $0x68] sm:$0xff] }
 0x4f6   :  { %v1170_v27 = vmul.f32 %v3177_v26, %v3177_v26  ;;  %1288 = vmatprep.subr.mxu0 %v1195_v8  ;;  %v1416_v8 = vld [vmem:[%s3776_s16 + $0x60] sm:$0xff] }
 0x4f7   :  { %1289 = vmatpush1.msra.mxu0 %v1194_v10  ;;  %v1413_v10 = vld [vmem:[%s3776_s16 + $0x48] sm:$0xff] }
 0x4f8   :  { %1171 = vadd.xlane.f32.xlu0 %v1170_v27  ;;  %1468 = vmatprep.subr.mxu0 %v1465_v11  ;;  %v1462_v27 = vld [vmem:[%s3776_s16 + $0x1d0] sm:$0xff]  ;;  %v1412_v11 = vld [vmem:[%s3776_s16 + $0x40] sm:$0xff] }
 0x581   :  { %v1172_v13 = vpop.xlane.xlu0 %1171 }
 0x582   :  { %v1173_v14 = vmul.f32 0.0078125, %v1172_v13  ;;  %v1409_v13 = vld [vmem:[%s3776_s16 + $0x28] sm:$0xff] }
 0x584   :  { %v1174_v15 = vadd.f32 1e-05, %v1173_v14  ;;  %v1411_v14 = vld [vmem:[%s3776_s16 + $0x38] sm:$0xff] }
 0x586   :  { %2102 = vrsqrt.f32 %v1174_v15  ;;  %v1408_v15 = vld [vmem:[%s3776_s16 + $0x20] sm:$0xff] }
 0x593   :  { %v2103_v16 = vpop.eup %2102 }
 0x594   :  { %v1176_v18 = vmul.f32 %v2103_v16, %v3177_v26  ;;  %v1460_v26 = vld [vmem:[%s3776_s16 + $0x1c0] sm:$0xff]  ;;  %v1410_v16 = vld [vmem:[%s3776_s16 + $0x30] sm:$0xff] }
 0x596   :  { %v1184_v20 = vmul.f32 %v1844_v17, %v1176_v18  ;;  %v1405_v17 = vld [vmem:[%s3776_s16 + $0x8] sm:$0xff]  ;;  %v1407_v18 = vld [vmem:[%s3776_s16 + $0x18] sm:$0xff] }
 0x598   :  { %v3332_v21 = vadd.f32 %v1845_v19, %v1184_v20  ;;  %v1404_v19 = vld [vmem:[%s3776_s16] sm:$0xff]  ;;  %v1406_v20 = vld [vmem:[%s3776_s16 + $0x10] sm:$0xff] }
 0x59a   :  { %1193 = vst [vmem:[%s3779_s18] sm:$0xff] %v3332_v21  ;;  %1323 = vmatmul.mubr.f32.vlgmr.msra.gmra.mxu0 %v3332_v21  ;;  %1394 = vmatmul.mubr.f32.vlgmr.msra.gmra.mxu1 %v3332_v21 }
 0x59b   :  { %1469 = vmatpush1.msra.mxu0 %v1464_v22  ;;  %1540 = vmatpush1.msra.mxu1 %v1466_v23  ;;  %v1675_v22 = vld [vmem:[%s3780_s17 + $0x1e8] sm:$0xff]  ;;  %v1677_v23 = vld [vmem:[%s3780_s17 + $0x1f8] sm:$0xff] }
 0x59c   :  { %1470 = vmatprep.subr.mxu0 %v1461_v24  ;;  %1541 = vmatprep.subr.mxu1 %v1463_v25  ;;  %v1674_v24 = vld [vmem:[%s3780_s17 + $0x1e0] sm:$0xff]  ;;  %v1676_v25 = vld [vmem:[%s3780_s17 + $0x1f0] sm:$0xff] }
 0x59d   :  { %1471 = vmatpush1.msra.mxu0 %v1460_v26  ;;  %1542 = vmatpush1.msra.mxu1 %v1462_v27  ;;  %v1671_v26 = vld [vmem:[%s3780_s17 + $0x1c8] sm:$0xff]  ;;  %v1673_v27 = vld [vmem:[%s3780_s17 + $0x1d8] sm:$0xff] }
 0x59e   :  { %1472 = vmatprep.subr.mxu0 %v1457_v28  ;;  %1543 = vmatprep.subr.mxu1 %v1459_v29  ;;  %v1670_v28 = vld [vmem:[%s3780_s17 + $0x1c0] sm:$0xff]  ;;  %v1672_v29 = vld [vmem:[%s3780_s17 + $0x1d0] sm:$0xff] }
 0x59f   :  { %1473 = vmatpush1.msra.mxu0 %v1456_v30  ;;  %1544 = vmatpush1.msra.mxu1 %v1458_v31  ;;  %v1667_v30 = vld [vmem:[%s3780_s17 + $0x1a8] sm:$0xff]  ;;  %v1669_v31 = vld [vmem:[%s3780_s17 + $0x1b8] sm:$0xff] }
 0x5a0   :  { %1474 = vmatprep.subr.mxu0 %v1453_v32  ;;  %1545 = vmatprep.subr.mxu1 %v1455_v33  ;;  %v1666_v32 = vld [vmem:[%s3780_s17 + $0x1a0] sm:$0xff]  ;;  %v1668_v33 = vld [vmem:[%s3780_s17 + $0x1b0] sm:$0xff] }
 0x5a1   :  { %1475 = vmatpush1.msra.mxu0 %v1452_v34  ;;  %1546 = vmatpush1.msra.mxu1 %v1454_v35  ;;  %v1663_v34 = vld [vmem:[%s3780_s17 + $0x188] sm:$0xff]  ;;  %v1665_v35 = vld [vmem:[%s3780_s17 + $0x198] sm:$0xff] }
 0x5a2   :  { %1476 = vmatprep.subr.mxu0 %v1449_v36  ;;  %1547 = vmatprep.subr.mxu1 %v1451_v37  ;;  %v1662_v36 = vld [vmem:[%s3780_s17 + $0x180] sm:$0xff]  ;;  %v1664_v37 = vld [vmem:[%s3780_s17 + $0x190] sm:$0xff] }
 0x5a3   :  { %1477 = vmatpush1.msra.mxu0 %v1448_v38  ;;  %1548 = vmatpush1.msra.mxu1 %v1450_v39  ;;  %v1659_v38 = vld [vmem:[%s3780_s17 + $0x168] sm:$0xff]  ;;  %v1661_v39 = vld [vmem:[%s3780_s17 + $0x178] sm:$0xff] }
 0x5a4   :  { %1478 = vmatprep.subr.mxu0 %v1445_v40  ;;  %1549 = vmatprep.subr.mxu1 %v1447_v41  ;;  %v1658_v40 = vld [vmem:[%s3780_s17 + $0x160] sm:$0xff]  ;;  %v1660_v41 = vld [vmem:[%s3780_s17 + $0x170] sm:$0xff] }
 0x5a5   :  { %1479 = vmatpush1.msra.mxu0 %v1444_v42  ;;  %1550 = vmatpush1.msra.mxu1 %v1446_v43  ;;  %v1655_v42 = vld [vmem:[%s3780_s17 + $0x148] sm:$0xff]  ;;  %v1657_v43 = vld [vmem:[%s3780_s17 + $0x158] sm:$0xff] }
 0x5a6   :  { %1480 = vmatprep.subr.mxu0 %v1441_v45  ;;  %1551 = vmatprep.subr.mxu1 %v1443_v46  ;;  %v1654_v45 = vld [vmem:[%s3780_s17 + $0x140] sm:$0xff]  ;;  %v1656_v46 = vld [vmem:[%s3780_s17 + $0x150] sm:$0xff] }
 0x5a7   :  { %1481 = vmatpush1.msra.mxu0 %v1440_v47  ;;  %1552 = vmatpush1.msra.mxu1 %v1442_v49  ;;  %v1651_v47 = vld [vmem:[%s3780_s17 + $0x128] sm:$0xff]  ;;  %v1653_v49 = vld [vmem:[%s3780_s17 + $0x138] sm:$0xff] }
 0x5a8   :  { %1482 = vmatprep.subr.mxu0 %v1437_v50  ;;  %1553 = vmatprep.subr.mxu1 %v1439_v51  ;;  %v1650_v50 = vld [vmem:[%s3780_s17 + $0x120] sm:$0xff]  ;;  %v1652_v51 = vld [vmem:[%s3780_s17 + $0x130] sm:$0xff] }
 0x5a9   :  { %1483 = vmatpush1.msra.mxu0 %v1436_v44  ;;  %1554 = vmatpush1.msra.mxu1 %v1438_v54  ;;  %v1647_v44 = vld [vmem:[%s3780_s17 + $0x108] sm:$0xff]  ;;  %v1649_v54 = vld [vmem:[%s3780_s17 + $0x118] sm:$0xff] }
 0x5aa   :  { %1484 = vmatprep.subr.mxu0 %v1433_v57  ;;  %1555 = vmatprep.subr.mxu1 %v1435_v59  ;;  %v1646_v57 = vld [vmem:[%s3780_s17 + $0x100] sm:$0xff]  ;;  %v1648_v59 = vld [vmem:[%s3780_s17 + $0x110] sm:$0xff] }
 0x5ab   :  { %1485 = vmatpush1.msra.mxu0 %v1432_v55  ;;  %1556 = vmatpush1.msra.mxu1 %v1434_v58  ;;  %v1643_v55 = vld [vmem:[%s3780_s17 + $0xe8] sm:$0xff]  ;;  %v1645_v58 = vld [vmem:[%s3780_s17 + $0xf8] sm:$0xff] }
 0x5ac   :  { %1486 = vmatprep.subr.mxu0 %v1429_v60  ;;  %1557 = vmatprep.subr.mxu1 %v1431_v63  ;;  %v1642_v60 = vld [vmem:[%s3780_s17 + $0xe0] sm:$0xff]  ;;  %v1644_v63 = vld [vmem:[%s3780_s17 + $0xf0] sm:$0xff] }
 0x5ad   :  { %1487 = vmatpush1.msra.mxu0 %v1428_v56  ;;  %1558 = vmatpush1.msra.mxu1 %v1430_v61  ;;  %v1639_v56 = vld [vmem:[%s3780_s17 + $0xc8] sm:$0xff]  ;;  %v1641_v61 = vld [vmem:[%s3780_s17 + $0xd8] sm:$0xff] }
 0x5ae   :  { %1488 = vmatprep.subr.mxu0 %v1425_v0  ;;  %1559 = vmatprep.subr.mxu1 %v1427_v52  ;;  %v1638_v0 = vld [vmem:[%s3780_s17 + $0xc0] sm:$0xff]  ;;  %v1640_v52 = vld [vmem:[%s3780_s17 + $0xd0] sm:$0xff] }
 0x5af   :  { %1489 = vmatpush1.msra.mxu0 %v1424_v62  ;;  %1560 = vmatpush1.msra.mxu1 %v1426_v53  ;;  %v1635_v62 = vld [vmem:[%s3780_s17 + $0xa8] sm:$0xff]  ;;  %v1637_v53 = vld [vmem:[%s3780_s17 + $0xb8] sm:$0xff] }
 0x5b0   :  { %1490 = vmatprep.subr.mxu0 %v1421_v1  ;;  %1561 = vmatprep.subr.mxu1 %v1423_v2  ;;  %v1634_v1 = vld [vmem:[%s3780_s17 + $0xa0] sm:$0xff]  ;;  %v1636_v2 = vld [vmem:[%s3780_s17 + $0xb0] sm:$0xff] }
 0x5b1   :  { %1491 = vmatpush1.msra.mxu0 %v1420_v3  ;;  %1562 = vmatpush1.msra.mxu1 %v1422_v4  ;;  %v1631_v3 = vld [vmem:[%s3780_s17 + $0x88] sm:$0xff]  ;;  %v1633_v4 = vld [vmem:[%s3780_s17 + $0x98] sm:$0xff] }
 0x5b2   :  { %1492 = vmatprep.subr.mxu0 %v1417_v6  ;;  %1563 = vmatprep.subr.mxu1 %v1419_v7  ;;  %v1630_v6 = vld [vmem:[%s3780_s17 + $0x80] sm:$0xff]  ;;  %v1632_v7 = vld [vmem:[%s3780_s17 + $0x90] sm:$0xff] }
 0x5b3   :  { %1493 = vmatpush1.msra.mxu0 %v1416_v8  ;;  %1564 = vmatpush1.msra.mxu1 %v1418_v9  ;;  %v1627_v8 = vld [vmem:[%s3780_s17 + $0x68] sm:$0xff]  ;;  %v1629_v9 = vld [vmem:[%s3780_s17 + $0x78] sm:$0xff] }
 0x5b4   :  { %1494 = vmatprep.subr.mxu0 %v1413_v10  ;;  %1565 = vmatprep.subr.mxu1 %v1415_v48  ;;  %v1626_v10 = vld [vmem:[%s3780_s17 + $0x60] sm:$0xff]  ;;  %v1628_v48 = vld [vmem:[%s3780_s17 + $0x70] sm:$0xff] }
 0x5b5   :  { %1495 = vmatpush1.msra.mxu0 %v1412_v11  ;;  %1566 = vmatpush1.msra.mxu1 %v1414_v12  ;;  %v1623_v11 = vld [vmem:[%s3780_s17 + $0x48] sm:$0xff]  ;;  %v1625_v12 = vld [vmem:[%s3780_s17 + $0x58] sm:$0xff] }
 0x5b6   :  { %1496 = vmatprep.subr.mxu0 %v1409_v13  ;;  %1567 = vmatprep.subr.mxu1 %v1411_v14  ;;  %v1622_v13 = vld [vmem:[%s3780_s17 + $0x40] sm:$0xff]  ;;  %v1624_v14 = vld [vmem:[%s3780_s17 + $0x50] sm:$0xff] }
 0x5b7   :  { %1497 = vmatpush1.msra.mxu0 %v1408_v15  ;;  %1568 = vmatpush1.msra.mxu1 %v1410_v16  ;;  %v1619_v15 = vld [vmem:[%s3780_s17 + $0x28] sm:$0xff]  ;;  %v1621_v16 = vld [vmem:[%s3780_s17 + $0x38] sm:$0xff] }
 0x5b8   :  { %1498 = vmatprep.subr.mxu0 %v1405_v17  ;;  %1569 = vmatprep.subr.mxu1 %v1407_v18  ;;  %v1618_v17 = vld [vmem:[%s3780_s17 + $0x20] sm:$0xff]  ;;  %v1620_v18 = vld [vmem:[%s3780_s17 + $0x30] sm:$0xff] }
 0x5b9   :  { %1499 = vmatpush1.msra.mxu0 %v1404_v19  ;;  %1532 = vmatprep.mubr.f32.mxu0 %v2104_v5  ;;  %v1615_v19 = vld [vmem:[%s3780_s17 + $0x8] sm:$0xff] }
 0x5ba   :  { %1570 = vmatpush1.msra.mxu1 %v1406_v20  ;;  %1603 = vmatprep.mubr.f32.mxu1 %v2104_v5  ;;  %v1617_v20 = vld [vmem:[%s3780_s17 + $0x18] sm:$0xff] }
 0x5bb   :  { %1533 = vmatmul.mubr.f32.vlgmr.msra.gmra.mxu0 %v3332_v21  ;;  %1604 = vmatmul.mubr.f32.vlgmr.msra.gmra.mxu1 %v3332_v21 }
 0x5bc   :  { %1678 = vmatprep.subr.mxu0 %v1675_v22  ;;  %1749 = vmatprep.subr.mxu1 %v1677_v23  ;;  %v1614_v22 = vld [vmem:[%s3780_s17] sm:$0xff]  ;;  %v1616_v23 = vld [vmem:[%s3780_s17 + $0x10] sm:$0xff] }
 0x5bd   :  { %1679 = vmatpush1.msra.mxu0 %v1674_v24  ;;  %1750 = vmatpush1.msra.mxu1 %v1676_v25 }
 0x5be   :  { %1680 = vmatprep.subr.mxu0 %v1671_v26  ;;  %1751 = vmatprep.subr.mxu1 %v1673_v27 }
 0x5bf   :  { %1681 = vmatpush1.msra.mxu0 %v1670_v28  ;;  %1752 = vmatpush1.msra.mxu1 %v1672_v29 }
 0x5c0   :  { %1682 = vmatprep.subr.mxu0 %v1667_v30  ;;  %1753 = vmatprep.subr.mxu1 %v1669_v31 }
 0x5c1   :  { %1683 = vmatpush1.msra.mxu0 %v1666_v32  ;;  %1754 = vmatpush1.msra.mxu1 %v1668_v33 }
 0x5c2   :  { %1684 = vmatprep.subr.mxu0 %v1663_v34  ;;  %1755 = vmatprep.subr.mxu1 %v1665_v35 }
 0x5c3   :  { %1685 = vmatpush1.msra.mxu0 %v1662_v36  ;;  %1756 = vmatpush1.msra.mxu1 %v1664_v37 }
 0x5c4   :  { %1686 = vmatprep.subr.mxu0 %v1659_v38  ;;  %1757 = vmatprep.subr.mxu1 %v1661_v39 }
 0x5c5   :  { %1687 = vmatpush1.msra.mxu0 %v1658_v40  ;;  %1758 = vmatpush1.msra.mxu1 %v1660_v41 }
 0x5c6   :  { %1688 = vmatprep.subr.mxu0 %v1655_v42  ;;  %1759 = vmatprep.subr.mxu1 %v1657_v43 }
 0x5c7   :  { %1689 = vmatpush1.msra.mxu0 %v1654_v45  ;;  %1760 = vmatpush1.msra.mxu1 %v1656_v46 }
 0x5c8   :  { %1690 = vmatprep.subr.mxu0 %v1651_v47  ;;  %1761 = vmatprep.subr.mxu1 %v1653_v49 }
 0x5c9   :  { %1691 = vmatpush1.msra.mxu0 %v1650_v50  ;;  %1762 = vmatpush1.msra.mxu1 %v1652_v51 }
 0x5ca   :  { %1692 = vmatprep.subr.mxu0 %v1647_v44  ;;  %1763 = vmatprep.subr.mxu1 %v1649_v54 }
 0x5cb   :  { %1693 = vmatpush1.msra.mxu0 %v1646_v57  ;;  %1764 = vmatpush1.msra.mxu1 %v1648_v59 }
 0x5cc   :  { %1694 = vmatprep.subr.mxu0 %v1643_v55  ;;  %1765 = vmatprep.subr.mxu1 %v1645_v58 }
 0x5cd   :  { %1695 = vmatpush1.msra.mxu0 %v1642_v60  ;;  %1766 = vmatpush1.msra.mxu1 %v1644_v63 }
 0x5ce   :  { %1696 = vmatprep.subr.mxu0 %v1639_v56  ;;  %1767 = vmatprep.subr.mxu1 %v1641_v61 }
 0x5cf   :  { %1697 = vmatpush1.msra.mxu0 %v1638_v0  ;;  %1768 = vmatpush1.msra.mxu1 %v1640_v52 }
 0x5d0   :  { %1698 = vmatprep.subr.mxu0 %v1635_v62  ;;  %1769 = vmatprep.subr.mxu1 %v1637_v53 }
 0x5d1   :  { %1699 = vmatpush1.msra.mxu0 %v1634_v1  ;;  %1770 = vmatpush1.msra.mxu1 %v1636_v2 }
 0x5d2   :  { %1700 = vmatprep.subr.mxu0 %v1631_v3  ;;  %1771 = vmatprep.subr.mxu1 %v1633_v4 }
 0x5d3   :  { %1701 = vmatpush1.msra.mxu0 %v1630_v6  ;;  %1772 = vmatpush1.msra.mxu1 %v1632_v7 }
 0x5d4   :  { %1702 = vmatprep.subr.mxu0 %v1627_v8  ;;  %1773 = vmatprep.subr.mxu1 %v1629_v9 }
 0x5d5   :  { %1703 = vmatpush1.msra.mxu0 %v1626_v10  ;;  %1774 = vmatpush1.msra.mxu1 %v1628_v48 }
 0x5d6   :  { %1704 = vmatprep.subr.mxu0 %v1623_v11  ;;  %1775 = vmatprep.subr.mxu1 %v1625_v12 }
 0x5d7   :  { %1705 = vmatpush1.msra.mxu0 %v1622_v13  ;;  %1776 = vmatpush1.msra.mxu1 %v1624_v14 }
 0x5d8   :  { %1706 = vmatprep.subr.mxu0 %v1619_v15  ;;  %1777 = vmatprep.subr.mxu1 %v1621_v16 }
 0x5d9   :  { %1707 = vmatpush1.msra.mxu0 %v1618_v17  ;;  %1778 = vmatpush1.msra.mxu1 %v1620_v18 }
 0x5da   :  { %1708 = vmatprep.subr.mxu0 %v1615_v19  ;;  %1779 = vmatprep.subr.mxu1 %v1617_v20 }
 0x5db   :  { %1709 = vmatpush1.msra.mxu0 %v1614_v22  ;;  %1742 = vmatprep.mubr.f32.mxu0 %v2104_v5 }
 0x5dc   :  { %1780 = vmatpush1.msra.mxu1 %v1616_v23  ;;  %1813 = vmatprep.mubr.f32.mxu1 %v2104_v5 }
 0x5dd   :  { %1743 = vmatmul.mubr.f32.vlgmr.msra.gmra.mxu0 %v3332_v21  ;;  %1814 = vmatmul.mubr.f32.vlgmr.msra.gmra.mxu1 %v3332_v21 }
 0x65a   :  { %v1324_v24 = vpop.f32.mrf.mxu0  ;;  %v1395_v25 = vpop.f32.mrf.mxu1 }
 0x65b   :  { %1400 = vst [vmem:[%s3781_s19] sm:$0xff] %v1324_v24  ;;  %1402 = vst [vmem:[%s3781_s19 + $0x10] sm:$0xff] %v1395_v25 }
 0x65c   :  { %v1326_v26 = vpop.f32.mrf.mxu0  ;;  %v1397_v27 = vpop.f32.mrf.mxu1 }
 0x65d   :  { %1401 = vst [vmem:[%s3781_s19 + $0x8] sm:$0xff] %v1326_v26  ;;  %1403 = vst [vmem:[%s3781_s19 + $0x18] sm:$0xff] %v1397_v27 }
 0x67b   :  { %v1534_v5 = vpop.f32.mrf.mxu0  ;;  %v1605_v21 = vpop.f32.mrf.mxu1 }
 0x67c   :  { %1610 = vst [vmem:[%s3782_s20] sm:$0xff] %v1534_v5  ;;  %1612 = vst [vmem:[%s3782_s20 + $0x10] sm:$0xff] %v1605_v21 }
 0x67d   :  { %v1536_v28 = vpop.f32.mrf.mxu0  ;;  %v1607_v29 = vpop.f32.mrf.mxu1 }
 0x67e   :  { %1611 = vst [vmem:[%s3782_s20 + $0x8] sm:$0xff] %v1536_v28  ;;  %1613 = vst [vmem:[%s3782_s20 + $0x18] sm:$0xff] %v1607_v29 }
 0x69d   :  { %v1744_v30 = vpop.f32.mrf.mxu0  ;;  %v1815_v31 = vpop.f32.mrf.mxu1 }
 0x69e   :  { %1820 = vst [vmem:[%s3783_s21] sm:$0xff] %v1744_v30  ;;  %1822 = vst [vmem:[%s3783_s21 + $0x10] sm:$0xff] %v1815_v31 }
 0x69f   :  { %v1746_v32 = vpop.f32.mrf.mxu0  ;;  %v1817_v33 = vpop.f32.mrf.mxu1 }
 0x6a0   :  { %1821 = vst [vmem:[%s3783_s21 + $0x8] sm:$0xff] %v1746_v32  ;;  %1823 = vst [vmem:[%s3783_s21 + $0x18] sm:$0xff] %v1817_v33 }

// kernel: saint_forward.8
= control target key start
LH: loop header
LB: loop body
LE: loop exit
PB: predicated region body
PF: predicated region fallthrough
CT: control target
= control target key end

     0   :  { %vm38_vm0 = vcmask 523264   ;;  %v1502_v0 = vmov 0.0   ;;  %vm1503_vm1 = vmmov 0   ;;  %vm647_vm2 = vcmask 64512   ;;  %s1728_s1 = inlined_call_operand.vmem [shape: f32[8,8,64], index: 1, kind: input, shape index: {}]   ;;  %s1729_s0 = inlined_call_operand.vmem [shape: f32[8,8,64], index: 0, kind: input, shape index: {}]   ;;  %s1730_s2 = inlined_call_operand.vmem [shape: f32[8,8,64], index: 2, kind: input, shape index: {}]   ;;  %s1731_s3 = inlined_call_operand.vmem [shape: f32[8,8,64], index: 3, kind: output, shape index: {}]  }
   0x1   :  { %1388 = vmatprep.subr.mxu0 %v1502_v0  ;;  %v22_v1 = vld [vmem:[%s1728_s1] sm:$0xff]  ;;  %1390 = vmatprep.mubr.msk.f32.mxu0 %vm1503_vm1, %v1502_v0  ;;  %v23_v2 = vld [vmem:[%s1728_s1 + $0x8] sm:$0xff]  ;;  %v24_v4 = vld [vmem:[%s1728_s1 + $0x10] sm:$0xff] }
   0x2   :  { %1389 = vmatpush3.xpose.msk.msra.mxu0 %vm38_vm0, %v22_v1  ;;  %1393 = vmatprep.subr.mxu1 %v1502_v0  ;;  %v14_v3 = vld [vmem:[%s1729_s0] sm:$0xff]  ;;  %v15_v5 = vld [vmem:[%s1729_s0 + $0x8] sm:$0xff]  ;;  %v25_v6 = vld [vmem:[%s1728_s1 + $0x18] sm:$0xff] }
   0x3   :  { %1394 = vmatpush3.xpose.msk.msra.mxu1 %vm38_vm0, %v23_v2  ;;  %1398 = vmatprep.subr.mxu0 %v1502_v0  ;;  %v16_v7 = vld [vmem:[%s1729_s0 + $0x10] sm:$0xff]  ;;  %v26_v8 = vld [vmem:[%s1728_s1 + $0x20] sm:$0xff]  ;;  %v17_v9 = vld [vmem:[%s1729_s0 + $0x18] sm:$0xff] }
   0x4   :  { %1395 = vmatprep.mubr.msk.f32.mxu1 %vm1503_vm1, %v1502_v0  ;;  %1403 = vmatprep.subr.mxu1 %v1502_v0  ;;  %v27_v10 = vld [vmem:[%s1728_s1 + $0x28] sm:$0xff]  ;;  %v18_v11 = vld [vmem:[%s1729_s0 + $0x20] sm:$0xff]  ;;  %v28_v12 = vld [vmem:[%s1728_s1 + $0x30] sm:$0xff] }
   0x5   :  { %1391 = vmatmul.mubr.msk.f32.vlgmr.msra.gmra.mxu0 %vm38_vm0, %v14_v3  ;;  %v19_v13 = vld [vmem:[%s1729_s0 + $0x28] sm:$0xff]  ;;  %v29_v14 = vld [vmem:[%s1728_s1 + $0x38] sm:$0xff]  ;;  %v20_v15 = vld [vmem:[%s1729_s0 + $0x30] sm:$0xff] }
   0x6   :  { %1399 = vmatpush3.xpose.msk.msra.mxu0 %vm38_vm0, %v24_v4  ;;  %1396 = vmatmul.mubr.msk.f32.vlgmr.msra.gmra.mxu1 %vm38_vm0, %v15_v5  ;;  %v21_v16 = vld [vmem:[%s1729_s0 + $0x38] sm:$0xff] }
   0x7   :  { %1400 = vmatprep.mubr.msk.f32.mxu0 %vm1503_vm1, %v1502_v0  ;;  %1404 = vmatpush3.xpose.msk.msra.mxu1 %vm38_vm0, %v25_v6 }
   0x8   :  { %1408 = vmatprep.subr.mxu0 %v1502_v0  ;;  %1405 = vmatprep.mubr.msk.f32.mxu1 %vm1503_vm1, %v1502_v0 }
   0x9   :  { %1401 = vmatmul.mubr.msk.f32.vlgmr.msra.gmra.mxu0 %vm38_vm0, %v16_v7  ;;  %1413 = vmatprep.subr.mxu1 %v1502_v0 }
   0xa   :  { %1409 = vmatpush3.xpose.msk.msra.mxu0 %vm38_vm0, %v26_v8  ;;  %1406 = vmatmul.mubr.msk.f32.vlgmr.msra.gmra.mxu1 %vm38_vm0, %v17_v9 }
   0xb   :  { %1410 = vmatprep.mubr.msk.f32.mxu0 %vm1503_vm1, %v1502_v0  ;;  %1414 = vmatpush3.xpose.msk.msra.mxu1 %vm38_vm0, %v27_v10 }
   0xc   :  { %1418 = vmatprep.subr.mxu0 %v1502_v0  ;;  %1415 = vmatprep.mubr.msk.f32.mxu1 %vm1503_vm1, %v1502_v0 }
   0xd   :  { %1411 = vmatmul.mubr.msk.f32.vlgmr.msra.gmra.mxu0 %vm38_vm0, %v18_v11  ;;  %1423 = vmatprep.subr.mxu1 %v1502_v0 }
   0xe   :  { %1419 = vmatpush3.xpose.msk.msra.mxu0 %vm38_vm0, %v28_v12  ;;  %1416 = vmatmul.mubr.msk.f32.vlgmr.msra.gmra.mxu1 %vm38_vm0, %v19_v13 }
   0xf   :  { %1420 = vmatprep.mubr.msk.f32.mxu0 %vm1503_vm1, %v1502_v0  ;;  %1424 = vmatpush3.xpose.msk.msra.mxu1 %vm38_vm0, %v29_v14 }
  0x10   :  { %1425 = vmatprep.mubr.msk.f32.mxu1 %vm1503_vm1, %v1502_v0  ;;  %1428 = vmatprep.subr.mxu0 %v1502_v0 }
  0x11   :  { %1421 = vmatmul.mubr.msk.f32.vlgmr.msra.gmra.mxu0 %vm38_vm0, %v20_v15  ;;  %1433 = vmatprep.subr.mxu1 %v1502_v0 }
  0x12   :  { %1426 = vmatmul.mubr.msk.f32.vlgmr.msra.gmra.mxu1 %vm38_vm0, %v21_v16  ;;  %1430 = vmatprep.mubr.msk.f32.mxu0 %vm1503_vm1, %v1502_v0 }
  0x13   :  { %1435 = vmatprep.mubr.msk.f32.mxu1 %vm1503_vm1, %v1502_v0 }
  0xc5   :  { %v111_v17 = vpop.f32.mrf.mxu0 }
  0xc6   :  { %v648_v18 = vsel %vm647_vm2, %v111_v17, -inf  ;;  %v187_v19 = vpop.f32.mrf.mxu1 }
  0xc7   :  { %649 = vmax.xlane.f32.xlu0 %v648_v18  ;;  %v1392_v20 = vpop.f32.mrf.mxu0  ;;  %v651_v22 = vsel %vm647_vm2, %v187_v19, -inf  ;;  %v30_v18 = vld [vmem:[%s1730_s2] sm:$0xff] }
  0xc8   :  { %v1397_v21 = vpop.f32.mrf.mxu1  ;;  %1429 = vmatpush3.msra.mxu0 %v30_v18 }
  0xc9   :  { %v263_v23 = vpop.f32.mrf.mxu0  ;;  %1438 = vmatprep.subr.mxu0 %v1502_v0 }
  0xca   :  { %v654_v24 = vsel %vm647_vm2, %v263_v23, -inf  ;;  %v339_v25 = vpop.f32.mrf.mxu1 }
  0xcb   :  { %652 = vmax.xlane.f32.xlu0 %v651_v22  ;;  %655 = vmax.xlane.f32.xlu1 %v654_v24  ;;  %v1402_v26 = vpop.f32.mrf.mxu0  ;;  %v657_v28 = vsel %vm647_vm2, %v339_v25, -inf }
  0xcc   :  { %v1407_v27 = vpop.f32.mrf.mxu1 }
  0xcd   :  { %v415_v29 = vpop.f32.mrf.mxu0 }
  0xce   :  { %v660_v30 = vsel %vm647_vm2, %v415_v29, -inf  ;;  %v491_v31 = vpop.f32.mrf.mxu1 }
  0xcf   :  { %658 = vmax.xlane.f32.xlu1 %v657_v28  ;;  %661 = vmax.xlane.f32.xlu0 %v660_v30  ;;  %v1412_v32 = vpop.f32.mrf.mxu0  ;;  %v663_v34 = vsel %vm647_vm2, %v491_v31, -inf }
  0xd0   :  { %v1417_v33 = vpop.f32.mrf.mxu1 }
  0xd1   :  { %v567_v35 = vpop.f32.mrf.mxu0 }
  0xd2   :  { %v666_v36 = vsel %vm647_vm2, %v567_v35, -inf  ;;  %v643_v37 = vpop.f32.mrf.mxu1 }
  0xd3   :  { %664 = vmax.xlane.f32.xlu1 %v663_v34  ;;  %667 = vmax.xlane.f32.xlu0 %v666_v36  ;;  %v1422_v38 = vpop.f32.mrf.mxu0  ;;  %v669_v40 = vsel %vm647_vm2, %v643_v37, -inf  ;;  %v33_v34 = vld [vmem:[%s1730_s2 + $0x18] sm:$0xff]  ;;  %v34_v36 = vld [vmem:[%s1730_s2 + $0x20] sm:$0xff] }
  0xd4   :  { %v1427_v39 = vpop.f32.mrf.mxu1 }
  0xd7   :  { %670 = vmax.xlane.f32.xlu1 %v669_v40  ;;  %v35_v40 = vld [vmem:[%s1730_s2 + $0x28] sm:$0xff] }
 0x150   :  { %v650_v41 = vpop.xlane.xlu0 %649 }
 0x151   :  { %v672_v42 = vsub.f32 %v111_v17, %v650_v41 }
 0x153   :  { %v680_v43 = vmul.f32 1.442695, %v672_v42  ;;  %v36_v42 = vld [vmem:[%s1730_s2 + $0x30] sm:$0xff] }
 0x154   :  { %v653_v44 = vpop.xlane.xlu0 %652  ;;  %v656_v45 = vpop.xlane.xlu1 %655 }
 0x155   :  { %1470 = vpow2.f32 %v680_v43  ;;  %v673_v46 = vsub.f32 %v187_v19, %v653_v44  ;;  %v674_v47 = vsub.f32 %v263_v23, %v656_v45  ;;  %v31_v19 = vld [vmem:[%s1730_s2 + $0x8] sm:$0xff] }
 0x156   :  { %1434 = vmatpush3.msra.mxu1 %v31_v19 }
 0x157   :  { %v682_v48 = vmul.f32 1.442695, %v673_v46  ;;  %v684_v49 = vmul.f32 1.442695, %v674_v47  ;;  %1443 = vmatprep.subr.mxu1 %v1502_v0  ;;  %v37_v46 = vld [vmem:[%s1730_s2 + $0x38] sm:$0xff] }
 0x158   :  { %v659_v50 = vpop.xlane.xlu1 %658  ;;  %v662_v51 = vpop.xlane.xlu0 %661 }
 0x159   :  { %1472 = vpow2.f32 %v682_v48  ;;  %v675_v52 = vsub.f32 %v339_v25, %v659_v50  ;;  %v676_v53 = vsub.f32 %v415_v29, %v662_v51  ;;  %v32_v29 = vld [vmem:[%s1730_s2 + $0x10] sm:$0xff] }
 0x15a   :  { %1474 = vpow2.f32 %v684_v49 }
 0x15b   :  { %v686_v54 = vmul.f32 1.442695, %v675_v52  ;;  %v688_v55 = vmul.f32 1.442695, %v676_v53 }
 0x15c   :  { %v665_v56 = vpop.xlane.xlu1 %664  ;;  %v668_v57 = vpop.xlane.xlu0 %667 }
 0x15d   :  { %1476 = vpow2.f32 %v686_v54  ;;  %v677_v58 = vsub.f32 %v491_v31, %v665_v56  ;;  %v678_v59 = vsub.f32 %v567_v35, %v668_v57 }
 0x15e   :  { %1478 = vpow2.f32 %v688_v55 }
 0x15f   :  { %v690_v60 = vmul.f32 1.442695, %v677_v58  ;;  %v692_v61 = vmul.f32 1.442695, %v678_v59 }
 0x160   :  { %v671_v62 = vpop.xlane.xlu1 %670 }
 0x161   :  { %1480 = vpow2.f32 %v690_v60  ;;  %v679_v63 = vsub.f32 %v643_v37, %v671_v62 }
 0x162   :  { %v1471_v1 = vpop.eup %1470  ;;  %1482 = vpow2.f32 %v692_v61 }
 0x163   :  { %v694_v2 = vmul.f32 1.442695, %v679_v63  ;;  %v696_v3 = vsel %vm647_vm2, %v1471_v1, 0.0 }
 0x164   :  { %697 = vadd.xlane.f32.xlu0 %v696_v3 }
 0x165   :  { %1484 = vpow2.f32 %v694_v2 }
 0x166   :  { %v1473_v4 = vpop.eup %1472 }
 0x167   :  { %v1475_v5 = vpop.eup %1474  ;;  %v699_v6 = vsel %vm647_vm2, %v1473_v4, 0.0 }
 0x168   :  { %700 = vadd.xlane.f32.xlu1 %v699_v6  ;;  %v702_v7 = vsel %vm647_vm2, %v1475_v5, 0.0 }
 0x169   :  { %703 = vadd.xlane.f32.xlu0 %v702_v7 }
 0x16a   :  { %v1477_v8 = vpop.eup %1476 }
 0x16b   :  { %v1479_v9 = vpop.eup %1478  ;;  %v705_v10 = vsel %vm647_vm2, %v1477_v8, 0.0 }
 0x16c   :  { %706 = vadd.xlane.f32.xlu1 %v705_v10  ;;  %v708_v11 = vsel %vm647_vm2, %v1479_v9, 0.0 }
 0x16d   :  { %709 = vadd.xlane.f32.xlu0 %v708_v11 }
 0x16e   :  { %v1631_v12 = vpop.eup %1480 }
 0x16f   :  { %v1633_v13 = vpop.eup %1482  ;;  %v711_v14 = vsel %vm647_vm2, %v1631_v12, 0.0 }
 0x170   :  { %712 = vadd.xlane.f32.xlu1 %v711_v14  ;;  %v714_v15 = vsel %vm647_vm2, %v1633_v13, 0.0 }
 0x171   :  { %715 = vadd.xlane.f32.xlu0 %v714_v15 }
 0x172   :  { %v1639_v16 = vpop.eup %1484 }
 0x173   :  { %v717_v17 = vsel %vm647_vm2, %v1639_v16, 0.0 }
 0x174   :  { %718 = vadd.xlane.f32.xlu1 %v717_v17 }
 0x1ed   :  { %v698_v20 = vpop.xlane.xlu0 %697 }
 0x1ee   :  { %1486 = vrcp.f32 %v698_v20 }
 0x1f1   :  { %v701_v21 = vpop.xlane.xlu1 %700 }
 0x1f2   :  { %1488 = vrcp.f32 %v701_v21  ;;  %v704_v22 = vpop.xlane.xlu0 %703 }
 0x1f3   :  { %1490 = vrcp.f32 %v704_v22 }
 0x1f5   :  { %v707_v23 = vpop.xlane.xlu1 %706 }
 0x1f6   :  { %1492 = vrcp.f32 %v707_v23  ;;  %v710_v24 = vpop.xlane.xlu0 %709 }
 0x1f7   :  { %1494 = vrcp.f32 %v710_v24 }
 0x1f9   :  { %v713_v25 = vpop.xlane.xlu1 %712 }
 0x1fa   :  { %1496 = vrcp.f32 %v713_v25  ;;  %v716_v26 = vpop.xlane.xlu0 %715 }
 0x1fb   :  { %v1487_v27 = vpop.eup %1486  ;;  %1498 = vrcp.f32 %v716_v26 }
 0x1fc   :  { %v728_v28 = vmul.f32 %v1487_v27, %v1471_v1 }
 0x1fd   :  { %v719_v30 = vpop.xlane.xlu1 %718 }
 0x1fe   :  { %1500 = vrcp.f32 %v719_v30  ;;  %1431 = vmatmul.mubr.msk.f32.vlgmr.msra.gmra.mxu0 %vm647_vm2, %v728_v28 }
 0x1ff   :  { %v1489_v31 = vpop.eup %1488  ;;  %1439 = vmatpush3.msra.mxu0 %v32_v29  ;;  %1440 = vmatprep.mubr.msk.f32.mxu0 %vm1503_vm1, %v1502_v0 }
 0x200   :  { %v1491_v32 = vpop.eup %1490  ;;  %v729_v33 = vmul.f32 %v1489_v31, %v1473_v4  ;;  %1448 = vmatprep.subr.mxu0 %v1502_v0 }
 0x201   :  { %v730_v35 = vmul.f32 %v1491_v32, %v1475_v5 }
 0x202   :  { %1436 = vmatmul.mubr.msk.f32.vlgmr.msra.gmra.mxu1 %vm647_vm2, %v729_v33 }
 0x203   :  { %v1493_v37 = vpop.eup %1492  ;;  %1441 = vmatmul.mubr.msk.f32.vlgmr.msra.gmra.mxu0 %vm647_vm2, %v730_v35  ;;  %1444 = vmatpush3.msra.mxu1 %v33_v34 }
 0x204   :  { %v1495_v38 = vpop.eup %1494  ;;  %1445 = vmatprep.mubr.msk.f32.mxu1 %vm1503_vm1, %v1502_v0  ;;  %1449 = vmatpush3.msra.mxu0 %v34_v36  ;;  %v731_v39 = vmul.f32 %v1493_v37, %v1477_v8 }
 0x205   :  { %1450 = vmatprep.mubr.msk.f32.mxu0 %vm1503_vm1, %v1502_v0  ;;  %v732_v41 = vmul.f32 %v1495_v38, %v1479_v9  ;;  %1453 = vmatprep.subr.mxu1 %v1502_v0 }
 0x206   :  { %1446 = vmatmul.mubr.msk.f32.vlgmr.msra.gmra.mxu1 %vm647_vm2, %v731_v39  ;;  %1458 = vmatprep.subr.mxu0 %v1502_v0 }
 0x207   :  { %v1497_v43 = vpop.eup %1496  ;;  %1451 = vmatmul.mubr.msk.f32.vlgmr.msra.gmra.mxu0 %vm647_vm2, %v732_v41  ;;  %1454 = vmatpush3.msra.mxu1 %v35_v40 }
 0x208   :  { %v1499_v44 = vpop.eup %1498  ;;  %1455 = vmatprep.mubr.msk.f32.mxu1 %vm1503_vm1, %v1502_v0  ;;  %1459 = vmatpush3.msra.mxu0 %v36_v42  ;;  %v733_v45 = vmul.f32 %v1497_v43, %v1631_v12 }
 0x209   :  { %1460 = vmatprep.mubr.msk.f32.mxu0 %vm1503_vm1, %v1502_v0  ;;  %v734_v47 = vmul.f32 %v1499_v44, %v1633_v13  ;;  %1463 = vmatprep.subr.mxu1 %v1502_v0 }
 0x20a   :  { %1456 = vmatmul.mubr.msk.f32.vlgmr.msra.gmra.mxu1 %vm647_vm2, %v733_v45 }
 0x20b   :  { %v1501_v48 = vpop.eup %1500  ;;  %1461 = vmatmul.mubr.msk.f32.vlgmr.msra.gmra.mxu0 %vm647_vm2, %v734_v47  ;;  %1464 = vmatpush3.msra.mxu1 %v37_v46 }
 0x20c   :  { %1465 = vmatprep.mubr.msk.f32.mxu1 %vm1503_vm1, %v1502_v0  ;;  %v735_v49 = vmul.f32 %v1501_v48, %v1639_v16 }
 0x20e   :  { %1466 = vmatmul.mubr.msk.f32.vlgmr.msra.gmra.mxu1 %vm647_vm2, %v735_v49 }
 0x2be   :  { %v805_v50 = vpop.f32.mrf.mxu0 }
 0x2bf   :  { %1320 = vst.msk [vmem:[%s1731_s3] sm:$0xff] %vm38_vm0, %v805_v50 }
 0x2c0   :  { %v1432_v51 = vpop.f32.mrf.mxu0 }
 0x2c2   :  { %v878_v52 = vpop.f32.mrf.mxu1 }
 0x2c3   :  { %1321 = vst.msk [vmem:[%s1731_s3 + $0x8] sm:$0xff] %vm38_vm0, %v878_v52  ;;  %v951_v53 = vpop.f32.mrf.mxu0 }
 0x2c4   :  { %1322 = vst.msk [vmem:[%s1731_s3 + $0x10] sm:$0xff] %vm38_vm0, %v951_v53  ;;  %v1437_v0 = vpop.f32.mrf.mxu1 }
 0x2c5   :  { %v1442_v54 = vpop.f32.mrf.mxu0 }
 0x2c6   :  { %v1024_v55 = vpop.f32.mrf.mxu1 }
 0x2c7   :  { %1323 = vst.msk [vmem:[%s1731_s3 + $0x18] sm:$0xff] %vm38_vm0, %v1024_v55  ;;  %v1097_v56 = vpop.f32.mrf.mxu0 }
 0x2c8   :  { %1324 = vst.msk [vmem:[%s1731_s3 + $0x20] sm:$0xff] %vm38_vm0, %v1097_v56  ;;  %v1447_v57 = vpop.f32.mrf.mxu1 }
 0x2c9   :  { %v1452_v58 = vpop.f32.mrf.mxu0 }
 0x2ca   :  { %v1170_v59 = vpop.f32.mrf.mxu1 }
 0x2cb   :  { %1325 = vst.msk [vmem:[%s1731_s3 + $0x28] sm:$0xff] %vm38_vm0, %v1170_v59  ;;  %v1243_v60 = vpop.f32.mrf.mxu0 }
 0x2cc   :  { %1326 = vst.msk [vmem:[%s1731_s3 + $0x30] sm:$0xff] %vm38_vm0, %v1243_v60  ;;  %v1457_v61 = vpop.f32.mrf.mxu1 }
 0x2cd   :  { %v1462_v62 = vpop.f32.mrf.mxu0 }
 0x2ce   :  { %v1316_v63 = vpop.f32.mrf.mxu1 }
 0x2cf   :  { %1327 = vst.msk [vmem:[%s1731_s3 + $0x38] sm:$0xff] %vm38_vm0, %v1316_v63 }
 0x2d0   :  { %v1467_v1 = vpop.f32.mrf.mxu1 }

// kernel: saint_forward.9
= control target key start
LH: loop header
LB: loop body
LE: loop exit
PB: predicated region body
PF: predicated region fallthrough
CT: control target
= control target key end

     0   :  { %s2047_s2 = inlined_call_operand.vmem [shape: f32[512,128], index: 2, kind: input, shape index: {}]   ;;  %s2048_s1 = inlined_call_operand.vmem [shape: f32[8,512], index: 1, kind: input, shape index: {}]   ;;  %s2049_s0 = inlined_call_operand.vmem [shape: f32[8,128], index: 0, kind: input, shape index: {}, may-alias: {0,12}]   ;;  %s2050_s3 = inlined_call_operand.vmem [shape: f32[1,128], index: 3, kind: input, shape index: {}]   ;;  %s2051_s6 = inlined_call_operand.vmem [shape: f32[128,512], index: 6, kind: input, shape index: {}]   ;;  %s2052_s8 = inlined_call_operand.vmem [shape: f32[128,512], index: 8, kind: input, shape index: {}]   ;;  %s2053_s4 = inlined_call_operand.vmem [shape: f32[1,128], index: 4, kind: input, shape index: {}]   ;;  %s2054_s5 = inlined_call_operand.vmem [shape: f32[1,128], index: 5, kind: input, shape index: {}]   ;;  %s2055_s10 = inlined_call_operand.vmem [shape: f32[512,128], index: 10, kind: input, shape index: {}]   ;;  %s2056_s9 = inlined_call_operand.vmem [shape: f32[1,512], index: 9, kind: input, shape index: {}]   ;;  %s2057_s7 = inlined_call_operand.vmem [shape: f32[1,512], index: 7, kind: input, shape index: {}]   ;;  %s2058_s11 = inlined_call_operand.vmem [shape: f32[1,128], index: 11, kind: input, shape index: {}]   ;;  %s2059_s12 = inlined_call_operand.vmem [shape: f32[8,128], index: 12, kind: output, shape index: {}, may-alias: {0,12}]  }
   0x1   :  { %v77_v0 = vld [vmem:[%s2047_s2 + $0xf8] sm:$0xff]  ;;  %v76_v4 = vld [vmem:[%s2047_s2 + $0xf0] sm:$0xff]  ;;  %v75_v8 = vld [vmem:[%s2047_s2 + $0xe8] sm:$0xff] }
   0x2   :  { %v109_v1 = vld [vmem:[%s2047_s2 + $0x1f8] sm:$0xff]  ;;  %1004 = vmatprep.subr.mxu0 %v77_v0  ;;  %v108_v5 = vld [vmem:[%s2047_s2 + $0x1f0] sm:$0xff]  ;;  %v107_v9 = vld [vmem:[%s2047_s2 + $0x1e8] sm:$0xff] }
   0x3   :  { %v61_v2 = vld [vmem:[%s2047_s2 + $0x78] sm:$0xff]  ;;  %1039 = vmatprep.subr.mxu1 %v109_v1  ;;  %v60_v6 = vld [vmem:[%s2047_s2 + $0x70] sm:$0xff]  ;;  %v59_v10 = vld [vmem:[%s2047_s2 + $0x68] sm:$0xff] }
   0x4   :  { %v93_v3 = vld [vmem:[%s2047_s2 + $0x178] sm:$0xff]  ;;  %1005 = vmatpush3.msra.mxu0 %v61_v2  ;;  %v92_v7 = vld [vmem:[%s2047_s2 + $0x170] sm:$0xff]  ;;  %v91_v11 = vld [vmem:[%s2047_s2 + $0x168] sm:$0xff] }
   0x5   :  { %1040 = vmatpush3.msra.mxu1 %v93_v3  ;;  %1006 = vmatprep.subr.mxu0 %v76_v4  ;;  %v74_v12 = vld [vmem:[%s2047_s2 + $0xe0] sm:$0xff]  ;;  %v73_v16 = vld [vmem:[%s2047_s2 + $0xd8] sm:$0xff]  ;;  %v72_v20 = vld [vmem:[%s2047_s2 + $0xd0] sm:$0xff] }
   0x6   :  { %1041 = vmatprep.subr.mxu1 %v108_v5  ;;  %1007 = vmatpush3.msra.mxu0 %v60_v6  ;;  %v106_v13 = vld [vmem:[%s2047_s2 + $0x1e0] sm:$0xff]  ;;  %v105_v17 = vld [vmem:[%s2047_s2 + $0x1d8] sm:$0xff]  ;;  %v104_v21 = vld [vmem:[%s2047_s2 + $0x1d0] sm:$0xff] }
   0x7   :  { %1042 = vmatpush3.msra.mxu1 %v92_v7  ;;  %1008 = vmatprep.subr.mxu0 %v75_v8  ;;  %v58_v14 = vld [vmem:[%s2047_s2 + $0x60] sm:$0xff]  ;;  %v57_v18 = vld [vmem:[%s2047_s2 + $0x58] sm:$0xff]  ;;  %v56_v22 = vld [vmem:[%s2047_s2 + $0x50] sm:$0xff] }
   0x8   :  { %1043 = vmatprep.subr.mxu1 %v107_v9  ;;  %v90_v15 = vld [vmem:[%s2047_s2 + $0x160] sm:$0xff]  ;;  %1009 = vmatpush3.msra.mxu0 %v59_v10  ;;  %v89_v19 = vld [vmem:[%s2047_s2 + $0x158] sm:$0xff]  ;;  %v88_v23 = vld [vmem:[%s2047_s2 + $0x150] sm:$0xff] }
   0x9   :  { %1044 = vmatpush3.msra.mxu1 %v91_v11  ;;  %1010 = vmatprep.subr.mxu0 %v74_v12  ;;  %v71_v24 = vld [vmem:[%s2047_s2 + $0xc8] sm:$0xff]  ;;  %v70_v28 = vld [vmem:[%s2047_s2 + $0xc0] sm:$0xff]  ;;  %v69_v32 = vld [vmem:[%s2047_s2 + $0xb8] sm:$0xff] }
   0xa   :  { %1045 = vmatprep.subr.mxu1 %v106_v13  ;;  %1011 = vmatpush3.msra.mxu0 %v58_v14  ;;  %v103_v25 = vld [vmem:[%s2047_s2 + $0x1c8] sm:$0xff]  ;;  %v102_v29 = vld [vmem:[%s2047_s2 + $0x1c0] sm:$0xff]  ;;  %v101_v33 = vld [vmem:[%s2047_s2 + $0x1b8] sm:$0xff] }
   0xb   :  { %1046 = vmatpush3.msra.mxu1 %v90_v15  ;;  %1012 = vmatprep.subr.mxu0 %v73_v16  ;;  %v55_v26 = vld [vmem:[%s2047_s2 + $0x48] sm:$0xff]  ;;  %v54_v30 = vld [vmem:[%s2047_s2 + $0x40] sm:$0xff]  ;;  %v53_v34 = vld [vmem:[%s2047_s2 + $0x38] sm:$0xff] }
   0xc   :  { %1047 = vmatprep.subr.mxu1 %v105_v17  ;;  %1013 = vmatpush3.msra.mxu0 %v57_v18  ;;  %v87_v27 = vld [vmem:[%s2047_s2 + $0x148] sm:$0xff]  ;;  %v86_v31 = vld [vmem:[%s2047_s2 + $0x140] sm:$0xff]  ;;  %v85_v35 = vld [vmem:[%s2047_s2 + $0x138] sm:$0xff] }
   0xd   :  { %1048 = vmatpush3.msra.mxu1 %v89_v19  ;;  %1014 = vmatprep.subr.mxu0 %v72_v20  ;;  %v68_v36 = vld [vmem:[%s2047_s2 + $0xb0] sm:$0xff]  ;;  %v67_v40 = vld [vmem:[%s2047_s2 + $0xa8] sm:$0xff]  ;;  %v66_v44 = vld [vmem:[%s2047_s2 + $0xa0] sm:$0xff] }
   0xe   :  { %1049 = vmatprep.subr.mxu1 %v104_v21  ;;  %1015 = vmatpush3.msra.mxu0 %v56_v22  ;;  %v100_v37 = vld [vmem:[%s2047_s2 + $0x1b0] sm:$0xff]  ;;  %v99_v41 = vld [vmem:[%s2047_s2 + $0x1a8] sm:$0xff]  ;;  %v98_v45 = vld [vmem:[%s2047_s2 + $0x1a0] sm:$0xff] }
   0xf   :  { %1050 = vmatpush3.msra.mxu1 %v88_v23  ;;  %1016 = vmatprep.subr.mxu0 %v71_v24  ;;  %v52_v38 = vld [vmem:[%s2047_s2 + $0x30] sm:$0xff]  ;;  %v51_v42 = vld [vmem:[%s2047_s2 + $0x28] sm:$0xff]  ;;  %v50_v46 = vld [vmem:[%s2047_s2 + $0x20] sm:$0xff] }
  0x10   :  { %1051 = vmatprep.subr.mxu1 %v103_v25  ;;  %1017 = vmatpush3.msra.mxu0 %v55_v26  ;;  %v84_v39 = vld [vmem:[%s2047_s2 + $0x130] sm:$0xff]  ;;  %v83_v43 = vld [vmem:[%s2047_s2 + $0x128] sm:$0xff]  ;;  %v82_v47 = vld [vmem:[%s2047_s2 + $0x120] sm:$0xff] }
  0x11   :  { %1052 = vmatpush3.msra.mxu1 %v87_v27  ;;  %1018 = vmatprep.subr.mxu0 %v70_v28  ;;  %v65_v48 = vld [vmem:[%s2047_s2 + $0x98] sm:$0xff]  ;;  %v64_v52 = vld [vmem:[%s2047_s2 + $0x90] sm:$0xff]  ;;  %v63_v56 = vld [vmem:[%s2047_s2 + $0x88] sm:$0xff] }
  0x12   :  { %1053 = vmatprep.subr.mxu1 %v102_v29  ;;  %1019 = vmatpush3.msra.mxu0 %v54_v30  ;;  %v97_v49 = vld [vmem:[%s2047_s2 + $0x198] sm:$0xff]  ;;  %v96_v53 = vld [vmem:[%s2047_s2 + $0x190] sm:$0xff]  ;;  %v95_v57 = vld [vmem:[%s2047_s2 + $0x188] sm:$0xff] }
  0x13   :  { %1054 = vmatpush3.msra.mxu1 %v86_v31  ;;  %1020 = vmatprep.subr.mxu0 %v69_v32  ;;  %v49_v50 = vld [vmem:[%s2047_s2 + $0x18] sm:$0xff]  ;;  %v48_v54 = vld [vmem:[%s2047_s2 + $0x10] sm:$0xff]  ;;  %v47_v58 = vld [vmem:[%s2047_s2 + $0x8] sm:$0xff] }
  0x14   :  { %1055 = vmatprep.subr.mxu1 %v101_v33  ;;  %1021 = vmatpush3.msra.mxu0 %v53_v34  ;;  %v81_v51 = vld [vmem:[%s2047_s2 + $0x118] sm:$0xff]  ;;  %v80_v55 = vld [vmem:[%s2047_s2 + $0x110] sm:$0xff]  ;;  %v79_v59 = vld [vmem:[%s2047_s2 + $0x108] sm:$0xff] }
  0x15   :  { %1056 = vmatpush3.msra.mxu1 %v85_v35  ;;  %1022 = vmatprep.subr.mxu0 %v68_v36  ;;  %v62_v60 = vld [vmem:[%s2047_s2 + $0x80] sm:$0xff]  ;;  %v43_v63 = vld [vmem:[%s2048_s1 + $0x8] sm:$0xff]  ;;  %v45_v1 = vld [vmem:[%s2048_s1 + $0x18] sm:$0xff] }
  0x16   :  { %1057 = vmatprep.subr.mxu1 %v100_v37  ;;  %1023 = vmatpush3.msra.mxu0 %v52_v38  ;;  %v94_v61 = vld [vmem:[%s2047_s2 + $0x180] sm:$0xff]  ;;  %v44_v3 = vld [vmem:[%s2048_s1 + $0x10] sm:$0xff]  ;;  %v348_v15 = vld [vmem:[%s2051_s6 + $0x1e8] sm:$0xff] }
  0x17   :  { %1058 = vmatpush3.msra.mxu1 %v84_v39  ;;  %1024 = vmatprep.subr.mxu0 %v67_v40  ;;  %v46_v62 = vld [vmem:[%s2047_s2] sm:$0xff]  ;;  %v350_v16 = vld [vmem:[%s2051_s6 + $0x1f8] sm:$0xff]  ;;  %v349_v18 = vld [vmem:[%s2051_s6 + $0x1f0] sm:$0xff] }
  0x18   :  { %1059 = vmatprep.subr.mxu1 %v99_v41  ;;  %1025 = vmatpush3.msra.mxu0 %v51_v42  ;;  %v78_v0 = vld [vmem:[%s2047_s2 + $0x100] sm:$0xff]  ;;  %v344_v19 = vld [vmem:[%s2051_s6 + $0x1c8] sm:$0xff]  ;;  %v346_v20 = vld [vmem:[%s2051_s6 + $0x1d8] sm:$0xff] }
  0x19   :  { %1060 = vmatpush3.msra.mxu1 %v83_v43  ;;  %1026 = vmatprep.subr.mxu0 %v66_v44  ;;  %v42_v2 = vld [vmem:[%s2048_s1] sm:$0xff]  ;;  %v345_v22 = vld [vmem:[%s2051_s6 + $0x1d0] sm:$0xff]  ;;  %v340_v23 = vld [vmem:[%s2051_s6 + $0x1a8] sm:$0xff] }
  0x1a   :  { %1061 = vmatprep.subr.mxu1 %v98_v45  ;;  %1027 = vmatpush3.msra.mxu0 %v50_v46  ;;  %v41_v10 = vld [vmem:[%s2049_s0] sm:$0xff]  ;;  %v342_v24 = vld [vmem:[%s2051_s6 + $0x1b8] sm:$0xff]  ;;  %v341_v26 = vld [vmem:[%s2051_s6 + $0x1b0] sm:$0xff] }
  0x1b   :  { %1062 = vmatpush3.msra.mxu1 %v82_v47  ;;  %1028 = vmatprep.subr.mxu0 %v65_v48  ;;  %v1000_v12 = vld [vmem:[%s2050_s3] ss:$0 sm:$0xff]  ;;  %v336_v27 = vld [vmem:[%s2051_s6 + $0x188] sm:$0xff]  ;;  %v338_v28 = vld [vmem:[%s2051_s6 + $0x198] sm:$0xff] }
  0x1c   :  { %1063 = vmatprep.subr.mxu1 %v97_v49  ;;  %1029 = vmatpush3.msra.mxu0 %v49_v50  ;;  %v347_v17 = vld [vmem:[%s2051_s6 + $0x1e0] sm:$0xff]  ;;  %v337_v30 = vld [vmem:[%s2051_s6 + $0x190] sm:$0xff]  ;;  %v332_v31 = vld [vmem:[%s2051_s6 + $0x168] sm:$0xff] }
  0x1d   :  { %1064 = vmatpush3.msra.mxu1 %v81_v51  ;;  %1030 = vmatprep.subr.mxu0 %v64_v52  ;;  %v343_v21 = vld [vmem:[%s2051_s6 + $0x1c0] sm:$0xff]  ;;  %v334_v32 = vld [vmem:[%s2051_s6 + $0x178] sm:$0xff]  ;;  %v333_v38 = vld [vmem:[%s2051_s6 + $0x170] sm:$0xff] }
  0x1e   :  { %1065 = vmatprep.subr.mxu1 %v96_v53  ;;  %1031 = vmatpush3.msra.mxu0 %v48_v54  ;;  %v339_v25 = vld [vmem:[%s2051_s6 + $0x1a0] sm:$0xff]  ;;  %v328_v39 = vld [vmem:[%s2051_s6 + $0x148] sm:$0xff]  ;;  %v330_v40 = vld [vmem:[%s2051_s6 + $0x158] sm:$0xff] }
  0x1f   :  { %1066 = vmatpush3.msra.mxu1 %v80_v55  ;;  %1032 = vmatprep.subr.mxu0 %v63_v56  ;;  %v335_v29 = vld [vmem:[%s2051_s6 + $0x180] sm:$0xff]  ;;  %v329_v42 = vld [vmem:[%s2051_s6 + $0x150] sm:$0xff]  ;;  %v324_v43 = vld [vmem:[%s2051_s6 + $0x128] sm:$0xff] }
  0x20   :  { %1067 = vmatprep.subr.mxu1 %v95_v57  ;;  %1033 = vmatpush3.msra.mxu0 %v47_v58  ;;  %v331_v37 = vld [vmem:[%s2051_s6 + $0x160] sm:$0xff]  ;;  %v326_v44 = vld [vmem:[%s2051_s6 + $0x138] sm:$0xff]  ;;  %v325_v46 = vld [vmem:[%s2051_s6 + $0x130] sm:$0xff] }
  0x21   :  { %1068 = vmatpush3.msra.mxu1 %v79_v59  ;;  %1034 = vmatprep.subr.mxu0 %v62_v60  ;;  %v327_v41 = vld [vmem:[%s2051_s6 + $0x140] sm:$0xff]  ;;  %v320_v47 = vld [vmem:[%s2051_s6 + $0x108] sm:$0xff]  ;;  %v322_v48 = vld [vmem:[%s2051_s6 + $0x118] sm:$0xff] }
  0x22   :  { %1069 = vmatprep.subr.mxu1 %v94_v61  ;;  %1035 = vmatpush3.msra.mxu0 %v46_v62  ;;  %v323_v45 = vld [vmem:[%s2051_s6 + $0x120] sm:$0xff]  ;;  %v321_v50 = vld [vmem:[%s2051_s6 + $0x110] sm:$0xff]  ;;  %v316_v51 = vld [vmem:[%s2051_s6 + $0xe8] sm:$0xff] }
  0x23   :  { %174 = vmatprep.mubr.f32.mxu0 %v43_v63  ;;  %1070 = vmatpush3.msra.mxu1 %v78_v0  ;;  %v319_v49 = vld [vmem:[%s2051_s6 + $0x100] sm:$0xff]  ;;  %v318_v52 = vld [vmem:[%s2051_s6 + $0xf8] sm:$0xff]  ;;  %v317_v54 = vld [vmem:[%s2051_s6 + $0xf0] sm:$0xff] }
  0x24   :  { %244 = vmatprep.mubr.f32.mxu1 %v45_v1  ;;  %175 = vmatmul.mubr.f32.vlgmr.msra.gmra.mxu0 %v42_v2  ;;  %v315_v53 = vld [vmem:[%s2051_s6 + $0xe0] sm:$0xff]  ;;  %v312_v55 = vld [vmem:[%s2051_s6 + $0xc8] sm:$0xff]  ;;  %v314_v56 = vld [vmem:[%s2051_s6 + $0xd8] sm:$0xff] }
  0x25   :  { %245 = vmatmul.mubr.f32.vlgmr.msra.gmra.mxu1 %v44_v3  ;;  %373 = vmatprep.subr.mxu0 %v348_v15  ;;  %v311_v57 = vld [vmem:[%s2051_s6 + $0xc0] sm:$0xff]  ;;  %v313_v58 = vld [vmem:[%s2051_s6 + $0xd0] sm:$0xff]  ;;  %v308_v59 = vld [vmem:[%s2051_s6 + $0xa8] sm:$0xff] }
  0x26   :  { %444 = vmatprep.subr.mxu1 %v350_v16  ;;  %374 = vmatpush1.msra.mxu0 %v347_v17  ;;  %v310_v60 = vld [vmem:[%s2051_s6 + $0xb8] sm:$0xff]  ;;  %v307_v61 = vld [vmem:[%s2051_s6 + $0xa0] sm:$0xff]  ;;  %v309_v62 = vld [vmem:[%s2051_s6 + $0xb0] sm:$0xff] }
  0x27   :  { %445 = vmatpush1.msra.mxu1 %v349_v18  ;;  %375 = vmatprep.subr.mxu0 %v344_v19  ;;  %v304_v63 = vld [vmem:[%s2051_s6 + $0x88] sm:$0xff]  ;;  %v306_v0 = vld [vmem:[%s2051_s6 + $0x98] sm:$0xff]  ;;  %v303_v1 = vld [vmem:[%s2051_s6 + $0x80] sm:$0xff] }
  0x28   :  { %446 = vmatprep.subr.mxu1 %v346_v20  ;;  %376 = vmatpush1.msra.mxu0 %v343_v21  ;;  %v305_v2 = vld [vmem:[%s2051_s6 + $0x90] sm:$0xff]  ;;  %v300_v3 = vld [vmem:[%s2051_s6 + $0x68] sm:$0xff]  ;;  %v290_v16 = vld [vmem:[%s2051_s6 + $0x18] sm:$0xff]  ;;  %v1155_v21 = vmov 0.0  }
  0x29   :  { %447 = vmatpush1.msra.mxu1 %v345_v22  ;;  %377 = vmatprep.subr.mxu0 %v340_v23  ;;  %v288_v15 = vld [vmem:[%s2051_s6 + $0x8] sm:$0xff]  ;;  %v287_v17 = vld [vmem:[%s2051_s6] sm:$0xff]  ;;  %v289_v18 = vld [vmem:[%s2051_s6 + $0x10] sm:$0xff] }
  0x2a   :  { %448 = vmatprep.subr.mxu1 %v342_v24  ;;  %378 = vmatpush1.msra.mxu0 %v339_v25  ;;  %v576_v19 = vld [vmem:[%s2052_s8 + $0x1e8] sm:$0xff]  ;;  %v578_v20 = vld [vmem:[%s2052_s8 + $0x1f8] sm:$0xff] }
  0x2b   :  { %449 = vmatpush1.msra.mxu1 %v341_v26  ;;  %379 = vmatprep.subr.mxu0 %v336_v27  ;;  %v1001_v26 = vld [vmem:[%s2053_s4] ss:$0 sm:$0xff] }
  0x2c   :  { %450 = vmatprep.subr.mxu1 %v338_v28  ;;  %380 = vmatpush1.msra.mxu0 %v335_v29  ;;  %v1002_v28 = vld [vmem:[%s2054_s5] ss:$0 sm:$0xff] }
  0x2d   :  { %451 = vmatpush1.msra.mxu1 %v337_v30  ;;  %381 = vmatprep.subr.mxu0 %v332_v31  ;;  %v575_v31 = vld [vmem:[%s2052_s8 + $0x1e0] sm:$0xff] }
  0x2e   :  { %452 = vmatprep.subr.mxu1 %v334_v32  ;;  %382 = vmatpush1.msra.mxu0 %v331_v37  ;;  %v577_v32 = vld [vmem:[%s2052_s8 + $0x1f0] sm:$0xff]  ;;  %v568_v37 = vld [vmem:[%s2052_s8 + $0x1a8] sm:$0xff] }
  0x2f   :  { %453 = vmatpush1.msra.mxu1 %v333_v38  ;;  %383 = vmatprep.subr.mxu0 %v328_v39  ;;  %v570_v38 = vld [vmem:[%s2052_s8 + $0x1b8] sm:$0xff]  ;;  %v567_v39 = vld [vmem:[%s2052_s8 + $0x1a0] sm:$0xff] }
  0x30   :  { %454 = vmatprep.subr.mxu1 %v330_v40  ;;  %384 = vmatpush1.msra.mxu0 %v327_v41  ;;  %v569_v40 = vld [vmem:[%s2052_s8 + $0x1b0] sm:$0xff]  ;;  %v564_v41 = vld [vmem:[%s2052_s8 + $0x188] sm:$0xff] }
  0x31   :  { %455 = vmatpush1.msra.mxu1 %v329_v42  ;;  %385 = vmatprep.subr.mxu0 %v324_v43  ;;  %v566_v42 = vld [vmem:[%s2052_s8 + $0x198] sm:$0xff]  ;;  %v563_v43 = vld [vmem:[%s2052_s8 + $0x180] sm:$0xff] }
  0x32   :  { %456 = vmatprep.subr.mxu1 %v326_v44  ;;  %386 = vmatpush1.msra.mxu0 %v323_v45  ;;  %v565_v44 = vld [vmem:[%s2052_s8 + $0x190] sm:$0xff]  ;;  %v560_v45 = vld [vmem:[%s2052_s8 + $0x168] sm:$0xff] }
  0x33   :  { %457 = vmatpush1.msra.mxu1 %v325_v46  ;;  %387 = vmatprep.subr.mxu0 %v320_v47  ;;  %v562_v46 = vld [vmem:[%s2052_s8 + $0x178] sm:$0xff]  ;;  %v559_v47 = vld [vmem:[%s2052_s8 + $0x160] sm:$0xff] }
  0x34   :  { %458 = vmatprep.subr.mxu1 %v322_v48  ;;  %388 = vmatpush1.msra.mxu0 %v319_v49  ;;  %v561_v48 = vld [vmem:[%s2052_s8 + $0x170] sm:$0xff]  ;;  %v556_v49 = vld [vmem:[%s2052_s8 + $0x148] sm:$0xff] }
  0x35   :  { %459 = vmatpush1.msra.mxu1 %v321_v50  ;;  %389 = vmatprep.subr.mxu0 %v316_v51  ;;  %v558_v50 = vld [vmem:[%s2052_s8 + $0x158] sm:$0xff]  ;;  %v555_v51 = vld [vmem:[%s2052_s8 + $0x140] sm:$0xff] }
  0x36   :  { %460 = vmatprep.subr.mxu1 %v318_v52  ;;  %390 = vmatpush1.msra.mxu0 %v315_v53  ;;  %v557_v52 = vld [vmem:[%s2052_s8 + $0x150] sm:$0xff]  ;;  %v552_v53 = vld [vmem:[%s2052_s8 + $0x128] sm:$0xff] }
  0x37   :  { %461 = vmatpush1.msra.mxu1 %v317_v54  ;;  %391 = vmatprep.subr.mxu0 %v312_v55  ;;  %v554_v54 = vld [vmem:[%s2052_s8 + $0x138] sm:$0xff]  ;;  %v551_v55 = vld [vmem:[%s2052_s8 + $0x120] sm:$0xff] }
  0x38   :  { %462 = vmatprep.subr.mxu1 %v314_v56  ;;  %392 = vmatpush1.msra.mxu0 %v311_v57  ;;  %v553_v56 = vld [vmem:[%s2052_s8 + $0x130] sm:$0xff]  ;;  %v548_v57 = vld [vmem:[%s2052_s8 + $0x108] sm:$0xff] }
  0x39   :  { %463 = vmatpush1.msra.mxu1 %v313_v58  ;;  %393 = vmatprep.subr.mxu0 %v308_v59  ;;  %v550_v58 = vld [vmem:[%s2052_s8 + $0x118] sm:$0xff]  ;;  %v547_v59 = vld [vmem:[%s2052_s8 + $0x100] sm:$0xff] }
  0x3a   :  { %464 = vmatprep.subr.mxu1 %v310_v60  ;;  %394 = vmatpush1.msra.mxu0 %v307_v61  ;;  %v549_v60 = vld [vmem:[%s2052_s8 + $0x110] sm:$0xff]  ;;  %v544_v61 = vld [vmem:[%s2052_s8 + $0xe8] sm:$0xff] }
  0x3b   :  { %465 = vmatpush1.msra.mxu1 %v309_v62  ;;  %395 = vmatprep.subr.mxu0 %v304_v63  ;;  %v546_v62 = vld [vmem:[%s2052_s8 + $0xf8] sm:$0xff]  ;;  %v543_v63 = vld [vmem:[%s2052_s8 + $0xe0] sm:$0xff] }
  0x3c   :  { %466 = vmatprep.subr.mxu1 %v306_v0  ;;  %396 = vmatpush1.msra.mxu0 %v303_v1  ;;  %v545_v0 = vld [vmem:[%s2052_s8 + $0xf0] sm:$0xff]  ;;  %v540_v1 = vld [vmem:[%s2052_s8 + $0xc8] sm:$0xff] }
  0x3d   :  { %467 = vmatpush1.msra.mxu1 %v305_v2  ;;  %397 = vmatprep.subr.mxu0 %v300_v3  ;;  %v542_v2 = vld [vmem:[%s2052_s8 + $0xd8] sm:$0xff]  ;;  %v539_v3 = vld [vmem:[%s2052_s8 + $0xc0] sm:$0xff] }
  0x3e   :  { %437 = vmatprep.mubr.f32.mxu0 %v1155_v21  ;;  %508 = vmatprep.mubr.f32.mxu1 %v1155_v21 }
  0xe4   :  { %v1036_v4 = vpop.f32.mrf.mxu0 }
  0xe5   :  { %v1071_v5 = vpop.f32.mrf.mxu1 }
  0xe6   :  { %v1037_v6 = vpop.f32.mrf.mxu0 }
  0xe7   :  { %v1072_v7 = vpop.f32.mrf.mxu1  ;;  %v1038_v8 = vadd.f32 %v1037_v6, %v1036_v4  ;;  %v302_v4 = vld [vmem:[%s2051_s6 + $0x78] sm:$0xff]  ;;  %v301_v6 = vld [vmem:[%s2051_s6 + $0x70] sm:$0xff] }
  0xe8   :  { %v1073_v9 = vadd.f32 %v1072_v7, %v1071_v5  ;;  %468 = vmatprep.subr.mxu1 %v302_v4  ;;  %v299_v5 = vld [vmem:[%s2051_s6 + $0x60] sm:$0xff]  ;;  %v296_v7 = vld [vmem:[%s2051_s6 + $0x48] sm:$0xff]  ;;  %v541_v4 = vld [vmem:[%s2052_s8 + $0xd0] sm:$0xff] }
  0xe9   :  { %398 = vmatpush1.msra.mxu0 %v299_v5  ;;  %469 = vmatpush1.msra.mxu1 %v301_v6  ;;  %v536_v5 = vld [vmem:[%s2052_s8 + $0xa8] sm:$0xff]  ;;  %v538_v6 = vld [vmem:[%s2052_s8 + $0xb8] sm:$0xff] }
  0xea   :  { %v247_v11 = vadd.f32 %v1073_v9, %v1038_v8  ;;  %v298_v8 = vld [vmem:[%s2051_s6 + $0x58] sm:$0xff]  ;;  %399 = vmatprep.subr.mxu0 %v296_v7  ;;  %v295_v9 = vld [vmem:[%s2051_s6 + $0x40] sm:$0xff] }
  0xeb   :  { %470 = vmatprep.subr.mxu1 %v298_v8  ;;  %400 = vmatpush1.msra.mxu0 %v295_v9  ;;  %v535_v7 = vld [vmem:[%s2052_s8 + $0xa0] sm:$0xff]  ;;  %v537_v8 = vld [vmem:[%s2052_s8 + $0xb0] sm:$0xff]  ;;  %v532_v9 = vld [vmem:[%s2052_s8 + $0x88] sm:$0xff] }
  0xec   :  { %v250_v13 = vadd.f32 %v247_v11, %v41_v10  ;;  %v297_v10 = vld [vmem:[%s2051_s6 + $0x50] sm:$0xff]  ;;  %v292_v11 = vld [vmem:[%s2051_s6 + $0x28] sm:$0xff] }
  0xed   :  { %471 = vmatpush1.msra.mxu1 %v297_v10  ;;  %401 = vmatprep.subr.mxu0 %v292_v11  ;;  %v534_v10 = vld [vmem:[%s2052_s8 + $0x98] sm:$0xff]  ;;  %v531_v11 = vld [vmem:[%s2052_s8 + $0x80] sm:$0xff] }
  0xee   :  { %v258_v14 = vadd.f32 %v1000_v12, %v250_v13  ;;  %v294_v12 = vld [vmem:[%s2051_s6 + $0x38] sm:$0xff]  ;;  %v291_v13 = vld [vmem:[%s2051_s6 + $0x20] sm:$0xff] }
  0xef   :  { %472 = vmatprep.subr.mxu1 %v294_v12  ;;  %402 = vmatpush1.msra.mxu0 %v291_v13  ;;  %v533_v12 = vld [vmem:[%s2052_s8 + $0x90] sm:$0xff]  ;;  %v528_v13 = vld [vmem:[%s2052_s8 + $0x68] sm:$0xff] }
  0xf0   :  { %259 = vadd.xlane.f32.xlu0 %v258_v14  ;;  %403 = vmatprep.subr.mxu0 %v288_v15  ;;  %v527_v15 = vld [vmem:[%s2052_s8 + $0x60] sm:$0xff] }
  0xf1   :  { %404 = vmatpush1.msra.mxu0 %v287_v17  ;;  %v524_v17 = vld [vmem:[%s2052_s8 + $0x48] sm:$0xff] }
  0xf2   :  { %601 = vmatprep.subr.mxu0 %v576_v19  ;;  %v523_v19 = vld [vmem:[%s2052_s8 + $0x40] sm:$0xff] }
 0x179   :  { %v260_v33 = vpop.xlane.xlu0 %259 }
 0x17a   :  { %v262_v34 = vmul.f32 0.0078125, %v260_v33  ;;  %v572_v33 = vld [vmem:[%s2052_s8 + $0x1c8] sm:$0xff] }
 0x17c   :  { %v1485_v35 = vsub.f32 %v258_v14, %v262_v34  ;;  %v293_v14 = vld [vmem:[%s2051_s6 + $0x30] sm:$0xff]  ;;  %v574_v34 = vld [vmem:[%s2052_s8 + $0x1d8] sm:$0xff] }
 0x17d   :  { %473 = vmatpush1.msra.mxu1 %v293_v14  ;;  %v530_v14 = vld [vmem:[%s2052_s8 + $0x78] sm:$0xff] }
 0x17e   :  { %v264_v36 = vmul.f32 %v1485_v35, %v1485_v35  ;;  %474 = vmatprep.subr.mxu1 %v290_v16  ;;  %v529_v16 = vld [vmem:[%s2052_s8 + $0x70] sm:$0xff] }
 0x17f   :  { %475 = vmatpush1.msra.mxu1 %v289_v18  ;;  %v526_v18 = vld [vmem:[%s2052_s8 + $0x58] sm:$0xff] }
 0x180   :  { %265 = vadd.xlane.f32.xlu0 %v264_v36  ;;  %672 = vmatprep.subr.mxu1 %v578_v20  ;;  %v573_v36 = vld [vmem:[%s2052_s8 + $0x1d0] sm:$0xff] }
 0x181   :  { %v525_v20 = vld [vmem:[%s2052_s8 + $0x50] sm:$0xff] }
 0x209   :  { %v266_v22 = vpop.xlane.xlu0 %265 }
 0x20a   :  { %v267_v23 = vmul.f32 0.0078125, %v266_v22  ;;  %v520_v22 = vld [vmem:[%s2052_s8 + $0x28] sm:$0xff] }
 0x20c   :  { %v268_v24 = vadd.f32 1e-05, %v267_v23  ;;  %v522_v23 = vld [vmem:[%s2052_s8 + $0x38] sm:$0xff] }
 0x20e   :  { %1145 = vrsqrt.f32 %v268_v24  ;;  %v519_v24 = vld [vmem:[%s2052_s8 + $0x20] sm:$0xff] }
 0x21b   :  { %v1146_v25 = vpop.eup %1145 }
 0x21c   :  { %v270_v27 = vmul.f32 %v1146_v25, %v1485_v35  ;;  %v571_v35 = vld [vmem:[%s2052_s8 + $0x1c0] sm:$0xff]  ;;  %v521_v25 = vld [vmem:[%s2052_s8 + $0x30] sm:$0xff] }
 0x21e   :  { %v278_v29 = vmul.f32 %v1001_v26, %v270_v27  ;;  %v516_v26 = vld [vmem:[%s2052_s8 + $0x8] sm:$0xff]  ;;  %v518_v27 = vld [vmem:[%s2052_s8 + $0x18] sm:$0xff] }
 0x220   :  { %v1642_v30 = vadd.f32 %v1002_v28, %v278_v29  ;;  %v515_v28 = vld [vmem:[%s2052_s8] sm:$0xff]  ;;  %v517_v29 = vld [vmem:[%s2052_s8 + $0x10] sm:$0xff] }
 0x222   :  { %438 = vmatmul.mubr.f32.vlgmr.msra.gmra.mxu0 %v1642_v30  ;;  %509 = vmatmul.mubr.f32.vlgmr.msra.gmra.mxu1 %v1642_v30 }
 0x223   :  { %602 = vmatpush1.msra.mxu0 %v575_v31  ;;  %673 = vmatpush1.msra.mxu1 %v577_v32  ;;  %v814_v31 = vld [vmem:[%s2055_s10 + $0xf8] sm:$0xff] }
 0x224   :  { %603 = vmatprep.subr.mxu0 %v572_v33  ;;  %674 = vmatprep.subr.mxu1 %v574_v34  ;;  %v846_v32 = vld [vmem:[%s2055_s10 + $0x1f8] sm:$0xff]  ;;  %v813_v34 = vld [vmem:[%s2055_s10 + $0xf0] sm:$0xff] }
 0x225   :  { %604 = vmatpush1.msra.mxu0 %v571_v35  ;;  %675 = vmatpush1.msra.mxu1 %v573_v36  ;;  %v798_v33 = vld [vmem:[%s2055_s10 + $0x78] sm:$0xff]  ;;  %v845_v35 = vld [vmem:[%s2055_s10 + $0x1f0] sm:$0xff] }
 0x226   :  { %605 = vmatprep.subr.mxu0 %v568_v37  ;;  %676 = vmatprep.subr.mxu1 %v570_v38  ;;  %v797_v36 = vld [vmem:[%s2055_s10 + $0x70] sm:$0xff]  ;;  %v812_v38 = vld [vmem:[%s2055_s10 + $0xe8] sm:$0xff] }
 0x227   :  { %606 = vmatpush1.msra.mxu0 %v567_v39  ;;  %677 = vmatpush1.msra.mxu1 %v569_v40  ;;  %v829_v37 = vld [vmem:[%s2055_s10 + $0x170] sm:$0xff]  ;;  %v844_v39 = vld [vmem:[%s2055_s10 + $0x1e8] sm:$0xff] }
 0x228   :  { %607 = vmatprep.subr.mxu0 %v564_v41  ;;  %678 = vmatprep.subr.mxu1 %v566_v42  ;;  %v796_v40 = vld [vmem:[%s2055_s10 + $0x68] sm:$0xff]  ;;  %v811_v42 = vld [vmem:[%s2055_s10 + $0xe0] sm:$0xff] }
 0x229   :  { %608 = vmatpush1.msra.mxu0 %v563_v43  ;;  %679 = vmatpush1.msra.mxu1 %v565_v44  ;;  %v828_v41 = vld [vmem:[%s2055_s10 + $0x168] sm:$0xff]  ;;  %v843_v43 = vld [vmem:[%s2055_s10 + $0x1e0] sm:$0xff] }
 0x22a   :  { %609 = vmatprep.subr.mxu0 %v560_v45  ;;  %680 = vmatprep.subr.mxu1 %v562_v46  ;;  %v795_v44 = vld [vmem:[%s2055_s10 + $0x60] sm:$0xff]  ;;  %v810_v46 = vld [vmem:[%s2055_s10 + $0xd8] sm:$0xff] }
 0x22b   :  { %610 = vmatpush1.msra.mxu0 %v559_v47  ;;  %681 = vmatpush1.msra.mxu1 %v561_v48  ;;  %v827_v45 = vld [vmem:[%s2055_s10 + $0x160] sm:$0xff]  ;;  %v842_v47 = vld [vmem:[%s2055_s10 + $0x1d8] sm:$0xff] }
 0x22c   :  { %611 = vmatprep.subr.mxu0 %v556_v49  ;;  %682 = vmatprep.subr.mxu1 %v558_v50  ;;  %v794_v48 = vld [vmem:[%s2055_s10 + $0x58] sm:$0xff]  ;;  %v809_v50 = vld [vmem:[%s2055_s10 + $0xd0] sm:$0xff] }
 0x22d   :  { %612 = vmatpush1.msra.mxu0 %v555_v51  ;;  %683 = vmatpush1.msra.mxu1 %v557_v52  ;;  %v826_v49 = vld [vmem:[%s2055_s10 + $0x158] sm:$0xff]  ;;  %v841_v51 = vld [vmem:[%s2055_s10 + $0x1d0] sm:$0xff] }
 0x22e   :  { %613 = vmatprep.subr.mxu0 %v552_v53  ;;  %684 = vmatprep.subr.mxu1 %v554_v54  ;;  %v793_v52 = vld [vmem:[%s2055_s10 + $0x50] sm:$0xff]  ;;  %v808_v54 = vld [vmem:[%s2055_s10 + $0xc8] sm:$0xff] }
 0x22f   :  { %614 = vmatpush1.msra.mxu0 %v551_v55  ;;  %685 = vmatpush1.msra.mxu1 %v553_v56  ;;  %v825_v53 = vld [vmem:[%s2055_s10 + $0x150] sm:$0xff]  ;;  %v840_v55 = vld [vmem:[%s2055_s10 + $0x1c8] sm:$0xff] }
 0x230   :  { %615 = vmatprep.subr.mxu0 %v548_v57  ;;  %686 = vmatprep.subr.mxu1 %v550_v58  ;;  %v792_v56 = vld [vmem:[%s2055_s10 + $0x48] sm:$0xff]  ;;  %v807_v58 = vld [vmem:[%s2055_s10 + $0xc0] sm:$0xff] }
 0x231   :  { %616 = vmatpush1.msra.mxu0 %v547_v59  ;;  %687 = vmatpush1.msra.mxu1 %v549_v60  ;;  %v824_v57 = vld [vmem:[%s2055_s10 + $0x148] sm:$0xff]  ;;  %v839_v59 = vld [vmem:[%s2055_s10 + $0x1c0] sm:$0xff] }
 0x232   :  { %617 = vmatprep.subr.mxu0 %v544_v61  ;;  %688 = vmatprep.subr.mxu1 %v546_v62  ;;  %v791_v60 = vld [vmem:[%s2055_s10 + $0x40] sm:$0xff]  ;;  %v806_v62 = vld [vmem:[%s2055_s10 + $0xb8] sm:$0xff] }
 0x233   :  { %618 = vmatpush1.msra.mxu0 %v543_v63  ;;  %689 = vmatpush1.msra.mxu1 %v545_v0  ;;  %v823_v61 = vld [vmem:[%s2055_s10 + $0x140] sm:$0xff]  ;;  %v838_v63 = vld [vmem:[%s2055_s10 + $0x1b8] sm:$0xff] }
 0x234   :  { %619 = vmatprep.subr.mxu0 %v540_v1  ;;  %690 = vmatprep.subr.mxu1 %v542_v2  ;;  %v790_v0 = vld [vmem:[%s2055_s10 + $0x38] sm:$0xff]  ;;  %v805_v2 = vld [vmem:[%s2055_s10 + $0xb0] sm:$0xff] }
 0x235   :  { %620 = vmatpush1.msra.mxu0 %v539_v3  ;;  %691 = vmatpush1.msra.mxu1 %v541_v4  ;;  %v822_v1 = vld [vmem:[%s2055_s10 + $0x138] sm:$0xff]  ;;  %v837_v3 = vld [vmem:[%s2055_s10 + $0x1b0] sm:$0xff] }
 0x236   :  { %621 = vmatprep.subr.mxu0 %v536_v5  ;;  %692 = vmatprep.subr.mxu1 %v538_v6  ;;  %v789_v4 = vld [vmem:[%s2055_s10 + $0x30] sm:$0xff]  ;;  %v804_v6 = vld [vmem:[%s2055_s10 + $0xa8] sm:$0xff] }
 0x237   :  { %622 = vmatpush1.msra.mxu0 %v535_v7  ;;  %693 = vmatpush1.msra.mxu1 %v537_v8  ;;  %v821_v5 = vld [vmem:[%s2055_s10 + $0x130] sm:$0xff]  ;;  %v836_v7 = vld [vmem:[%s2055_s10 + $0x1a8] sm:$0xff] }
 0x238   :  { %623 = vmatprep.subr.mxu0 %v532_v9  ;;  %694 = vmatprep.subr.mxu1 %v534_v10  ;;  %v788_v8 = vld [vmem:[%s2055_s10 + $0x28] sm:$0xff]  ;;  %v803_v10 = vld [vmem:[%s2055_s10 + $0xa0] sm:$0xff] }
 0x239   :  { %624 = vmatpush1.msra.mxu0 %v531_v11  ;;  %695 = vmatpush1.msra.mxu1 %v533_v12  ;;  %v820_v9 = vld [vmem:[%s2055_s10 + $0x128] sm:$0xff]  ;;  %v835_v11 = vld [vmem:[%s2055_s10 + $0x1a0] sm:$0xff] }
 0x23a   :  { %625 = vmatprep.subr.mxu0 %v528_v13  ;;  %696 = vmatprep.subr.mxu1 %v530_v14  ;;  %v787_v12 = vld [vmem:[%s2055_s10 + $0x20] sm:$0xff]  ;;  %v802_v14 = vld [vmem:[%s2055_s10 + $0x98] sm:$0xff] }
 0x23b   :  { %626 = vmatpush1.msra.mxu0 %v527_v15  ;;  %697 = vmatpush1.msra.mxu1 %v529_v16  ;;  %v819_v13 = vld [vmem:[%s2055_s10 + $0x120] sm:$0xff]  ;;  %v834_v15 = vld [vmem:[%s2055_s10 + $0x198] sm:$0xff] }
 0x23c   :  { %627 = vmatprep.subr.mxu0 %v524_v17  ;;  %698 = vmatprep.subr.mxu1 %v526_v18  ;;  %v786_v16 = vld [vmem:[%s2055_s10 + $0x18] sm:$0xff]  ;;  %v801_v18 = vld [vmem:[%s2055_s10 + $0x90] sm:$0xff] }
 0x23d   :  { %628 = vmatpush1.msra.mxu0 %v523_v19  ;;  %699 = vmatpush1.msra.mxu1 %v525_v20  ;;  %v818_v17 = vld [vmem:[%s2055_s10 + $0x118] sm:$0xff]  ;;  %v833_v19 = vld [vmem:[%s2055_s10 + $0x190] sm:$0xff] }
 0x23e   :  { %629 = vmatprep.subr.mxu0 %v520_v22  ;;  %700 = vmatprep.subr.mxu1 %v522_v23  ;;  %v785_v20 = vld [vmem:[%s2055_s10 + $0x10] sm:$0xff]  ;;  %v800_v23 = vld [vmem:[%s2055_s10 + $0x88] sm:$0xff] }
 0x23f   :  { %630 = vmatpush1.msra.mxu0 %v519_v24  ;;  %701 = vmatpush1.msra.mxu1 %v521_v25  ;;  %v817_v22 = vld [vmem:[%s2055_s10 + $0x110] sm:$0xff]  ;;  %v832_v24 = vld [vmem:[%s2055_s10 + $0x188] sm:$0xff] }
 0x240   :  { %631 = vmatprep.subr.mxu0 %v516_v26  ;;  %702 = vmatprep.subr.mxu1 %v518_v27  ;;  %v784_v25 = vld [vmem:[%s2055_s10 + $0x8] sm:$0xff]  ;;  %v799_v27 = vld [vmem:[%s2055_s10 + $0x80] sm:$0xff] }
 0x241   :  { %632 = vmatpush1.msra.mxu0 %v515_v28  ;;  %665 = vmatprep.mubr.f32.mxu0 %v1155_v21  ;;  %v816_v26 = vld [vmem:[%s2055_s10 + $0x108] sm:$0xff]  ;;  %v831_v28 = vld [vmem:[%s2055_s10 + $0x180] sm:$0xff] }
 0x242   :  { %703 = vmatpush1.msra.mxu1 %v517_v29  ;;  %736 = vmatprep.mubr.f32.mxu1 %v1155_v21  ;;  %v830_v21 = vld [vmem:[%s2055_s10 + $0x178] sm:$0xff]  ;;  %v783_v29 = vld [vmem:[%s2055_s10] sm:$0xff] }
 0x243   :  { %666 = vmatmul.mubr.f32.vlgmr.msra.gmra.mxu0 %v1642_v30  ;;  %737 = vmatmul.mubr.f32.vlgmr.msra.gmra.mxu1 %v1642_v30 }
 0x244   :  { %1074 = vmatprep.subr.mxu0 %v814_v31  ;;  %1109 = vmatprep.subr.mxu1 %v846_v32  ;;  %v815_v31 = vld [vmem:[%s2055_s10 + $0x100] sm:$0xff]  ;;  %v353_v32 = vlaneseq }
 0x245   :  { %1075 = vmatpush3.msra.mxu0 %v798_v33  ;;  %1110 = vmatpush3.msra.mxu1 %v830_v21 }
 0x246   :  { %1076 = vmatprep.subr.mxu0 %v813_v34  ;;  %1111 = vmatprep.subr.mxu1 %v845_v35  ;;  %v354_v33 = vshrl.u32 %v353_v32, 7  ;;  %v579_v35 = vld [vmem:[%s2056_s9] sm:$0xf] }
 0x247   :  { %1077 = vmatpush3.msra.mxu0 %v797_v36  ;;  %1112 = vmatpush3.msra.mxu1 %v829_v37 }
 0x248   :  { %1078 = vmatprep.subr.mxu0 %v812_v38  ;;  %1113 = vmatprep.subr.mxu1 %v844_v39  ;;  %v355_v36 = vsub.s32 0, %v354_v33  ;;  %v363_v37 = vsub.s32 2, %v354_v33  ;;  %v359_v38 = vsub.s32 1, %v354_v33  ;;  %v367_v39 = vsub.s32 3, %v354_v33 }
 0x249   :  { %1079 = vmatpush3.msra.mxu0 %v796_v40  ;;  %1114 = vmatpush3.msra.mxu1 %v828_v41 }
 0x24a   :  { %1080 = vmatprep.subr.mxu0 %v811_v42  ;;  %1115 = vmatprep.subr.mxu1 %v843_v43  ;;  %v584_v40 = vrot.slane %v579_v35, %v355_v36  ;;  %v592_v41 = vrot.slane %v579_v35, %v363_v37 }
 0x24b   :  { %1081 = vmatpush3.msra.mxu0 %v795_v44  ;;  %1116 = vmatpush3.msra.mxu1 %v827_v45  ;;  %v588_v44 = vrot.slane %v579_v35, %v359_v38  ;;  %v596_v45 = vrot.slane %v579_v35, %v367_v39 }
 0x24c   :  { %1082 = vmatprep.subr.mxu0 %v810_v46  ;;  %1117 = vmatprep.subr.mxu1 %v842_v47 }
 0x24d   :  { %1083 = vmatpush3.msra.mxu0 %v794_v48  ;;  %1118 = vmatpush3.msra.mxu1 %v826_v49 }
 0x24e   :  { %1084 = vmatprep.subr.mxu0 %v809_v50  ;;  %1119 = vmatprep.subr.mxu1 %v841_v51 }
 0x24f   :  { %1085 = vmatpush3.msra.mxu0 %v793_v52  ;;  %1120 = vmatpush3.msra.mxu1 %v825_v53 }
 0x250   :  { %1086 = vmatprep.subr.mxu0 %v808_v54  ;;  %1121 = vmatprep.subr.mxu1 %v840_v55 }
 0x251   :  { %1087 = vmatpush3.msra.mxu0 %v792_v56  ;;  %1122 = vmatpush3.msra.mxu1 %v824_v57 }
 0x252   :  { %1088 = vmatprep.subr.mxu0 %v807_v58  ;;  %1123 = vmatprep.subr.mxu1 %v839_v59 }
 0x253   :  { %1089 = vmatpush3.msra.mxu0 %v791_v60  ;;  %1124 = vmatpush3.msra.mxu1 %v823_v61 }
 0x254   :  { %1090 = vmatprep.subr.mxu0 %v806_v62  ;;  %1125 = vmatprep.subr.mxu1 %v838_v63 }
 0x255   :  { %1091 = vmatpush3.msra.mxu0 %v790_v0  ;;  %1126 = vmatpush3.msra.mxu1 %v822_v1 }
 0x256   :  { %1092 = vmatprep.subr.mxu0 %v805_v2  ;;  %1127 = vmatprep.subr.mxu1 %v837_v3 }
 0x257   :  { %1093 = vmatpush3.msra.mxu0 %v789_v4  ;;  %1128 = vmatpush3.msra.mxu1 %v821_v5 }
 0x258   :  { %1094 = vmatprep.subr.mxu0 %v804_v6  ;;  %1129 = vmatprep.subr.mxu1 %v836_v7 }
 0x259   :  { %1095 = vmatpush3.msra.mxu0 %v788_v8  ;;  %1130 = vmatpush3.msra.mxu1 %v820_v9 }
 0x25a   :  { %1096 = vmatprep.subr.mxu0 %v803_v10  ;;  %1131 = vmatprep.subr.mxu1 %v835_v11  ;;  %v351_v10 = vld [vmem:[%s2057_s7] sm:$0xf] }
 0x25b   :  { %1097 = vmatpush3.msra.mxu0 %v787_v12  ;;  %1132 = vmatpush3.msra.mxu1 %v819_v13  ;;  %v360_v13 = vrot.slane %v351_v10, %v359_v38 }
 0x25c   :  { %1098 = vmatprep.subr.mxu0 %v802_v14  ;;  %1133 = vmatprep.subr.mxu1 %v834_v15 }
 0x25d   :  { %1099 = vmatpush3.msra.mxu0 %v786_v16  ;;  %1134 = vmatpush3.msra.mxu1 %v818_v17  ;;  %v356_v16 = vrot.slane %v351_v10, %v355_v36  ;;  %v368_v17 = vrot.slane %v351_v10, %v367_v39 }
 0x25e   :  { %1100 = vmatprep.subr.mxu0 %v801_v18  ;;  %1135 = vmatprep.subr.mxu1 %v833_v19 }
 0x25f   :  { %1101 = vmatpush3.msra.mxu0 %v785_v20  ;;  %1136 = vmatpush3.msra.mxu1 %v817_v22  ;;  %v364_v22 = vrot.slane %v351_v10, %v363_v37 }
 0x260   :  { %1102 = vmatprep.subr.mxu0 %v800_v23  ;;  %1137 = vmatprep.subr.mxu1 %v832_v24 }
 0x261   :  { %1103 = vmatpush3.msra.mxu0 %v784_v25  ;;  %1138 = vmatpush3.msra.mxu1 %v816_v26 }
 0x262   :  { %1104 = vmatprep.subr.mxu0 %v799_v27  ;;  %1139 = vmatprep.subr.mxu1 %v831_v28 }
 0x263   :  { %1105 = vmatpush3.msra.mxu0 %v783_v29  ;;  %1140 = vmatpush3.msra.mxu1 %v815_v31 }
 0x2e2   :  { %v2028_v21 = vpop.f32.mrf.mxu0  ;;  %v2030_v34 = vpop.f32.mrf.mxu1 }
 0x2e3   :  { %v440_v33 = vadd.f32 %v2028_v21, %v356_v16  ;;  %v511_v36 = vadd.f32 %v2030_v34, %v364_v22 }
 0x2e4   :  { %v441_v42 = vpop.f32.mrf.mxu0  ;;  %v512_v43 = vpop.f32.mrf.mxu1 }
 0x2e5   :  { %v442_v29 = vadd.f32 %v441_v42, %v360_v13  ;;  %v513_v35 = vadd.f32 %v512_v43, %v368_v17  ;;  %v1003_v42 = vld [vmem:[%s2058_s11] ss:$0 sm:$0xff] }
 0x303   :  { %v667_v46 = vpop.f32.mrf.mxu0  ;;  %v738_v47 = vpop.f32.mrf.mxu1 }
 0x304   :  { %v668_v48 = vadd.f32 %v667_v46, %v584_v40  ;;  %v739_v49 = vadd.f32 %v738_v47, %v592_v41 }
 0x305   :  { %v669_v50 = vpop.f32.mrf.mxu0  ;;  %v740_v51 = vpop.f32.mrf.mxu1 }
 0x306   :  { %v747_v52 = vmul.f32 0.044715, %v668_v48  ;;  %v749_v53 = vmul.f32 0.044715, %v739_v49  ;;  %v670_v54 = vadd.f32 %v669_v50, %v588_v44  ;;  %v741_v55 = vadd.f32 %v740_v51, %v596_v45 }
 0x307   :  { %v743_v18 = vmul.f32 0.5, %v668_v48  ;;  %v745_v25 = vmul.f32 0.5, %v739_v49 }
 0x308   :  { %v751_v56 = vmul.f32 %v747_v52, %v668_v48  ;;  %v753_v57 = vmul.f32 %v749_v53, %v739_v49  ;;  %v748_v58 = vmul.f32 0.044715, %v670_v54  ;;  %v750_v59 = vmul.f32 0.044715, %v741_v55 }
 0x309   :  { %v744_v23 = vmul.f32 0.5, %v670_v54  ;;  %v746_v26 = vmul.f32 0.5, %v741_v55 }
 0x30a   :  { %v755_v60 = vmul.f32 %v751_v56, %v668_v48  ;;  %v757_v61 = vmul.f32 %v753_v57, %v739_v49  ;;  %v752_v62 = vmul.f32 %v748_v58, %v670_v54  ;;  %v754_v63 = vmul.f32 %v750_v59, %v741_v55 }
 0x30c   :  { %v759_v0 = vadd.f32 %v755_v60, %v668_v48  ;;  %v761_v1 = vadd.f32 %v757_v61, %v739_v49  ;;  %v756_v2 = vmul.f32 %v752_v62, %v670_v54  ;;  %v758_v3 = vmul.f32 %v754_v63, %v741_v55 }
 0x30e   :  { %v763_v4 = vmul.f32 0.7978846, %v759_v0  ;;  %v765_v5 = vmul.f32 0.7978846, %v761_v1  ;;  %v760_v6 = vadd.f32 %v756_v2, %v670_v54  ;;  %v762_v7 = vadd.f32 %v758_v3, %v741_v55 }
 0x310   :  { %1147 = vtanh.f32 %v763_v4  ;;  %v764_v8 = vmul.f32 0.7978846, %v760_v6  ;;  %v766_v9 = vmul.f32 0.7978846, %v762_v7 }
 0x311   :  { %1149 = vtanh.f32 %v765_v5 }
 0x312   :  { %1151 = vtanh.f32 %v764_v8 }
 0x313   :  { %1153 = vtanh.f32 %v766_v9 }
 0x31d   :  { %v1148_v11 = vpop.eup %1147 }
 0x31e   :  { %v1150_v12 = vpop.eup %1149  ;;  %v771_v14 = vadd.f32 1.0, %v1148_v11 }
 0x31f   :  { %v1152_v15 = vpop.eup %1151  ;;  %v773_v19 = vadd.f32 1.0, %v1150_v12 }
 0x320   :  { %v1154_v20 = vpop.eup %1153  ;;  %v772_v24 = vadd.f32 1.0, %v1152_v15  ;;  %v775_v28 = vmul.f32 %v771_v14, %v743_v18 }
 0x321   :  { %v774_v27 = vadd.f32 1.0, %v1154_v20  ;;  %v777_v32 = vmul.f32 %v773_v19, %v745_v25 }
 0x322   :  { %v776_v31 = vmul.f32 %v772_v24, %v744_v23  ;;  %v779_v41 = vmul.f32 %v775_v28, %v440_v33 }
 0x323   :  { %v778_v38 = vmul.f32 %v774_v27, %v746_v26  ;;  %v781_v37 = vmul.f32 %v777_v32, %v511_v36 }
 0x324   :  { %v780_v39 = vmul.f32 %v776_v31, %v442_v29 }
 0x325   :  { %v782_v40 = vmul.f32 %v778_v38, %v513_v35 }
 0x326   :  { %918 = vmatprep.mubr.f32.mxu0 %v780_v39 }
 0x327   :  { %988 = vmatprep.mubr.f32.mxu1 %v782_v40  ;;  %919 = vmatmul.mubr.f32.vlgmr.msra.gmra.mxu0 %v779_v41 }
 0x328   :  { %989 = vmatmul.mubr.f32.vlgmr.msra.gmra.mxu1 %v781_v37 }
 0x3e7   :  { %v1106_v44 = vpop.f32.mrf.mxu0 }
 0x3e8   :  { %v1141_v45 = vpop.f32.mrf.mxu1 }
 0x3e9   :  { %v1107_v46 = vpop.f32.mrf.mxu0 }
 0x3ea   :  { %v1108_v21 = vadd.f32 %v1107_v46, %v1106_v44  ;;  %v1142_v43 = vpop.f32.mrf.mxu1 }
 0x3eb   :  { %v1143_v48 = vadd.f32 %v1142_v43, %v1141_v45 }
 0x3ec   :  { %v921_v47 = vadd.f32 %v1108_v21, %v1003_v42 }
 0x3ee   :  { %v991_v34 = vadd.f32 %v1143_v48, %v921_v47 }
 0x3f0   :  { %v994_v49 = vadd.f32 %v991_v34, %v1642_v30 }
 0x3f2   :  { %995 = vst [vmem:[%s2059_s12] sm:$0xff] %v994_v49 }

// kernel: saint_forward.6
= control target key start
LH: loop header
LB: loop body
LE: loop exit
PB: predicated region body
PF: predicated region fallthrough
CT: control target
= control target key end

     0   :  { %vm206_vm0 = vcmask 130048   ;;  %v14259_v0 = vmov 0.0   ;;  %vm12122_vm1 = vmmov 0   ;;  %vm5071_vm2 = vcmask 27648   ;;  %s14255_s1 = inlined_call_operand.vmem [shape: f32[64,4,16], index: 1, kind: input, shape index: {}]   ;;  %s14256_s0 = inlined_call_operand.vmem [shape: f32[64,4,16], index: 0, kind: input, shape index: {}]   ;;  %s14257_s2 = inlined_call_operand.vmem [shape: f32[64,4,16], index: 2, kind: input, shape index: {}]   ;;  %s14258_s3 = inlined_call_operand.vmem [shape: f32[64,4,16], index: 3, kind: output, shape index: {}]  }
   0x1   :  { %11223 = vmatprep.subr.mxu0 %v14259_v0  ;;  %v78_v1 = vld [vmem:[%s14255_s1] sm:$0xf]  ;;  %11225 = vmatprep.mubr.msk.f32.mxu0 %vm12122_vm1, %v14259_v0  ;;  %v79_v2 = vld [vmem:[%s14255_s1 + $0x4] sm:$0xf]  ;;  %v80_v4 = vld [vmem:[%s14255_s1 + $0x8] sm:$0xf] }
   0x2   :  { %11224 = vmatpush3.xpose.msk.msra.mxu0 %vm206_vm0, %v78_v1  ;;  %11228 = vmatprep.subr.mxu1 %v14259_v0  ;;  %v14_v3 = vld [vmem:[%s14256_s0] sm:$0xf]  ;;  %v15_v5 = vld [vmem:[%s14256_s0 + $0x4] sm:$0xf]  ;;  %v81_v6 = vld [vmem:[%s14255_s1 + $0xc] sm:$0xf] }
   0x3   :  { %11229 = vmatpush3.xpose.msk.msra.mxu1 %vm206_vm0, %v79_v2  ;;  %11233 = vmatprep.subr.mxu0 %v14259_v0  ;;  %v16_v7 = vld [vmem:[%s14256_s0 + $0x8] sm:$0xf]  ;;  %v82_v8 = vld [vmem:[%s14255_s1 + $0x10] sm:$0xf]  ;;  %v17_v9 = vld [vmem:[%s14256_s0 + $0xc] sm:$0xf] }
   0x4   :  { %11230 = vmatprep.mubr.msk.f32.mxu1 %vm12122_vm1, %v14259_v0  ;;  %11238 = vmatprep.subr.mxu1 %v14259_v0  ;;  %v83_v10 = vld [vmem:[%s14255_s1 + $0x14] sm:$0xf]  ;;  %v18_v11 = vld [vmem:[%s14256_s0 + $0x10] sm:$0xf]  ;;  %v84_v12 = vld [vmem:[%s14255_s1 + $0x18] sm:$0xf] }
   0x5   :  { %11226 = vmatmul.mubr.msk.f32.vlgmr.msra.gmra.mxu0 %vm206_vm0, %v14_v3  ;;  %v19_v13 = vld [vmem:[%s14256_s0 + $0x14] sm:$0xf]  ;;  %v85_v14 = vld [vmem:[%s14255_s1 + $0x1c] sm:$0xf]  ;;  %v20_v15 = vld [vmem:[%s14256_s0 + $0x18] sm:$0xf] }
   0x6   :  { %11234 = vmatpush3.xpose.msk.msra.mxu0 %vm206_vm0, %v80_v4  ;;  %11231 = vmatmul.mubr.msk.f32.vlgmr.msra.gmra.mxu1 %vm206_vm0, %v15_v5  ;;  %v86_v16 = vld [vmem:[%s14255_s1 + $0x20] sm:$0xf]  ;;  %v21_v17 = vld [vmem:[%s14256_s0 + $0x1c] sm:$0xf]  ;;  %v87_v18 = vld [vmem:[%s14255_s1 + $0x24] sm:$0xf] }
   0x7   :  { %11235 = vmatprep.mubr.msk.f32.mxu0 %vm12122_vm1, %v14259_v0  ;;  %11239 = vmatpush3.xpose.msk.msra.mxu1 %vm206_vm0, %v81_v6  ;;  %v22_v19 = vld [vmem:[%s14256_s0 + $0x20] sm:$0xf]  ;;  %v88_v20 = vld [vmem:[%s14255_s1 + $0x28] sm:$0xf]  ;;  %v23_v21 = vld [vmem:[%s14256_s0 + $0x24] sm:$0xf] }
   0x8   :  { %11243 = vmatprep.subr.mxu0 %v14259_v0  ;;  %11240 = vmatprep.mubr.msk.f32.mxu1 %vm12122_vm1, %v14259_v0  ;;  %v89_v22 = vld [vmem:[%s14255_s1 + $0x2c] sm:$0xf]  ;;  %v24_v23 = vld [vmem:[%s14256_s0 + $0x28] sm:$0xf]  ;;  %v90_v24 = vld [vmem:[%s14255_s1 + $0x30] sm:$0xf] }
   0x9   :  { %11236 = vmatmul.mubr.msk.f32.vlgmr.msra.gmra.mxu0 %vm206_vm0, %v16_v7  ;;  %11248 = vmatprep.subr.mxu1 %v14259_v0  ;;  %v25_v25 = vld [vmem:[%s14256_s0 + $0x2c] sm:$0xf]  ;;  %v91_v26 = vld [vmem:[%s14255_s1 + $0x34] sm:$0xf]  ;;  %v26_v27 = vld [vmem:[%s14256_s0 + $0x30] sm:$0xf] }
   0xa   :  { %11244 = vmatpush3.xpose.msk.msra.mxu0 %vm206_vm0, %v82_v8  ;;  %11241 = vmatmul.mubr.msk.f32.vlgmr.msra.gmra.mxu1 %vm206_vm0, %v17_v9  ;;  %v92_v28 = vld [vmem:[%s14255_s1 + $0x38] sm:$0xf]  ;;  %v27_v29 = vld [vmem:[%s14256_s0 + $0x34] sm:$0xf]  ;;  %v93_v30 = vld [vmem:[%s14255_s1 + $0x3c] sm:$0xf] }
   0xb   :  { %11245 = vmatprep.mubr.msk.f32.mxu0 %vm12122_vm1, %v14259_v0  ;;  %11249 = vmatpush3.xpose.msk.msra.mxu1 %vm206_vm0, %v83_v10  ;;  %v28_v31 = vld [vmem:[%s14256_s0 + $0x38] sm:$0xf]  ;;  %v94_v32 = vld [vmem:[%s14255_s1 + $0x40] sm:$0xf]  ;;  %v29_v33 = vld [vmem:[%s14256_s0 + $0x3c] sm:$0xf] }
   0xc   :  { %11253 = vmatprep.subr.mxu0 %v14259_v0  ;;  %11250 = vmatprep.mubr.msk.f32.mxu1 %vm12122_vm1, %v14259_v0  ;;  %v95_v34 = vld [vmem:[%s14255_s1 + $0x44] sm:$0xf]  ;;  %v30_v35 = vld [vmem:[%s14256_s0 + $0x40] sm:$0xf]  ;;  %v96_v36 = vld [vmem:[%s14255_s1 + $0x48] sm:$0xf] }
   0xd   :  { %11246 = vmatmul.mubr.msk.f32.vlgmr.msra.gmra.mxu0 %vm206_vm0, %v18_v11  ;;  %11258 = vmatprep.subr.mxu1 %v14259_v0  ;;  %v31_v37 = vld [vmem:[%s14256_s0 + $0x44] sm:$0xf]  ;;  %v97_v38 = vld [vmem:[%s14255_s1 + $0x4c] sm:$0xf]  ;;  %v32_v39 = vld [vmem:[%s14256_s0 + $0x48] sm:$0xf] }
   0xe   :  { %11254 = vmatpush3.xpose.msk.msra.mxu0 %vm206_vm0, %v84_v12  ;;  %11251 = vmatmul.mubr.msk.f32.vlgmr.msra.gmra.mxu1 %vm206_vm0, %v19_v13  ;;  %v98_v40 = vld [vmem:[%s14255_s1 + $0x50] sm:$0xf]  ;;  %v33_v41 = vld [vmem:[%s14256_s0 + $0x4c] sm:$0xf]  ;;  %v99_v42 = vld [vmem:[%s14255_s1 + $0x54] sm:$0xf] }
   0xf   :  { %11255 = vmatprep.mubr.msk.f32.mxu0 %vm12122_vm1, %v14259_v0  ;;  %11259 = vmatpush3.xpose.msk.msra.mxu1 %vm206_vm0, %v85_v14  ;;  %v34_v43 = vld [vmem:[%s14256_s0 + $0x50] sm:$0xf]  ;;  %v100_v44 = vld [vmem:[%s14255_s1 + $0x58] sm:$0xf]  ;;  %v35_v45 = vld [vmem:[%s14256_s0 + $0x54] sm:$0xf] }
  0x10   :  { %11263 = vmatprep.subr.mxu0 %v14259_v0  ;;  %11260 = vmatprep.mubr.msk.f32.mxu1 %vm12122_vm1, %v14259_v0  ;;  %v101_v46 = vld [vmem:[%s14255_s1 + $0x5c] sm:$0xf]  ;;  %v36_v47 = vld [vmem:[%s14256_s0 + $0x58] sm:$0xf]  ;;  %v102_v48 = vld [vmem:[%s14255_s1 + $0x60] sm:$0xf] }
  0x11   :  { %11256 = vmatmul.mubr.msk.f32.vlgmr.msra.gmra.mxu0 %vm206_vm0, %v20_v15  ;;  %11268 = vmatprep.subr.mxu1 %v14259_v0  ;;  %v37_v49 = vld [vmem:[%s14256_s0 + $0x5c] sm:$0xf]  ;;  %v103_v50 = vld [vmem:[%s14255_s1 + $0x64] sm:$0xf]  ;;  %v38_v51 = vld [vmem:[%s14256_s0 + $0x60] sm:$0xf] }
  0x12   :  { %11264 = vmatpush3.xpose.msk.msra.mxu0 %vm206_vm0, %v86_v16  ;;  %11261 = vmatmul.mubr.msk.f32.vlgmr.msra.gmra.mxu1 %vm206_vm0, %v21_v17  ;;  %v104_v52 = vld [vmem:[%s14255_s1 + $0x68] sm:$0xf]  ;;  %v39_v53 = vld [vmem:[%s14256_s0 + $0x64] sm:$0xf]  ;;  %v105_v54 = vld [vmem:[%s14255_s1 + $0x6c] sm:$0xf] }
  0x13   :  { %11265 = vmatprep.mubr.msk.f32.mxu0 %vm12122_vm1, %v14259_v0  ;;  %11269 = vmatpush3.xpose.msk.msra.mxu1 %vm206_vm0, %v87_v18  ;;  %v40_v55 = vld [vmem:[%s14256_s0 + $0x68] sm:$0xf]  ;;  %v106_v56 = vld [vmem:[%s14255_s1 + $0x70] sm:$0xf]  ;;  %v41_v57 = vld [vmem:[%s14256_s0 + $0x6c] sm:$0xf] }
  0x14   :  { %11273 = vmatprep.subr.mxu0 %v14259_v0  ;;  %11270 = vmatprep.mubr.msk.f32.mxu1 %vm12122_vm1, %v14259_v0  ;;  %v107_v58 = vld [vmem:[%s14255_s1 + $0x74] sm:$0xf]  ;;  %v42_v59 = vld [vmem:[%s14256_s0 + $0x70] sm:$0xf]  ;;  %v108_v60 = vld [vmem:[%s14255_s1 + $0x78] sm:$0xf] }
  0x15   :  { %11266 = vmatmul.mubr.msk.f32.vlgmr.msra.gmra.mxu0 %vm206_vm0, %v22_v19  ;;  %11278 = vmatprep.subr.mxu1 %v14259_v0  ;;  %v43_v61 = vld [vmem:[%s14256_s0 + $0x74] sm:$0xf]  ;;  %v109_v62 = vld [vmem:[%s14255_s1 + $0x7c] sm:$0xf]  ;;  %v44_v63 = vld [vmem:[%s14256_s0 + $0x78] sm:$0xf] }
  0x16   :  { %11274 = vmatpush3.xpose.msk.msra.mxu0 %vm206_vm0, %v88_v20  ;;  %11271 = vmatmul.mubr.msk.f32.vlgmr.msra.gmra.mxu1 %vm206_vm0, %v23_v21  ;;  %v110_v1 = vld [vmem:[%s14255_s1 + $0x80] sm:$0xf]  ;;  %v45_v2 = vld [vmem:[%s14256_s0 + $0x7c] sm:$0xf]  ;;  %v111_v3 = vld [vmem:[%s14255_s1 + $0x84] sm:$0xf] }
  0x17   :  { %11275 = vmatprep.mubr.msk.f32.mxu0 %vm12122_vm1, %v14259_v0  ;;  %11279 = vmatpush3.xpose.msk.msra.mxu1 %vm206_vm0, %v89_v22  ;;  %v46_v4 = vld [vmem:[%s14256_s0 + $0x80] sm:$0xf]  ;;  %v112_v5 = vld [vmem:[%s14255_s1 + $0x88] sm:$0xf]  ;;  %v47_v6 = vld [vmem:[%s14256_s0 + $0x84] sm:$0xf] }
  0x18   :  { %11283 = vmatprep.subr.mxu0 %v14259_v0  ;;  %11280 = vmatprep.mubr.msk.f32.mxu1 %vm12122_vm1, %v14259_v0  ;;  %v113_v7 = vld [vmem:[%s14255_s1 + $0x8c] sm:$0xf]  ;;  %v48_v8 = vld [vmem:[%s14256_s0 + $0x88] sm:$0xf]  ;;  %v114_v9 = vld [vmem:[%s14255_s1 + $0x90] sm:$0xf] }
  0x19   :  { %11276 = vmatmul.mubr.msk.f32.vlgmr.msra.gmra.mxu0 %vm206_vm0, %v24_v23  ;;  %11288 = vmatprep.subr.mxu1 %v14259_v0  ;;  %v49_v10 = vld [vmem:[%s14256_s0 + $0x8c] sm:$0xf]  ;;  %v115_v11 = vld [vmem:[%s14255_s1 + $0x94] sm:$0xf]  ;;  %v50_v12 = vld [vmem:[%s14256_s0 + $0x90] sm:$0xf] }
  0x1a   :  { %11284 = vmatpush3.xpose.msk.msra.mxu0 %vm206_vm0, %v90_v24  ;;  %11281 = vmatmul.mubr.msk.f32.vlgmr.msra.gmra.mxu1 %vm206_vm0, %v25_v25  ;;  %v116_v13 = vld [vmem:[%s14255_s1 + $0x98] sm:$0xf]  ;;  %v51_v14 = vld [vmem:[%s14256_s0 + $0x94] sm:$0xf]  ;;  %v117_v15 = vld [vmem:[%s14255_s1 + $0x9c] sm:$0xf] }
  0x1b   :  { %11285 = vmatprep.mubr.msk.f32.mxu0 %vm12122_vm1, %v14259_v0  ;;  %11289 = vmatpush3.xpose.msk.msra.mxu1 %vm206_vm0, %v91_v26  ;;  %v52_v16 = vld [vmem:[%s14256_s0 + $0x98] sm:$0xf]  ;;  %v118_v17 = vld [vmem:[%s14255_s1 + $0xa0] sm:$0xf]  ;;  %v53_v18 = vld [vmem:[%s14256_s0 + $0x9c] sm:$0xf] }
  0x1c   :  { %11293 = vmatprep.subr.mxu0 %v14259_v0  ;;  %11290 = vmatprep.mubr.msk.f32.mxu1 %vm12122_vm1, %v14259_v0  ;;  %v119_v19 = vld [vmem:[%s14255_s1 + $0xa4] sm:$0xf]  ;;  %v54_v20 = vld [vmem:[%s14256_s0 + $0xa0] sm:$0xf]  ;;  %v120_v21 = vld [vmem:[%s14255_s1 + $0xa8] sm:$0xf] }
  0x1d   :  { %11286 = vmatmul.mubr.msk.f32.vlgmr.msra.gmra.mxu0 %vm206_vm0, %v26_v27  ;;  %11298 = vmatprep.subr.mxu1 %v14259_v0  ;;  %v55_v22 = vld [vmem:[%s14256_s0 + $0xa4] sm:$0xf]  ;;  %v121_v23 = vld [vmem:[%s14255_s1 + $0xac] sm:$0xf]  ;;  %v56_v24 = vld [vmem:[%s14256_s0 + $0xa8] sm:$0xf] }
  0x1e   :  { %11294 = vmatpush3.xpose.msk.msra.mxu0 %vm206_vm0, %v92_v28  ;;  %11291 = vmatmul.mubr.msk.f32.vlgmr.msra.gmra.mxu1 %vm206_vm0, %v27_v29  ;;  %v122_v25 = vld [vmem:[%s14255_s1 + $0xb0] sm:$0xf]  ;;  %v57_v26 = vld [vmem:[%s14256_s0 + $0xac] sm:$0xf]  ;;  %v123_v27 = vld [vmem:[%s14255_s1 + $0xb4] sm:$0xf] }
  0x1f   :  { %11295 = vmatprep.mubr.msk.f32.mxu0 %vm12122_vm1, %v14259_v0  ;;  %11299 = vmatpush3.xpose.msk.msra.mxu1 %vm206_vm0, %v93_v30  ;;  %v58_v28 = vld [vmem:[%s14256_s0 + $0xb0] sm:$0xf]  ;;  %v124_v29 = vld [vmem:[%s14255_s1 + $0xb8] sm:$0xf]  ;;  %v59_v30 = vld [vmem:[%s14256_s0 + $0xb4] sm:$0xf] }
  0x20   :  { %11303 = vmatprep.subr.mxu0 %v14259_v0  ;;  %11300 = vmatprep.mubr.msk.f32.mxu1 %vm12122_vm1, %v14259_v0  ;;  %vm5780_vm3 = vcmask 1043456   ;;  %vm5776_vm4 = vcmask 31744   ;;  %vm10642_vm5 = vcmask 125952  }
  0x21   :  { %11296 = vmatmul.mubr.msk.f32.vlgmr.msra.gmra.mxu0 %vm206_vm0, %v28_v31  ;;  %11308 = vmatprep.subr.mxu1 %v14259_v0  ;;  %v125_v31 = vld [vmem:[%s14255_s1 + $0xbc] sm:$0xf] }
  0x22   :  { %11304 = vmatpush3.xpose.msk.msra.mxu0 %vm206_vm0, %v94_v32  ;;  %11301 = vmatmul.mubr.msk.f32.vlgmr.msra.gmra.mxu1 %vm206_vm0, %v29_v33  ;;  %v60_v32 = vld [vmem:[%s14256_s0 + $0xb8] sm:$0xf]  ;;  %v126_v33 = vld [vmem:[%s14255_s1 + $0xc0] sm:$0xf] }
  0x23   :  { %11305 = vmatprep.mubr.msk.f32.mxu0 %vm12122_vm1, %v14259_v0  ;;  %11309 = vmatpush3.xpose.msk.msra.mxu1 %vm206_vm0, %v95_v34  ;;  %v61_v34 = vld [vmem:[%s14256_s0 + $0xbc] sm:$0xf] }
  0x24   :  { %11313 = vmatprep.subr.mxu0 %v14259_v0  ;;  %11310 = vmatprep.mubr.msk.f32.mxu1 %vm12122_vm1, %v14259_v0 }
  0x25   :  { %11306 = vmatmul.mubr.msk.f32.vlgmr.msra.gmra.mxu0 %vm206_vm0, %v30_v35  ;;  %11318 = vmatprep.subr.mxu1 %v14259_v0  ;;  %v127_v35 = vld [vmem:[%s14255_s1 + $0xc4] sm:$0xf] }
  0x26   :  { %11314 = vmatpush3.xpose.msk.msra.mxu0 %vm206_vm0, %v96_v36  ;;  %11311 = vmatmul.mubr.msk.f32.vlgmr.msra.gmra.mxu1 %vm206_vm0, %v31_v37  ;;  %v62_v36 = vld [vmem:[%s14256_s0 + $0xc0] sm:$0xf]  ;;  %v128_v37 = vld [vmem:[%s14255_s1 + $0xc8] sm:$0xf] }
  0x27   :  { %11315 = vmatprep.mubr.msk.f32.mxu0 %vm12122_vm1, %v14259_v0  ;;  %11319 = vmatpush3.xpose.msk.msra.mxu1 %vm206_vm0, %v97_v38  ;;  %v63_v38 = vld [vmem:[%s14256_s0 + $0xc4] sm:$0xf] }
  0x28   :  { %11323 = vmatprep.subr.mxu0 %v14259_v0  ;;  %11320 = vmatprep.mubr.msk.f32.mxu1 %vm12122_vm1, %v14259_v0 }
  0x29   :  { %11316 = vmatmul.mubr.msk.f32.vlgmr.msra.gmra.mxu0 %vm206_vm0, %v32_v39  ;;  %11328 = vmatprep.subr.mxu1 %v14259_v0  ;;  %v129_v39 = vld [vmem:[%s14255_s1 + $0xcc] sm:$0xf] }
  0x2a   :  { %11324 = vmatpush3.xpose.msk.msra.mxu0 %vm206_vm0, %v98_v40  ;;  %11321 = vmatmul.mubr.msk.f32.vlgmr.msra.gmra.mxu1 %vm206_vm0, %v33_v41  ;;  %v64_v40 = vld [vmem:[%s14256_s0 + $0xc8] sm:$0xf]  ;;  %v130_v41 = vld [vmem:[%s14255_s1 + $0xd0] sm:$0xf] }
  0x2b   :  { %11325 = vmatprep.mubr.msk.f32.mxu0 %vm12122_vm1, %v14259_v0  ;;  %11329 = vmatpush3.xpose.msk.msra.mxu1 %vm206_vm0, %v99_v42  ;;  %v65_v42 = vld [vmem:[%s14256_s0 + $0xcc] sm:$0xf] }
  0x2c   :  { %11333 = vmatprep.subr.mxu0 %v14259_v0  ;;  %11330 = vmatprep.mubr.msk.f32.mxu1 %vm12122_vm1, %v14259_v0 }
  0x2d   :  { %11326 = vmatmul.mubr.msk.f32.vlgmr.msra.gmra.mxu0 %vm206_vm0, %v34_v43  ;;  %11338 = vmatprep.subr.mxu1 %v14259_v0  ;;  %v131_v43 = vld [vmem:[%s14255_s1 + $0xd4] sm:$0xf] }
  0x2e   :  { %11334 = vmatpush3.xpose.msk.msra.mxu0 %vm206_vm0, %v100_v44  ;;  %11331 = vmatmul.mubr.msk.f32.vlgmr.msra.gmra.mxu1 %vm206_vm0, %v35_v45  ;;  %v66_v44 = vld [vmem:[%s14256_s0 + $0xd0] sm:$0xf]  ;;  %v132_v45 = vld [vmem:[%s14255_s1 + $0xd8] sm:$0xf] }
  0x2f   :  { %11335 = vmatprep.mubr.msk.f32.mxu0 %vm12122_vm1, %v14259_v0  ;;  %11339 = vmatpush3.xpose.msk.msra.mxu1 %vm206_vm0, %v101_v46  ;;  %v67_v46 = vld [vmem:[%s14256_s0 + $0xd4] sm:$0xf] }
  0x30   :  { %11343 = vmatprep.subr.mxu0 %v14259_v0  ;;  %11340 = vmatprep.mubr.msk.f32.mxu1 %vm12122_vm1, %v14259_v0 }
  0x31   :  { %11336 = vmatmul.mubr.msk.f32.vlgmr.msra.gmra.mxu0 %vm206_vm0, %v36_v47  ;;  %11348 = vmatprep.subr.mxu1 %v14259_v0  ;;  %v133_v47 = vld [vmem:[%s14255_s1 + $0xdc] sm:$0xf] }
  0x32   :  { %11344 = vmatpush3.xpose.msk.msra.mxu0 %vm206_vm0, %v102_v48  ;;  %11341 = vmatmul.mubr.msk.f32.vlgmr.msra.gmra.mxu1 %vm206_vm0, %v37_v49  ;;  %v68_v48 = vld [vmem:[%s14256_s0 + $0xd8] sm:$0xf]  ;;  %v134_v49 = vld [vmem:[%s14255_s1 + $0xe0] sm:$0xf] }
  0x33   :  { %11345 = vmatprep.mubr.msk.f32.mxu0 %vm12122_vm1, %v14259_v0  ;;  %11349 = vmatpush3.xpose.msk.msra.mxu1 %vm206_vm0, %v103_v50  ;;  %v69_v50 = vld [vmem:[%s14256_s0 + $0xdc] sm:$0xf] }
  0x34   :  { %11353 = vmatprep.subr.mxu0 %v14259_v0  ;;  %11350 = vmatprep.mubr.msk.f32.mxu1 %vm12122_vm1, %v14259_v0 }
  0x35   :  { %11346 = vmatmul.mubr.msk.f32.vlgmr.msra.gmra.mxu0 %vm206_vm0, %v38_v51  ;;  %11358 = vmatprep.subr.mxu1 %v14259_v0  ;;  %v135_v51 = vld [vmem:[%s14255_s1 + $0xe4] sm:$0xf] }
  0x36   :  { %11354 = vmatpush3.xpose.msk.msra.mxu0 %vm206_vm0, %v104_v52  ;;  %11351 = vmatmul.mubr.msk.f32.vlgmr.msra.gmra.mxu1 %vm206_vm0, %v39_v53  ;;  %v70_v52 = vld [vmem:[%s14256_s0 + $0xe0] sm:$0xf]  ;;  %v136_v53 = vld [vmem:[%s14255_s1 + $0xe8] sm:$0xf] }
  0x37   :  { %11355 = vmatprep.mubr.msk.f32.mxu0 %vm12122_vm1, %v14259_v0  ;;  %11359 = vmatpush3.xpose.msk.msra.mxu1 %vm206_vm0, %v105_v54  ;;  %v71_v54 = vld [vmem:[%s14256_s0 + $0xe4] sm:$0xf] }
  0x38   :  { %11363 = vmatprep.subr.mxu0 %v14259_v0  ;;  %11360 = vmatprep.mubr.msk.f32.mxu1 %vm12122_vm1, %v14259_v0 }
  0x39   :  { %11356 = vmatmul.mubr.msk.f32.vlgmr.msra.gmra.mxu0 %vm206_vm0, %v40_v55  ;;  %11368 = vmatprep.subr.mxu1 %v14259_v0  ;;  %v137_v55 = vld [vmem:[%s14255_s1 + $0xec] sm:$0xf] }
  0x3a   :  { %11364 = vmatpush3.xpose.msk.msra.mxu0 %vm206_vm0, %v106_v56  ;;  %11361 = vmatmul.mubr.msk.f32.vlgmr.msra.gmra.mxu1 %vm206_vm0, %v41_v57  ;;  %v72_v56 = vld [vmem:[%s14256_s0 + $0xe8] sm:$0xf]  ;;  %v138_v57 = vld [vmem:[%s14255_s1 + $0xf0] sm:$0xf] }
  0x3b   :  { %11365 = vmatprep.mubr.msk.f32.mxu0 %vm12122_vm1, %v14259_v0  ;;  %11369 = vmatpush3.xpose.msk.msra.mxu1 %vm206_vm0, %v107_v58  ;;  %v73_v58 = vld [vmem:[%s14256_s0 + $0xec] sm:$0xf] }
  0x3c   :  { %11373 = vmatprep.subr.mxu0 %v14259_v0  ;;  %11370 = vmatprep.mubr.msk.f32.mxu1 %vm12122_vm1, %v14259_v0 }
  0x3d   :  { %11366 = vmatmul.mubr.msk.f32.vlgmr.msra.gmra.mxu0 %vm206_vm0, %v42_v59  ;;  %11378 = vmatprep.subr.mxu1 %v14259_v0  ;;  %v139_v59 = vld [vmem:[%s14255_s1 + $0xf4] sm:$0xf] }
  0x3e   :  { %11374 = vmatpush3.xpose.msk.msra.mxu0 %vm206_vm0, %v108_v60  ;;  %11371 = vmatmul.mubr.msk.f32.vlgmr.msra.gmra.mxu1 %vm206_vm0, %v43_v61  ;;  %v74_v60 = vld [vmem:[%s14256_s0 + $0xf0] sm:$0xf]  ;;  %v140_v61 = vld [vmem:[%s14255_s1 + $0xf8] sm:$0xf] }
  0x3f   :  { %11375 = vmatprep.mubr.msk.f32.mxu0 %vm12122_vm1, %v14259_v0  ;;  %11379 = vmatpush3.xpose.msk.msra.mxu1 %vm206_vm0, %v109_v62  ;;  %v75_v62 = vld [vmem:[%s14256_s0 + $0xf4] sm:$0xf] }
  0x40   :  { %11383 = vmatprep.subr.mxu0 %v14259_v0  ;;  %11380 = vmatprep.mubr.msk.f32.mxu1 %vm12122_vm1, %v14259_v0 }
  0x41   :  { %11376 = vmatmul.mubr.msk.f32.vlgmr.msra.gmra.mxu0 %vm206_vm0, %v44_v63  ;;  %11388 = vmatprep.subr.mxu1 %v14259_v0  ;;  %v141_v63 = vld [vmem:[%s14255_s1 + $0xfc] sm:$0xf] }
  0x42   :  { %11384 = vmatpush3.xpose.msk.msra.mxu0 %vm206_vm0, %v110_v1  ;;  %11381 = vmatmul.mubr.msk.f32.vlgmr.msra.gmra.mxu1 %vm206_vm0, %v45_v2  ;;  %v76_v1 = vld [vmem:[%s14256_s0 + $0xf8] sm:$0xf]  ;;  %v77_v2 = vld [vmem:[%s14256_s0 + $0xfc] sm:$0xf] }
  0x43   :  { %11385 = vmatprep.mubr.msk.f32.mxu0 %vm12122_vm1, %v14259_v0  ;;  %11389 = vmatpush3.xpose.msk.msra.mxu1 %vm206_vm0, %v111_v3 }
  0x44   :  { %11393 = vmatprep.subr.mxu0 %v14259_v0  ;;  %11390 = vmatprep.mubr.msk.f32.mxu1 %vm12122_vm1, %v14259_v0 }
  0x45   :  { %11386 = vmatmul.mubr.msk.f32.vlgmr.msra.gmra.mxu0 %vm206_vm0, %v46_v4  ;;  %11398 = vmatprep.subr.mxu1 %v14259_v0 }
  0x46   :  { %11394 = vmatpush3.xpose.msk.msra.mxu0 %vm206_vm0, %v112_v5  ;;  %11391 = vmatmul.mubr.msk.f32.vlgmr.msra.gmra.mxu1 %vm206_vm0, %v47_v6 }
  0x47   :  { %11395 = vmatprep.mubr.msk.f32.mxu0 %vm12122_vm1, %v14259_v0  ;;  %11399 = vmatpush3.xpose.msk.msra.mxu1 %vm206_vm0, %v113_v7 }
  0x48   :  { %11403 = vmatprep.subr.mxu0 %v14259_v0  ;;  %11400 = vmatprep.mubr.msk.f32.mxu1 %vm12122_vm1, %v14259_v0 }
  0x49   :  { %11396 = vmatmul.mubr.msk.f32.vlgmr.msra.gmra.mxu0 %vm206_vm0, %v48_v8  ;;  %11408 = vmatprep.subr.mxu1 %v14259_v0 }
  0x4a   :  { %11404 = vmatpush3.xpose.msk.msra.mxu0 %vm206_vm0, %v114_v9  ;;  %11401 = vmatmul.mubr.msk.f32.vlgmr.msra.gmra.mxu1 %vm206_vm0, %v49_v10 }
  0x4b   :  { %11405 = vmatprep.mubr.msk.f32.mxu0 %vm12122_vm1, %v14259_v0  ;;  %11409 = vmatpush3.xpose.msk.msra.mxu1 %vm206_vm0, %v115_v11 }
  0x4c   :  { %11413 = vmatprep.subr.mxu0 %v14259_v0  ;;  %11410 = vmatprep.mubr.msk.f32.mxu1 %vm12122_vm1, %v14259_v0 }
  0x4d   :  { %11406 = vmatmul.mubr.msk.f32.vlgmr.msra.gmra.mxu0 %vm206_vm0, %v50_v12  ;;  %11418 = vmatprep.subr.mxu1 %v14259_v0 }
  0x4e   :  { %11414 = vmatpush3.xpose.msk.msra.mxu0 %vm206_vm0, %v116_v13  ;;  %11411 = vmatmul.mubr.msk.f32.vlgmr.msra.gmra.mxu1 %vm206_vm0, %v51_v14 }
  0x4f   :  { %11415 = vmatprep.mubr.msk.f32.mxu0 %vm12122_vm1, %v14259_v0  ;;  %11419 = vmatpush3.xpose.msk.msra.mxu1 %vm206_vm0, %v117_v15 }
  0x50   :  { %11423 = vmatprep.subr.mxu0 %v14259_v0  ;;  %11420 = vmatprep.mubr.msk.f32.mxu1 %vm12122_vm1, %v14259_v0 }
  0x51   :  { %11416 = vmatmul.mubr.msk.f32.vlgmr.msra.gmra.mxu0 %vm206_vm0, %v52_v16  ;;  %11428 = vmatprep.subr.mxu1 %v14259_v0 }
  0x52   :  { %11424 = vmatpush3.xpose.msk.msra.mxu0 %vm206_vm0, %v118_v17  ;;  %11421 = vmatmul.mubr.msk.f32.vlgmr.msra.gmra.mxu1 %vm206_vm0, %v53_v18 }
  0x53   :  { %11425 = vmatprep.mubr.msk.f32.mxu0 %vm12122_vm1, %v14259_v0  ;;  %11429 = vmatpush3.xpose.msk.msra.mxu1 %vm206_vm0, %v119_v19 }
  0x54   :  { %11433 = vmatprep.subr.mxu0 %v14259_v0  ;;  %11430 = vmatprep.mubr.msk.f32.mxu1 %vm12122_vm1, %v14259_v0 }
  0x55   :  { %11426 = vmatmul.mubr.msk.f32.vlgmr.msra.gmra.mxu0 %vm206_vm0, %v54_v20  ;;  %11438 = vmatprep.subr.mxu1 %v14259_v0 }
  0x56   :  { %11434 = vmatpush3.xpose.msk.msra.mxu0 %vm206_vm0, %v120_v21  ;;  %11431 = vmatmul.mubr.msk.f32.vlgmr.msra.gmra.mxu1 %vm206_vm0, %v55_v22 }
  0x57   :  { %11435 = vmatprep.mubr.msk.f32.mxu0 %vm12122_vm1, %v14259_v0  ;;  %11439 = vmatpush3.xpose.msk.msra.mxu1 %vm206_vm0, %v121_v23 }
  0x58   :  { %11443 = vmatprep.subr.mxu0 %v14259_v0  ;;  %11440 = vmatprep.mubr.msk.f32.mxu1 %vm12122_vm1, %v14259_v0 }
  0x59   :  { %11436 = vmatmul.mubr.msk.f32.vlgmr.msra.gmra.mxu0 %vm206_vm0, %v56_v24  ;;  %11448 = vmatprep.subr.mxu1 %v14259_v0 }
  0x5a   :  { %11444 = vmatpush3.xpose.msk.msra.mxu0 %vm206_vm0, %v122_v25  ;;  %11441 = vmatmul.mubr.msk.f32.vlgmr.msra.gmra.mxu1 %vm206_vm0, %v57_v26 }
  0x5b   :  { %11445 = vmatprep.mubr.msk.f32.mxu0 %vm12122_vm1, %v14259_v0  ;;  %11449 = vmatpush3.xpose.msk.msra.mxu1 %vm206_vm0, %v123_v27 }
  0x5c   :  { %11453 = vmatprep.subr.mxu0 %v14259_v0  ;;  %11450 = vmatprep.mubr.msk.f32.mxu1 %vm12122_vm1, %v14259_v0 }
  0x5d   :  { %11446 = vmatmul.mubr.msk.f32.vlgmr.msra.gmra.mxu0 %vm206_vm0, %v58_v28  ;;  %11458 = vmatprep.subr.mxu1 %v14259_v0 }
  0x5e   :  { %11454 = vmatpush3.xpose.msk.msra.mxu0 %vm206_vm0, %v124_v29  ;;  %11451 = vmatmul.mubr.msk.f32.vlgmr.msra.gmra.mxu1 %vm206_vm0, %v59_v30 }
  0x5f   :  { %11455 = vmatprep.mubr.msk.f32.mxu0 %vm12122_vm1, %v14259_v0  ;;  %11459 = vmatpush3.xpose.msk.msra.mxu1 %vm206_vm0, %v125_v31 }
  0x60   :  { %11463 = vmatprep.subr.mxu0 %v14259_v0  ;;  %11460 = vmatprep.mubr.msk.f32.mxu1 %vm12122_vm1, %v14259_v0 }
  0x61   :  { %11456 = vmatmul.mubr.msk.f32.vlgmr.msra.gmra.mxu0 %vm206_vm0, %v60_v32  ;;  %11468 = vmatprep.subr.mxu1 %v14259_v0 }
  0x62   :  { %11464 = vmatpush3.xpose.msk.msra.mxu0 %vm206_vm0, %v126_v33  ;;  %11461 = vmatmul.mubr.msk.f32.vlgmr.msra.gmra.mxu1 %vm206_vm0, %v61_v34 }
  0x63   :  { %11465 = vmatprep.mubr.msk.f32.mxu0 %vm12122_vm1, %v14259_v0  ;;  %11469 = vmatpush3.xpose.msk.msra.mxu1 %vm206_vm0, %v127_v35 }
  0x64   :  { %11473 = vmatprep.subr.mxu0 %v14259_v0  ;;  %11470 = vmatprep.mubr.msk.f32.mxu1 %vm12122_vm1, %v14259_v0 }
  0x65   :  { %11466 = vmatmul.mubr.msk.f32.vlgmr.msra.gmra.mxu0 %vm206_vm0, %v62_v36  ;;  %11478 = vmatprep.subr.mxu1 %v14259_v0 }
  0x66   :  { %11474 = vmatpush3.xpose.msk.msra.mxu0 %vm206_vm0, %v128_v37  ;;  %11471 = vmatmul.mubr.msk.f32.vlgmr.msra.gmra.mxu1 %vm206_vm0, %v63_v38 }
  0x67   :  { %11475 = vmatprep.mubr.msk.f32.mxu0 %vm12122_vm1, %v14259_v0  ;;  %11479 = vmatpush3.xpose.msk.msra.mxu1 %vm206_vm0, %v129_v39 }
  0x68   :  { %11483 = vmatprep.subr.mxu0 %v14259_v0  ;;  %11480 = vmatprep.mubr.msk.f32.mxu1 %vm12122_vm1, %v14259_v0 }
  0x69   :  { %11476 = vmatmul.mubr.msk.f32.vlgmr.msra.gmra.mxu0 %vm206_vm0, %v64_v40  ;;  %11488 = vmatprep.subr.mxu1 %v14259_v0 }
  0x6a   :  { %11484 = vmatpush3.xpose.msk.msra.mxu0 %vm206_vm0, %v130_v41  ;;  %11481 = vmatmul.mubr.msk.f32.vlgmr.msra.gmra.mxu1 %vm206_vm0, %v65_v42 }
  0x6b   :  { %11485 = vmatprep.mubr.msk.f32.mxu0 %vm12122_vm1, %v14259_v0  ;;  %11489 = vmatpush3.xpose.msk.msra.mxu1 %vm206_vm0, %v131_v43 }
  0x6c   :  { %11493 = vmatprep.subr.mxu0 %v14259_v0  ;;  %11490 = vmatprep.mubr.msk.f32.mxu1 %vm12122_vm1, %v14259_v0 }
  0x6d   :  { %11486 = vmatmul.mubr.msk.f32.vlgmr.msra.gmra.mxu0 %vm206_vm0, %v66_v44  ;;  %11498 = vmatprep.subr.mxu1 %v14259_v0 }
  0x6e   :  { %11494 = vmatpush3.xpose.msk.msra.mxu0 %vm206_vm0, %v132_v45  ;;  %11491 = vmatmul.mubr.msk.f32.vlgmr.msra.gmra.mxu1 %vm206_vm0, %v67_v46 }
  0x6f   :  { %11495 = vmatprep.mubr.msk.f32.mxu0 %vm12122_vm1, %v14259_v0  ;;  %11499 = vmatpush3.xpose.msk.msra.mxu1 %vm206_vm0, %v133_v47 }
  0x70   :  { %11503 = vmatprep.subr.mxu0 %v14259_v0  ;;  %11500 = vmatprep.mubr.msk.f32.mxu1 %vm12122_vm1, %v14259_v0 }
  0x71   :  { %11496 = vmatmul.mubr.msk.f32.vlgmr.msra.gmra.mxu0 %vm206_vm0, %v68_v48  ;;  %11508 = vmatprep.subr.mxu1 %v14259_v0 }
  0x72   :  { %11504 = vmatpush3.xpose.msk.msra.mxu0 %vm206_vm0, %v134_v49  ;;  %11501 = vmatmul.mubr.msk.f32.vlgmr.msra.gmra.mxu1 %vm206_vm0, %v69_v50 }
  0x73   :  { %11505 = vmatprep.mubr.msk.f32.mxu0 %vm12122_vm1, %v14259_v0  ;;  %11509 = vmatpush3.xpose.msk.msra.mxu1 %vm206_vm0, %v135_v51 }
  0x74   :  { %11513 = vmatprep.subr.mxu0 %v14259_v0  ;;  %11510 = vmatprep.mubr.msk.f32.mxu1 %vm12122_vm1, %v14259_v0 }
  0x75   :  { %11506 = vmatmul.mubr.msk.f32.vlgmr.msra.gmra.mxu0 %vm206_vm0, %v70_v52  ;;  %11518 = vmatprep.subr.mxu1 %v14259_v0 }
  0x76   :  { %11514 = vmatpush3.xpose.msk.msra.mxu0 %vm206_vm0, %v136_v53  ;;  %11511 = vmatmul.mubr.msk.f32.vlgmr.msra.gmra.mxu1 %vm206_vm0, %v71_v54 }
  0x77   :  { %11515 = vmatprep.mubr.msk.f32.mxu0 %vm12122_vm1, %v14259_v0  ;;  %11519 = vmatpush3.xpose.msk.msra.mxu1 %vm206_vm0, %v137_v55 }
  0x78   :  { %11523 = vmatprep.subr.mxu0 %v14259_v0  ;;  %11520 = vmatprep.mubr.msk.f32.mxu1 %vm12122_vm1, %v14259_v0 }
  0x79   :  { %11516 = vmatmul.mubr.msk.f32.vlgmr.msra.gmra.mxu0 %vm206_vm0, %v72_v56  ;;  %11528 = vmatprep.subr.mxu1 %v14259_v0 }
  0x7a   :  { %11524 = vmatpush3.xpose.msk.msra.mxu0 %vm206_vm0, %v138_v57  ;;  %11521 = vmatmul.mubr.msk.f32.vlgmr.msra.gmra.mxu1 %vm206_vm0, %v73_v58 }
  0x7b   :  { %11525 = vmatprep.mubr.msk.f32.mxu0 %vm12122_vm1, %v14259_v0  ;;  %11529 = vmatpush3.xpose.msk.msra.mxu1 %vm206_vm0, %v139_v59 }
  0x7c   :  { %11533 = vmatprep.subr.mxu0 %v14259_v0  ;;  %11530 = vmatprep.mubr.msk.f32.mxu1 %vm12122_vm1, %v14259_v0 }
  0x7d   :  { %11526 = vmatmul.mubr.msk.f32.vlgmr.msra.gmra.mxu0 %vm206_vm0, %v74_v60  ;;  %11538 = vmatprep.subr.mxu1 %v14259_v0 }
  0x7e   :  { %11534 = vmatpush3.xpose.msk.msra.mxu0 %vm206_vm0, %v140_v61  ;;  %11531 = vmatmul.mubr.msk.f32.vlgmr.msra.gmra.mxu1 %vm206_vm0, %v75_v62 }
  0x7f   :  { %11535 = vmatprep.mubr.msk.f32.mxu0 %vm12122_vm1, %v14259_v0  ;;  %11539 = vmatpush3.xpose.msk.msra.mxu1 %vm206_vm0, %v141_v63 }
  0x80   :  { %11540 = vmatprep.mubr.msk.f32.mxu1 %vm12122_vm1, %v14259_v0  ;;  %11543 = vmatprep.subr.mxu0 %v14259_v0 }
  0x81   :  { %11536 = vmatmul.mubr.msk.f32.vlgmr.msra.gmra.mxu0 %vm206_vm0, %v76_v1  ;;  %11548 = vmatprep.subr.mxu1 %v14259_v0 }
  0x82   :  { %11541 = vmatmul.mubr.msk.f32.vlgmr.msra.gmra.mxu1 %vm206_vm0, %v77_v2  ;;  %11545 = vmatprep.mubr.msk.f32.mxu0 %vm12122_vm1, %v14259_v0 }
  0x83   :  { %11550 = vmatprep.mubr.msk.f32.mxu1 %vm12122_vm1, %v14259_v0 }
  0xc5   :  { %v12853_v3 = vpop.f32.mrf.mxu0 }
  0xc6   :  { %v5072_v4 = vsel %vm5071_vm2, %v12853_v3, -inf  ;;  %v12857_v5 = vpop.f32.mrf.mxu1 }
  0xc7   :  { %5073 = vmax.xlane.f32.xlu0 %v5072_v4  ;;  %v11227_v6 = vpop.f32.mrf.mxu0  ;;  %v5075_v8 = vsel %vm5071_vm2, %v12857_v5, -inf }
  0xc8   :  { %v11232_v7 = vpop.f32.mrf.mxu1 }
  0xc9   :  { %v12861_v9 = vpop.f32.mrf.mxu0 }
  0xca   :  { %v5078_v10 = vsel %vm5071_vm2, %v12861_v9, -inf  ;;  %v12865_v11 = vpop.f32.mrf.mxu1 }
  0xcb   :  { %5076 = vmax.xlane.f32.xlu0 %v5075_v8  ;;  %5079 = vmax.xlane.f32.xlu1 %v5078_v10  ;;  %v11237_v12 = vpop.f32.mrf.mxu0  ;;  %v5081_v14 = vsel %vm5071_vm2, %v12865_v11, -inf }
  0xcc   :  { %v11242_v13 = vpop.f32.mrf.mxu1 }
  0xcd   :  { %v12869_v15 = vpop.f32.mrf.mxu0 }
  0xce   :  { %v5084_v16 = vsel %vm5071_vm2, %v12869_v15, -inf  ;;  %v12873_v17 = vpop.f32.mrf.mxu1 }
  0xcf   :  { %5082 = vmax.xlane.f32.xlu1 %v5081_v14  ;;  %5085 = vmax.xlane.f32.xlu0 %v5084_v16  ;;  %v11247_v18 = vpop.f32.mrf.mxu0  ;;  %v5087_v20 = vsel %vm5071_vm2, %v12873_v17, -inf }
  0xd0   :  { %v11252_v19 = vpop.f32.mrf.mxu1 }
  0xd1   :  { %v12877_v21 = vpop.f32.mrf.mxu0 }
  0xd2   :  { %v5090_v22 = vsel %vm5071_vm2, %v12877_v21, -inf  ;;  %v12881_v23 = vpop.f32.mrf.mxu1 }
  0xd3   :  { %5088 = vmax.xlane.f32.xlu1 %v5087_v20  ;;  %5091 = vmax.xlane.f32.xlu0 %v5090_v22  ;;  %v11257_v24 = vpop.f32.mrf.mxu0  ;;  %v5093_v26 = vsel %vm5071_vm2, %v12881_v23, -inf }
  0xd4   :  { %v11262_v25 = vpop.f32.mrf.mxu1 }
  0xd5   :  { %v12885_v27 = vpop.f32.mrf.mxu0 }
  0xd6   :  { %v5096_v28 = vsel %vm5071_vm2, %v12885_v27, -inf  ;;  %v12889_v29 = vpop.f32.mrf.mxu1 }
  0xd7   :  { %5094 = vmax.xlane.f32.xlu1 %v5093_v26  ;;  %5097 = vmax.xlane.f32.xlu0 %v5096_v28  ;;  %v11267_v30 = vpop.f32.mrf.mxu0  ;;  %v5099_v32 = vsel %vm5071_vm2, %v12889_v29, -inf }
  0xd8   :  { %v11272_v31 = vpop.f32.mrf.mxu1 }
  0xd9   :  { %v12893_v33 = vpop.f32.mrf.mxu0 }
  0xda   :  { %v5102_v34 = vsel %vm5071_vm2, %v12893_v33, -inf  ;;  %v12897_v35 = vpop.f32.mrf.mxu1 }
  0xdb   :  { %5100 = vmax.xlane.f32.xlu1 %v5099_v32  ;;  %5103 = vmax.xlane.f32.xlu0 %v5102_v34  ;;  %v11277_v36 = vpop.f32.mrf.mxu0  ;;  %v5105_v38 = vsel %vm5071_vm2, %v12897_v35, -inf }
  0xdc   :  { %v11282_v37 = vpop.f32.mrf.mxu1 }
  0xdd   :  { %v12901_v39 = vpop.f32.mrf.mxu0 }
  0xde   :  { %v5108_v40 = vsel %vm5071_vm2, %v12901_v39, -inf  ;;  %v12905_v41 = vpop.f32.mrf.mxu1 }
  0xdf   :  { %5106 = vmax.xlane.f32.xlu1 %v5105_v38  ;;  %5109 = vmax.xlane.f32.xlu0 %v5108_v40  ;;  %v11287_v42 = vpop.f32.mrf.mxu0  ;;  %v5111_v44 = vsel %vm5071_vm2, %v12905_v41, -inf }
  0xe0   :  { %v11292_v43 = vpop.f32.mrf.mxu1 }
  0xe1   :  { %v12909_v45 = vpop.f32.mrf.mxu0 }
  0xe2   :  { %v5114_v46 = vsel %vm5071_vm2, %v12909_v45, -inf  ;;  %v12913_v47 = vpop.f32.mrf.mxu1 }
  0xe3   :  { %5112 = vmax.xlane.f32.xlu1 %v5111_v44  ;;  %5115 = vmax.xlane.f32.xlu0 %v5114_v46  ;;  %v11297_v48 = vpop.f32.mrf.mxu0  ;;  %v5117_v50 = vsel %vm5071_vm2, %v12913_v47, -inf }
  0xe4   :  { %v11302_v49 = vpop.f32.mrf.mxu1 }
  0xe5   :  { %v12917_v51 = vpop.f32.mrf.mxu0 }
  0xe6   :  { %v5120_v52 = vsel %vm5071_vm2, %v12917_v51, -inf  ;;  %v12921_v53 = vpop.f32.mrf.mxu1 }
  0xe7   :  { %5118 = vmax.xlane.f32.xlu1 %v5117_v50  ;;  %5121 = vmax.xlane.f32.xlu0 %v5120_v52  ;;  %v11307_v54 = vpop.f32.mrf.mxu0  ;;  %v5123_v56 = vsel %vm5071_vm2, %v12921_v53, -inf }
  0xe8   :  { %v11312_v55 = vpop.f32.mrf.mxu1 }
  0xe9   :  { %v12925_v57 = vpop.f32.mrf.mxu0 }
  0xea   :  { %v5126_v58 = vsel %vm5071_vm2, %v12925_v57, -inf  ;;  %v12929_v59 = vpop.f32.mrf.mxu1 }
  0xeb   :  { %5124 = vmax.xlane.f32.xlu1 %v5123_v56  ;;  %5127 = vmax.xlane.f32.xlu0 %v5126_v58  ;;  %v11317_v60 = vpop.f32.mrf.mxu0  ;;  %v5129_v62 = vsel %vm5071_vm2, %v12929_v59, -inf }
  0xec   :  { %v11322_v61 = vpop.f32.mrf.mxu1 }
  0xed   :  { %v12933_v63 = vpop.f32.mrf.mxu0 }
  0xee   :  { %v5132_v1 = vsel %vm5071_vm2, %v12933_v63, -inf  ;;  %v12937_v2 = vpop.f32.mrf.mxu1 }
  0xef   :  { %5130 = vmax.xlane.f32.xlu1 %v5129_v62  ;;  %5133 = vmax.xlane.f32.xlu0 %v5132_v1  ;;  %v11327_v4 = vpop.f32.mrf.mxu0  ;;  %v5135_v7 = vsel %vm5071_vm2, %v12937_v2, -inf }
  0xf0   :  { %v11332_v6 = vpop.f32.mrf.mxu1 }
  0xf1   :  { %v12941_v8 = vpop.f32.mrf.mxu0 }
  0xf2   :  { %v5138_v10 = vsel %vm5071_vm2, %v12941_v8, -inf  ;;  %v12945_v12 = vpop.f32.mrf.mxu1 }
  0xf3   :  { %5136 = vmax.xlane.f32.xlu1 %v5135_v7  ;;  %5139 = vmax.xlane.f32.xlu0 %v5138_v10  ;;  %v11337_v13 = vpop.f32.mrf.mxu0  ;;  %v5141_v16 = vsel %vm5071_vm2, %v12945_v12, -inf }
  0xf4   :  { %v11342_v14 = vpop.f32.mrf.mxu1 }
  0xf5   :  { %v12949_v18 = vpop.f32.mrf.mxu0 }
  0xf6   :  { %v5144_v19 = vsel %vm5071_vm2, %v12949_v18, -inf  ;;  %v12953_v20 = vpop.f32.mrf.mxu1 }
  0xf7   :  { %5142 = vmax.xlane.f32.xlu1 %v5141_v16  ;;  %5145 = vmax.xlane.f32.xlu0 %v5144_v19  ;;  %v11347_v22 = vpop.f32.mrf.mxu0  ;;  %v5147_v25 = vsel %vm5071_vm2, %v12953_v20, -inf }
  0xf8   :  { %v11352_v24 = vpop.f32.mrf.mxu1 }
  0xf9   :  { %v12957_v26 = vpop.f32.mrf.mxu0 }
  0xfa   :  { %v5150_v28 = vsel %vm5071_vm2, %v12957_v26, -inf  ;;  %v12961_v30 = vpop.f32.mrf.mxu1 }
  0xfb   :  { %5148 = vmax.xlane.f32.xlu1 %v5147_v25  ;;  %5151 = vmax.xlane.f32.xlu0 %v5150_v28  ;;  %v11357_v31 = vpop.f32.mrf.mxu0  ;;  %v5153_v34 = vsel %vm5071_vm2, %v12961_v30, -inf }
  0xfc   :  { %v11362_v32 = vpop.f32.mrf.mxu1 }
  0xfd   :  { %v12965_v36 = vpop.f32.mrf.mxu0 }
  0xfe   :  { %v5156_v37 = vsel %vm5071_vm2, %v12965_v36, -inf  ;;  %v12969_v38 = vpop.f32.mrf.mxu1 }
  0xff   :  { %5154 = vmax.xlane.f32.xlu1 %v5153_v34  ;;  %5157 = vmax.xlane.f32.xlu0 %v5156_v37  ;;  %v11367_v40 = vpop.f32.mrf.mxu0  ;;  %v5159_v43 = vsel %vm5071_vm2, %v12969_v38, -inf }
 0x100   :  { %v11372_v42 = vpop.f32.mrf.mxu1 }
 0x101   :  { %v12973_v44 = vpop.f32.mrf.mxu0 }
 0x102   :  { %v5162_v46 = vsel %vm5071_vm2, %v12973_v44, -inf  ;;  %v12977_v48 = vpop.f32.mrf.mxu1 }
 0x103   :  { %5160 = vmax.xlane.f32.xlu1 %v5159_v43  ;;  %5163 = vmax.xlane.f32.xlu0 %v5162_v46  ;;  %v11377_v49 = vpop.f32.mrf.mxu0  ;;  %v5165_v52 = vsel %vm5071_vm2, %v12977_v48, -inf }
 0x104   :  { %v11382_v50 = vpop.f32.mrf.mxu1 }
 0x105   :  { %v12981_v54 = vpop.f32.mrf.mxu0 }
 0x106   :  { %v5168_v55 = vsel %vm5071_vm2, %v12981_v54, -inf  ;;  %v12985_v56 = vpop.f32.mrf.mxu1 }
 0x107   :  { %5166 = vmax.xlane.f32.xlu1 %v5165_v52  ;;  %5169 = vmax.xlane.f32.xlu0 %v5168_v55  ;;  %v11387_v58 = vpop.f32.mrf.mxu0  ;;  %v5171_v61 = vsel %vm5071_vm2, %v12985_v56, -inf }
 0x108   :  { %v11392_v60 = vpop.f32.mrf.mxu1 }
 0x109   :  { %v12989_v62 = vpop.f32.mrf.mxu0 }
 0x10a   :  { %v5174_v1 = vsel %vm5071_vm2, %v12989_v62, -inf  ;;  %v12993_v4 = vpop.f32.mrf.mxu1 }
 0x10b   :  { %5172 = vmax.xlane.f32.xlu1 %v5171_v61  ;;  %5175 = vmax.xlane.f32.xlu0 %v5174_v1  ;;  %v11397_v6 = vpop.f32.mrf.mxu0  ;;  %v5177_v10 = vsel %vm5071_vm2, %v12993_v4, -inf }
 0x10c   :  { %v11402_v7 = vpop.f32.mrf.mxu1 }
 0x10d   :  { %v12997_v13 = vpop.f32.mrf.mxu0 }
 0x10e   :  { %v5180_v14 = vsel %vm5071_vm2, %v12997_v13, -inf  ;;  %v13001_v16 = vpop.f32.mrf.mxu1 }
 0x10f   :  { %5178 = vmax.xlane.f32.xlu1 %v5177_v10  ;;  %5181 = vmax.xlane.f32.xlu0 %v5180_v14  ;;  %v11407_v19 = vpop.f32.mrf.mxu0  ;;  %v5183_v24 = vsel %vm5071_vm2, %v13001_v16, -inf }
 0x110   :  { %v11412_v22 = vpop.f32.mrf.mxu1 }
 0x111   :  { %v13005_v25 = vpop.f32.mrf.mxu0 }
 0x112   :  { %v5186_v28 = vsel %vm5071_vm2, %v13005_v25, -inf  ;;  %v13009_v31 = vpop.f32.mrf.mxu1 }
 0x113   :  { %5184 = vmax.xlane.f32.xlu1 %v5183_v24  ;;  %5187 = vmax.xlane.f32.xlu0 %v5186_v28  ;;  %v11417_v32 = vpop.f32.mrf.mxu0  ;;  %v5189_v37 = vsel %vm5071_vm2, %v13009_v31, -inf }
 0x114   :  { %v11422_v34 = vpop.f32.mrf.mxu1 }
 0x115   :  { %v13013_v40 = vpop.f32.mrf.mxu0 }
 0x116   :  { %v5192_v42 = vsel %vm5071_vm2, %v13013_v40, -inf  ;;  %v13017_v43 = vpop.f32.mrf.mxu1 }
 0x117   :  { %5190 = vmax.xlane.f32.xlu1 %v5189_v37  ;;  %5193 = vmax.xlane.f32.xlu0 %v5192_v42  ;;  %v11427_v46 = vpop.f32.mrf.mxu0  ;;  %v5195_v50 = vsel %vm5071_vm2, %v13017_v43, -inf }
 0x118   :  { %v11432_v49 = vpop.f32.mrf.mxu1 }
 0x119   :  { %v13021_v52 = vpop.f32.mrf.mxu0 }
 0x11a   :  { %v5198_v55 = vsel %vm5071_vm2, %v13021_v52, -inf  ;;  %v13025_v58 = vpop.f32.mrf.mxu1 }
 0x11b   :  { %5196 = vmax.xlane.f32.xlu1 %v5195_v50  ;;  %5199 = vmax.xlane.f32.xlu0 %v5198_v55  ;;  %v11437_v60 = vpop.f32.mrf.mxu0  ;;  %v5201_v1 = vsel %vm5071_vm2, %v13025_v58, -inf }
 0x11c   :  { %v11442_v61 = vpop.f32.mrf.mxu1 }
 0x11d   :  { %v13029_v6 = vpop.f32.mrf.mxu0 }
 0x11e   :  { %v5204_v7 = vsel %vm5071_vm2, %v13029_v6, -inf  ;;  %v13033_v10 = vpop.f32.mrf.mxu1 }
 0x11f   :  { %5202 = vmax.xlane.f32.xlu1 %v5201_v1  ;;  %5205 = vmax.xlane.f32.xlu0 %v5204_v7  ;;  %v11447_v14 = vpop.f32.mrf.mxu0  ;;  %v5207_v22 = vsel %vm5071_vm2, %v13033_v10, -inf }
 0x120   :  { %v11452_v19 = vpop.f32.mrf.mxu1 }
 0x121   :  { %v13037_v24 = vpop.f32.mrf.mxu0 }
 0x122   :  { %v5210_v28 = vsel %vm5071_vm2, %v13037_v24, -inf  ;;  %v13041_v32 = vpop.f32.mrf.mxu1 }
 0x123   :  { %5208 = vmax.xlane.f32.xlu1 %v5207_v22  ;;  %5211 = vmax.xlane.f32.xlu0 %v5210_v28  ;;  %v11457_v34 = vpop.f32.mrf.mxu0  ;;  %v5213_v42 = vsel %vm5071_vm2, %v13041_v32, -inf }
 0x124   :  { %v11462_v37 = vpop.f32.mrf.mxu1 }
 0x125   :  { %v13045_v46 = vpop.f32.mrf.mxu0 }
 0x126   :  { %v5216_v49 = vsel %vm5071_vm2, %v13045_v46, -inf  ;;  %v13049_v50 = vpop.f32.mrf.mxu1 }
 0x127   :  { %5214 = vmax.xlane.f32.xlu1 %v5213_v42  ;;  %5217 = vmax.xlane.f32.xlu0 %v5216_v49  ;;  %v11467_v55 = vpop.f32.mrf.mxu0  ;;  %v5219_v61 = vsel %vm5071_vm2, %v13049_v50, -inf }
 0x128   :  { %v11472_v60 = vpop.f32.mrf.mxu1 }
 0x129   :  { %v13053_v1 = vpop.f32.mrf.mxu0 }
 0x12a   :  { %14286 = vst [vmem:[#allocation2_spill] sm:$0xff] %v13053_v1  ;;  %v5222_v7 = vsel %vm5071_vm2, %v13053_v1, -inf  ;;  %v13057_v14 = vpop.f32.mrf.mxu1 }
 0x12b   :  { %14287 = vst [vmem:[#allocation3_spill] sm:$0xff] %v13057_v14  ;;  %5220 = vmax.xlane.f32.xlu1 %v5219_v61  ;;  %5223 = vmax.xlane.f32.xlu0 %v5222_v7  ;;  %v11477_v19 = vpop.f32.mrf.mxu0  ;;  %v5225_v28 = vsel %vm5071_vm2, %v13057_v14, -inf }
 0x12c   :  { %v11482_v22 = vpop.f32.mrf.mxu1 }
 0x12d   :  { %v13061_v34 = vpop.f32.mrf.mxu0 }
 0x12e   :  { %14288 = vst [vmem:[#allocation4_spill] sm:$0xff] %v13061_v34  ;;  %v5228_v37 = vsel %vm5071_vm2, %v13061_v34, -inf  ;;  %v13065_v42 = vpop.f32.mrf.mxu1 }
 0x12f   :  { %14289 = vst [vmem:[#allocation5_spill] sm:$0xff] %v13065_v42  ;;  %5226 = vmax.xlane.f32.xlu1 %v5225_v28  ;;  %5229 = vmax.xlane.f32.xlu0 %v5228_v37  ;;  %v11487_v49 = vpop.f32.mrf.mxu0  ;;  %v5231_v60 = vsel %vm5071_vm2, %v13065_v42, -inf }
 0x130   :  { %v11492_v55 = vpop.f32.mrf.mxu1 }
 0x131   :  { %v13069_v61 = vpop.f32.mrf.mxu0 }
 0x132   :  { %14290 = vst [vmem:[#allocation6_spill] sm:$0xff] %v13069_v61  ;;  %v5234_v7 = vsel %vm5071_vm2, %v13069_v61, -inf  ;;  %v13073_v19 = vpop.f32.mrf.mxu1 }
 0x133   :  { %14291 = vst [vmem:[#allocation7_spill] sm:$0xff] %v13073_v19  ;;  %5232 = vmax.xlane.f32.xlu1 %v5231_v60  ;;  %5235 = vmax.xlane.f32.xlu0 %v5234_v7  ;;  %v11497_v22 = vpop.f32.mrf.mxu0  ;;  %v5237_v28 = vsel %vm5071_vm2, %v13073_v19, -inf }
 0x134   :  { %v11502_v0 = vpop.f32.mrf.mxu1 }
 0x135   :  { %v13077_v37 = vpop.f32.mrf.mxu0 }
 0x136   :  { %14292 = vst [vmem:[#allocation8_spill] sm:$0xff] %v13077_v37  ;;  %v5240_v49 = vsel %vm5071_vm2, %v13077_v37, -inf  ;;  %v13081_v55 = vpop.f32.mrf.mxu1 }
 0x137   :  { %14293 = vst [vmem:[#allocation9_spill] sm:$0xff] %v13081_v55  ;;  %5238 = vmax.xlane.f32.xlu1 %v5237_v28  ;;  %5241 = vmax.xlane.f32.xlu0 %v5240_v49  ;;  %v11507_v42 = vpop.f32.mrf.mxu0  ;;  %v5243_v60 = vsel %vm5071_vm2, %v13081_v55, -inf }
 0x138   :  { %v11512_v61 = vpop.f32.mrf.mxu1 }
 0x139   :  { %v13085_v7 = vpop.f32.mrf.mxu0 }
 0x13a   :  { %14294 = vst [vmem:[#allocation10_spill] sm:$0xff] %v13085_v7  ;;  %v5246_v0 = vsel %vm5071_vm2, %v13085_v7, -inf  ;;  %v13089_v22 = vpop.f32.mrf.mxu1 }
 0x13b   :  { %14295 = vst [vmem:[#allocation11_spill] sm:$0xff] %v13089_v22  ;;  %5244 = vmax.xlane.f32.xlu1 %v5243_v60  ;;  %5247 = vmax.xlane.f32.xlu0 %v5246_v0  ;;  %v11517_v19 = vpop.f32.mrf.mxu0  ;;  %v5249_v28 = vsel %vm5071_vm2, %v13089_v22, -inf }
 0x13c   :  { %v11522_v37 = vpop.f32.mrf.mxu1 }
 0x13d   :  { %v13093_v49 = vpop.f32.mrf.mxu0 }
 0x13e   :  { %14296 = vst [vmem:[#allocation12_spill] sm:$0xff] %v13093_v49  ;;  %v5252_v42 = vsel %vm5071_vm2, %v13093_v49, -inf  ;;  %v13097_v61 = vpop.f32.mrf.mxu1 }
 0x13f   :  { %14297 = vst [vmem:[#allocation13_spill] sm:$0xff] %v13097_v61  ;;  %5250 = vmax.xlane.f32.xlu1 %v5249_v28  ;;  %5253 = vmax.xlane.f32.xlu0 %v5252_v42  ;;  %v11527_v55 = vpop.f32.mrf.mxu0  ;;  %v5255_v60 = vsel %vm5071_vm2, %v13097_v61, -inf }
 0x140   :  { %v11532_v7 = vpop.f32.mrf.mxu1 }
 0x141   :  { %v13101_v0 = vpop.f32.mrf.mxu0 }
 0x142   :  { %14298 = vst [vmem:[#allocation14_spill] sm:$0xff] %v13101_v0  ;;  %v5258_v19 = vsel %vm5071_vm2, %v13101_v0, -inf  ;;  %v13105_v37 = vpop.f32.mrf.mxu1 }
 0x143   :  { %14299 = vst [vmem:[#allocation15_spill] sm:$0xff] %v13105_v37  ;;  %5256 = vmax.xlane.f32.xlu1 %v5255_v60  ;;  %5259 = vmax.xlane.f32.xlu0 %v5258_v19  ;;  %v11537_v22 = vpop.f32.mrf.mxu0  ;;  %v5261_v28 = vsel %vm5071_vm2, %v13105_v37, -inf }
 0x144   :  { %v11542_v49 = vpop.f32.mrf.mxu1 }
 0x147   :  { %5262 = vmax.xlane.f32.xlu1 %v5261_v28 }
 0x150   :  { %v5074_v55 = vpop.xlane.xlu0 %5073 }
 0x151   :  { %v5264_v7 = vsub.f32 %v12853_v3, %v5074_v55 }
 0x153   :  { %v5328_v42 = vmul.f32 1.442695, %v5264_v7 }
 0x154   :  { %v5077_v61 = vpop.xlane.xlu0 %5076  ;;  %v5080_v34 = vpop.xlane.xlu1 %5079 }
 0x155   :  { %11865 = vpow2.f32 %v5328_v42  ;;  %v5265_v14 = vsub.f32 %v12857_v5, %v5077_v61  ;;  %v5266_v0 = vsub.f32 %v12861_v9, %v5080_v34 }
 0x157   :  { %v5330_v1 = vmul.f32 1.442695, %v5265_v14  ;;  %v5332_v60 = vmul.f32 1.442695, %v5266_v0 }
 0x158   :  { %v5083_v19 = vpop.xlane.xlu1 %5082  ;;  %v5086_v22 = vpop.xlane.xlu0 %5085 }
 0x159   :  { %11867 = vpow2.f32 %v5330_v1  ;;  %v5267_v49 = vsub.f32 %v12865_v11, %v5083_v19  ;;  %v5268_v28 = vsub.f32 %v12869_v15, %v5086_v22 }
 0x15a   :  { %11869 = vpow2.f32 %v5332_v60 }
 0x15b   :  { %v5334_v37 = vmul.f32 1.442695, %v5267_v49  ;;  %v5336_v3 = vmul.f32 1.442695, %v5268_v28 }
 0x15c   :  { %v5089_v55 = vpop.xlane.xlu1 %5088  ;;  %v5092_v7 = vpop.xlane.xlu0 %5091 }
 0x15d   :  { %11871 = vpow2.f32 %v5334_v37  ;;  %v5269_v42 = vsub.f32 %v12873_v17, %v5089_v55  ;;  %v5270_v5 = vsub.f32 %v12877_v21, %v5092_v7 }
 0x15e   :  { %11873 = vpow2.f32 %v5336_v3 }
 0x15f   :  { %v5338_v9 = vmul.f32 1.442695, %v5269_v42  ;;  %v5340_v14 = vmul.f32 1.442695, %v5270_v5 }
 0x160   :  { %v5095_v34 = vpop.xlane.xlu1 %5094  ;;  %v5098_v61 = vpop.xlane.xlu0 %5097 }
 0x161   :  { %11875 = vpow2.f32 %v5338_v9  ;;  %v5271_v11 = vsub.f32 %v12881_v23, %v5095_v34  ;;  %v5272_v15 = vsub.f32 %v12885_v27, %v5098_v61 }
 0x162   :  { %v13118_v1 = vpop.eup %11865  ;;  %11877 = vpow2.f32 %v5340_v14 }
 0x163   :  { %v5342_v0 = vmul.f32 1.442695, %v5271_v11  ;;  %v5344_v60 = vmul.f32 1.442695, %v5272_v15  ;;  %v5456_v17 = vsel %vm5071_vm2, %v13118_v1, 0.0 }
 0x164   :  { %v5101_v37 = vpop.xlane.xlu1 %5100  ;;  %v5104_v21 = vpop.xlane.xlu0 %5103  ;;  %5457 = vadd.xlane.f32.xlu0 %v5456_v17 }
 0x165   :  { %11879 = vpow2.f32 %v5342_v0  ;;  %v5273_v19 = vsub.f32 %v12889_v29, %v5101_v37  ;;  %v5274_v22 = vsub.f32 %v12893_v33, %v5104_v21 }
 0x166   :  { %v13124_v49 = vpop.eup %11867  ;;  %11881 = vpow2.f32 %v5344_v60 }
 0x167   :  { %v13126_v23 = vpop.eup %11869  ;;  %v5346_v27 = vmul.f32 1.442695, %v5273_v19  ;;  %v5348_v28 = vmul.f32 1.442695, %v5274_v22  ;;  %v5459_v3 = vsel %vm5071_vm2, %v13124_v49, 0.0 }
 0x168   :  { %5460 = vadd.xlane.f32.xlu1 %v5459_v3  ;;  %v5107_v55 = vpop.xlane.xlu1 %5106  ;;  %v5110_v7 = vpop.xlane.xlu0 %5109  ;;  %v5462_v42 = vsel %vm5071_vm2, %v13126_v23, 0.0 }
 0x169   :  { %11883 = vpow2.f32 %v5346_v27  ;;  %v5275_v29 = vsub.f32 %v12897_v35, %v5107_v55  ;;  %v5276_v33 = vsub.f32 %v12901_v39, %v5110_v7  ;;  %5463 = vadd.xlane.f32.xlu0 %v5462_v42 }
 0x16a   :  { %v13134_v5 = vpop.eup %11871  ;;  %11885 = vpow2.f32 %v5348_v28 }
 0x16b   :  { %v13136_v9 = vpop.eup %11873  ;;  %v5350_v14 = vmul.f32 1.442695, %v5275_v29  ;;  %v5352_v34 = vmul.f32 1.442695, %v5276_v33  ;;  %v5465_v61 = vsel %vm5071_vm2, %v13134_v5, 0.0 }
 0x16c   :  { %5466 = vadd.xlane.f32.xlu1 %v5465_v61  ;;  %v5113_v11 = vpop.xlane.xlu1 %5112  ;;  %v5116_v15 = vpop.xlane.xlu0 %5115  ;;  %v5468_v0 = vsel %vm5071_vm2, %v13136_v9, 0.0 }
 0x16d   :  { %11887 = vpow2.f32 %v5350_v14  ;;  %v5277_v35 = vsub.f32 %v12905_v41, %v5113_v11  ;;  %v5278_v39 = vsub.f32 %v12909_v45, %v5116_v15  ;;  %5469 = vadd.xlane.f32.xlu0 %v5468_v0 }
 0x16e   :  { %v13144_v60 = vpop.eup %11875  ;;  %11889 = vpow2.f32 %v5352_v34 }
 0x16f   :  { %v13146_v17 = vpop.eup %11877  ;;  %v5354_v37 = vmul.f32 1.442695, %v5277_v35  ;;  %v5356_v21 = vmul.f32 1.442695, %v5278_v39  ;;  %v5471_v19 = vsel %vm5071_vm2, %v13144_v60, 0.0 }
 0x170   :  { %5472 = vadd.xlane.f32.xlu1 %v5471_v19  ;;  %v5119_v22 = vpop.xlane.xlu1 %5118  ;;  %v5122_v27 = vpop.xlane.xlu0 %5121  ;;  %v5474_v28 = vsel %vm5071_vm2, %v13146_v17, 0.0 }
 0x171   :  { %11891 = vpow2.f32 %v5354_v37  ;;  %v5279_v41 = vsub.f32 %v12913_v47, %v5119_v22  ;;  %v5280_v45 = vsub.f32 %v12917_v51, %v5122_v27  ;;  %5475 = vadd.xlane.f32.xlu0 %v5474_v28 }
 0x172   :  { %v13154_v3 = vpop.eup %11879  ;;  %11893 = vpow2.f32 %v5356_v21 }
 0x173   :  { %v13156_v55 = vpop.eup %11881  ;;  %v5358_v7 = vmul.f32 1.442695, %v5279_v41  ;;  %v5360_v42 = vmul.f32 1.442695, %v5280_v45  ;;  %v5477_v29 = vsel %vm5071_vm2, %v13154_v3, 0.0 }
 0x174   :  { %5478 = vadd.xlane.f32.xlu1 %v5477_v29  ;;  %v5125_v33 = vpop.xlane.xlu1 %5124  ;;  %v5128_v14 = vpop.xlane.xlu0 %5127  ;;  %v5480_v34 = vsel %vm5071_vm2, %v13156_v55, 0.0 }
 0x175   :  { %11895 = vpow2.f32 %v5358_v7  ;;  %v5281_v47 = vsub.f32 %v12921_v53, %v5125_v33  ;;  %v5282_v51 = vsub.f32 %v12925_v57, %v5128_v14  ;;  %5481 = vadd.xlane.f32.xlu0 %v5480_v34  ;;  %v14300_v14 = vmov 0.0  }
 0x176   :  { %v13164_v61 = vpop.eup %11883  ;;  %11897 = vpow2.f32 %v5360_v42 }
 0x177   :  { %v13166_v11 = vpop.eup %11885  ;;  %v5362_v15 = vmul.f32 1.442695, %v5281_v47  ;;  %v5364_v0 = vmul.f32 1.442695, %v5282_v51  ;;  %v5483_v35 = vsel %vm5071_vm2, %v13164_v61, 0.0 }
 0x178   :  { %5484 = vadd.xlane.f32.xlu1 %v5483_v35  ;;  %v5131_v39 = vpop.xlane.xlu1 %5130  ;;  %v5134_v37 = vpop.xlane.xlu0 %5133  ;;  %v5486_v21 = vsel %vm5071_vm2, %v13166_v11, 0.0  ;;  %v143_v35 = vld [vmem:[%s14257_s2 + $0x4] sm:$0xf] }
 0x179   :  { %11899 = vpow2.f32 %v5362_v15  ;;  %v5283_v53 = vsub.f32 %v12929_v59, %v5131_v39  ;;  %v5284_v57 = vsub.f32 %v12933_v63, %v5134_v37  ;;  %5487 = vadd.xlane.f32.xlu0 %v5486_v21  ;;  %v142_v63 = vld [vmem:[%s14257_s2] sm:$0xf]  ;;  %11549 = vmatpush3.msk.msra.mxu1 %vm5780_vm3, %v143_v35 }
 0x17a   :  { %v13174_v19 = vpop.eup %11887  ;;  %11901 = vpow2.f32 %v5364_v0  ;;  %11544 = vmatpush3.msk.msra.mxu0 %vm5780_vm3, %v142_v63  ;;  %11558 = vmatprep.subr.mxu1 %v14300_v14 }
 0x17b   :  { %v13176_v22 = vpop.eup %11889  ;;  %v5366_v27 = vmul.f32 1.442695, %v5283_v53  ;;  %v5368_v28 = vmul.f32 1.442695, %v5284_v57  ;;  %v5489_v41 = vsel %vm5071_vm2, %v13174_v19, 0.0  ;;  %11553 = vmatprep.subr.mxu0 %v14300_v14 }
 0x17c   :  { %5490 = vadd.xlane.f32.xlu1 %v5489_v41  ;;  %v5137_v45 = vpop.xlane.xlu1 %5136  ;;  %v5140_v7 = vpop.xlane.xlu0 %5139  ;;  %v5492_v59 = vsel %vm5071_vm2, %v13176_v22, 0.0 }
 0x17d   :  { %11903 = vpow2.f32 %v5366_v27  ;;  %v5285_v42 = vsub.f32 %v12937_v2, %v5137_v45  ;;  %v5286_v29 = vsub.f32 %v12941_v8, %v5140_v7  ;;  %5493 = vadd.xlane.f32.xlu0 %v5492_v59 }
 0x17e   :  { %v13188_v33 = vpop.eup %11891  ;;  %11905 = vpow2.f32 %v5368_v28 }
 0x17f   :  { %v13191_v34 = vpop.eup %11893  ;;  %v5370_v47 = vmul.f32 1.442695, %v5285_v42  ;;  %v5372_v51 = vmul.f32 1.442695, %v5286_v29  ;;  %v5495_v15 = vsel %vm5071_vm2, %v13188_v33, 0.0 }
 0x180   :  { %5496 = vadd.xlane.f32.xlu1 %v5495_v15  ;;  %v5143_v0 = vpop.xlane.xlu1 %5142  ;;  %v5146_v2 = vpop.xlane.xlu0 %5145  ;;  %v5498_v8 = vsel %vm5071_vm2, %v13191_v34, 0.0 }
 0x181   :  { %11907 = vpow2.f32 %v5370_v47  ;;  %v5287_v39 = vsub.f32 %v12945_v12, %v5143_v0  ;;  %v5288_v37 = vsub.f32 %v12949_v18, %v5146_v2  ;;  %5499 = vadd.xlane.f32.xlu0 %v5498_v8 }
 0x182   :  { %v13203_v21 = vpop.eup %11895  ;;  %11909 = vpow2.f32 %v5372_v51 }
 0x183   :  { %v13206_v53 = vpop.eup %11897  ;;  %v5374_v57 = vmul.f32 1.442695, %v5287_v39  ;;  %v5376_v27 = vmul.f32 1.442695, %v5288_v37  ;;  %v5501_v28 = vsel %vm5071_vm2, %v13203_v21, 0.0 }
 0x184   :  { %5502 = vadd.xlane.f32.xlu1 %v5501_v28  ;;  %v5149_v41 = vpop.xlane.xlu1 %5148  ;;  %v5152_v12 = vpop.xlane.xlu0 %5151  ;;  %v5504_v18 = vsel %vm5071_vm2, %v13206_v53, 0.0 }
 0x185   :  { %11911 = vpow2.f32 %v5374_v57  ;;  %v5289_v45 = vsub.f32 %v12953_v20, %v5149_v41  ;;  %v5290_v7 = vsub.f32 %v12957_v26, %v5152_v12  ;;  %5505 = vadd.xlane.f32.xlu0 %v5504_v18 }
 0x186   :  { %v13214_v59 = vpop.eup %11899  ;;  %11913 = vpow2.f32 %v5376_v27 }
 0x187   :  { %v13216_v63 = vpop.eup %11901  ;;  %v5378_v42 = vmul.f32 1.442695, %v5289_v45  ;;  %v5380_v29 = vmul.f32 1.442695, %v5290_v7  ;;  %v5507_v47 = vsel %vm5071_vm2, %v13214_v59, 0.0 }
 0x188   :  { %5508 = vadd.xlane.f32.xlu1 %v5507_v47  ;;  %v5155_v51 = vpop.xlane.xlu1 %5154  ;;  %v5158_v15 = vpop.xlane.xlu0 %5157  ;;  %v5510_v0 = vsel %vm5071_vm2, %v13216_v63, 0.0 }
 0x189   :  { %11915 = vpow2.f32 %v5378_v42  ;;  %v5291_v20 = vsub.f32 %v12961_v30, %v5155_v51  ;;  %v5292_v26 = vsub.f32 %v12965_v36, %v5158_v15  ;;  %5511 = vadd.xlane.f32.xlu0 %v5510_v0 }
 0x18a   :  { %v13224_v2 = vpop.eup %11903  ;;  %11917 = vpow2.f32 %v5380_v29 }
 0x18b   :  { %v13226_v8 = vpop.eup %11905  ;;  %v5382_v35 = vmul.f32 1.442695, %v5291_v20  ;;  %v5384_v39 = vmul.f32 1.442695, %v5292_v26  ;;  %v5513_v37 = vsel %vm5071_vm2, %v13224_v2, 0.0 }
 0x18c   :  { %5514 = vadd.xlane.f32.xlu1 %v5513_v37  ;;  %v5161_v57 = vpop.xlane.xlu1 %5160  ;;  %v5164_v27 = vpop.xlane.xlu0 %5163  ;;  %v5516_v28 = vsel %vm5071_vm2, %v13226_v8, 0.0 }
 0x18d   :  { %11919 = vpow2.f32 %v5382_v35  ;;  %v5293_v30 = vsub.f32 %v12969_v38, %v5161_v57  ;;  %v5294_v36 = vsub.f32 %v12973_v44, %v5164_v27  ;;  %5517 = vadd.xlane.f32.xlu0 %v5516_v28 }
 0x18e   :  { %v13234_v41 = vpop.eup %11907  ;;  %11921 = vpow2.f32 %v5384_v39 }
 0x18f   :  { %v13236_v12 = vpop.eup %11909  ;;  %v5386_v18 = vmul.f32 1.442695, %v5293_v30  ;;  %v5388_v45 = vmul.f32 1.442695, %v5294_v36  ;;  %v5519_v7 = vsel %vm5071_vm2, %v13234_v41, 0.0 }
 0x190   :  { %5520 = vadd.xlane.f32.xlu1 %v5519_v7  ;;  %v5167_v42 = vpop.xlane.xlu1 %5166  ;;  %v5170_v29 = vpop.xlane.xlu0 %5169  ;;  %v5522_v47 = vsel %vm5071_vm2, %v13236_v12, 0.0 }
 0x191   :  { %11923 = vpow2.f32 %v5386_v18  ;;  %v5295_v38 = vsub.f32 %v12977_v48, %v5167_v42  ;;  %v5296_v44 = vsub.f32 %v12981_v54, %v5170_v29  ;;  %5523 = vadd.xlane.f32.xlu0 %v5522_v47 }
 0x192   :  { %v13244_v51 = vpop.eup %11911  ;;  %11925 = vpow2.f32 %v5388_v45 }
 0x193   :  { %v13246_v15 = vpop.eup %11913  ;;  %v5390_v0 = vmul.f32 1.442695, %v5295_v38  ;;  %v5392_v20 = vmul.f32 1.442695, %v5296_v44  ;;  %v5525_v26 = vsel %vm5071_vm2, %v13244_v51, 0.0 }
 0x194   :  { %5526 = vadd.xlane.f32.xlu1 %v5525_v26  ;;  %v5173_v35 = vpop.xlane.xlu1 %5172  ;;  %v5176_v39 = vpop.xlane.xlu0 %5175  ;;  %v5528_v37 = vsel %vm5071_vm2, %v13246_v15, 0.0 }
 0x195   :  { %11927 = vpow2.f32 %v5390_v0  ;;  %v5297_v48 = vsub.f32 %v12985_v56, %v5173_v35  ;;  %v5298_v54 = vsub.f32 %v12989_v62, %v5176_v39  ;;  %5529 = vadd.xlane.f32.xlu0 %v5528_v37 }
 0x196   :  { %v13254_v57 = vpop.eup %11915  ;;  %11929 = vpow2.f32 %v5392_v20 }
 0x197   :  { %v13256_v27 = vpop.eup %11917  ;;  %v5394_v28 = vmul.f32 1.442695, %v5297_v48  ;;  %v5396_v30 = vmul.f32 1.442695, %v5298_v54  ;;  %v5531_v36 = vsel %vm5071_vm2, %v13254_v57, 0.0 }
 0x198   :  { %5532 = vadd.xlane.f32.xlu1 %v5531_v36  ;;  %v5179_v18 = vpop.xlane.xlu1 %5178  ;;  %v5182_v45 = vpop.xlane.xlu0 %5181  ;;  %v5534_v7 = vsel %vm5071_vm2, %v13256_v27, 0.0 }
 0x199   :  { %11931 = vpow2.f32 %v5394_v28  ;;  %v5299_v56 = vsub.f32 %v12993_v4, %v5179_v18  ;;  %v5300_v62 = vsub.f32 %v12997_v13, %v5182_v45  ;;  %5535 = vadd.xlane.f32.xlu0 %v5534_v7 }
 0x19a   :  { %v13264_v42 = vpop.eup %11919  ;;  %11933 = vpow2.f32 %v5396_v30 }
 0x19b   :  { %v13266_v29 = vpop.eup %11921  ;;  %v5398_v47 = vmul.f32 1.442695, %v5299_v56  ;;  %v5400_v38 = vmul.f32 1.442695, %v5300_v62  ;;  %v5537_v44 = vsel %vm5071_vm2, %v13264_v42, 0.0 }
 0x19c   :  { %5538 = vadd.xlane.f32.xlu1 %v5537_v44  ;;  %v5185_v0 = vpop.xlane.xlu1 %5184  ;;  %v5188_v20 = vpop.xlane.xlu0 %5187  ;;  %v5540_v26 = vsel %vm5071_vm2, %v13266_v29, 0.0 }
 0x19d   :  { %11935 = vpow2.f32 %v5398_v47  ;;  %v5301_v4 = vsub.f32 %v13001_v16, %v5185_v0  ;;  %v5302_v13 = vsub.f32 %v13005_v25, %v5188_v20  ;;  %5541 = vadd.xlane.f32.xlu0 %v5540_v26 }
 0x19e   :  { %v13274_v35 = vpop.eup %11923  ;;  %11937 = vpow2.f32 %v5400_v38 }
 0x19f   :  { %v13276_v39 = vpop.eup %11925  ;;  %v5402_v37 = vmul.f32 1.442695, %v5301_v4  ;;  %v5404_v48 = vmul.f32 1.442695, %v5302_v13  ;;  %v5543_v54 = vsel %vm5071_vm2, %v13274_v35, 0.0 }
 0x1a0   :  { %5544 = vadd.xlane.f32.xlu1 %v5543_v54  ;;  %v5191_v28 = vpop.xlane.xlu1 %5190  ;;  %v5194_v30 = vpop.xlane.xlu0 %5193  ;;  %v5546_v36 = vsel %vm5071_vm2, %v13276_v39, 0.0 }
 0x1a1   :  { %11939 = vpow2.f32 %v5402_v37  ;;  %v5303_v16 = vsub.f32 %v13009_v31, %v5191_v28  ;;  %v5304_v25 = vsub.f32 %v13013_v40, %v5194_v30  ;;  %5547 = vadd.xlane.f32.xlu0 %v5546_v36 }
 0x1a2   :  { %v13284_v18 = vpop.eup %11927  ;;  %11941 = vpow2.f32 %v5404_v48 }
 0x1a3   :  { %v13286_v45 = vpop.eup %11929  ;;  %v5406_v7 = vmul.f32 1.442695, %v5303_v16  ;;  %v5408_v56 = vmul.f32 1.442695, %v5304_v25  ;;  %v5549_v62 = vsel %vm5071_vm2, %v13284_v18, 0.0 }
 0x1a4   :  { %5550 = vadd.xlane.f32.xlu1 %v5549_v62  ;;  %v5197_v47 = vpop.xlane.xlu1 %5196  ;;  %v5200_v38 = vpop.xlane.xlu0 %5199  ;;  %v5552_v44 = vsel %vm5071_vm2, %v13286_v45, 0.0 }
 0x1a5   :  { %11943 = vpow2.f32 %v5406_v7  ;;  %v5305_v31 = vsub.f32 %v13017_v43, %v5197_v47  ;;  %v5306_v40 = vsub.f32 %v13021_v52, %v5200_v38  ;;  %5553 = vadd.xlane.f32.xlu0 %v5552_v44 }
 0x1a6   :  { %v13294_v0 = vpop.eup %11931  ;;  %11945 = vpow2.f32 %v5408_v56 }
 0x1a7   :  { %v13296_v20 = vpop.eup %11933  ;;  %v5410_v26 = vmul.f32 1.442695, %v5305_v31  ;;  %v5412_v4 = vmul.f32 1.442695, %v5306_v40  ;;  %v5555_v13 = vsel %vm5071_vm2, %v13294_v0, 0.0 }
 0x1a8   :  { %5556 = vadd.xlane.f32.xlu1 %v5555_v13  ;;  %v5203_v37 = vpop.xlane.xlu1 %5202  ;;  %v5206_v48 = vpop.xlane.xlu0 %5205  ;;  %v5558_v54 = vsel %vm5071_vm2, %v13296_v20, 0.0 }
 0x1a9   :  { %11947 = vpow2.f32 %v5410_v26  ;;  %v5307_v43 = vsub.f32 %v13025_v58, %v5203_v37  ;;  %v5308_v52 = vsub.f32 %v13029_v6, %v5206_v48  ;;  %5559 = vadd.xlane.f32.xlu0 %v5558_v54 }
 0x1aa   :  { %v13304_v28 = vpop.eup %11935  ;;  %11949 = vpow2.f32 %v5412_v4 }
 0x1ab   :  { %v13306_v30 = vpop.eup %11937  ;;  %v5414_v36 = vmul.f32 1.442695, %v5307_v43  ;;  %v5416_v16 = vmul.f32 1.442695, %v5308_v52  ;;  %v5561_v25 = vsel %vm5071_vm2, %v13304_v28, 0.0 }
 0x1ac   :  { %5562 = vadd.xlane.f32.xlu1 %v5561_v25  ;;  %v5209_v7 = vpop.xlane.xlu1 %5208  ;;  %v5212_v56 = vpop.xlane.xlu0 %5211  ;;  %v5564_v62 = vsel %vm5071_vm2, %v13306_v30, 0.0 }
 0x1ad   :  { %11951 = vpow2.f32 %v5414_v36  ;;  %v5309_v58 = vsub.f32 %v13033_v10, %v5209_v7  ;;  %v5310_v6 = vsub.f32 %v13037_v24, %v5212_v56  ;;  %5565 = vadd.xlane.f32.xlu0 %v5564_v62 }
 0x1ae   :  { %v13314_v47 = vpop.eup %11939  ;;  %11953 = vpow2.f32 %v5416_v16 }
 0x1af   :  { %v13316_v38 = vpop.eup %11941  ;;  %v5418_v44 = vmul.f32 1.442695, %v5309_v58  ;;  %v5420_v31 = vmul.f32 1.442695, %v5310_v6  ;;  %v5567_v40 = vsel %vm5071_vm2, %v13314_v47, 0.0 }
 0x1b0   :  { %5568 = vadd.xlane.f32.xlu1 %v5567_v40  ;;  %v5215_v26 = vpop.xlane.xlu1 %5214  ;;  %v5218_v4 = vpop.xlane.xlu0 %5217  ;;  %v5570_v13 = vsel %vm5071_vm2, %v13316_v38, 0.0 }
 0x1b1   :  { %11955 = vpow2.f32 %v5418_v44  ;;  %v5311_v10 = vsub.f32 %v13041_v32, %v5215_v26  ;;  %v5312_v24 = vsub.f32 %v13045_v46, %v5218_v4  ;;  %5571 = vadd.xlane.f32.xlu0 %v5570_v13  ;;  %v14301_v46 = vld [vmem:[#allocation2_spill] sm:$0xff]  ;;  %v14303_v13 = vld [vmem:[#allocation4_spill] sm:$0xff] }
 0x1b2   :  { %v13324_v37 = vpop.eup %11943  ;;  %11957 = vpow2.f32 %v5420_v31 }
 0x1b3   :  { %v13326_v48 = vpop.eup %11945  ;;  %v5422_v54 = vmul.f32 1.442695, %v5311_v10  ;;  %v5424_v43 = vmul.f32 1.442695, %v5312_v24  ;;  %v5573_v52 = vsel %vm5071_vm2, %v13324_v37, 0.0 }
 0x1b4   :  { %5574 = vadd.xlane.f32.xlu1 %v5573_v52  ;;  %v5221_v36 = vpop.xlane.xlu1 %5220  ;;  %v5224_v16 = vpop.xlane.xlu0 %5223  ;;  %v5576_v25 = vsel %vm5071_vm2, %v13326_v48, 0.0 }
 0x1b5   :  { %11959 = vpow2.f32 %v5422_v54  ;;  %v5313_v32 = vsub.f32 %v13049_v50, %v5221_v36  ;;  %v5314_v7 = vsub.f32 %v14301_v46, %v5224_v16  ;;  %5577 = vadd.xlane.f32.xlu0 %v5576_v25  ;;  %v14302_v50 = vld [vmem:[#allocation3_spill] sm:$0xff]  ;;  %v14304_v46 = vld [vmem:[#allocation5_spill] sm:$0xff] }
 0x1b6   :  { %v13334_v56 = vpop.eup %11947  ;;  %11961 = vpow2.f32 %v5424_v43 }
 0x1b7   :  { %v13336_v62 = vpop.eup %11949  ;;  %v5426_v58 = vmul.f32 1.442695, %v5313_v32  ;;  %v5428_v6 = vmul.f32 1.442695, %v5314_v7  ;;  %v5579_v44 = vsel %vm5071_vm2, %v13334_v56, 0.0 }
 0x1b8   :  { %5580 = vadd.xlane.f32.xlu1 %v5579_v44  ;;  %v5227_v31 = vpop.xlane.xlu1 %5226  ;;  %v5230_v40 = vpop.xlane.xlu0 %5229  ;;  %v5582_v26 = vsel %vm5071_vm2, %v13336_v62, 0.0 }
 0x1b9   :  { %11963 = vpow2.f32 %v5426_v58  ;;  %v5315_v4 = vsub.f32 %v14302_v50, %v5227_v31  ;;  %v5316_v10 = vsub.f32 %v14303_v13, %v5230_v40  ;;  %5583 = vadd.xlane.f32.xlu0 %v5582_v26  ;;  %v14305_v58 = vld [vmem:[#allocation6_spill] sm:$0xff] }
 0x1ba   :  { %v13344_v24 = vpop.eup %11951  ;;  %11965 = vpow2.f32 %v5428_v6 }
 0x1bb   :  { %v13346_v54 = vpop.eup %11953  ;;  %v5430_v43 = vmul.f32 1.442695, %v5315_v4  ;;  %v5432_v52 = vmul.f32 1.442695, %v5316_v10  ;;  %v5585_v36 = vsel %vm5071_vm2, %v13344_v24, 0.0 }
 0x1bc   :  { %5586 = vadd.xlane.f32.xlu1 %v5585_v36  ;;  %v5233_v16 = vpop.xlane.xlu1 %5232  ;;  %v5236_v25 = vpop.xlane.xlu0 %5235  ;;  %v5588_v32 = vsel %vm5071_vm2, %v13346_v54, 0.0 }
 0x1bd   :  { %11967 = vpow2.f32 %v5430_v43  ;;  %v5317_v7 = vsub.f32 %v14304_v46, %v5233_v16  ;;  %v5318_v44 = vsub.f32 %v14305_v58, %v5236_v25  ;;  %5589 = vadd.xlane.f32.xlu0 %v5588_v32  ;;  %v14307_v43 = vld [vmem:[#allocation7_spill] sm:$0xff]  ;;  %v14308_v16 = vld [vmem:[#allocation8_spill] sm:$0xff] }
 0x1be   :  { %v13354_v6 = vpop.eup %11955  ;;  %11969 = vpow2.f32 %v5432_v52 }
 0x1bf   :  { %v13356_v31 = vpop.eup %11957  ;;  %v5434_v40 = vmul.f32 1.442695, %v5317_v7  ;;  %v5436_v26 = vmul.f32 1.442695, %v5318_v44  ;;  %v5591_v50 = vsel %vm5071_vm2, %v13354_v6, 0.0 }
 0x1c0   :  { %14306 = vst [vmem:[#allocation2_spill] sm:$0xff] %v13356_v31  ;;  %5592 = vadd.xlane.f32.xlu1 %v5591_v50  ;;  %v5239_v4 = vpop.xlane.xlu1 %5238  ;;  %v5242_v13 = vpop.xlane.xlu0 %5241  ;;  %v5594_v10 = vsel %vm5071_vm2, %v13356_v31, 0.0 }
 0x1c1   :  { %11971 = vpow2.f32 %v5434_v40  ;;  %v5319_v36 = vsub.f32 %v14307_v43, %v5239_v4  ;;  %v5320_v25 = vsub.f32 %v14308_v16, %v5242_v13  ;;  %5595 = vadd.xlane.f32.xlu0 %v5594_v10  ;;  %v14310_v4 = vld [vmem:[#allocation9_spill] sm:$0xff]  ;;  %v14311_v10 = vld [vmem:[#allocation10_spill] sm:$0xff] }
 0x1c2   :  { %v13364_v52 = vpop.eup %11959  ;;  %11973 = vpow2.f32 %v5436_v26 }
 0x1c3   :  { %14309 = vst [vmem:[#allocation3_spill] sm:$0xff] %v13364_v52  ;;  %v13366_v32 = vpop.eup %11961  ;;  %v5438_v46 = vmul.f32 1.442695, %v5319_v36  ;;  %v5440_v7 = vmul.f32 1.442695, %v5320_v25  ;;  %v5597_v58 = vsel %vm5071_vm2, %v13364_v52, 0.0 }
 0x1c4   :  { %5598 = vadd.xlane.f32.xlu1 %v5597_v58  ;;  %v5245_v44 = vpop.xlane.xlu1 %5244  ;;  %v5248_v50 = vpop.xlane.xlu0 %5247  ;;  %v5600_v40 = vsel %vm5071_vm2, %v13366_v32, 0.0 }
 0x1c5   :  { %11975 = vpow2.f32 %v5438_v46  ;;  %v5321_v13 = vsub.f32 %v14310_v4, %v5245_v44  ;;  %v5322_v43 = vsub.f32 %v14311_v10, %v5248_v50  ;;  %5601 = vadd.xlane.f32.xlu0 %v5600_v40  ;;  %v14314_v44 = vld [vmem:[#allocation11_spill] sm:$0xff]  ;;  %v14315_v40 = vld [vmem:[#allocation12_spill] sm:$0xff] }
 0x1c6   :  { %v13374_v26 = vpop.eup %11963  ;;  %11977 = vpow2.f32 %v5440_v7 }
 0x1c7   :  { %14312 = vst [vmem:[#allocation4_spill] sm:$0xff] %v13374_v26  ;;  %v13376_v36 = vpop.eup %11965  ;;  %v5442_v16 = vmul.f32 1.442695, %v5321_v13  ;;  %v5444_v25 = vmul.f32 1.442695, %v5322_v43  ;;  %v5603_v58 = vsel %vm5071_vm2, %v13374_v26, 0.0 }
 0x1c8   :  { %14313 = vst [vmem:[#allocation5_spill] sm:$0xff] %v13376_v36  ;;  %5604 = vadd.xlane.f32.xlu1 %v5603_v58  ;;  %v5251_v52 = vpop.xlane.xlu1 %5250  ;;  %v5254_v31 = vpop.xlane.xlu0 %5253  ;;  %v5606_v46 = vsel %vm5071_vm2, %v13376_v36, 0.0 }
 0x1c9   :  { %11979 = vpow2.f32 %v5442_v16  ;;  %v5323_v50 = vsub.f32 %v14314_v44, %v5251_v52  ;;  %v5324_v4 = vsub.f32 %v14315_v40, %v5254_v31  ;;  %5607 = vadd.xlane.f32.xlu0 %v5606_v46  ;;  %v14317_v52 = vld [vmem:[#allocation13_spill] sm:$0xff]  ;;  %v14318_v46 = vld [vmem:[#allocation14_spill] sm:$0xff] }
 0x1ca   :  { %v13384_v7 = vpop.eup %11967  ;;  %11981 = vpow2.f32 %v5444_v25 }
 0x1cb   :  { %14316 = vst [vmem:[#allocation6_spill] sm:$0xff] %v13384_v7  ;;  %v13386_v13 = vpop.eup %11969  ;;  %v5446_v10 = vmul.f32 1.442695, %v5323_v50  ;;  %v5448_v43 = vmul.f32 1.442695, %v5324_v4  ;;  %v5609_v58 = vsel %vm5071_vm2, %v13384_v7, 0.0 }
 0x1cc   :  { %5610 = vadd.xlane.f32.xlu1 %v5609_v58  ;;  %v5257_v26 = vpop.xlane.xlu1 %5256  ;;  %v5612_v16 = vsel %vm5071_vm2, %v13386_v13, 0.0  ;;  %v5260_v36 = vpop.xlane.xlu0 %5259 }
 0x1cd   :  { %11983 = vpow2.f32 %v5446_v10  ;;  %v5325_v31 = vsub.f32 %v14317_v52, %v5257_v26  ;;  %5613 = vadd.xlane.f32.xlu0 %v5612_v16  ;;  %v5326_v44 = vsub.f32 %v14318_v46, %v5260_v36  ;;  %v14319_v26 = vld [vmem:[#allocation15_spill] sm:$0xff] }
 0x1ce   :  { %v13394_v25 = vpop.eup %11971  ;;  %11985 = vpow2.f32 %v5448_v43 }
 0x1cf   :  { %v13396_v50 = vpop.eup %11973  ;;  %v5450_v40 = vmul.f32 1.442695, %v5325_v31  ;;  %v5452_v4 = vmul.f32 1.442695, %v5326_v44  ;;  %v5615_v58 = vsel %vm5071_vm2, %v13394_v25, 0.0 }
 0x1d0   :  { %5616 = vadd.xlane.f32.xlu1 %v5615_v58  ;;  %v5263_v7 = vpop.xlane.xlu1 %5262  ;;  %v5618_v10 = vsel %vm5071_vm2, %v13396_v50, 0.0 }
 0x1d1   :  { %11987 = vpow2.f32 %v5450_v40  ;;  %v5327_v16 = vsub.f32 %v14319_v26, %v5263_v7  ;;  %5619 = vadd.xlane.f32.xlu0 %v5618_v10 }
 0x1d2   :  { %v13403_v36 = vpop.eup %11975  ;;  %11989 = vpow2.f32 %v5452_v4 }
 0x1d3   :  { %v13405_v43 = vpop.eup %11977  ;;  %v5454_v52 = vmul.f32 1.442695, %v5327_v16  ;;  %v5621_v31 = vsel %vm5071_vm2, %v13403_v36, 0.0 }
 0x1d4   :  { %5622 = vadd.xlane.f32.xlu1 %v5621_v31  ;;  %v5624_v46 = vsel %vm5071_vm2, %v13405_v43, 0.0 }
 0x1d5   :  { %11991 = vpow2.f32 %v5454_v52  ;;  %5625 = vadd.xlane.f32.xlu0 %v5624_v46 }
 0x1d6   :  { %v13411_v44 = vpop.eup %11979 }
 0x1d7   :  { %14320 = vst [vmem:[#allocation7_spill] sm:$0xff] %v13411_v44  ;;  %v13413_v40 = vpop.eup %11981  ;;  %v5627_v7 = vsel %vm5071_vm2, %v13411_v44, 0.0 }
 0x1d8   :  { %14321 = vst [vmem:[#allocation8_spill] sm:$0xff] %v13413_v40  ;;  %5628 = vadd.xlane.f32.xlu1 %v5627_v7  ;;  %v5630_v4 = vsel %vm5071_vm2, %v13413_v40, 0.0 }
 0x1d9   :  { %5631 = vadd.xlane.f32.xlu0 %v5630_v4 }
 0x1da   :  { %v13419_v58 = vpop.eup %11983 }
 0x1db   :  { %14322 = vst [vmem:[#allocation9_spill] sm:$0xff] %v13419_v58  ;;  %v13421_v10 = vpop.eup %11985  ;;  %v5633_v26 = vsel %vm5071_vm2, %v13419_v58, 0.0 }
 0x1dc   :  { %14323 = vst [vmem:[#allocation10_spill] sm:$0xff] %v13421_v10  ;;  %5634 = vadd.xlane.f32.xlu1 %v5633_v26  ;;  %v5636_v16 = vsel %vm5071_vm2, %v13421_v10, 0.0 }
 0x1dd   :  { %5637 = vadd.xlane.f32.xlu0 %v5636_v16 }
 0x1de   :  { %v13427_v52 = vpop.eup %11987 }
 0x1df   :  { %14324 = vst [vmem:[#allocation11_spill] sm:$0xff] %v13427_v52  ;;  %v13429_v31 = vpop.eup %11989  ;;  %v5639_v46 = vsel %vm5071_vm2, %v13427_v52, 0.0 }
 0x1e0   :  { %14325 = vst [vmem:[#allocation12_spill] sm:$0xff] %v13429_v31  ;;  %5640 = vadd.xlane.f32.xlu1 %v5639_v46  ;;  %v5642_v7 = vsel %vm5071_vm2, %v13429_v31, 0.0 }
 0x1e1   :  { %5643 = vadd.xlane.f32.xlu0 %v5642_v7 }
 0x1e2   :  { %v13435_v4 = vpop.eup %11991 }
 0x1e3   :  { %v5645_v26 = vsel %vm5071_vm2, %v13435_v4, 0.0 }
 0x1e4   :  { %5646 = vadd.xlane.f32.xlu1 %v5645_v26 }
 0x1ed   :  { %v5458_v10 = vpop.xlane.xlu0 %5457 }
 0x1ee   :  { %11993 = vrcp.f32 %v5458_v10  ;;  %v144_v10 = vld [vmem:[%s14257_s2 + $0x8] sm:$0xf] }
 0x1f1   :  { %v5461_v16 = vpop.xlane.xlu1 %5460 }
 0x1f2   :  { %11995 = vrcp.f32 %v5461_v16  ;;  %v5464_v58 = vpop.xlane.xlu0 %5463 }
 0x1f3   :  { %11997 = vrcp.f32 %v5464_v58 }
 0x1f5   :  { %v5467_v40 = vpop.xlane.xlu1 %5466 }
 0x1f6   :  { %11999 = vrcp.f32 %v5467_v40  ;;  %v5470_v52 = vpop.xlane.xlu0 %5469 }
 0x1f7   :  { %12001 = vrcp.f32 %v5470_v52 }
 0x1f9   :  { %v5473_v46 = vpop.xlane.xlu1 %5472 }
 0x1fa   :  { %12003 = vrcp.f32 %v5473_v46  ;;  %v5476_v31 = vpop.xlane.xlu0 %5475 }
 0x1fb   :  { %v11994_v7 = vpop.eup %11993  ;;  %12005 = vrcp.f32 %v5476_v31 }
 0x1fc   :  { %v5712_v44 = vmul.f32 %v11994_v7, %v13118_v1  ;;  %v145_v1 = vld [vmem:[%s14257_s2 + $0xc] sm:$0xf] }
 0x1fd   :  { %v5479_v26 = vpop.xlane.xlu1 %5478 }
 0x1fe   :  { %12007 = vrcp.f32 %v5479_v26  ;;  %v5482_v16 = vpop.xlane.xlu0 %5481  ;;  %11546 = vmatmul.mubr.msk.f32.vlgmr.msra.gmra.mxu0 %vm5776_vm4, %v5712_v44  ;;  %v146_v44 = vld [vmem:[%s14257_s2 + $0x10] sm:$0xf]  ;;  %v147_v26 = vld [vmem:[%s14257_s2 + $0x14] sm:$0xf] }
 0x1ff   :  { %v11996_v40 = vpop.eup %11995  ;;  %12009 = vrcp.f32 %v5482_v16  ;;  %11554 = vmatpush3.msk.msra.mxu0 %vm5780_vm3, %v144_v10  ;;  %11555 = vmatprep.mubr.msk.f32.mxu0 %vm12122_vm1, %v14300_v14 }
 0x200   :  { %v11998_v58 = vpop.eup %11997  ;;  %v5713_v52 = vmul.f32 %v11996_v40, %v13124_v49  ;;  %11563 = vmatprep.subr.mxu0 %v14300_v14 }
 0x201   :  { %v5485_v31 = vpop.xlane.xlu1 %5484  ;;  %v5714_v46 = vmul.f32 %v11998_v58, %v13126_v23  ;;  %v148_v58 = vld [vmem:[%s14257_s2 + $0x18] sm:$0xf] }
 0x202   :  { %12011 = vrcp.f32 %v5485_v31  ;;  %v5488_v7 = vpop.xlane.xlu0 %5487  ;;  %11551 = vmatmul.mubr.msk.f32.vlgmr.msra.gmra.mxu1 %vm5776_vm4, %v5713_v52  ;;  %v149_v31 = vld [vmem:[%s14257_s2 + $0x1c] sm:$0xf] }
 0x203   :  { %v12000_v10 = vpop.eup %11999  ;;  %12013 = vrcp.f32 %v5488_v7  ;;  %11556 = vmatmul.mubr.msk.f32.vlgmr.msra.gmra.mxu0 %vm5776_vm4, %v5714_v46  ;;  %11559 = vmatpush3.msk.msra.mxu1 %vm5780_vm3, %v145_v1  ;;  %v150_v7 = vld [vmem:[%s14257_s2 + $0x20] sm:$0xf] }
 0x204   :  { %v12002_v49 = vpop.eup %12001  ;;  %11560 = vmatprep.mubr.msk.f32.mxu1 %vm12122_vm1, %v14300_v14  ;;  %11564 = vmatpush3.msk.msra.mxu0 %vm5780_vm3, %v146_v44  ;;  %v5715_v23 = vmul.f32 %v12000_v10, %v13134_v5 }
 0x205   :  { %v5491_v16 = vpop.xlane.xlu1 %5490  ;;  %11565 = vmatprep.mubr.msk.f32.mxu0 %vm12122_vm1, %v14300_v14  ;;  %v5716_v40 = vmul.f32 %v12002_v49, %v13136_v9  ;;  %11568 = vmatprep.subr.mxu1 %v14300_v14 }
 0x206   :  { %12015 = vrcp.f32 %v5491_v16  ;;  %v5494_v52 = vpop.xlane.xlu0 %5493  ;;  %11561 = vmatmul.mubr.msk.f32.vlgmr.msra.gmra.mxu1 %vm5776_vm4, %v5715_v23  ;;  %11573 = vmatprep.subr.mxu0 %v14300_v14  ;;  %v151_v23 = vld [vmem:[%s14257_s2 + $0x24] sm:$0xf] }
 0x207   :  { %v12004_v5 = vpop.eup %12003  ;;  %12017 = vrcp.f32 %v5494_v52  ;;  %11566 = vmatmul.mubr.msk.f32.vlgmr.msra.gmra.mxu0 %vm5776_vm4, %v5716_v40  ;;  %11569 = vmatpush3.msk.msra.mxu1 %vm5780_vm3, %v147_v26  ;;  %v152_v40 = vld [vmem:[%s14257_s2 + $0x28] sm:$0xf] }
 0x208   :  { %v12006_v1 = vpop.eup %12005  ;;  %11570 = vmatprep.mubr.msk.f32.mxu1 %vm12122_vm1, %v14300_v14  ;;  %11574 = vmatpush3.msk.msra.mxu0 %vm5780_vm3, %v148_v58  ;;  %v5717_v9 = vmul.f32 %v12004_v5, %v13144_v60  ;;  %v153_v5 = vld [vmem:[%s14257_s2 + $0x2c] sm:$0xf] }
 0x209   :  { %v5497_v46 = vpop.xlane.xlu1 %5496  ;;  %11575 = vmatprep.mubr.msk.f32.mxu0 %vm12122_vm1, %v14300_v14  ;;  %v5718_v44 = vmul.f32 %v12006_v1, %v13146_v17  ;;  %11578 = vmatprep.subr.mxu1 %v14300_v14 }
 0x20a   :  { %12019 = vrcp.f32 %v5497_v46  ;;  %v5500_v10 = vpop.xlane.xlu0 %5499  ;;  %11571 = vmatmul.mubr.msk.f32.vlgmr.msra.gmra.mxu1 %vm5776_vm4, %v5717_v9  ;;  %11583 = vmatprep.subr.mxu0 %v14300_v14 }
 0x20b   :  { %v12008_v60 = vpop.eup %12007  ;;  %12021 = vrcp.f32 %v5500_v10  ;;  %11576 = vmatmul.mubr.msk.f32.vlgmr.msra.gmra.mxu0 %vm5776_vm4, %v5718_v44  ;;  %11579 = vmatpush3.msk.msra.mxu1 %vm5780_vm3, %v149_v31  ;;  %v154_v31 = vld [vmem:[%s14257_s2 + $0x30] sm:$0xf] }
 0x20c   :  { %v12010_v49 = vpop.eup %12009  ;;  %11580 = vmatprep.mubr.msk.f32.mxu1 %vm12122_vm1, %v14300_v14  ;;  %11584 = vmatpush3.msk.msra.mxu0 %vm5780_vm3, %v150_v7  ;;  %v5719_v17 = vmul.f32 %v12008_v60, %v13154_v3  ;;  %v155_v7 = vld [vmem:[%s14257_s2 + $0x34] sm:$0xf] }
 0x20d   :  { %v5503_v26 = vpop.xlane.xlu1 %5502  ;;  %11585 = vmatprep.mubr.msk.f32.mxu0 %vm12122_vm1, %v14300_v14  ;;  %v5720_v16 = vmul.f32 %v12010_v49, %v13156_v55  ;;  %11588 = vmatprep.subr.mxu1 %v14300_v14  ;;  %v156_v49 = vld [vmem:[%s14257_s2 + $0x38] sm:$0xf] }
 0x20e   :  { %12023 = vrcp.f32 %v5503_v26  ;;  %v5506_v58 = vpop.xlane.xlu0 %5505  ;;  %11581 = vmatmul.mubr.msk.f32.vlgmr.msra.gmra.mxu1 %vm5776_vm4, %v5719_v17  ;;  %11593 = vmatprep.subr.mxu0 %v14300_v14  ;;  %v157_v26 = vld [vmem:[%s14257_s2 + $0x3c] sm:$0xf] }
 0x20f   :  { %v12012_v3 = vpop.eup %12011  ;;  %12025 = vrcp.f32 %v5506_v58  ;;  %11586 = vmatmul.mubr.msk.f32.vlgmr.msra.gmra.mxu0 %vm5776_vm4, %v5720_v16  ;;  %11589 = vmatpush3.msk.msra.mxu1 %vm5780_vm3, %v151_v23  ;;  %v158_v58 = vld [vmem:[%s14257_s2 + $0x40] sm:$0xf] }
 0x210   :  { %v12014_v52 = vpop.eup %12013  ;;  %11590 = vmatprep.mubr.msk.f32.mxu1 %vm12122_vm1, %v14300_v14  ;;  %11594 = vmatpush3.msk.msra.mxu0 %vm5780_vm3, %v152_v40  ;;  %v5721_v55 = vmul.f32 %v12012_v3, %v13164_v61 }
 0x211   :  { %v5509_v1 = vpop.xlane.xlu1 %5508  ;;  %11595 = vmatprep.mubr.msk.f32.mxu0 %vm12122_vm1, %v14300_v14  ;;  %v5722_v9 = vmul.f32 %v12014_v52, %v13166_v11  ;;  %11598 = vmatprep.subr.mxu1 %v14300_v14 }
 0x212   :  { %12027 = vrcp.f32 %v5509_v1  ;;  %v5512_v46 = vpop.xlane.xlu0 %5511  ;;  %11591 = vmatmul.mubr.msk.f32.vlgmr.msra.gmra.mxu1 %vm5776_vm4, %v5721_v55  ;;  %11603 = vmatprep.subr.mxu0 %v14300_v14  ;;  %v159_v55 = vld [vmem:[%s14257_s2 + $0x44] sm:$0xf] }
 0x213   :  { %v12016_v61 = vpop.eup %12015  ;;  %12029 = vrcp.f32 %v5512_v46  ;;  %11596 = vmatmul.mubr.msk.f32.vlgmr.msra.gmra.mxu0 %vm5776_vm4, %v5722_v9  ;;  %11599 = vmatpush3.msk.msra.mxu1 %vm5780_vm3, %v153_v5  ;;  %v160_v9 = vld [vmem:[%s14257_s2 + $0x48] sm:$0xf] }
 0x214   :  { %v12018_v44 = vpop.eup %12017  ;;  %11600 = vmatprep.mubr.msk.f32.mxu1 %vm12122_vm1, %v14300_v14  ;;  %11604 = vmatpush3.msk.msra.mxu0 %vm5780_vm3, %v154_v31  ;;  %v5723_v11 = vmul.f32 %v12016_v61, %v13174_v19  ;;  %v161_v61 = vld [vmem:[%s14257_s2 + $0x4c] sm:$0xf] }
 0x215   :  { %v5515_v10 = vpop.xlane.xlu1 %5514  ;;  %11605 = vmatprep.mubr.msk.f32.mxu0 %vm12122_vm1, %v14300_v14  ;;  %v5724_v60 = vmul.f32 %v12018_v44, %v13176_v22  ;;  %11608 = vmatprep.subr.mxu1 %v14300_v14 }
 0x216   :  { %12031 = vrcp.f32 %v5515_v10  ;;  %v5518_v17 = vpop.xlane.xlu0 %5517  ;;  %11601 = vmatmul.mubr.msk.f32.vlgmr.msra.gmra.mxu1 %vm5776_vm4, %v5723_v11  ;;  %11613 = vmatprep.subr.mxu0 %v14300_v14 }
 0x217   :  { %v12020_v19 = vpop.eup %12019  ;;  %12033 = vrcp.f32 %v5518_v17  ;;  %11606 = vmatmul.mubr.msk.f32.vlgmr.msra.gmra.mxu0 %vm5776_vm4, %v5724_v60  ;;  %11609 = vmatpush3.msk.msra.mxu1 %vm5780_vm3, %v155_v7  ;;  %v162_v7 = vld [vmem:[%s14257_s2 + $0x50] sm:$0xf] }
 0x218   :  { %v12022_v23 = vpop.eup %12021  ;;  %11610 = vmatprep.mubr.msk.f32.mxu1 %vm12122_vm1, %v14300_v14  ;;  %11614 = vmatpush3.msk.msra.mxu0 %vm5780_vm3, %v156_v49  ;;  %v5725_v22 = vmul.f32 %v12020_v19, %v13188_v33  ;;  %v163_v49 = vld [vmem:[%s14257_s2 + $0x54] sm:$0xf] }
 0x219   :  { %v5521_v16 = vpop.xlane.xlu1 %5520  ;;  %11615 = vmatprep.mubr.msk.f32.mxu0 %vm12122_vm1, %v14300_v14  ;;  %v5726_v40 = vmul.f32 %v12022_v23, %v13191_v34  ;;  %11618 = vmatprep.subr.mxu1 %v14300_v14  ;;  %v164_v23 = vld [vmem:[%s14257_s2 + $0x58] sm:$0xf] }
 0x21a   :  { %12035 = vrcp.f32 %v5521_v16  ;;  %v5524_v3 = vpop.xlane.xlu0 %5523  ;;  %11611 = vmatmul.mubr.msk.f32.vlgmr.msra.gmra.mxu1 %vm5776_vm4, %v5725_v22  ;;  %11623 = vmatprep.subr.mxu0 %v14300_v14  ;;  %v165_v16 = vld [vmem:[%s14257_s2 + $0x5c] sm:$0xf] }
 0x21b   :  { %v12024_v33 = vpop.eup %12023  ;;  %12037 = vrcp.f32 %v5524_v3  ;;  %11616 = vmatmul.mubr.msk.f32.vlgmr.msra.gmra.mxu0 %vm5776_vm4, %v5726_v40  ;;  %11619 = vmatpush3.msk.msra.mxu1 %vm5780_vm3, %v157_v26  ;;  %v166_v3 = vld [vmem:[%s14257_s2 + $0x60] sm:$0xf] }
 0x21c   :  { %v12026_v52 = vpop.eup %12025  ;;  %11620 = vmatprep.mubr.msk.f32.mxu1 %vm12122_vm1, %v14300_v14  ;;  %11624 = vmatpush3.msk.msra.mxu0 %vm5780_vm3, %v158_v58  ;;  %v5727_v34 = vmul.f32 %v12024_v33, %v13203_v21 }
 0x21d   :  { %v5527_v5 = vpop.xlane.xlu1 %5526  ;;  %11625 = vmatprep.mubr.msk.f32.mxu0 %vm12122_vm1, %v14300_v14  ;;  %v5728_v1 = vmul.f32 %v12026_v52, %v13206_v53  ;;  %11628 = vmatprep.subr.mxu1 %v14300_v14 }
 0x21e   :  { %12039 = vrcp.f32 %v5527_v5  ;;  %v5530_v31 = vpop.xlane.xlu0 %5529  ;;  %11621 = vmatmul.mubr.msk.f32.vlgmr.msra.gmra.mxu1 %vm5776_vm4, %v5727_v34  ;;  %11633 = vmatprep.subr.mxu0 %v14300_v14  ;;  %v167_v34 = vld [vmem:[%s14257_s2 + $0x64] sm:$0xf] }
 0x21f   :  { %v12028_v21 = vpop.eup %12027  ;;  %12041 = vrcp.f32 %v5530_v31  ;;  %11626 = vmatmul.mubr.msk.f32.vlgmr.msra.gmra.mxu0 %vm5776_vm4, %v5728_v1  ;;  %11629 = vmatpush3.msk.msra.mxu1 %vm5780_vm3, %v159_v55  ;;  %v168_v1 = vld [vmem:[%s14257_s2 + $0x68] sm:$0xf] }
 0x220   :  { %v12030_v46 = vpop.eup %12029  ;;  %11630 = vmatprep.mubr.msk.f32.mxu1 %vm12122_vm1, %v14300_v14  ;;  %11634 = vmatpush3.msk.msra.mxu0 %vm5780_vm3, %v160_v9  ;;  %v5729_v53 = vmul.f32 %v12028_v21, %v13214_v59  ;;  %v169_v21 = vld [vmem:[%s14257_s2 + $0x6c] sm:$0xf] }
 0x221   :  { %v5533_v44 = vpop.xlane.xlu1 %5532  ;;  %11635 = vmatprep.mubr.msk.f32.mxu0 %vm12122_vm1, %v14300_v14  ;;  %v5730_v11 = vmul.f32 %v12030_v46, %v13216_v63  ;;  %11638 = vmatprep.subr.mxu1 %v14300_v14 }
 0x222   :  { %12043 = vrcp.f32 %v5533_v44  ;;  %v5536_v10 = vpop.xlane.xlu0 %5535  ;;  %11631 = vmatmul.mubr.msk.f32.vlgmr.msra.gmra.mxu1 %vm5776_vm4, %v5729_v53  ;;  %11643 = vmatprep.subr.mxu0 %v14300_v14 }
 0x223   :  { %v12032_v59 = vpop.eup %12031  ;;  %12045 = vrcp.f32 %v5536_v10  ;;  %11636 = vmatmul.mubr.msk.f32.vlgmr.msra.gmra.mxu0 %vm5776_vm4, %v5730_v11  ;;  %11639 = vmatpush3.msk.msra.mxu1 %vm5780_vm3, %v161_v61  ;;  %v170_v61 = vld [vmem:[%s14257_s2 + $0x70] sm:$0xf] }
 0x224   :  { %v12034_v60 = vpop.eup %12033  ;;  %11640 = vmatprep.mubr.msk.f32.mxu1 %vm12122_vm1, %v14300_v14  ;;  %11644 = vmatpush3.msk.msra.mxu0 %vm5780_vm3, %v162_v7  ;;  %v5731_v63 = vmul.f32 %v12032_v59, %v13224_v2  ;;  %v171_v7 = vld [vmem:[%s14257_s2 + $0x74] sm:$0xf] }
 0x225   :  { %v5539_v17 = vpop.xlane.xlu1 %5538  ;;  %11645 = vmatprep.mubr.msk.f32.mxu0 %vm12122_vm1, %v14300_v14  ;;  %v5732_v19 = vmul.f32 %v12034_v60, %v13226_v8  ;;  %11648 = vmatprep.subr.mxu1 %v14300_v14  ;;  %v172_v60 = vld [vmem:[%s14257_s2 + $0x78] sm:$0xf] }
 0x226   :  { %12047 = vrcp.f32 %v5539_v17  ;;  %v5542_v22 = vpop.xlane.xlu0 %5541  ;;  %11641 = vmatmul.mubr.msk.f32.vlgmr.msra.gmra.mxu1 %vm5776_vm4, %v5731_v63  ;;  %11653 = vmatprep.subr.mxu0 %v14300_v14  ;;  %v173_v17 = vld [vmem:[%s14257_s2 + $0x7c] sm:$0xf] }
 0x227   :  { %v12036_v2 = vpop.eup %12035  ;;  %12049 = vrcp.f32 %v5542_v22  ;;  %11646 = vmatmul.mubr.msk.f32.vlgmr.msra.gmra.mxu0 %vm5776_vm4, %v5732_v19  ;;  %11649 = vmatpush3.msk.msra.mxu1 %vm5780_vm3, %v163_v49  ;;  %v174_v22 = vld [vmem:[%s14257_s2 + $0x80] sm:$0xf] }
 0x228   :  { %v12038_v26 = vpop.eup %12037  ;;  %11650 = vmatprep.mubr.msk.f32.mxu1 %vm12122_vm1, %v14300_v14  ;;  %11654 = vmatpush3.msk.msra.mxu0 %vm5780_vm3, %v164_v23  ;;  %v5733_v8 = vmul.f32 %v12036_v2, %v13234_v41 }
 0x229   :  { %v5545_v40 = vpop.xlane.xlu1 %5544  ;;  %11655 = vmatprep.mubr.msk.f32.mxu0 %vm12122_vm1, %v14300_v14  ;;  %v5734_v58 = vmul.f32 %v12038_v26, %v13236_v12  ;;  %11658 = vmatprep.subr.mxu1 %v14300_v14 }
 0x22a   :  { %12051 = vrcp.f32 %v5545_v40  ;;  %v5548_v33 = vpop.xlane.xlu0 %5547  ;;  %11651 = vmatmul.mubr.msk.f32.vlgmr.msra.gmra.mxu1 %vm5776_vm4, %v5733_v8  ;;  %11663 = vmatprep.subr.mxu0 %v14300_v14  ;;  %v175_v8 = vld [vmem:[%s14257_s2 + $0x84] sm:$0xf] }
 0x22b   :  { %v12040_v41 = vpop.eup %12039  ;;  %12053 = vrcp.f32 %v5548_v33  ;;  %11656 = vmatmul.mubr.msk.f32.vlgmr.msra.gmra.mxu0 %vm5776_vm4, %v5734_v58  ;;  %11659 = vmatpush3.msk.msra.mxu1 %vm5780_vm3, %v165_v16  ;;  %v176_v58 = vld [vmem:[%s14257_s2 + $0x88] sm:$0xf] }
 0x22c   :  { %v12042_v52 = vpop.eup %12041  ;;  %11660 = vmatprep.mubr.msk.f32.mxu1 %vm12122_vm1, %v14300_v14  ;;  %11664 = vmatpush3.msk.msra.mxu0 %vm5780_vm3, %v166_v3  ;;  %v5735_v12 = vmul.f32 %v12040_v41, %v13244_v51  ;;  %v177_v41 = vld [vmem:[%s14257_s2 + $0x8c] sm:$0xf] }
 0x22d   :  { %v5551_v55 = vpop.xlane.xlu1 %5550  ;;  %11665 = vmatprep.mubr.msk.f32.mxu0 %vm12122_vm1, %v14300_v14  ;;  %v5736_v5 = vmul.f32 %v12042_v52, %v13246_v15  ;;  %11668 = vmatprep.subr.mxu1 %v14300_v14 }
 0x22e   :  { %12055 = vrcp.f32 %v5551_v55  ;;  %v5554_v9 = vpop.xlane.xlu0 %5553  ;;  %11661 = vmatmul.mubr.msk.f32.vlgmr.msra.gmra.mxu1 %vm5776_vm4, %v5735_v12  ;;  %11673 = vmatprep.subr.mxu0 %v14300_v14 }
 0x22f   :  { %v12044_v51 = vpop.eup %12043  ;;  %12057 = vrcp.f32 %v5554_v9  ;;  %11666 = vmatmul.mubr.msk.f32.vlgmr.msra.gmra.mxu0 %vm5776_vm4, %v5736_v5  ;;  %11669 = vmatpush3.msk.msra.mxu1 %vm5780_vm3, %v167_v34  ;;  %v178_v34 = vld [vmem:[%s14257_s2 + $0x90] sm:$0xf] }
 0x230   :  { %v12046_v31 = vpop.eup %12045  ;;  %11670 = vmatprep.mubr.msk.f32.mxu1 %vm12122_vm1, %v14300_v14  ;;  %11674 = vmatpush3.msk.msra.mxu0 %vm5780_vm3, %v168_v1  ;;  %v5737_v15 = vmul.f32 %v12044_v51, %v13254_v57  ;;  %v179_v1 = vld [vmem:[%s14257_s2 + $0x94] sm:$0xf] }
 0x231   :  { %v5557_v46 = vpop.xlane.xlu1 %5556  ;;  %11675 = vmatprep.mubr.msk.f32.mxu0 %vm12122_vm1, %v14300_v14  ;;  %v5738_v53 = vmul.f32 %v12046_v31, %v13256_v27  ;;  %11678 = vmatprep.subr.mxu1 %v14300_v14  ;;  %v180_v31 = vld [vmem:[%s14257_s2 + $0x98] sm:$0xf] }
 0x232   :  { %12059 = vrcp.f32 %v5557_v46  ;;  %v5560_v44 = vpop.xlane.xlu0 %5559  ;;  %11671 = vmatmul.mubr.msk.f32.vlgmr.msra.gmra.mxu1 %vm5776_vm4, %v5737_v15  ;;  %11683 = vmatprep.subr.mxu0 %v14300_v14  ;;  %v181_v46 = vld [vmem:[%s14257_s2 + $0x9c] sm:$0xf] }
 0x233   :  { %v12048_v57 = vpop.eup %12047  ;;  %12061 = vrcp.f32 %v5560_v44  ;;  %11676 = vmatmul.mubr.msk.f32.vlgmr.msra.gmra.mxu0 %vm5776_vm4, %v5738_v53  ;;  %11679 = vmatpush3.msk.msra.mxu1 %vm5780_vm3, %v169_v21  ;;  %v182_v44 = vld [vmem:[%s14257_s2 + $0xa0] sm:$0xf] }
 0x234   :  { %v12050_v11 = vpop.eup %12049  ;;  %11680 = vmatprep.mubr.msk.f32.mxu1 %vm12122_vm1, %v14300_v14  ;;  %11684 = vmatpush3.msk.msra.mxu0 %vm5780_vm3, %v170_v61  ;;  %v5739_v27 = vmul.f32 %v12048_v57, %v13264_v42 }
 0x235   :  { %v5563_v10 = vpop.xlane.xlu1 %5562  ;;  %11685 = vmatprep.mubr.msk.f32.mxu0 %vm12122_vm1, %v14300_v14  ;;  %v5740_v59 = vmul.f32 %v12050_v11, %v13266_v29  ;;  %11688 = vmatprep.subr.mxu1 %v14300_v14 }
 0x236   :  { %12063 = vrcp.f32 %v5563_v10  ;;  %v5566_v63 = vpop.xlane.xlu0 %5565  ;;  %11681 = vmatmul.mubr.msk.f32.vlgmr.msra.gmra.mxu1 %vm5776_vm4, %v5739_v27  ;;  %11693 = vmatprep.subr.mxu0 %v14300_v14  ;;  %v183_v27 = vld [vmem:[%s14257_s2 + $0xa4] sm:$0xf] }
 0x237   :  { %v12052_v42 = vpop.eup %12051  ;;  %12065 = vrcp.f32 %v5566_v63  ;;  %11686 = vmatmul.mubr.msk.f32.vlgmr.msra.gmra.mxu0 %vm5776_vm4, %v5740_v59  ;;  %11689 = vmatpush3.msk.msra.mxu1 %vm5780_vm3, %v171_v7  ;;  %v184_v59 = vld [vmem:[%s14257_s2 + $0xa8] sm:$0xf] }
 0x238   :  { %v12054_v49 = vpop.eup %12053  ;;  %11690 = vmatprep.mubr.msk.f32.mxu1 %vm12122_vm1, %v14300_v14  ;;  %11694 = vmatpush3.msk.msra.mxu0 %vm5780_vm3, %v172_v60  ;;  %v5741_v29 = vmul.f32 %v12052_v42, %v13274_v35  ;;  %v185_v42 = vld [vmem:[%s14257_s2 + $0xac] sm:$0xf] }
 0x239   :  { %v5569_v19 = vpop.xlane.xlu1 %5568  ;;  %11695 = vmatprep.mubr.msk.f32.mxu0 %vm12122_vm1, %v14300_v14  ;;  %v5742_v23 = vmul.f32 %v12054_v49, %v13276_v39  ;;  %11698 = vmatprep.subr.mxu1 %v14300_v14 }
 0x23a   :  { %12067 = vrcp.f32 %v5569_v19  ;;  %v5572_v2 = vpop.xlane.xlu0 %5571  ;;  %11691 = vmatmul.mubr.msk.f32.vlgmr.msra.gmra.mxu1 %vm5776_vm4, %v5741_v29  ;;  %11703 = vmatprep.subr.mxu0 %v14300_v14 }
 0x23b   :  { %v12056_v35 = vpop.eup %12055  ;;  %12069 = vrcp.f32 %v5572_v2  ;;  %11696 = vmatmul.mubr.msk.f32.vlgmr.msra.gmra.mxu0 %vm5776_vm4, %v5742_v23  ;;  %11699 = vmatpush3.msk.msra.mxu1 %vm5780_vm3, %v173_v17  ;;  %v186_v17 = vld [vmem:[%s14257_s2 + $0xb0] sm:$0xf] }
 0x23c   :  { %v12058_v26 = vpop.eup %12057  ;;  %11700 = vmatprep.mubr.msk.f32.mxu1 %vm12122_vm1, %v14300_v14  ;;  %11704 = vmatpush3.msk.msra.mxu0 %vm5780_vm3, %v174_v22  ;;  %v5743_v39 = vmul.f32 %v12056_v35, %v13284_v18  ;;  %v187_v22 = vld [vmem:[%s14257_s2 + $0xb4] sm:$0xf] }
 0x23d   :  { %v5575_v16 = vpop.xlane.xlu1 %5574  ;;  %11705 = vmatprep.mubr.msk.f32.mxu0 %vm12122_vm1, %v14300_v14  ;;  %v5744_v40 = vmul.f32 %v12058_v26, %v13286_v45  ;;  %11708 = vmatprep.subr.mxu1 %v14300_v14  ;;  %v188_v26 = vld [vmem:[%s14257_s2 + $0xb8] sm:$0xf] }
 0x23e   :  { %12071 = vrcp.f32 %v5575_v16  ;;  %v5578_v3 = vpop.xlane.xlu0 %5577  ;;  %11701 = vmatmul.mubr.msk.f32.vlgmr.msra.gmra.mxu1 %vm5776_vm4, %v5743_v39  ;;  %11713 = vmatprep.subr.mxu0 %v14300_v14  ;;  %v189_v16 = vld [vmem:[%s14257_s2 + $0xbc] sm:$0xf] }
 0x23f   :  { %v12060_v18 = vpop.eup %12059  ;;  %12073 = vrcp.f32 %v5578_v3  ;;  %11706 = vmatmul.mubr.msk.f32.vlgmr.msra.gmra.mxu0 %vm5776_vm4, %v5744_v40  ;;  %11709 = vmatpush3.msk.msra.mxu1 %vm5780_vm3, %v175_v8 }
 0x240   :  { %v12062_v33 = vpop.eup %12061  ;;  %11710 = vmatprep.mubr.msk.f32.mxu1 %vm12122_vm1, %v14300_v14  ;;  %11714 = vmatpush3.msk.msra.mxu0 %vm5780_vm3, %v176_v58  ;;  %v5745_v45 = vmul.f32 %v12060_v18, %v13294_v0  ;;  %v14326_v58 = vld [vmem:[#allocation2_spill] sm:$0xff] }
 0x241   :  { %v5581_v52 = vpop.xlane.xlu1 %5580  ;;  %11715 = vmatprep.mubr.msk.f32.mxu0 %vm12122_vm1, %v14300_v14  ;;  %v5746_v12 = vmul.f32 %v12062_v33, %v13296_v20  ;;  %11718 = vmatprep.subr.mxu1 %v14300_v14  ;;  %v190_v18 = vld [vmem:[%s14257_s2 + $0xc0] sm:$0xf] }
 0x242   :  { %12075 = vrcp.f32 %v5581_v52  ;;  %v5584_v55 = vpop.xlane.xlu0 %5583  ;;  %11711 = vmatmul.mubr.msk.f32.vlgmr.msra.gmra.mxu1 %vm5776_vm4, %v5745_v45  ;;  %11723 = vmatprep.subr.mxu0 %v14300_v14 }
 0x243   :  { %v12064_v0 = vpop.eup %12063  ;;  %12077 = vrcp.f32 %v5584_v55  ;;  %11716 = vmatmul.mubr.msk.f32.vlgmr.msra.gmra.mxu0 %vm5776_vm4, %v5746_v12  ;;  %11719 = vmatpush3.msk.msra.mxu1 %vm5780_vm3, %v177_v41  ;;  %v14327_v41 = vld [vmem:[#allocation3_spill] sm:$0xff]  ;;  %v191_v12 = vld [vmem:[%s14257_s2 + $0xc4] sm:$0xf] }
 0x244   :  { %v12066_v5 = vpop.eup %12065  ;;  %11720 = vmatprep.mubr.msk.f32.mxu1 %vm12122_vm1, %v14300_v14  ;;  %11724 = vmatpush3.msk.msra.mxu0 %vm5780_vm3, %v178_v34  ;;  %v5747_v20 = vmul.f32 %v12064_v0, %v13304_v28  ;;  %v192_v0 = vld [vmem:[%s14257_s2 + $0xc8] sm:$0xf] }
 0x245   :  { %v5587_v9 = vpop.xlane.xlu1 %5586  ;;  %11725 = vmatprep.mubr.msk.f32.mxu0 %vm12122_vm1, %v14300_v14  ;;  %v5748_v51 = vmul.f32 %v12066_v5, %v13306_v30  ;;  %11728 = vmatprep.subr.mxu1 %v14300_v14 }
 0x246   :  { %12079 = vrcp.f32 %v5587_v9  ;;  %v5590_v15 = vpop.xlane.xlu0 %5589  ;;  %11721 = vmatmul.mubr.msk.f32.vlgmr.msra.gmra.mxu1 %vm5776_vm4, %v5747_v20  ;;  %11733 = vmatprep.subr.mxu0 %v14300_v14 }
 0x247   :  { %v12068_v28 = vpop.eup %12067  ;;  %12081 = vrcp.f32 %v5590_v15  ;;  %11726 = vmatmul.mubr.msk.f32.vlgmr.msra.gmra.mxu0 %vm5776_vm4, %v5748_v51  ;;  %11729 = vmatpush3.msk.msra.mxu1 %vm5780_vm3, %v179_v1  ;;  %v14328_v1 = vld [vmem:[#allocation4_spill] sm:$0xff]  ;;  %v193_v51 = vld [vmem:[%s14257_s2 + $0xcc] sm:$0xf] }
 0x248   :  { %v12070_v21 = vpop.eup %12069  ;;  %11730 = vmatprep.mubr.msk.f32.mxu1 %vm12122_vm1, %v14300_v14  ;;  %11734 = vmatpush3.msk.msra.mxu0 %vm5780_vm3, %v180_v31  ;;  %v5749_v30 = vmul.f32 %v12068_v28, %v13314_v47  ;;  %v14329_v31 = vld [vmem:[#allocation5_spill] sm:$0xff] }
 0x249   :  { %v5593_v53 = vpop.xlane.xlu1 %5592  ;;  %11735 = vmatprep.mubr.msk.f32.mxu0 %vm12122_vm1, %v14300_v14  ;;  %v5750_v61 = vmul.f32 %v12070_v21, %v13316_v38  ;;  %11738 = vmatprep.subr.mxu1 %v14300_v14  ;;  %v194_v21 = vld [vmem:[%s14257_s2 + $0xd0] sm:$0xf] }
 0x24a   :  { %12083 = vrcp.f32 %v5593_v53  ;;  %v5596_v57 = vpop.xlane.xlu0 %5595  ;;  %11731 = vmatmul.mubr.msk.f32.vlgmr.msra.gmra.mxu1 %vm5776_vm4, %v5749_v30  ;;  %11743 = vmatprep.subr.mxu0 %v14300_v14 }
 0x24b   :  { %v12072_v47 = vpop.eup %12071  ;;  %12085 = vrcp.f32 %v5596_v57  ;;  %11736 = vmatmul.mubr.msk.f32.vlgmr.msra.gmra.mxu0 %vm5776_vm4, %v5750_v61  ;;  %11739 = vmatpush3.msk.msra.mxu1 %vm5780_vm3, %v181_v46  ;;  %v14330_v61 = vld [vmem:[#allocation6_spill] sm:$0xff]  ;;  %v195_v57 = vld [vmem:[%s14257_s2 + $0xd4] sm:$0xf] }
 0x24c   :  { %v12074_v11 = vpop.eup %12073  ;;  %11740 = vmatprep.mubr.msk.f32.mxu1 %vm12122_vm1, %v14300_v14  ;;  %11744 = vmatpush3.msk.msra.mxu0 %vm5780_vm3, %v182_v44  ;;  %v5751_v38 = vmul.f32 %v12072_v47, %v13324_v37 }
 0x24d   :  { %v5599_v7 = vpop.xlane.xlu1 %5598  ;;  %11745 = vmatprep.mubr.msk.f32.mxu0 %vm12122_vm1, %v14300_v14  ;;  %v5752_v10 = vmul.f32 %v12074_v11, %v13326_v48  ;;  %11748 = vmatprep.subr.mxu1 %v14300_v14 }
 0x24e   :  { %12087 = vrcp.f32 %v5599_v7  ;;  %v5602_v60 = vpop.xlane.xlu0 %5601  ;;  %11741 = vmatmul.mubr.msk.f32.vlgmr.msra.gmra.mxu1 %vm5776_vm4, %v5751_v38  ;;  %11753 = vmatprep.subr.mxu0 %v14300_v14  ;;  %v196_v38 = vld [vmem:[%s14257_s2 + $0xd8] sm:$0xf] }
 0x24f   :  { %v12076_v37 = vpop.eup %12075  ;;  %12089 = vrcp.f32 %v5602_v60  ;;  %11746 = vmatmul.mubr.msk.f32.vlgmr.msra.gmra.mxu0 %vm5776_vm4, %v5752_v10  ;;  %11749 = vmatpush3.msk.msra.mxu1 %vm5780_vm3, %v183_v27 }
 0x250   :  { %v12078_v63 = vpop.eup %12077  ;;  %11750 = vmatprep.mubr.msk.f32.mxu1 %vm12122_vm1, %v14300_v14  ;;  %11754 = vmatpush3.msk.msra.mxu0 %vm5780_vm3, %v184_v59  ;;  %v5753_v48 = vmul.f32 %v12076_v37, %v13334_v56  ;;  %v197_v59 = vld [vmem:[%s14257_s2 + $0xdc] sm:$0xf] }
 0x251   :  { %v5605_v49 = vpop.xlane.xlu1 %5604  ;;  %11755 = vmatprep.mubr.msk.f32.mxu0 %vm12122_vm1, %v14300_v14  ;;  %v5754_v29 = vmul.f32 %v12078_v63, %v13336_v62  ;;  %11758 = vmatprep.subr.mxu1 %v14300_v14 }
 0x252   :  { %12091 = vrcp.f32 %v5605_v49  ;;  %v5608_v19 = vpop.xlane.xlu0 %5607  ;;  %11751 = vmatmul.mubr.msk.f32.vlgmr.msra.gmra.mxu1 %vm5776_vm4, %v5753_v48  ;;  %11763 = vmatprep.subr.mxu0 %v14300_v14  ;;  %v199_v49 = vld [vmem:[%s14257_s2 + $0xe4] sm:$0xf] }
 0x253   :  { %v12080_v56 = vpop.eup %12079  ;;  %12093 = vrcp.f32 %v5608_v19  ;;  %11756 = vmatmul.mubr.msk.f32.vlgmr.msra.gmra.mxu0 %vm5776_vm4, %v5754_v29  ;;  %11759 = vmatpush3.msk.msra.mxu1 %vm5780_vm3, %v185_v42 }
 0x254   :  { %v12082_v23 = vpop.eup %12081  ;;  %11760 = vmatprep.mubr.msk.f32.mxu1 %vm12122_vm1, %v14300_v14  ;;  %11764 = vmatpush3.msk.msra.mxu0 %vm5780_vm3, %v186_v17  ;;  %v5755_v62 = vmul.f32 %v12080_v56, %v13344_v24  ;;  %v14331_v56 = vld [vmem:[#allocation7_spill] sm:$0xff] }
 0x255   :  { %v5611_v2 = vpop.xlane.xlu1 %5610  ;;  %11765 = vmatprep.mubr.msk.f32.mxu0 %vm12122_vm1, %v14300_v14  ;;  %v5756_v35 = vmul.f32 %v12082_v23, %v13346_v54  ;;  %11768 = vmatprep.subr.mxu1 %v14300_v14 }
 0x256   :  { %12095 = vrcp.f32 %v5611_v2  ;;  %v5614_v39 = vpop.xlane.xlu0 %5613  ;;  %11761 = vmatmul.mubr.msk.f32.vlgmr.msra.gmra.mxu1 %vm5776_vm4, %v5755_v62  ;;  %11773 = vmatprep.subr.mxu0 %v14300_v14  ;;  %v201_v62 = vld [vmem:[%s14257_s2 + $0xec] sm:$0xf] }
 0x257   :  { %v12084_v24 = vpop.eup %12083  ;;  %12097 = vrcp.f32 %v5614_v39  ;;  %11766 = vmatmul.mubr.msk.f32.vlgmr.msra.gmra.mxu0 %vm5776_vm4, %v5756_v35  ;;  %11769 = vmatpush3.msk.msra.mxu1 %vm5780_vm3, %v187_v22  ;;  %v14332_v22 = vld [vmem:[#allocation8_spill] sm:$0xff] }
 0x258   :  { %v12086_v8 = vpop.eup %12085  ;;  %11770 = vmatprep.mubr.msk.f32.mxu1 %vm12122_vm1, %v14300_v14  ;;  %11774 = vmatpush3.msk.msra.mxu0 %vm5780_vm3, %v188_v26  ;;  %v5757_v54 = vmul.f32 %v12084_v24, %v13354_v6  ;;  %v202_v35 = vld [vmem:[%s14257_s2 + $0xf0] sm:$0xf]  ;;  %v14333_v24 = vld [vmem:[#allocation9_spill] sm:$0xff] }
 0x259   :  { %v5617_v40 = vpop.xlane.xlu1 %5616  ;;  %11775 = vmatprep.mubr.msk.f32.mxu0 %vm12122_vm1, %v14300_v14  ;;  %v5758_v3 = vmul.f32 %v12086_v8, %v14326_v58  ;;  %11778 = vmatprep.subr.mxu1 %v14300_v14  ;;  %v204_v58 = vld [vmem:[%s14257_s2 + $0xf8] sm:$0xf] }
 0x25a   :  { %12099 = vrcp.f32 %v5617_v40  ;;  %v5620_v33 = vpop.xlane.xlu0 %5619  ;;  %11771 = vmatmul.mubr.msk.f32.vlgmr.msra.gmra.mxu1 %vm5776_vm4, %v5757_v54  ;;  %11783 = vmatprep.subr.mxu0 %v14300_v14  ;;  %v203_v54 = vld [vmem:[%s14257_s2 + $0xf4] sm:$0xf] }
 0x25b   :  { %v12088_v6 = vpop.eup %12087  ;;  %12101 = vrcp.f32 %v5620_v33  ;;  %11776 = vmatmul.mubr.msk.f32.vlgmr.msra.gmra.mxu0 %vm5776_vm4, %v5758_v3  ;;  %11779 = vmatpush3.msk.msra.mxu1 %vm5780_vm3, %v189_v16  ;;  %v14334_v16 = vld [vmem:[#allocation10_spill] sm:$0xff]  ;;  %v14335_v33 = vld [vmem:[#allocation11_spill] sm:$0xff] }
 0x25c   :  { %v12090_v45 = vpop.eup %12089  ;;  %11780 = vmatprep.mubr.msk.f32.mxu1 %vm12122_vm1, %v14300_v14  ;;  %11784 = vmatpush3.msk.msra.mxu0 %vm5780_vm3, %v190_v18  ;;  %v5759_v52 = vmul.f32 %v12088_v6, %v14327_v41  ;;  %v14336_v41 = vld [vmem:[#allocation12_spill] sm:$0xff] }
 0x25d   :  { %v5760_v34 = vmul.f32 %v12090_v45, %v13366_v32  ;;  %v5623_v55 = vpop.xlane.xlu1 %5622  ;;  %11785 = vmatprep.mubr.msk.f32.mxu0 %vm12122_vm1, %v14300_v14  ;;  %11788 = vmatprep.subr.mxu1 %v14300_v14  ;;  %v205_v45 = vld [vmem:[%s14257_s2 + $0xfc] sm:$0xf] }
 0x25e   :  { %12103 = vrcp.f32 %v5623_v55  ;;  %v5626_v5 = vpop.xlane.xlu0 %5625  ;;  %11781 = vmatmul.mubr.msk.f32.vlgmr.msra.gmra.mxu1 %vm5776_vm4, %v5759_v52  ;;  %11793 = vmatprep.subr.mxu0 %v14300_v14 }
 0x25f   :  { %v12092_v20 = vpop.eup %12091  ;;  %12105 = vrcp.f32 %v5626_v5  ;;  %11786 = vmatmul.mubr.msk.f32.vlgmr.msra.gmra.mxu0 %vm5776_vm4, %v5760_v34  ;;  %11789 = vmatpush3.msk.msra.mxu1 %vm5780_vm3, %v191_v12 }
 0x260   :  { %v12094_v32 = vpop.eup %12093  ;;  %v5761_v9 = vmul.f32 %v12092_v20, %v14328_v1  ;;  %11790 = vmatprep.mubr.msk.f32.mxu1 %vm12122_vm1, %v14300_v14  ;;  %11794 = vmatpush3.msk.msra.mxu0 %vm5780_vm3, %v192_v0 }
 0x261   :  { %v5762_v15 = vmul.f32 %v12094_v32, %v14329_v31  ;;  %v5629_v28 = vpop.xlane.xlu1 %5628  ;;  %11795 = vmatprep.mubr.msk.f32.mxu0 %vm12122_vm1, %v14300_v14  ;;  %11798 = vmatprep.subr.mxu1 %v14300_v14 }
 0x262   :  { %12107 = vrcp.f32 %v5629_v28  ;;  %v5632_v30 = vpop.xlane.xlu0 %5631  ;;  %11791 = vmatmul.mubr.msk.f32.vlgmr.msra.gmra.mxu1 %vm5776_vm4, %v5761_v9  ;;  %11803 = vmatprep.subr.mxu0 %v14300_v14 }
 0x263   :  { %v12096_v46 = vpop.eup %12095  ;;  %12109 = vrcp.f32 %v5632_v30  ;;  %11796 = vmatmul.mubr.msk.f32.vlgmr.msra.gmra.mxu0 %vm5776_vm4, %v5762_v15  ;;  %11799 = vmatpush3.msk.msra.mxu1 %vm5780_vm3, %v193_v51 }
 0x264   :  { %v12098_v53 = vpop.eup %12097  ;;  %v5763_v44 = vmul.f32 %v12096_v46, %v14330_v61  ;;  %11800 = vmatprep.mubr.msk.f32.mxu1 %vm12122_vm1, %v14300_v14  ;;  %11804 = vmatpush3.msk.msra.mxu0 %vm5780_vm3, %v194_v21 }
 0x265   :  { %v5764_v47 = vmul.f32 %v12098_v53, %v13386_v13  ;;  %v5635_v11 = vpop.xlane.xlu1 %5634  ;;  %11805 = vmatprep.mubr.msk.f32.mxu0 %vm12122_vm1, %v14300_v14  ;;  %11808 = vmatprep.subr.mxu1 %v14300_v14 }
 0x266   :  { %12111 = vrcp.f32 %v5635_v11  ;;  %v5638_v27 = vpop.xlane.xlu0 %5637  ;;  %11801 = vmatmul.mubr.msk.f32.vlgmr.msra.gmra.mxu1 %vm5776_vm4, %v5763_v44  ;;  %11813 = vmatprep.subr.mxu0 %v14300_v14 }
 0x267   :  { %v12100_v7 = vpop.eup %12099  ;;  %12113 = vrcp.f32 %v5638_v27  ;;  %11806 = vmatmul.mubr.msk.f32.vlgmr.msra.gmra.mxu0 %vm5776_vm4, %v5764_v47  ;;  %11809 = vmatpush3.msk.msra.mxu1 %vm5780_vm3, %v195_v57 }
 0x268   :  { %v12102_v13 = vpop.eup %12101  ;;  %v5765_v10 = vmul.f32 %v12100_v7, %v13394_v25  ;;  %11810 = vmatprep.mubr.msk.f32.mxu1 %vm12122_vm1, %v14300_v14  ;;  %11814 = vmatpush3.msk.msra.mxu0 %vm5780_vm3, %v196_v38  ;;  %v198_v25 = vld [vmem:[%s14257_s2 + $0xe0] sm:$0xf] }
 0x269   :  { %v5766_v60 = vmul.f32 %v12102_v13, %v13396_v50  ;;  %v5641_v37 = vpop.xlane.xlu1 %5640  ;;  %11815 = vmatprep.mubr.msk.f32.mxu0 %vm12122_vm1, %v14300_v14  ;;  %11818 = vmatprep.subr.mxu1 %v14300_v14 }
 0x26a   :  { %12115 = vrcp.f32 %v5641_v37  ;;  %v5644_v63 = vpop.xlane.xlu0 %5643  ;;  %11811 = vmatmul.mubr.msk.f32.vlgmr.msra.gmra.mxu1 %vm5776_vm4, %v5765_v10  ;;  %11823 = vmatprep.subr.mxu0 %v14300_v14 }
 0x26b   :  { %v12104_v48 = vpop.eup %12103  ;;  %12117 = vrcp.f32 %v5644_v63  ;;  %11816 = vmatmul.mubr.msk.f32.vlgmr.msra.gmra.mxu0 %vm5776_vm4, %v5766_v60  ;;  %11819 = vmatpush3.msk.msra.mxu1 %vm5780_vm3, %v197_v59 }
 0x26c   :  { %v12106_v50 = vpop.eup %12105  ;;  %v5767_v42 = vmul.f32 %v12104_v48, %v13403_v36  ;;  %11820 = vmatprep.mubr.msk.f32.mxu1 %vm12122_vm1, %v14300_v14  ;;  %11824 = vmatpush3.msk.msra.mxu0 %vm5780_vm3, %v198_v25  ;;  %v200_v36 = vld [vmem:[%s14257_s2 + $0xe8] sm:$0xf] }
 0x26d   :  { %v5768_v29 = vmul.f32 %v12106_v50, %v13405_v43  ;;  %v5647_v17 = vpop.xlane.xlu1 %5646  ;;  %11825 = vmatprep.mubr.msk.f32.mxu0 %vm12122_vm1, %v14300_v14  ;;  %11828 = vmatprep.subr.mxu1 %v14300_v14 }
 0x26e   :  { %12119 = vrcp.f32 %v5647_v17  ;;  %11821 = vmatmul.mubr.msk.f32.vlgmr.msra.gmra.mxu1 %vm5776_vm4, %v5767_v42  ;;  %11833 = vmatprep.subr.mxu0 %v14300_v14 }
 0x26f   :  { %v12108_v19 = vpop.eup %12107  ;;  %11826 = vmatmul.mubr.msk.f32.vlgmr.msra.gmra.mxu0 %vm5776_vm4, %v5768_v29  ;;  %11829 = vmatpush3.msk.msra.mxu1 %vm5780_vm3, %v199_v49 }
 0x270   :  { %v12110_v43 = vpop.eup %12109  ;;  %v5769_v23 = vmul.f32 %v12108_v19, %v14331_v56  ;;  %11830 = vmatprep.mubr.msk.f32.mxu1 %vm12122_vm1, %v14300_v14  ;;  %11834 = vmatpush3.msk.msra.mxu0 %vm5780_vm3, %v200_v36 }
 0x271   :  { %v5770_v2 = vmul.f32 %v12110_v43, %v14332_v22  ;;  %11835 = vmatprep.mubr.msk.f32.mxu0 %vm12122_vm1, %v14300_v14  ;;  %11838 = vmatprep.subr.mxu1 %v14300_v14 }
 0x272   :  { %11831 = vmatmul.mubr.msk.f32.vlgmr.msra.gmra.mxu1 %vm5776_vm4, %v5769_v23  ;;  %11843 = vmatprep.subr.mxu0 %v14300_v14 }
 0x273   :  { %v12112_v26 = vpop.eup %12111  ;;  %11836 = vmatmul.mubr.msk.f32.vlgmr.msra.gmra.mxu0 %vm5776_vm4, %v5770_v2  ;;  %11839 = vmatpush3.msk.msra.mxu1 %vm5780_vm3, %v201_v62 }
 0x274   :  { %v12114_v39 = vpop.eup %12113  ;;  %v5771_v8 = vmul.f32 %v12112_v26, %v14333_v24  ;;  %11840 = vmatprep.mubr.msk.f32.mxu1 %vm12122_vm1, %v14300_v14  ;;  %11844 = vmatpush3.msk.msra.mxu0 %vm5780_vm3, %v202_v35 }
 0x275   :  { %v5772_v40 = vmul.f32 %v12114_v39, %v14334_v16  ;;  %11845 = vmatprep.mubr.msk.f32.mxu0 %vm12122_vm1, %v14300_v14  ;;  %11848 = vmatprep.subr.mxu1 %v14300_v14 }
 0x276   :  { %11841 = vmatmul.mubr.msk.f32.vlgmr.msra.gmra.mxu1 %vm5776_vm4, %v5771_v8  ;;  %11853 = vmatprep.subr.mxu0 %v14300_v14 }
 0x277   :  { %v12116_v3 = vpop.eup %12115  ;;  %11846 = vmatmul.mubr.msk.f32.vlgmr.msra.gmra.mxu0 %vm5776_vm4, %v5772_v40  ;;  %11849 = vmatpush3.msk.msra.mxu1 %vm5780_vm3, %v203_v54 }
 0x278   :  { %v12118_v18 = vpop.eup %12117  ;;  %v5773_v6 = vmul.f32 %v12116_v3, %v14335_v33  ;;  %11850 = vmatprep.mubr.msk.f32.mxu1 %vm12122_vm1, %v14300_v14  ;;  %11854 = vmatpush3.msk.msra.mxu0 %vm5780_vm3, %v204_v58 }
 0x279   :  { %v5774_v52 = vmul.f32 %v12118_v18, %v14336_v41  ;;  %11855 = vmatprep.mubr.msk.f32.mxu0 %vm12122_vm1, %v14300_v14  ;;  %11858 = vmatprep.subr.mxu1 %v14300_v14 }
 0x27a   :  { %11851 = vmatmul.mubr.msk.f32.vlgmr.msra.gmra.mxu1 %vm5776_vm4, %v5773_v6 }
 0x27b   :  { %v12120_v12 = vpop.eup %12119  ;;  %11856 = vmatmul.mubr.msk.f32.vlgmr.msra.gmra.mxu0 %vm5776_vm4, %v5774_v52  ;;  %11859 = vmatpush3.msk.msra.mxu1 %vm5780_vm3, %v205_v45 }
 0x27c   :  { %v5775_v34 = vmul.f32 %v12120_v12, %v13435_v4  ;;  %11860 = vmatprep.mubr.msk.f32.mxu1 %vm12122_vm1, %v14300_v14 }
 0x27e   :  { %11861 = vmatmul.mubr.msk.f32.vlgmr.msra.gmra.mxu1 %vm5776_vm4, %v5775_v34 }
 0x2be   :  { %v5850_v55 = vpop.f32.mrf.mxu0 }
 0x2bf   :  { %10643 = vst.msk [vmem:[%s14258_s3] sm:$0xf] %vm10642_vm5, %v5850_v55 }
 0x2c0   :  { %v11547_v0 = vpop.f32.mrf.mxu0 }
 0x2c2   :  { %v5926_v5 = vpop.f32.mrf.mxu1 }
 0x2c3   :  { %10644 = vst.msk [vmem:[%s14258_s3 + $0x4] sm:$0xf] %vm10642_vm5, %v5926_v5  ;;  %v6002_v4 = vpop.f32.mrf.mxu0 }
 0x2c4   :  { %10645 = vst.msk [vmem:[%s14258_s3 + $0x8] sm:$0xf] %vm10642_vm5, %v6002_v4  ;;  %v11552_v14 = vpop.f32.mrf.mxu1 }
 0x2c5   :  { %v11557_v20 = vpop.f32.mrf.mxu0 }
 0x2c6   :  { %v6078_v32 = vpop.f32.mrf.mxu1 }
 0x2c7   :  { %10646 = vst.msk [vmem:[%s14258_s3 + $0xc] sm:$0xf] %vm10642_vm5, %v6078_v32  ;;  %v6154_v1 = vpop.f32.mrf.mxu0 }
 0x2c8   :  { %10647 = vst.msk [vmem:[%s14258_s3 + $0x10] sm:$0xf] %vm10642_vm5, %v6154_v1  ;;  %v11562_v9 = vpop.f32.mrf.mxu1 }
 0x2c9   :  { %v11567_v51 = vpop.f32.mrf.mxu0 }
 0x2ca   :  { %v6230_v31 = vpop.f32.mrf.mxu1 }
 0x2cb   :  { %10648 = vst.msk [vmem:[%s14258_s3 + $0x14] sm:$0xf] %vm10642_vm5, %v6230_v31  ;;  %v6306_v15 = vpop.f32.mrf.mxu0 }
 0x2cc   :  { %10649 = vst.msk [vmem:[%s14258_s3 + $0x18] sm:$0xf] %vm10642_vm5, %v6306_v15  ;;  %v11572_v28 = vpop.f32.mrf.mxu1 }
 0x2cd   :  { %v11577_v21 = vpop.f32.mrf.mxu0 }
 0x2ce   :  { %v6382_v30 = vpop.f32.mrf.mxu1 }
 0x2cf   :  { %10650 = vst.msk [vmem:[%s14258_s3 + $0x1c] sm:$0xf] %vm10642_vm5, %v6382_v30  ;;  %v6458_v46 = vpop.f32.mrf.mxu0 }
 0x2d0   :  { %10651 = vst.msk [vmem:[%s14258_s3 + $0x20] sm:$0xf] %vm10642_vm5, %v6458_v46  ;;  %v11582_v53 = vpop.f32.mrf.mxu1 }
 0x2d1   :  { %v11587_v61 = vpop.f32.mrf.mxu0 }
 0x2d2   :  { %v6534_v44 = vpop.f32.mrf.mxu1 }
 0x2d3   :  { %10652 = vst.msk [vmem:[%s14258_s3 + $0x24] sm:$0xf] %vm10642_vm5, %v6534_v44  ;;  %v6610_v57 = vpop.f32.mrf.mxu0 }
 0x2d4   :  { %10653 = vst.msk [vmem:[%s14258_s3 + $0x28] sm:$0xf] %vm10642_vm5, %v6610_v57  ;;  %v11592_v47 = vpop.f32.mrf.mxu1 }
 0x2d5   :  { %v11597_v11 = vpop.f32.mrf.mxu0 }
 0x2d6   :  { %v6686_v38 = vpop.f32.mrf.mxu1 }
 0x2d7   :  { %10654 = vst.msk [vmem:[%s14258_s3 + $0x2c] sm:$0xf] %vm10642_vm5, %v6686_v38  ;;  %v6762_v27 = vpop.f32.mrf.mxu0 }
 0x2d8   :  { %10655 = vst.msk [vmem:[%s14258_s3 + $0x30] sm:$0xf] %vm10642_vm5, %v6762_v27  ;;  %v11602_v7 = vpop.f32.mrf.mxu1 }
 0x2d9   :  { %v11607_v13 = vpop.f32.mrf.mxu0 }
 0x2da   :  { %v6838_v10 = vpop.f32.mrf.mxu1 }
 0x2db   :  { %10656 = vst.msk [vmem:[%s14258_s3 + $0x34] sm:$0xf] %vm10642_vm5, %v6838_v10  ;;  %v6914_v59 = vpop.f32.mrf.mxu0 }
 0x2dc   :  { %10657 = vst.msk [vmem:[%s14258_s3 + $0x38] sm:$0xf] %vm10642_vm5, %v6914_v59  ;;  %v11612_v60 = vpop.f32.mrf.mxu1 }
 0x2dd   :  { %v11617_v37 = vpop.f32.mrf.mxu0 }
 0x2de   :  { %v6990_v25 = vpop.f32.mrf.mxu1 }
 0x2df   :  { %10658 = vst.msk [vmem:[%s14258_s3 + $0x3c] sm:$0xf] %vm10642_vm5, %v6990_v25  ;;  %v7066_v63 = vpop.f32.mrf.mxu0 }
 0x2e0   :  { %10659 = vst.msk [vmem:[%s14258_s3 + $0x40] sm:$0xf] %vm10642_vm5, %v7066_v63  ;;  %v11622_v48 = vpop.f32.mrf.mxu1 }
 0x2e1   :  { %v11627_v50 = vpop.f32.mrf.mxu0 }
 0x2e2   :  { %v7142_v42 = vpop.f32.mrf.mxu1 }
 0x2e3   :  { %10660 = vst.msk [vmem:[%s14258_s3 + $0x44] sm:$0xf] %vm10642_vm5, %v7142_v42  ;;  %v7218_v49 = vpop.f32.mrf.mxu0 }
 0x2e4   :  { %10661 = vst.msk [vmem:[%s14258_s3 + $0x48] sm:$0xf] %vm10642_vm5, %v7218_v49  ;;  %v11632_v29 = vpop.f32.mrf.mxu1 }
 0x2e5   :  { %v11637_v17 = vpop.f32.mrf.mxu0 }
 0x2e6   :  { %v7294_v36 = vpop.f32.mrf.mxu1 }
 0x2e7   :  { %10662 = vst.msk [vmem:[%s14258_s3 + $0x4c] sm:$0xf] %vm10642_vm5, %v7294_v36  ;;  %v7370_v19 = vpop.f32.mrf.mxu0 }
 0x2e8   :  { %10663 = vst.msk [vmem:[%s14258_s3 + $0x50] sm:$0xf] %vm10642_vm5, %v7370_v19  ;;  %v11642_v43 = vpop.f32.mrf.mxu1 }
 0x2e9   :  { %v11647_v56 = vpop.f32.mrf.mxu0 }
 0x2ea   :  { %v7446_v23 = vpop.f32.mrf.mxu1 }
 0x2eb   :  { %10664 = vst.msk [vmem:[%s14258_s3 + $0x54] sm:$0xf] %vm10642_vm5, %v7446_v23  ;;  %v7522_v62 = vpop.f32.mrf.mxu0 }
 0x2ec   :  { %10665 = vst.msk [vmem:[%s14258_s3 + $0x58] sm:$0xf] %vm10642_vm5, %v7522_v62  ;;  %v11652_v22 = vpop.f32.mrf.mxu1 }
 0x2ed   :  { %v11657_v2 = vpop.f32.mrf.mxu0 }
 0x2ee   :  { %v7598_v35 = vpop.f32.mrf.mxu1 }
 0x2ef   :  { %10666 = vst.msk [vmem:[%s14258_s3 + $0x5c] sm:$0xf] %vm10642_vm5, %v7598_v35  ;;  %v7674_v26 = vpop.f32.mrf.mxu0 }
 0x2f0   :  { %10667 = vst.msk [vmem:[%s14258_s3 + $0x60] sm:$0xf] %vm10642_vm5, %v7674_v26  ;;  %v11662_v39 = vpop.f32.mrf.mxu1 }
 0x2f1   :  { %v11667_v24 = vpop.f32.mrf.mxu0 }
 0x2f2   :  { %v7750_v8 = vpop.f32.mrf.mxu1 }
 0x2f3   :  { %10668 = vst.msk [vmem:[%s14258_s3 + $0x64] sm:$0xf] %vm10642_vm5, %v7750_v8  ;;  %v7826_v54 = vpop.f32.mrf.mxu0 }
 0x2f4   :  { %10669 = vst.msk [vmem:[%s14258_s3 + $0x68] sm:$0xf] %vm10642_vm5, %v7826_v54  ;;  %v11672_v16 = vpop.f32.mrf.mxu1 }
 0x2f5   :  { %v11677_v40 = vpop.f32.mrf.mxu0 }
 0x2f6   :  { %v7902_v58 = vpop.f32.mrf.mxu1 }
 0x2f7   :  { %10670 = vst.msk [vmem:[%s14258_s3 + $0x6c] sm:$0xf] %vm10642_vm5, %v7902_v58  ;;  %v7978_v3 = vpop.f32.mrf.mxu0 }
 0x2f8   :  { %10671 = vst.msk [vmem:[%s14258_s3 + $0x70] sm:$0xf] %vm10642_vm5, %v7978_v3  ;;  %v11682_v18 = vpop.f32.mrf.mxu1 }
 0x2f9   :  { %v11687_v33 = vpop.f32.mrf.mxu0 }
 0x2fa   :  { %v8054_v6 = vpop.f32.mrf.mxu1 }
 0x2fb   :  { %10672 = vst.msk [vmem:[%s14258_s3 + $0x74] sm:$0xf] %vm10642_vm5, %v8054_v6  ;;  %v8130_v45 = vpop.f32.mrf.mxu0 }
 0x2fc   :  { %10673 = vst.msk [vmem:[%s14258_s3 + $0x78] sm:$0xf] %vm10642_vm5, %v8130_v45  ;;  %v11692_v41 = vpop.f32.mrf.mxu1 }
 0x2fd   :  { %v11697_v52 = vpop.f32.mrf.mxu0 }
 0x2fe   :  { %v8206_v12 = vpop.f32.mrf.mxu1 }
 0x2ff   :  { %10674 = vst.msk [vmem:[%s14258_s3 + $0x7c] sm:$0xf] %vm10642_vm5, %v8206_v12  ;;  %v8282_v34 = vpop.f32.mrf.mxu0 }
 0x300   :  { %10675 = vst.msk [vmem:[%s14258_s3 + $0x80] sm:$0xf] %vm10642_vm5, %v8282_v34  ;;  %v11702_v55 = vpop.f32.mrf.mxu1 }
 0x301   :  { %v11707_v0 = vpop.f32.mrf.mxu0 }
 0x302   :  { %v8358_v5 = vpop.f32.mrf.mxu1 }
 0x303   :  { %10676 = vst.msk [vmem:[%s14258_s3 + $0x84] sm:$0xf] %vm10642_vm5, %v8358_v5  ;;  %v8434_v4 = vpop.f32.mrf.mxu0 }
 0x304   :  { %10677 = vst.msk [vmem:[%s14258_s3 + $0x88] sm:$0xf] %vm10642_vm5, %v8434_v4  ;;  %v11712_v14 = vpop.f32.mrf.mxu1 }
 0x305   :  { %v11717_v20 = vpop.f32.mrf.mxu0 }
 0x306   :  { %v8510_v32 = vpop.f32.mrf.mxu1 }
 0x307   :  { %10678 = vst.msk [vmem:[%s14258_s3 + $0x8c] sm:$0xf] %vm10642_vm5, %v8510_v32  ;;  %v8586_v1 = vpop.f32.mrf.mxu0 }
 0x308   :  { %10679 = vst.msk [vmem:[%s14258_s3 + $0x90] sm:$0xf] %vm10642_vm5, %v8586_v1  ;;  %v11722_v9 = vpop.f32.mrf.mxu1 }
 0x309   :  { %v11727_v51 = vpop.f32.mrf.mxu0 }
 0x30a   :  { %v8662_v31 = vpop.f32.mrf.mxu1 }
 0x30b   :  { %10680 = vst.msk [vmem:[%s14258_s3 + $0x94] sm:$0xf] %vm10642_vm5, %v8662_v31  ;;  %v8738_v15 = vpop.f32.mrf.mxu0 }
 0x30c   :  { %10681 = vst.msk [vmem:[%s14258_s3 + $0x98] sm:$0xf] %vm10642_vm5, %v8738_v15  ;;  %v11732_v28 = vpop.f32.mrf.mxu1 }
 0x30d   :  { %v11737_v21 = vpop.f32.mrf.mxu0 }
 0x30e   :  { %v8814_v30 = vpop.f32.mrf.mxu1 }
 0x30f   :  { %10682 = vst.msk [vmem:[%s14258_s3 + $0x9c] sm:$0xf] %vm10642_vm5, %v8814_v30  ;;  %v8890_v46 = vpop.f32.mrf.mxu0 }
 0x310   :  { %10683 = vst.msk [vmem:[%s14258_s3 + $0xa0] sm:$0xf] %vm10642_vm5, %v8890_v46  ;;  %v11742_v53 = vpop.f32.mrf.mxu1 }
 0x311   :  { %v11747_v61 = vpop.f32.mrf.mxu0 }
 0x312   :  { %v8966_v44 = vpop.f32.mrf.mxu1 }
 0x313   :  { %10684 = vst.msk [vmem:[%s14258_s3 + $0xa4] sm:$0xf] %vm10642_vm5, %v8966_v44  ;;  %v9042_v57 = vpop.f32.mrf.mxu0 }
 0x314   :  { %10685 = vst.msk [vmem:[%s14258_s3 + $0xa8] sm:$0xf] %vm10642_vm5, %v9042_v57  ;;  %v11752_v47 = vpop.f32.mrf.mxu1 }
 0x315   :  { %v11757_v11 = vpop.f32.mrf.mxu0 }
 0x316   :  { %v9118_v38 = vpop.f32.mrf.mxu1 }
 0x317   :  { %10686 = vst.msk [vmem:[%s14258_s3 + $0xac] sm:$0xf] %vm10642_vm5, %v9118_v38  ;;  %v9194_v27 = vpop.f32.mrf.mxu0 }
 0x318   :  { %10687 = vst.msk [vmem:[%s14258_s3 + $0xb0] sm:$0xf] %vm10642_vm5, %v9194_v27  ;;  %v11762_v7 = vpop.f32.mrf.mxu1 }
 0x319   :  { %v11767_v13 = vpop.f32.mrf.mxu0 }
 0x31a   :  { %v9270_v10 = vpop.f32.mrf.mxu1 }
 0x31b   :  { %10688 = vst.msk [vmem:[%s14258_s3 + $0xb4] sm:$0xf] %vm10642_vm5, %v9270_v10  ;;  %v9346_v59 = vpop.f32.mrf.mxu0 }
 0x31c   :  { %10689 = vst.msk [vmem:[%s14258_s3 + $0xb8] sm:$0xf] %vm10642_vm5, %v9346_v59  ;;  %v11772_v60 = vpop.f32.mrf.mxu1 }
 0x31d   :  { %v11777_v37 = vpop.f32.mrf.mxu0 }
 0x31e   :  { %v9422_v25 = vpop.f32.mrf.mxu1 }
 0x31f   :  { %10690 = vst.msk [vmem:[%s14258_s3 + $0xbc] sm:$0xf] %vm10642_vm5, %v9422_v25  ;;  %v9498_v63 = vpop.f32.mrf.mxu0 }
 0x320   :  { %10691 = vst.msk [vmem:[%s14258_s3 + $0xc0] sm:$0xf] %vm10642_vm5, %v9498_v63  ;;  %v11782_v48 = vpop.f32.mrf.mxu1 }
 0x321   :  { %v11787_v50 = vpop.f32.mrf.mxu0 }
 0x322   :  { %v9574_v42 = vpop.f32.mrf.mxu1 }
 0x323   :  { %10692 = vst.msk [vmem:[%s14258_s3 + $0xc4] sm:$0xf] %vm10642_vm5, %v9574_v42  ;;  %v9650_v49 = vpop.f32.mrf.mxu0 }
 0x324   :  { %10693 = vst.msk [vmem:[%s14258_s3 + $0xc8] sm:$0xf] %vm10642_vm5, %v9650_v49  ;;  %v11792_v29 = vpop.f32.mrf.mxu1 }
 0x325   :  { %v11797_v17 = vpop.f32.mrf.mxu0 }
 0x326   :  { %v9726_v36 = vpop.f32.mrf.mxu1 }
 0x327   :  { %10694 = vst.msk [vmem:[%s14258_s3 + $0xcc] sm:$0xf] %vm10642_vm5, %v9726_v36  ;;  %v9802_v19 = vpop.f32.mrf.mxu0 }
 0x328   :  { %10695 = vst.msk [vmem:[%s14258_s3 + $0xd0] sm:$0xf] %vm10642_vm5, %v9802_v19  ;;  %v11802_v43 = vpop.f32.mrf.mxu1 }
 0x329   :  { %v11807_v56 = vpop.f32.mrf.mxu0 }
 0x32a   :  { %v9878_v23 = vpop.f32.mrf.mxu1 }
 0x32b   :  { %10696 = vst.msk [vmem:[%s14258_s3 + $0xd4] sm:$0xf] %vm10642_vm5, %v9878_v23  ;;  %v9954_v62 = vpop.f32.mrf.mxu0 }
 0x32c   :  { %10697 = vst.msk [vmem:[%s14258_s3 + $0xd8] sm:$0xf] %vm10642_vm5, %v9954_v62  ;;  %v11812_v22 = vpop.f32.mrf.mxu1 }
 0x32d   :  { %v11817_v2 = vpop.f32.mrf.mxu0 }
 0x32e   :  { %v10030_v35 = vpop.f32.mrf.mxu1 }
 0x32f   :  { %10698 = vst.msk [vmem:[%s14258_s3 + $0xdc] sm:$0xf] %vm10642_vm5, %v10030_v35  ;;  %v10106_v26 = vpop.f32.mrf.mxu0 }
 0x330   :  { %10699 = vst.msk [vmem:[%s14258_s3 + $0xe0] sm:$0xf] %vm10642_vm5, %v10106_v26  ;;  %v11822_v39 = vpop.f32.mrf.mxu1 }
 0x331   :  { %v11827_v24 = vpop.f32.mrf.mxu0 }
 0x332   :  { %v10182_v8 = vpop.f32.mrf.mxu1 }
 0x333   :  { %10700 = vst.msk [vmem:[%s14258_s3 + $0xe4] sm:$0xf] %vm10642_vm5, %v10182_v8  ;;  %v10258_v54 = vpop.f32.mrf.mxu0 }
 0x334   :  { %10701 = vst.msk [vmem:[%s14258_s3 + $0xe8] sm:$0xf] %vm10642_vm5, %v10258_v54  ;;  %v11832_v16 = vpop.f32.mrf.mxu1 }
 0x335   :  { %v11837_v40 = vpop.f32.mrf.mxu0 }
 0x336   :  { %v10334_v58 = vpop.f32.mrf.mxu1 }
 0x337   :  { %10702 = vst.msk [vmem:[%s14258_s3 + $0xec] sm:$0xf] %vm10642_vm5, %v10334_v58  ;;  %v10410_v3 = vpop.f32.mrf.mxu0 }
 0x338   :  { %10703 = vst.msk [vmem:[%s14258_s3 + $0xf0] sm:$0xf] %vm10642_vm5, %v10410_v3  ;;  %v11842_v18 = vpop.f32.mrf.mxu1 }
 0x339   :  { %v11847_v33 = vpop.f32.mrf.mxu0 }
 0x33a   :  { %v10486_v6 = vpop.f32.mrf.mxu1 }
 0x33b   :  { %10704 = vst.msk [vmem:[%s14258_s3 + $0xf4] sm:$0xf] %vm10642_vm5, %v10486_v6  ;;  %v10562_v45 = vpop.f32.mrf.mxu0 }
 0x33c   :  { %10705 = vst.msk [vmem:[%s14258_s3 + $0xf8] sm:$0xf] %vm10642_vm5, %v10562_v45  ;;  %v11852_v41 = vpop.f32.mrf.mxu1 }
 0x33d   :  { %v11857_v52 = vpop.f32.mrf.mxu0 }
 0x33e   :  { %v10638_v12 = vpop.f32.mrf.mxu1 }
 0x33f   :  { %10706 = vst.msk [vmem:[%s14258_s3 + $0xfc] sm:$0xf] %vm10642_vm5, %v10638_v12 }
 0x340   :  { %v11862_v34 = vpop.f32.mrf.mxu1 }

</bundles_post_ra>
